<compile_context>
chip_gen: v7x
topology: tpu7x:2x2x1
jax: 0.10.0
libtpu: 0.0.40
codegen_flags: <defaults>
</compile_context>

<pallas_src>
import jax
import jax.numpy as jnp
from jax.experimental import pallas as pl
from jax.experimental.pallas import tpu as pltpu

C_STEM, C_FEAT, C_SIDE, C_EXIT = 32, 64, 128, 2


# ---------------------------------------------------------------------------
# In-kernel building blocks
# ---------------------------------------------------------------------------

def _conv3x3_relu(pad_ref, w_ref, b_ref, x=None):
    """3x3 conv (padding=1) + bias + ReLU as ONE im2col MXU matmul.

    pad_ref : (B, H+2, W+2, Cin) f32 VMEM scratch.  If `x` is given it is
              written into the interior; otherwise the caller already filled
              it.  Only the 1-pixel halo ring is zeroed here (the interior is
              always fully overwritten every grid step, so no full-buffer zero).
    w_ref   : (9*Cin, Cout) bf16 weights, tap-major layout.
    b_ref   : (1, Cout) f32 bias.
    returns : (B*H*W, Cout) f32 (post-ReLU), rows ordered (b, h, w).
    """
    B, Hp, Wp, Cin = pad_ref.shape
    H, W = Hp - 2, Wp - 2
    if x is not None:
        pad_ref[:, 1:H + 1, 1:W + 1, :] = x
    zrow = jnp.zeros((B, 1, Wp, Cin), jnp.float32)
    pad_ref[:, 0:1, :, :] = zrow
    pad_ref[:, H + 1:H + 2, :, :] = zrow
    zcol = jnp.zeros((B, Hp, 1, Cin), jnp.float32)
    pad_ref[:, :, 0:1, :] = zcol
    pad_ref[:, :, W + 1:W + 2, :] = zcol
    # im2col: 9 static tap slices concatenated along lanes -> (B*H*W, 9*Cin).
    taps = [pad_ref[:, dy:dy + H, dx:dx + W, :].reshape(B * H * W, Cin)
            for dy in range(3) for dx in range(3)]
    col = jnp.concatenate(taps, axis=-1).astype(jnp.bfloat16)
    acc = jnp.dot(col, w_ref[...], preferred_element_type=jnp.float32) + b_ref[...]
    return jnp.maximum(acc, 0.0)


def _avg_pool2x2(x_flat, B, H, W, C):
    """2x2 average pool on a row-major (B*H*W, C) activation -> (B, Hh, Wh, C).

    Pure f32 VPU adds on reshaped row pairs (channel/lane axis untouched);
    replaces the old dense (Hh*Wh, H*W) pooling-matrix matmul.
    """
    Hh, Wh = H // 2, W // 2
    x = x_flat.reshape(B * Hh, 2, W, C)
    x = x[:, 0] + x[:, 1]                      # sum adjacent rows along H
    x = x.reshape(B * Hh * Wh, 2, C)
    x = x[:, 0, :] + x[:, 1, :]                # sum adjacent rows along W
    return 0.25 * x.reshape(B, Hh, Wh, C)


# ---------------------------------------------------------------------------
# Fused kernel: backbone(pos+anchor) -> vec_pos -> cosine -> classifier -> exit
# ---------------------------------------------------------------------------

def _fused_kernel(pos_ref, anc_ref, mlow_ref,
                  w1_ref, b1_ref, w2_ref, b2_ref,
                  ws_ref, bs_ref, w6_ref, b6_ref, weT_ref,
                  feat_ref, vec_ref, seg_ref, exit_ref,
                  pad1, pad2, pad3, pad6):
    _, H, W, _ = pos_ref.shape
    Hh, Wh = H // 2, W // 2
    HWh = Hh * Wh

    # ---- shared backbone on the stacked (pos, anchor) pair: one im2col matmul
    #      per stage with M doubled (better MXU fill, single weight fetch).
    pad1[0:1, 1:H + 1, 1:W + 1, :] = pos_ref[...]
    pad1[1:2, 1:H + 1, 1:W + 1, :] = anc_ref[...]
    h1 = _conv3x3_relu(pad1, w1_ref, b1_ref)                      # (2*H*W, 32)
    pooled = _avg_pool2x2(h1, 2, H, W, C_STEM)                    # (2, Hh, Wh, 32)
    feat2 = _conv3x3_relu(pad2, w2_ref, b2_ref, x=pooled)         # (2*HWh, 64)
    feat_pos = feat2[:HWh, :]                                     # support feats
    feat_anc = feat2[HWh:, :]                                     # query feats

    # ---- support branch: masked global pool.  mlow is the mask pulled back
    #      through the bilinear-upsample operator AND pre-scaled by
    #      1/sum(pos_mask) on the host, so this dot IS vec_pos.
    vec = jnp.dot(mlow_ref[0], feat_pos,
                  preferred_element_type=jnp.float32)             # (1, 64)
    vec_ref[...] = vec.reshape(1, 1, C_FEAT)

    # ---- query branch ----
    feat_ref[...] = feat_anc.reshape(1, Hh, Wh, C_FEAT)

    # side features: conv3x3(64 -> 128) + ReLU (VMEM only).
    side = _conv3x3_relu(pad3, ws_ref, bs_ref,
                         x=feat_anc.reshape(1, Hh, Wh, C_FEAT))   # (HWh, 128)

    # channel-wise cosine similarity (VPU multiply + lane reduction; no MXU).
    dotv = jnp.sum(feat_anc * vec, axis=-1, keepdims=True)        # (HWh, 1)
    fsq = jnp.sum(feat_anc * feat_anc, axis=-1, keepdims=True)    # (HWh, 1)
    vnorm = jnp.sqrt(jnp.sum(vec * vec))
    seg = dotv / jnp.maximum(jnp.sqrt(fsq) * vnorm, 1e-8)         # (HWh, 1)
    seg_ref[...] = seg.reshape(1, HWh, 1)

    # classifier_6 on exit_feat_in = side * tmp_seg (fused, VMEM only).
    h6 = _conv3x3_relu(pad6, w6_ref, b6_ref,
                       x=(side * seg).reshape(1, Hh, Wh, C_SIDE)) # (HWh, 128)

    # exit 1x1 conv, emitted transposed: (C_EXIT, HWh) so the HBM store is
    # lane-dense and only the 2 real channels are written.  The padding=1
    # border (pure bias) and the bias add are applied on the host.
    exT = jax.lax.dot_general(weT_ref[...], h6.astype(jnp.bfloat16),
                              dimension_numbers=(((1,), (1,)), ((), ())),
                              preferred_element_type=jnp.float32)  # (2, HWh)
    exit_ref[...] = exT.reshape(1, C_EXIT, HWh)


# ---------------------------------------------------------------------------
# pallas_call wrapper
# ---------------------------------------------------------------------------

def _fused_forward(pos, anchor, m_low, w1, b1, w2, b2, ws, bs, w6, b6, weT):
    N, H, W, _ = pos.shape
    Hh, Wh = H // 2, W // 2
    HWh = Hh * Wh

    img_spec = pl.BlockSpec((1, H, W, 3), lambda n: (n, 0, 0, 0))

    def const2d(shape):
        return pl.BlockSpec(shape, lambda n: (0, 0))

    return pl.pallas_call(
        _fused_kernel,
        out_shape=(
            jax.ShapeDtypeStruct((N, Hh, Wh, C_FEAT), jnp.float32),   # outB (NHWC)
            jax.ShapeDtypeStruct((N, 1, C_FEAT), jnp.float32),        # vec_pos
            jax.ShapeDtypeStruct((N, HWh, 1), jnp.float32),           # tmp_seg
            jax.ShapeDtypeStruct((N, C_EXIT, HWh), jnp.float32),      # exit interior
        ),
        grid=(N,),
        in_specs=[
            img_spec,                                                  # pos
            pl.BlockSpec((1, H, W, 3), lambda n: (n, 0, 0, 0)),        # anchor
            pl.BlockSpec((1, 1, HWh), lambda n: (n, 0, 0)),            # m_low (scaled)
            const2d((9 * 3, C_STEM)), const2d((1, C_STEM)),            # w1, b1
            const2d((9 * C_STEM, C_FEAT)), const2d((1, C_FEAT)),       # w2, b2
            const2d((9 * C_FEAT, C_SIDE)), const2d((1, C_SIDE)),       # ws, bs
            const2d((9 * C_SIDE, C_SIDE)), const2d((1, C_SIDE)),       # w6, b6
            const2d((C_EXIT, C_SIDE)),                                 # weT
        ],
        out_specs=(
            pl.BlockSpec((1, Hh, Wh, C_FEAT), lambda n: (n, 0, 0, 0)),
            pl.BlockSpec((1, 1, C_FEAT), lambda n: (n, 0, 0)),
            pl.BlockSpec((1, HWh, 1), lambda n: (n, 0, 0)),
            pl.BlockSpec((1, C_EXIT, HWh), lambda n: (n, 0, 0)),
        ),
        scratch_shapes=[
            pltpu.VMEM((2, H + 2, W + 2, 3), jnp.float32),             # pad1 (both imgs)
            pltpu.VMEM((2, Hh + 2, Wh + 2, C_STEM), jnp.float32),      # pad2 (both imgs)
            pltpu.VMEM((1, Hh + 2, Wh + 2, C_FEAT), jnp.float32),      # pad3 (anchor)
            pltpu.VMEM((1, Hh + 2, Wh + 2, C_SIDE), jnp.float32),      # pad6 (anchor)
        ],
        compiler_params=pltpu.CompilerParams(
            dimension_semantics=("parallel",),
            vmem_limit_bytes=48 * 1024 * 1024,
        ),
    )(pos, anchor, m_low, w1, b1, w2, b2, ws, bs, w6, b6, weT)


# ---------------------------------------------------------------------------
# Host-side helpers, parameters, forward
# ---------------------------------------------------------------------------

def _resize_weight_matrix(dst, src):
    """M (dst, src) such that bilinear-resize along that axis == M @ x."""
    return jax.image.resize(jnp.eye(src, dtype=jnp.float32), (dst, src),
                            method="bilinear")


def init_params(key):
    ks = jax.random.split(key, 10)

    def rnd(k, shape, scale=0.05):
        return (scale * jax.random.normal(k, shape)).astype(jnp.float32)

    return {
        # synthetic netB (stands in for VGG16+decoder)
        "w1": rnd(ks[0], (3, 3, 3, C_STEM)),          "b1": rnd(ks[1], (C_STEM,)),
        "w2": rnd(ks[2], (3, 3, C_STEM, C_FEAT)),     "b2": rnd(ks[3], (C_FEAT,)),
        "w_side": rnd(ks[4], (3, 3, C_FEAT, C_SIDE)), "b_side": rnd(ks[5], (C_SIDE,)),
        # classifier_6: Conv2d(128,128,3,padding=1) + ReLU
        "w6": rnd(ks[6], (3, 3, C_SIDE, C_SIDE)),     "b6": rnd(ks[7], (C_SIDE,)),
        # exit_layer: Conv2d(128,2,kernel_size=1,padding=1)
        "w_exit": rnd(ks[8], (C_SIDE, C_EXIT)),       "b_exit": rnd(ks[9], (C_EXIT,)),
    }


@jax.jit
def one_model_forward(params, anchor_img, pos_img, neg_img, pos_mask):
    del neg_img  # unused in the reference forward()

    N, _, H, W = anchor_img.shape
    Hh, Wh = H // 2, W // 2

    # NCHW -> NHWC
    anchor = jnp.transpose(anchor_img, (0, 2, 3, 1)).astype(jnp.float32)
    pos = jnp.transpose(pos_img, (0, 2, 3, 1)).astype(jnp.float32)

    # im2col weight layout, bf16 for the MXU; biases stay f32.
    w1 = params["w1"].reshape(9 * 3, C_STEM).astype(jnp.bfloat16)
    b1 = params["b1"].reshape(1, C_STEM)
    w2 = params["w2"].reshape(9 * C_STEM, C_FEAT).astype(jnp.bfloat16)
    b2 = params["b2"].reshape(1, C_FEAT)
    ws = params["w_side"].reshape(9 * C_FEAT, C_SIDE).astype(jnp.bfloat16)
    bs = params["b_side"].reshape(1, C_SIDE)
    w6 = params["w6"].reshape(9 * C_SIDE, C_SIDE).astype(jnp.bfloat16)
    b6 = params["b6"].reshape(1, C_SIDE)
    weT = params["w_exit"].T.astype(jnp.bfloat16)                    # (2, 128)

    # F.upsample(outA_pos, mask size, 'bilinear') followed by a masked sum is
    # linear, so pull the mask back through the transpose of the resize
    # operator and pre-scale by 1/torch.sum(pos_mask) (whole-batch sum, like
    # the reference) so the kernel's dot directly yields vec_pos.
    mask_h, mask_w = pos_mask.shape[2], pos_mask.shape[3]
    A = _resize_weight_matrix(mask_h, Hh)                            # (mask_h, Hh)
    Bm = _resize_weight_matrix(mask_w, Wh)                           # (mask_w, Wh)
    mask2d = pos_mask[:, 0].astype(jnp.float32)                      # (N, mask_h, mask_w)
    m_low = jnp.einsum("hi,nhw,wj->nij", A, mask2d, Bm)              # (N, Hh, Wh)
    m_low = (m_low / jnp.sum(pos_mask.astype(jnp.float32))
             ).reshape(N, 1, Hh * Wh)

    feat, vec, seg, exT = _fused_forward(
        pos, anchor, m_low, w1, b1, w2, b2, ws, bs, w6, b6, weT)

    outB = jnp.transpose(feat, (0, 3, 1, 2))                         # (N,64,Hh,Wh)
    tmp_seg = seg.reshape(N, Hh, Wh)
    vec_pos_4d = vec[:, 0, :, None, None]                            # (N,64,1,1)
    # exit_layer is a 1x1 conv with padding=1 -> its border ring is pure bias;
    # assemble it on the host from the lane-dense interior the kernel wrote.
    outB_side = (jnp.pad(exT.reshape(N, C_EXIT, Hh, Wh),
                         ((0, 0), (0, 0), (1, 1), (1, 1)))
                 + params["b_exit"][None, :, None, None])            # (N,2,Hh+2,Wh+2)
    return outB, tmp_seg, vec_pos_4d, outB_side


# ---------------------------------------------------------------------------
# Main
# ---------------------------------------------------------------------------

if __name__ == "__main__":
    key = jax.random.PRNGKey(0)
    k1, k2, k3, k4, k5 = jax.random.split(key, 5)

    N, H, W = 2, 16, 16
    anchor_img = jax.random.normal(k1, (N, 3, H, W), jnp.float32)
    pos_img = jax.random.normal(k2, (N, 3, H, W), jnp.float32)
    neg_img = jax.random.normal(k3, (N, 3, H, W), jnp.float32)
    pos_mask = (jax.random.uniform(k4, (N, 1, H, W)) > 0.5).astype(jnp.float32)

    params = init_params(k5)

    outB, tmp_seg, vec_pos, outB_side = one_model_forward(
        params, anchor_img, pos_img, neg_img, pos_mask)
    jax.block_until_ready((outB, tmp_seg, vec_pos, outB_side))

    assert outB.shape == (N, C_FEAT, H // 2, W // 2)
    assert tmp_seg.shape == (N, H // 2, W // 2)
    assert vec_pos.shape == (N, C_FEAT, 1, 1)
    assert outB_side.shape == (N, C_EXIT, H // 2 + 2, W // 2 + 2)
    assert bool(jnp.all(jnp.isfinite(outB))) and bool(jnp.all(jnp.isfinite(outB_side)))
    assert bool(jnp.all(jnp.isfinite(tmp_seg))) and bool(jnp.all(jnp.isfinite(vec_pos)))

    print("KERNEL_OK")
</pallas_src>

<mosaic_0001>
module attributes {stable_mosaic.version = 11 : i64} {
  func.func @_fused_kernel(%arg0: i32, %arg1: memref<1x16x16x3xf32, #tpu.memory_space<vmem>>, %arg2: memref<1x16x16x3xf32, #tpu.memory_space<vmem>>, %arg3: memref<1x1x64xf32, #tpu.memory_space<vmem>>, %arg4: memref<27x32xbf16, #tpu.memory_space<vmem>>, %arg5: memref<1x32xf32, #tpu.memory_space<vmem>>, %arg6: memref<288x64xbf16, #tpu.memory_space<vmem>>, %arg7: memref<1x64xf32, #tpu.memory_space<vmem>>, %arg8: memref<576x128xbf16, #tpu.memory_space<vmem>>, %arg9: memref<1x128xf32, #tpu.memory_space<vmem>>, %arg10: memref<1152x128xbf16, #tpu.memory_space<vmem>>, %arg11: memref<1x128xf32, #tpu.memory_space<vmem>>, %arg12: memref<2x128xbf16, #tpu.memory_space<vmem>>, %arg13: memref<1x8x8x64xf32, #tpu.memory_space<vmem>>, %arg14: memref<1x1x64xf32, #tpu.memory_space<vmem>>, %arg15: memref<1x64x1xf32, #tpu.memory_space<vmem>>, %arg16: memref<1x2x64xf32, #tpu.memory_space<vmem>>, %arg17: memref<2x18x18x3xf32, #tpu.memory_space<vmem>>, %arg18: memref<2x10x10x32xf32, #tpu.memory_space<vmem>>, %arg19: memref<1x10x10x64xf32, #tpu.memory_space<vmem>>, %arg20: memref<1x10x10x128xf32, #tpu.memory_space<vmem>>) attributes {dimension_semantics = [#tpu.dimension_semantics<parallel>], iteration_bounds = array<i64: 2>, scalar_prefetch = 0 : i64, scratch_operands = 4 : i64, tpu.core_type = #tpu.core_type<tc>, window_params = [{transform_indices = @transform_0, window_bounds = array<i64: 1, 16, 16, 3>}, {transform_indices = @transform_1, window_bounds = array<i64: 1, 16, 16, 3>}, {transform_indices = @transform_2, window_bounds = array<i64: 1, 1, 64>}, {pipeline_mode = #tpu.pipeline_mode<synchronous>, transform_indices = @transform_3, window_bounds = array<i64: 27, 32>}, {pipeline_mode = #tpu.pipeline_mode<synchronous>, transform_indices = @transform_4, window_bounds = array<i64: 1, 32>}, {pipeline_mode = #tpu.pipeline_mode<synchronous>, transform_indices = @transform_5, window_bounds = array<i64: 288, 64>}, {pipeline_mode = #tpu.pipeline_mode<synchronous>, transform_indices = @transform_6, window_bounds = array<i64: 1, 64>}, {pipeline_mode = #tpu.pipeline_mode<synchronous>, transform_indices = @transform_7, window_bounds = array<i64: 576, 128>}, {pipeline_mode = #tpu.pipeline_mode<synchronous>, transform_indices = @transform_8, window_bounds = array<i64: 1, 128>}, {pipeline_mode = #tpu.pipeline_mode<synchronous>, transform_indices = @transform_9, window_bounds = array<i64: 1152, 128>}, {pipeline_mode = #tpu.pipeline_mode<synchronous>, transform_indices = @transform_10, window_bounds = array<i64: 1, 128>}, {pipeline_mode = #tpu.pipeline_mode<synchronous>, transform_indices = @transform_11, window_bounds = array<i64: 2, 128>}, {transform_indices = @transform_12, window_bounds = array<i64: 1, 8, 8, 64>}, {transform_indices = @transform_13, window_bounds = array<i64: 1, 1, 64>}, {transform_indices = @transform_14, window_bounds = array<i64: 1, 64, 1>}, {transform_indices = @transform_15, window_bounds = array<i64: 1, 2, 64>}]} {
    %c0 = arith.constant 0 : index
    %c0_0 = arith.constant 0 : index
    %c0_1 = arith.constant 0 : index
    %c0_2 = arith.constant 0 : index
    %0 = vector.load %arg1[%c0, %c0_0, %c0_1, %c0_2] : memref<1x16x16x3xf32, #tpu.memory_space<vmem>>, vector<1x16x16x3xf32>
    %c0_3 = arith.constant 0 : index
    %c1 = arith.constant 1 : index
    %c1_4 = arith.constant 1 : index
    %c0_5 = arith.constant 0 : index
    %1 = vector.load %arg17[%c0_3, %c1, %c1_4, %c0_5] : memref<2x18x18x3xf32, #tpu.memory_space<vmem>>, vector<1x16x16x3xf32>
    tpu.vector_store %arg17[%c0_3, %c1, %c1_4, %c0_5], %0 {strides = array<i32>} : memref<2x18x18x3xf32, #tpu.memory_space<vmem>>, vector<1x16x16x3xf32>,
    %c0_6 = arith.constant 0 : index
    %c0_7 = arith.constant 0 : index
    %c0_8 = arith.constant 0 : index
    %c0_9 = arith.constant 0 : index
    %2 = vector.load %arg2[%c0_6, %c0_7, %c0_8, %c0_9] : memref<1x16x16x3xf32, #tpu.memory_space<vmem>>, vector<1x16x16x3xf32>
    %c1_10 = arith.constant 1 : index
    %c1_11 = arith.constant 1 : index
    %c1_12 = arith.constant 1 : index
    %c0_13 = arith.constant 0 : index
    %3 = vector.load %arg17[%c1_10, %c1_11, %c1_12, %c0_13] : memref<2x18x18x3xf32, #tpu.memory_space<vmem>>, vector<1x16x16x3xf32>
    tpu.vector_store %arg17[%c1_10, %c1_11, %c1_12, %c0_13], %2 {strides = array<i32>} : memref<2x18x18x3xf32, #tpu.memory_space<vmem>>, vector<1x16x16x3xf32>,
    %cst = arith.constant 0.000000e+00 : f32
    %4 = vector.broadcast %cst : f32 to vector<2x1x18x3xf32>
    %c0_14 = arith.constant 0 : index
    %c0_15 = arith.constant 0 : index
    %c0_16 = arith.constant 0 : index
    %c0_17 = arith.constant 0 : index
    %5 = vector.load %arg17[%c0_14, %c0_15, %c0_16, %c0_17] : memref<2x18x18x3xf32, #tpu.memory_space<vmem>>, vector<2x1x18x3xf32>
    tpu.vector_store %arg17[%c0_14, %c0_15, %c0_16, %c0_17], %4 {strides = array<i32>} : memref<2x18x18x3xf32, #tpu.memory_space<vmem>>, vector<2x1x18x3xf32>,
    %c0_18 = arith.constant 0 : index
    %c17 = arith.constant 17 : index
    %c0_19 = arith.constant 0 : index
    %c0_20 = arith.constant 0 : index
    %6 = vector.load %arg17[%c0_18, %c17, %c0_19, %c0_20] : memref<2x18x18x3xf32, #tpu.memory_space<vmem>>, vector<2x1x18x3xf32>
    tpu.vector_store %arg17[%c0_18, %c17, %c0_19, %c0_20], %4 {strides = array<i32>} : memref<2x18x18x3xf32, #tpu.memory_space<vmem>>, vector<2x1x18x3xf32>,
    %cst_21 = arith.constant 0.000000e+00 : f32
    %7 = vector.broadcast %cst_21 : f32 to vector<2x18x1x3xf32>
    %c0_22 = arith.constant 0 : index
    %c0_23 = arith.constant 0 : index
    %c0_24 = arith.constant 0 : index
    %c0_25 = arith.constant 0 : index
    %8 = vector.load %arg17[%c0_22, %c0_23, %c0_24, %c0_25] : memref<2x18x18x3xf32, #tpu.memory_space<vmem>>, vector<2x18x1x3xf32>
    tpu.vector_store %arg17[%c0_22, %c0_23, %c0_24, %c0_25], %7 {strides = array<i32>} : memref<2x18x18x3xf32, #tpu.memory_space<vmem>>, vector<2x18x1x3xf32>,
    %c0_26 = arith.constant 0 : index
    %c0_27 = arith.constant 0 : index
    %c17_28 = arith.constant 17 : index
    %c0_29 = arith.constant 0 : index
    %9 = vector.load %arg17[%c0_26, %c0_27, %c17_28, %c0_29] : memref<2x18x18x3xf32, #tpu.memory_space<vmem>>, vector<2x18x1x3xf32>
    tpu.vector_store %arg17[%c0_26, %c0_27, %c17_28, %c0_29], %7 {strides = array<i32>} : memref<2x18x18x3xf32, #tpu.memory_space<vmem>>, vector<2x18x1x3xf32>,
    %c0_30 = arith.constant 0 : index
    %c0_31 = arith.constant 0 : index
    %c0_32 = arith.constant 0 : index
    %c0_33 = arith.constant 0 : index
    %10 = vector.load %arg17[%c0_30, %c0_31, %c0_32, %c0_33] : memref<2x18x18x3xf32, #tpu.memory_space<vmem>>, vector<2x16x16x3xf32>
    %11 = vector.shape_cast %10 : vector<2x16x16x3xf32> to vector<512x3xf32>
    %c0_34 = arith.constant 0 : index
    %c0_35 = arith.constant 0 : index
    %c1_36 = arith.constant 1 : index
    %c0_37 = arith.constant 0 : index
    %12 = vector.load %arg17[%c0_34, %c0_35, %c1_36, %c0_37] : memref<2x18x18x3xf32, #tpu.memory_space<vmem>>, vector<2x16x16x3xf32>
    %13 = vector.shape_cast %12 : vector<2x16x16x3xf32> to vector<512x3xf32>
    %c0_38 = arith.constant 0 : index
    %c0_39 = arith.constant 0 : index
    %c2 = arith.constant 2 : index
    %c0_40 = arith.constant 0 : index
    %14 = vector.load %arg17[%c0_38, %c0_39, %c2, %c0_40] : memref<2x18x18x3xf32, #tpu.memory_space<vmem>>, vector<2x16x16x3xf32>
    %15 = vector.shape_cast %14 : vector<2x16x16x3xf32> to vector<512x3xf32>
    %c0_41 = arith.constant 0 : index
    %c1_42 = arith.constant 1 : index
    %c0_43 = arith.constant 0 : index
    %c0_44 = arith.constant 0 : index
    %16 = vector.load %arg17[%c0_41, %c1_42, %c0_43, %c0_44] : memref<2x18x18x3xf32, #tpu.memory_space<vmem>>, vector<2x16x16x3xf32>
    %17 = vector.shape_cast %16 : vector<2x16x16x3xf32> to vector<512x3xf32>
    %c0_45 = arith.constant 0 : index
    %c1_46 = arith.constant 1 : index
    %c1_47 = arith.constant 1 : index
    %c0_48 = arith.constant 0 : index
    %18 = vector.load %arg17[%c0_45, %c1_46, %c1_47, %c0_48] : memref<2x18x18x3xf32, #tpu.memory_space<vmem>>, vector<2x16x16x3xf32>
    %19 = vector.shape_cast %18 : vector<2x16x16x3xf32> to vector<512x3xf32>
    %c0_49 = arith.constant 0 : index
    %c1_50 = arith.constant 1 : index
    %c2_51 = arith.constant 2 : index
    %c0_52 = arith.constant 0 : index
    %20 = vector.load %arg17[%c0_49, %c1_50, %c2_51, %c0_52] : memref<2x18x18x3xf32, #tpu.memory_space<vmem>>, vector<2x16x16x3xf32>
    %21 = vector.shape_cast %20 : vector<2x16x16x3xf32> to vector<512x3xf32>
    %c0_53 = arith.constant 0 : index
    %c2_54 = arith.constant 2 : index
    %c0_55 = arith.constant 0 : index
    %c0_56 = arith.constant 0 : index
    %22 = vector.load %arg17[%c0_53, %c2_54, %c0_55, %c0_56] : memref<2x18x18x3xf32, #tpu.memory_space<vmem>>, vector<2x16x16x3xf32>
    %23 = vector.shape_cast %22 : vector<2x16x16x3xf32> to vector<512x3xf32>
    %c0_57 = arith.constant 0 : index
    %c2_58 = arith.constant 2 : index
    %c1_59 = arith.constant 1 : index
    %c0_60 = arith.constant 0 : index
    %24 = vector.load %arg17[%c0_57, %c2_58, %c1_59, %c0_60] : memref<2x18x18x3xf32, #tpu.memory_space<vmem>>, vector<2x16x16x3xf32>
    %25 = vector.shape_cast %24 : vector<2x16x16x3xf32> to vector<512x3xf32>
    %c0_61 = arith.constant 0 : index
    %c2_62 = arith.constant 2 : index
    %c2_63 = arith.constant 2 : index
    %c0_64 = arith.constant 0 : index
    %26 = vector.load %arg17[%c0_61, %c2_62, %c2_63, %c0_64] : memref<2x18x18x3xf32, #tpu.memory_space<vmem>>, vector<2x16x16x3xf32>
    %27 = vector.shape_cast %26 : vector<2x16x16x3xf32> to vector<512x3xf32>
    %28 = tpu.concatenate %11, %13, %15, %17, %19, %21, %23, %25, %27 in 1 : vector<512x3xf32>, vector<512x3xf32>, vector<512x3xf32>, vector<512x3xf32>, vector<512x3xf32>, vector<512x3xf32>, vector<512x3xf32>, vector<512x3xf32>, vector<512x3xf32> -> vector<512x27xf32>
    %29 = arith.truncf %28 : vector<512x27xf32> to vector<512x27xbf16>
    %c0_65 = arith.constant 0 : index
    %c0_66 = arith.constant 0 : index
    %30 = vector.load %arg4[%c0_65, %c0_66] : memref<27x32xbf16, #tpu.memory_space<vmem>>, vector<27x32xbf16>
    %cst_67 = arith.constant dense<0.000000e+00> : vector<512x32xf32>
    %31 = tpu.matmul %29, %30, %cst_67 {dimension_numbers = #tpu.dot_dimension_numbers<[1], [0], [0], [1], [0, 0, 1, 1], [], []>} : vector<512x27xbf16>, vector<27x32xbf16>, vector<512x32xf32> -> vector<512x32xf32>
    %c0_68 = arith.constant 0 : index
    %c0_69 = arith.constant 0 : index
    %32 = vector.load %arg5[%c0_68, %c0_69] : memref<1x32xf32, #tpu.memory_space<vmem>>, vector<1x32xf32>
    %33 = vector.broadcast %32 : vector<1x32xf32> to vector<512x32xf32>
    %34 = arith.addf %31, %33 : vector<512x32xf32>
    %cst_70 = arith.constant 0.000000e+00 : f32
    %35 = vector.broadcast %cst_70 : f32 to vector<512x32xf32>
    %36 = arith.maximumf %34, %35 : vector<512x32xf32>
    %37 = vector.shape_cast %36 : vector<512x32xf32> to vector<16x2x16x32xf32>
    %38 = vector.extract_strided_slice %37 {offsets = [0, 0, 0, 0], sizes = [16, 1, 16, 32], strides = [1, 1, 1, 1]} : vector<16x2x16x32xf32> to vector<16x1x16x32xf32>
    %39 = vector.shape_cast %38 : vector<16x1x16x32xf32> to vector<16x16x32xf32>
    %40 = vector.extract_strided_slice %37 {offsets = [0, 1, 0, 0], sizes = [16, 1, 16, 32], strides = [1, 1, 1, 1]} : vector<16x2x16x32xf32> to vector<16x1x16x32xf32>
    %41 = vector.shape_cast %40 : vector<16x1x16x32xf32> to vector<16x16x32xf32>
    %42 = arith.addf %39, %41 : vector<16x16x32xf32>
    %43 = vector.shape_cast %42 : vector<16x16x32xf32> to vector<128x2x32xf32>
    %44 = vector.extract_strided_slice %43 {offsets = [0, 0, 0], sizes = [128, 1, 32], strides = [1, 1, 1]} : vector<128x2x32xf32> to vector<128x1x32xf32>
    %45 = vector.shape_cast %44 : vector<128x1x32xf32> to vector<128x32xf32>
    %46 = vector.extract_strided_slice %43 {offsets = [0, 1, 0], sizes = [128, 1, 32], strides = [1, 1, 1]} : vector<128x2x32xf32> to vector<128x1x32xf32>
    %47 = vector.shape_cast %46 : vector<128x1x32xf32> to vector<128x32xf32>
    %48 = arith.addf %45, %47 : vector<128x32xf32>
    %49 = vector.shape_cast %48 : vector<128x32xf32> to vector<2x8x8x32xf32>
    %cst_71 = arith.constant 2.500000e-01 : f32
    %50 = vector.broadcast %cst_71 : f32 to vector<2x8x8x32xf32>
    %51 = arith.mulf %50, %49 : vector<2x8x8x32xf32>
    %c0_72 = arith.constant 0 : index
    %c1_73 = arith.constant 1 : index
    %c1_74 = arith.constant 1 : index
    %c0_75 = arith.constant 0 : index
    %52 = vector.load %arg18[%c0_72, %c1_73, %c1_74, %c0_75] : memref<2x10x10x32xf32, #tpu.memory_space<vmem>>, vector<2x8x8x32xf32>
    tpu.vector_store %arg18[%c0_72, %c1_73, %c1_74, %c0_75], %51 {strides = array<i32>} : memref<2x10x10x32xf32, #tpu.memory_space<vmem>>, vector<2x8x8x32xf32>,
    %cst_76 = arith.constant 0.000000e+00 : f32
    %53 = vector.broadcast %cst_76 : f32 to vector<2x1x10x32xf32>
    %c0_77 = arith.constant 0 : index
    %c0_78 = arith.constant 0 : index
    %c0_79 = arith.constant 0 : index
    %c0_80 = arith.constant 0 : index
    %54 = vector.load %arg18[%c0_77, %c0_78, %c0_79, %c0_80] : memref<2x10x10x32xf32, #tpu.memory_space<vmem>>, vector<2x1x10x32xf32>
    tpu.vector_store %arg18[%c0_77, %c0_78, %c0_79, %c0_80], %53 {strides = array<i32>} : memref<2x10x10x32xf32, #tpu.memory_space<vmem>>, vector<2x1x10x32xf32>,
    %c0_81 = arith.constant 0 : index
    %c9 = arith.constant 9 : index
    %c0_82 = arith.constant 0 : index
    %c0_83 = arith.constant 0 : index
    %55 = vector.load %arg18[%c0_81, %c9, %c0_82, %c0_83] : memref<2x10x10x32xf32, #tpu.memory_space<vmem>>, vector<2x1x10x32xf32>
    tpu.vector_store %arg18[%c0_81, %c9, %c0_82, %c0_83], %53 {strides = array<i32>} : memref<2x10x10x32xf32, #tpu.memory_space<vmem>>, vector<2x1x10x32xf32>,
    %cst_84 = arith.constant 0.000000e+00 : f32
    %56 = vector.broadcast %cst_84 : f32 to vector<2x10x1x32xf32>
    %c0_85 = arith.constant 0 : index
    %c0_86 = arith.constant 0 : index
    %c0_87 = arith.constant 0 : index
    %c0_88 = arith.constant 0 : index
    %57 = vector.load %arg18[%c0_85, %c0_86, %c0_87, %c0_88] : memref<2x10x10x32xf32, #tpu.memory_space<vmem>>, vector<2x10x1x32xf32>
    tpu.vector_store %arg18[%c0_85, %c0_86, %c0_87, %c0_88], %56 {strides = array<i32>} : memref<2x10x10x32xf32, #tpu.memory_space<vmem>>, vector<2x10x1x32xf32>,
    %c0_89 = arith.constant 0 : index
    %c0_90 = arith.constant 0 : index
    %c9_91 = arith.constant 9 : index
    %c0_92 = arith.constant 0 : index
    %58 = vector.load %arg18[%c0_89, %c0_90, %c9_91, %c0_92] : memref<2x10x10x32xf32, #tpu.memory_space<vmem>>, vector<2x10x1x32xf32>
    tpu.vector_store %arg18[%c0_89, %c0_90, %c9_91, %c0_92], %56 {strides = array<i32>} : memref<2x10x10x32xf32, #tpu.memory_space<vmem>>, vector<2x10x1x32xf32>,
    %c0_93 = arith.constant 0 : index
    %c0_94 = arith.constant 0 : index
    %c0_95 = arith.constant 0 : index
    %c0_96 = arith.constant 0 : index
    %59 = vector.load %arg18[%c0_93, %c0_94, %c0_95, %c0_96] : memref<2x10x10x32xf32, #tpu.memory_space<vmem>>, vector<2x8x8x32xf32>
    %60 = vector.shape_cast %59 : vector<2x8x8x32xf32> to vector<128x32xf32>
    %c0_97 = arith.constant 0 : index
    %c0_98 = arith.constant 0 : index
    %c1_99 = arith.constant 1 : index
    %c0_100 = arith.constant 0 : index
    %61 = vector.load %arg18[%c0_97, %c0_98, %c1_99, %c0_100] : memref<2x10x10x32xf32, #tpu.memory_space<vmem>>, vector<2x8x8x32xf32>
    %62 = vector.shape_cast %61 : vector<2x8x8x32xf32> to vector<128x32xf32>
    %c0_101 = arith.constant 0 : index
    %c0_102 = arith.constant 0 : index
    %c2_103 = arith.constant 2 : index
    %c0_104 = arith.constant 0 : index
    %63 = vector.load %arg18[%c0_101, %c0_102, %c2_103, %c0_104] : memref<2x10x10x32xf32, #tpu.memory_space<vmem>>, vector<2x8x8x32xf32>
    %64 = vector.shape_cast %63 : vector<2x8x8x32xf32> to vector<128x32xf32>
    %c0_105 = arith.constant 0 : index
    %c1_106 = arith.constant 1 : index
    %c0_107 = arith.constant 0 : index
    %c0_108 = arith.constant 0 : index
    %65 = vector.load %arg18[%c0_105, %c1_106, %c0_107, %c0_108] : memref<2x10x10x32xf32, #tpu.memory_space<vmem>>, vector<2x8x8x32xf32>
    %66 = vector.shape_cast %65 : vector<2x8x8x32xf32> to vector<128x32xf32>
    %c0_109 = arith.constant 0 : index
    %c1_110 = arith.constant 1 : index
    %c1_111 = arith.constant 1 : index
    %c0_112 = arith.constant 0 : index
    %67 = vector.load %arg18[%c0_109, %c1_110, %c1_111, %c0_112] : memref<2x10x10x32xf32, #tpu.memory_space<vmem>>, vector<2x8x8x32xf32>
    %68 = vector.shape_cast %67 : vector<2x8x8x32xf32> to vector<128x32xf32>
    %c0_113 = arith.constant 0 : index
    %c1_114 = arith.constant 1 : index
    %c2_115 = arith.constant 2 : index
    %c0_116 = arith.constant 0 : index
    %69 = vector.load %arg18[%c0_113, %c1_114, %c2_115, %c0_116] : memref<2x10x10x32xf32, #tpu.memory_space<vmem>>, vector<2x8x8x32xf32>
    %70 = vector.shape_cast %69 : vector<2x8x8x32xf32> to vector<128x32xf32>
    %c0_117 = arith.constant 0 : index
    %c2_118 = arith.constant 2 : index
    %c0_119 = arith.constant 0 : index
    %c0_120 = arith.constant 0 : index
    %71 = vector.load %arg18[%c0_117, %c2_118, %c0_119, %c0_120] : memref<2x10x10x32xf32, #tpu.memory_space<vmem>>, vector<2x8x8x32xf32>
    %72 = vector.shape_cast %71 : vector<2x8x8x32xf32> to vector<128x32xf32>
    %c0_121 = arith.constant 0 : index
    %c2_122 = arith.constant 2 : index
    %c1_123 = arith.constant 1 : index
    %c0_124 = arith.constant 0 : index
    %73 = vector.load %arg18[%c0_121, %c2_122, %c1_123, %c0_124] : memref<2x10x10x32xf32, #tpu.memory_space<vmem>>, vector<2x8x8x32xf32>
    %74 = vector.shape_cast %73 : vector<2x8x8x32xf32> to vector<128x32xf32>
    %c0_125 = arith.constant 0 : index
    %c2_126 = arith.constant 2 : index
    %c2_127 = arith.constant 2 : index
    %c0_128 = arith.constant 0 : index
    %75 = vector.load %arg18[%c0_125, %c2_126, %c2_127, %c0_128] : memref<2x10x10x32xf32, #tpu.memory_space<vmem>>, vector<2x8x8x32xf32>
    %76 = vector.shape_cast %75 : vector<2x8x8x32xf32> to vector<128x32xf32>
    %77 = tpu.concatenate %60, %62, %64, %66, %68, %70, %72, %74, %76 in 1 : vector<128x32xf32>, vector<128x32xf32>, vector<128x32xf32>, vector<128x32xf32>, vector<128x32xf32>, vector<128x32xf32>, vector<128x32xf32>, vector<128x32xf32>, vector<128x32xf32> -> vector<128x288xf32>
    %78 = arith.truncf %77 : vector<128x288xf32> to vector<128x288xbf16>
    %c0_129 = arith.constant 0 : index
    %c0_130 = arith.constant 0 : index
    %79 = vector.load %arg6[%c0_129, %c0_130] : memref<288x64xbf16, #tpu.memory_space<vmem>>, vector<288x64xbf16>
    %cst_131 = arith.constant dense<0.000000e+00> : vector<128x64xf32>
    %80 = tpu.matmul %78, %79, %cst_131 {dimension_numbers = #tpu.dot_dimension_numbers<[1], [0], [0], [1], [0, 0, 1, 1], [], []>} : vector<128x288xbf16>, vector<288x64xbf16>, vector<128x64xf32> -> vector<128x64xf32>
    %c0_132 = arith.constant 0 : index
    %c0_133 = arith.constant 0 : index
    %81 = vector.load %arg7[%c0_132, %c0_133] : memref<1x64xf32, #tpu.memory_space<vmem>>, vector<1x64xf32>
    %82 = vector.broadcast %81 : vector<1x64xf32> to vector<128x64xf32>
    %83 = arith.addf %80, %82 : vector<128x64xf32>
    %cst_134 = arith.constant 0.000000e+00 : f32
    %84 = vector.broadcast %cst_134 : f32 to vector<128x64xf32>
    %85 = arith.maximumf %83, %84 : vector<128x64xf32>
    %86 = vector.extract_strided_slice %85 {offsets = [0, 0], sizes = [64, 64], strides = [1, 1]} : vector<128x64xf32> to vector<64x64xf32>
    %87 = vector.extract_strided_slice %85 {offsets = [64, 0], sizes = [64, 64], strides = [1, 1]} : vector<128x64xf32> to vector<64x64xf32>
    %c0_135 = arith.constant 0 : index
    %c0_136 = arith.constant 0 : index
    %c0_137 = arith.constant 0 : index
    %88 = vector.load %arg3[%c0_135, %c0_136, %c0_137] : memref<1x1x64xf32, #tpu.memory_space<vmem>>, vector<1x1x64xf32>
    %89 = vector.shape_cast %88 : vector<1x1x64xf32> to vector<1x64xf32>
    %cst_138 = arith.constant dense<0.000000e+00> : vector<1x64xf32>
    %90 = tpu.matmul %89, %86, %cst_138 {dimension_numbers = #tpu.dot_dimension_numbers<[1], [0], [0], [1], [0, 0, 1, 1], [], []>} : vector<1x64xf32>, vector<64x64xf32>, vector<1x64xf32> -> vector<1x64xf32>
    %91 = vector.shape_cast %90 : vector<1x64xf32> to vector<1x1x64xf32>
    %c0_139 = arith.constant 0 : index
    %c0_140 = arith.constant 0 : index
    %c0_141 = arith.constant 0 : index
    %92 = vector.load %arg14[%c0_139, %c0_140, %c0_141] : memref<1x1x64xf32, #tpu.memory_space<vmem>>, vector<1x1x64xf32>
    tpu.vector_store %arg14[%c0_139, %c0_140, %c0_141], %91 {strides = array<i32>} : memref<1x1x64xf32, #tpu.memory_space<vmem>>, vector<1x1x64xf32>,
    %93 = vector.shape_cast %87 : vector<64x64xf32> to vector<1x8x8x64xf32>
    %c0_142 = arith.constant 0 : index
    %c0_143 = arith.constant 0 : index
    %c0_144 = arith.constant 0 : index
    %c0_145 = arith.constant 0 : index
    %94 = vector.load %arg13[%c0_142, %c0_143, %c0_144, %c0_145] : memref<1x8x8x64xf32, #tpu.memory_space<vmem>>, vector<1x8x8x64xf32>
    tpu.vector_store %arg13[%c0_142, %c0_143, %c0_144, %c0_145], %93 {strides = array<i32>} : memref<1x8x8x64xf32, #tpu.memory_space<vmem>>, vector<1x8x8x64xf32>,
    %95 = vector.shape_cast %87 : vector<64x64xf32> to vector<1x8x8x64xf32>
    %c0_146 = arith.constant 0 : index
    %c1_147 = arith.constant 1 : index
    %c1_148 = arith.constant 1 : index
    %c0_149 = arith.constant 0 : index
    %96 = vector.load %arg19[%c0_146, %c1_147, %c1_148, %c0_149] : memref<1x10x10x64xf32, #tpu.memory_space<vmem>>, vector<1x8x8x64xf32>
    tpu.vector_store %arg19[%c0_146, %c1_147, %c1_148, %c0_149], %95 {strides = array<i32>} : memref<1x10x10x64xf32, #tpu.memory_space<vmem>>, vector<1x8x8x64xf32>,
    %cst_150 = arith.constant 0.000000e+00 : f32
    %97 = vector.broadcast %cst_150 : f32 to vector<1x1x10x64xf32>
    %c0_151 = arith.constant 0 : index
    %c0_152 = arith.constant 0 : index
    %c0_153 = arith.constant 0 : index
    %c0_154 = arith.constant 0 : index
    %98 = vector.load %arg19[%c0_151, %c0_152, %c0_153, %c0_154] : memref<1x10x10x64xf32, #tpu.memory_space<vmem>>, vector<1x1x10x64xf32>
    tpu.vector_store %arg19[%c0_151, %c0_152, %c0_153, %c0_154], %97 {strides = array<i32>} : memref<1x10x10x64xf32, #tpu.memory_space<vmem>>, vector<1x1x10x64xf32>,
    %c0_155 = arith.constant 0 : index
    %c9_156 = arith.constant 9 : index
    %c0_157 = arith.constant 0 : index
    %c0_158 = arith.constant 0 : index
    %99 = vector.load %arg19[%c0_155, %c9_156, %c0_157, %c0_158] : memref<1x10x10x64xf32, #tpu.memory_space<vmem>>, vector<1x1x10x64xf32>
    tpu.vector_store %arg19[%c0_155, %c9_156, %c0_157, %c0_158], %97 {strides = array<i32>} : memref<1x10x10x64xf32, #tpu.memory_space<vmem>>, vector<1x1x10x64xf32>,
    %cst_159 = arith.constant 0.000000e+00 : f32
    %100 = vector.broadcast %cst_159 : f32 to vector<1x10x1x64xf32>
    %c0_160 = arith.constant 0 : index
    %c0_161 = arith.constant 0 : index
    %c0_162 = arith.constant 0 : index
    %c0_163 = arith.constant 0 : index
    %101 = vector.load %arg19[%c0_160, %c0_161, %c0_162, %c0_163] : memref<1x10x10x64xf32, #tpu.memory_space<vmem>>, vector<1x10x1x64xf32>
    tpu.vector_store %arg19[%c0_160, %c0_161, %c0_162, %c0_163], %100 {strides = array<i32>} : memref<1x10x10x64xf32, #tpu.memory_space<vmem>>, vector<1x10x1x64xf32>,
    %c0_164 = arith.constant 0 : index
    %c0_165 = arith.constant 0 : index
    %c9_166 = arith.constant 9 : index
    %c0_167 = arith.constant 0 : index
    %102 = vector.load %arg19[%c0_164, %c0_165, %c9_166, %c0_167] : memref<1x10x10x64xf32, #tpu.memory_space<vmem>>, vector<1x10x1x64xf32>
    tpu.vector_store %arg19[%c0_164, %c0_165, %c9_166, %c0_167], %100 {strides = array<i32>} : memref<1x10x10x64xf32, #tpu.memory_space<vmem>>, vector<1x10x1x64xf32>,
    %c0_168 = arith.constant 0 : index
    %c0_169 = arith.constant 0 : index
    %c0_170 = arith.constant 0 : index
    %c0_171 = arith.constant 0 : index
    %103 = vector.load %arg19[%c0_168, %c0_169, %c0_170, %c0_171] : memref<1x10x10x64xf32, #tpu.memory_space<vmem>>, vector<1x8x8x64xf32>
    %104 = vector.shape_cast %103 : vector<1x8x8x64xf32> to vector<64x64xf32>
    %c0_172 = arith.constant 0 : index
    %c0_173 = arith.constant 0 : index
    %c1_174 = arith.constant 1 : index
    %c0_175 = arith.constant 0 : index
    %105 = vector.load %arg19[%c0_172, %c0_173, %c1_174, %c0_175] : memref<1x10x10x64xf32, #tpu.memory_space<vmem>>, vector<1x8x8x64xf32>
    %106 = vector.shape_cast %105 : vector<1x8x8x64xf32> to vector<64x64xf32>
    %c0_176 = arith.constant 0 : index
    %c0_177 = arith.constant 0 : index
    %c2_178 = arith.constant 2 : index
    %c0_179 = arith.constant 0 : index
    %107 = vector.load %arg19[%c0_176, %c0_177, %c2_178, %c0_179] : memref<1x10x10x64xf32, #tpu.memory_space<vmem>>, vector<1x8x8x64xf32>
    %108 = vector.shape_cast %107 : vector<1x8x8x64xf32> to vector<64x64xf32>
    %c0_180 = arith.constant 0 : index
    %c1_181 = arith.constant 1 : index
    %c0_182 = arith.constant 0 : index
    %c0_183 = arith.constant 0 : index
    %109 = vector.load %arg19[%c0_180, %c1_181, %c0_182, %c0_183] : memref<1x10x10x64xf32, #tpu.memory_space<vmem>>, vector<1x8x8x64xf32>
    %110 = vector.shape_cast %109 : vector<1x8x8x64xf32> to vector<64x64xf32>
    %c0_184 = arith.constant 0 : index
    %c1_185 = arith.constant 1 : index
    %c1_186 = arith.constant 1 : index
    %c0_187 = arith.constant 0 : index
    %111 = vector.load %arg19[%c0_184, %c1_185, %c1_186, %c0_187] : memref<1x10x10x64xf32, #tpu.memory_space<vmem>>, vector<1x8x8x64xf32>
    %112 = vector.shape_cast %111 : vector<1x8x8x64xf32> to vector<64x64xf32>
    %c0_188 = arith.constant 0 : index
    %c1_189 = arith.constant 1 : index
    %c2_190 = arith.constant 2 : index
    %c0_191 = arith.constant 0 : index
    %113 = vector.load %arg19[%c0_188, %c1_189, %c2_190, %c0_191] : memref<1x10x10x64xf32, #tpu.memory_space<vmem>>, vector<1x8x8x64xf32>
    %114 = vector.shape_cast %113 : vector<1x8x8x64xf32> to vector<64x64xf32>
    %c0_192 = arith.constant 0 : index
    %c2_193 = arith.constant 2 : index
    %c0_194 = arith.constant 0 : index
    %c0_195 = arith.constant 0 : index
    %115 = vector.load %arg19[%c0_192, %c2_193, %c0_194, %c0_195] : memref<1x10x10x64xf32, #tpu.memory_space<vmem>>, vector<1x8x8x64xf32>
    %116 = vector.shape_cast %115 : vector<1x8x8x64xf32> to vector<64x64xf32>
    %c0_196 = arith.constant 0 : index
    %c2_197 = arith.constant 2 : index
    %c1_198 = arith.constant 1 : index
    %c0_199 = arith.constant 0 : index
    %117 = vector.load %arg19[%c0_196, %c2_197, %c1_198, %c0_199] : memref<1x10x10x64xf32, #tpu.memory_space<vmem>>, vector<1x8x8x64xf32>
    %118 = vector.shape_cast %117 : vector<1x8x8x64xf32> to vector<64x64xf32>
    %c0_200 = arith.constant 0 : index
    %c2_201 = arith.constant 2 : index
    %c2_202 = arith.constant 2 : index
    %c0_203 = arith.constant 0 : index
    %119 = vector.load %arg19[%c0_200, %c2_201, %c2_202, %c0_203] : memref<1x10x10x64xf32, #tpu.memory_space<vmem>>, vector<1x8x8x64xf32>
    %120 = vector.shape_cast %119 : vector<1x8x8x64xf32> to vector<64x64xf32>
    %121 = tpu.concatenate %104, %106, %108, %110, %112, %114, %116, %118, %120 in 1 : vector<64x64xf32>, vector<64x64xf32>, vector<64x64xf32>, vector<64x64xf32>, vector<64x64xf32>, vector<64x64xf32>, vector<64x64xf32>, vector<64x64xf32>, vector<64x64xf32> -> vector<64x576xf32>
    %122 = arith.truncf %121 : vector<64x576xf32> to vector<64x576xbf16>
    %c0_204 = arith.constant 0 : index
    %c0_205 = arith.constant 0 : index
    %123 = vector.load %arg8[%c0_204, %c0_205] : memref<576x128xbf16, #tpu.memory_space<vmem>>, vector<576x128xbf16>
    %cst_206 = arith.constant dense<0.000000e+00> : vector<64x128xf32>
    %124 = tpu.matmul %122, %123, %cst_206 {dimension_numbers = #tpu.dot_dimension_numbers<[1], [0], [0], [1], [0, 0, 1, 1], [], []>} : vector<64x576xbf16>, vector<576x128xbf16>, vector<64x128xf32> -> vector<64x128xf32>
    %c0_207 = arith.constant 0 : index
    %c0_208 = arith.constant 0 : index
    %125 = vector.load %arg9[%c0_207, %c0_208] : memref<1x128xf32, #tpu.memory_space<vmem>>, vector<1x128xf32>
    %126 = vector.broadcast %125 : vector<1x128xf32> to vector<64x128xf32>
    %127 = arith.addf %124, %126 : vector<64x128xf32>
    %cst_209 = arith.constant 0.000000e+00 : f32
    %128 = vector.broadcast %cst_209 : f32 to vector<64x128xf32>
    %129 = arith.maximumf %127, %128 : vector<64x128xf32>
    %130 = vector.broadcast %90 : vector<1x64xf32> to vector<64x64xf32>
    %131 = arith.mulf %87, %130 : vector<64x64xf32>
    %cst_210 = arith.constant dense<0.000000e+00> : vector<64xf32>
    %132 = vector.multi_reduction <add>, %131, %cst_210 [1] : vector<64x64xf32> to vector<64xf32>
    %133 = vector.shape_cast %132 : vector<64xf32> to vector<64x1xf32>
    %134 = arith.mulf %87, %87 : vector<64x64xf32>
    %cst_211 = arith.constant dense<0.000000e+00> : vector<64xf32>
    %135 = vector.multi_reduction <add>, %134, %cst_211 [1] : vector<64x64xf32> to vector<64xf32>
    %136 = vector.shape_cast %135 : vector<64xf32> to vector<64x1xf32>
    %137 = arith.mulf %90, %90 : vector<1x64xf32>
    %138 = vector.shape_cast %137 : vector<1x64xf32> to vector<1x1x64xf32>
    %cst_212 = arith.constant dense<0.000000e+00> : vector<1xf32>
    %139 = vector.multi_reduction <add>, %138, %cst_212 [1, 2] : vector<1x1x64xf32> to vector<1xf32>
    %140 = vector.shape_cast %139 : vector<1xf32> to vector<1x1x1xf32>
    %141 = vector.extract %140[0, 0, 0] : f32 from vector<1x1x1xf32>
    %142 = math.sqrt %141 : f32
    %143 = math.sqrt %136 : vector<64x1xf32>
    %144 = vector.broadcast %142 : f32 to vector<64x1xf32>
    %145 = arith.mulf %143, %144 : vector<64x1xf32>
    %cst_213 = arith.constant 9.99999993E-9 : f32
    %146 = vector.broadcast %cst_213 : f32 to vector<64x1xf32>
    %147 = arith.maximumf %145, %146 : vector<64x1xf32>
    %148 = arith.divf %133, %147 : vector<64x1xf32>
    %149 = vector.shape_cast %148 : vector<64x1xf32> to vector<1x64x1xf32>
    %c0_214 = arith.constant 0 : index
    %c0_215 = arith.constant 0 : index
    %c0_216 = arith.constant 0 : index
    %150 = vector.load %arg15[%c0_214, %c0_215, %c0_216] : memref<1x64x1xf32, #tpu.memory_space<vmem>>, vector<1x64x1xf32>
    tpu.vector_store %arg15[%c0_214, %c0_215, %c0_216], %149 {strides = array<i32>} : memref<1x64x1xf32, #tpu.memory_space<vmem>>, vector<1x64x1xf32>,
    %151 = vector.broadcast %148 : vector<64x1xf32> to vector<64x128xf32>
    %152 = arith.mulf %129, %151 : vector<64x128xf32>
    %153 = vector.shape_cast %152 : vector<64x128xf32> to vector<1x8x8x128xf32>
    %c0_217 = arith.constant 0 : index
    %c1_218 = arith.constant 1 : index
    %c1_219 = arith.constant 1 : index
    %c0_220 = arith.constant 0 : index
    %154 = vector.load %arg20[%c0_217, %c1_218, %c1_219, %c0_220] : memref<1x10x10x128xf32, #tpu.memory_space<vmem>>, vector<1x8x8x128xf32>
    tpu.vector_store %arg20[%c0_217, %c1_218, %c1_219, %c0_220], %153 {strides = array<i32>} : memref<1x10x10x128xf32, #tpu.memory_space<vmem>>, vector<1x8x8x128xf32>,
    %cst_221 = arith.constant 0.000000e+00 : f32
    %155 = vector.broadcast %cst_221 : f32 to vector<1x1x10x128xf32>
    %c0_222 = arith.constant 0 : index
    %c0_223 = arith.constant 0 : index
    %c0_224 = arith.constant 0 : index
    %c0_225 = arith.constant 0 : index
    %156 = vector.load %arg20[%c0_222, %c0_223, %c0_224, %c0_225] : memref<1x10x10x128xf32, #tpu.memory_space<vmem>>, vector<1x1x10x128xf32>
    tpu.vector_store %arg20[%c0_222, %c0_223, %c0_224, %c0_225], %155 {strides = array<i32>} : memref<1x10x10x128xf32, #tpu.memory_space<vmem>>, vector<1x1x10x128xf32>,
    %c0_226 = arith.constant 0 : index
    %c9_227 = arith.constant 9 : index
    %c0_228 = arith.constant 0 : index
    %c0_229 = arith.constant 0 : index
    %157 = vector.load %arg20[%c0_226, %c9_227, %c0_228, %c0_229] : memref<1x10x10x128xf32, #tpu.memory_space<vmem>>, vector<1x1x10x128xf32>
    tpu.vector_store %arg20[%c0_226, %c9_227, %c0_228, %c0_229], %155 {strides = array<i32>} : memref<1x10x10x128xf32, #tpu.memory_space<vmem>>, vector<1x1x10x128xf32>,
    %cst_230 = arith.constant 0.000000e+00 : f32
    %158 = vector.broadcast %cst_230 : f32 to vector<1x10x1x128xf32>
    %c0_231 = arith.constant 0 : index
    %c0_232 = arith.constant 0 : index
    %c0_233 = arith.constant 0 : index
    %c0_234 = arith.constant 0 : index
    %159 = vector.load %arg20[%c0_231, %c0_232, %c0_233, %c0_234] : memref<1x10x10x128xf32, #tpu.memory_space<vmem>>, vector<1x10x1x128xf32>
    tpu.vector_store %arg20[%c0_231, %c0_232, %c0_233, %c0_234], %158 {strides = array<i32>} : memref<1x10x10x128xf32, #tpu.memory_space<vmem>>, vector<1x10x1x128xf32>,
    %c0_235 = arith.constant 0 : index
    %c0_236 = arith.constant 0 : index
    %c9_237 = arith.constant 9 : index
    %c0_238 = arith.constant 0 : index
    %160 = vector.load %arg20[%c0_235, %c0_236, %c9_237, %c0_238] : memref<1x10x10x128xf32, #tpu.memory_space<vmem>>, vector<1x10x1x128xf32>
    tpu.vector_store %arg20[%c0_235, %c0_236, %c9_237, %c0_238], %158 {strides = array<i32>} : memref<1x10x10x128xf32, #tpu.memory_space<vmem>>, vector<1x10x1x128xf32>,
    %c0_239 = arith.constant 0 : index
    %c0_240 = arith.constant 0 : index
    %c0_241 = arith.constant 0 : index
    %c0_242 = arith.constant 0 : index
    %161 = vector.load %arg20[%c0_239, %c0_240, %c0_241, %c0_242] : memref<1x10x10x128xf32, #tpu.memory_space<vmem>>, vector<1x8x8x128xf32>
    %162 = vector.shape_cast %161 : vector<1x8x8x128xf32> to vector<64x128xf32>
    %c0_243 = arith.constant 0 : index
    %c0_244 = arith.constant 0 : index
    %c1_245 = arith.constant 1 : index
    %c0_246 = arith.constant 0 : index
    %163 = vector.load %arg20[%c0_243, %c0_244, %c1_245, %c0_246] : memref<1x10x10x128xf32, #tpu.memory_space<vmem>>, vector<1x8x8x128xf32>
    %164 = vector.shape_cast %163 : vector<1x8x8x128xf32> to vector<64x128xf32>
    %c0_247 = arith.constant 0 : index
    %c0_248 = arith.constant 0 : index
    %c2_249 = arith.constant 2 : index
    %c0_250 = arith.constant 0 : index
    %165 = vector.load %arg20[%c0_247, %c0_248, %c2_249, %c0_250] : memref<1x10x10x128xf32, #tpu.memory_space<vmem>>, vector<1x8x8x128xf32>
    %166 = vector.shape_cast %165 : vector<1x8x8x128xf32> to vector<64x128xf32>
    %c0_251 = arith.constant 0 : index
    %c1_252 = arith.constant 1 : index
    %c0_253 = arith.constant 0 : index
    %c0_254 = arith.constant 0 : index
    %167 = vector.load %arg20[%c0_251, %c1_252, %c0_253, %c0_254] : memref<1x10x10x128xf32, #tpu.memory_space<vmem>>, vector<1x8x8x128xf32>
    %168 = vector.shape_cast %167 : vector<1x8x8x128xf32> to vector<64x128xf32>
    %c0_255 = arith.constant 0 : index
    %c1_256 = arith.constant 1 : index
    %c1_257 = arith.constant 1 : index
    %c0_258 = arith.constant 0 : index
    %169 = vector.load %arg20[%c0_255, %c1_256, %c1_257, %c0_258] : memref<1x10x10x128xf32, #tpu.memory_space<vmem>>, vector<1x8x8x128xf32>
    %170 = vector.shape_cast %169 : vector<1x8x8x128xf32> to vector<64x128xf32>
    %c0_259 = arith.constant 0 : index
    %c1_260 = arith.constant 1 : index
    %c2_261 = arith.constant 2 : index
    %c0_262 = arith.constant 0 : index
    %171 = vector.load %arg20[%c0_259, %c1_260, %c2_261, %c0_262] : memref<1x10x10x128xf32, #tpu.memory_space<vmem>>, vector<1x8x8x128xf32>
    %172 = vector.shape_cast %171 : vector<1x8x8x128xf32> to vector<64x128xf32>
    %c0_263 = arith.constant 0 : index
    %c2_264 = arith.constant 2 : index
    %c0_265 = arith.constant 0 : index
    %c0_266 = arith.constant 0 : index
    %173 = vector.load %arg20[%c0_263, %c2_264, %c0_265, %c0_266] : memref<1x10x10x128xf32, #tpu.memory_space<vmem>>, vector<1x8x8x128xf32>
    %174 = vector.shape_cast %173 : vector<1x8x8x128xf32> to vector<64x128xf32>
    %c0_267 = arith.constant 0 : index
    %c2_268 = arith.constant 2 : index
    %c1_269 = arith.constant 1 : index
    %c0_270 = arith.constant 0 : index
    %175 = vector.load %arg20[%c0_267, %c2_268, %c1_269, %c0_270] : memref<1x10x10x128xf32, #tpu.memory_space<vmem>>, vector<1x8x8x128xf32>
    %176 = vector.shape_cast %175 : vector<1x8x8x128xf32> to vector<64x128xf32>
    %c0_271 = arith.constant 0 : index
    %c2_272 = arith.constant 2 : index
    %c2_273 = arith.constant 2 : index
    %c0_274 = arith.constant 0 : index
    %177 = vector.load %arg20[%c0_271, %c2_272, %c2_273, %c0_274] : memref<1x10x10x128xf32, #tpu.memory_space<vmem>>, vector<1x8x8x128xf32>
    %178 = vector.shape_cast %177 : vector<1x8x8x128xf32> to vector<64x128xf32>
    %179 = tpu.concatenate %162, %164, %166, %168, %170, %172, %174, %176, %178 in 1 : vector<64x128xf32>, vector<64x128xf32>, vector<64x128xf32>, vector<64x128xf32>, vector<64x128xf32>, vector<64x128xf32>, vector<64x128xf32>, vector<64x128xf32>, vector<64x128xf32> -> vector<64x1152xf32>
    %180 = arith.truncf %179 : vector<64x1152xf32> to vector<64x1152xbf16>
    %c0_275 = arith.constant 0 : index
    %c0_276 = arith.constant 0 : index
    %181 = vector.load %arg10[%c0_275, %c0_276] : memref<1152x128xbf16, #tpu.memory_space<vmem>>, vector<1152x128xbf16>
    %cst_277 = arith.constant dense<0.000000e+00> : vector<64x128xf32>
    %182 = tpu.matmul %180, %181, %cst_277 {dimension_numbers = #tpu.dot_dimension_numbers<[1], [0], [0], [1], [0, 0, 1, 1], [], []>} : vector<64x1152xbf16>, vector<1152x128xbf16>, vector<64x128xf32> -> vector<64x128xf32>
    %c0_278 = arith.constant 0 : index
    %c0_279 = arith.constant 0 : index
    %183 = vector.load %arg11[%c0_278, %c0_279] : memref<1x128xf32, #tpu.memory_space<vmem>>, vector<1x128xf32>
    %184 = vector.broadcast %183 : vector<1x128xf32> to vector<64x128xf32>
    %185 = arith.addf %182, %184 : vector<64x128xf32>
    %cst_280 = arith.constant 0.000000e+00 : f32
    %186 = vector.broadcast %cst_280 : f32 to vector<64x128xf32>
    %187 = arith.maximumf %185, %186 : vector<64x128xf32>
    %c0_281 = arith.constant 0 : index
    %c0_282 = arith.constant 0 : index
    %188 = vector.load %arg12[%c0_281, %c0_282] : memref<2x128xbf16, #tpu.memory_space<vmem>>, vector<2x128xbf16>
    %189 = arith.truncf %187 : vector<64x128xf32> to vector<64x128xbf16>
    %cst_283 = arith.constant dense<0.000000e+00> : vector<2x64xf32>
    %190 = tpu.matmul %188, %189, %cst_283 {dimension_numbers = #tpu.dot_dimension_numbers<[1], [1], [0], [0], [0, 0, 1, 0], [], []>} : vector<2x128xbf16>, vector<64x128xbf16>, vector<2x64xf32> -> vector<2x64xf32>
    %191 = vector.shape_cast %190 : vector<2x64xf32> to vector<1x2x64xf32>
    %c0_284 = arith.constant 0 : index
    %c0_285 = arith.constant 0 : index
    %c0_286 = arith.constant 0 : index
    %192 = vector.load %arg16[%c0_284, %c0_285, %c0_286] : memref<1x2x64xf32, #tpu.memory_space<vmem>>, vector<1x2x64xf32>
    tpu.vector_store %arg16[%c0_284, %c0_285, %c0_286], %191 {strides = array<i32>} : memref<1x2x64xf32, #tpu.memory_space<vmem>>, vector<1x2x64xf32>,
    return
  }
  func.func @transform_0(%arg0: i32) -> (i32, i32, i32, i32) {
    %c0_i32 = arith.constant 0 : i32
    %c0_i32_0 = arith.constant 0 : i32
    %c0_i32_1 = arith.constant 0 : i32
    %c0_i32_2 = arith.constant 0 : i32
    return %arg0, %c0_i32, %c0_i32_0, %c0_i32_1 : i32, i32, i32, i32
  }
  func.func @transform_1(%arg0: i32) -> (i32, i32, i32, i32) {
    %c0_i32 = arith.constant 0 : i32
    %c0_i32_0 = arith.constant 0 : i32
    %c0_i32_1 = arith.constant 0 : i32
    %c0_i32_2 = arith.constant 0 : i32
    return %arg0, %c0_i32, %c0_i32_0, %c0_i32_1 : i32, i32, i32, i32
  }
  func.func @transform_2(%arg0: i32) -> (i32, i32, i32) {
    %c0_i32 = arith.constant 0 : i32
    %c0_i32_0 = arith.constant 0 : i32
    %c0_i32_1 = arith.constant 0 : i32
    return %arg0, %c0_i32, %c0_i32_0 : i32, i32, i32
  }
  func.func @transform_3(%arg0: i32) -> (i32, i32) {
    %c0_i32 = arith.constant 0 : i32
    %c0_i32_0 = arith.constant 0 : i32
    %c0_i32_1 = arith.constant 0 : i32
    return %c0_i32, %c0_i32_0 : i32, i32
  }
  func.func @transform_4(%arg0: i32) -> (i32, i32) {
    %c0_i32 = arith.constant 0 : i32
    %c0_i32_0 = arith.constant 0 : i32
    %c0_i32_1 = arith.constant 0 : i32
    return %c0_i32, %c0_i32_0 : i32, i32
  }
  func.func @transform_5(%arg0: i32) -> (i32, i32) {
    %c0_i32 = arith.constant 0 : i32
    %c0_i32_0 = arith.constant 0 : i32
    %c0_i32_1 = arith.constant 0 : i32
    return %c0_i32, %c0_i32_0 : i32, i32
  }
  func.func @transform_6(%arg0: i32) -> (i32, i32) {
    %c0_i32 = arith.constant 0 : i32
    %c0_i32_0 = arith.constant 0 : i32
    %c0_i32_1 = arith.constant 0 : i32
    return %c0_i32, %c0_i32_0 : i32, i32
  }
  func.func @transform_7(%arg0: i32) -> (i32, i32) {
    %c0_i32 = arith.constant 0 : i32
    %c0_i32_0 = arith.constant 0 : i32
    %c0_i32_1 = arith.constant 0 : i32
    return %c0_i32, %c0_i32_0 : i32, i32
  }
  func.func @transform_8(%arg0: i32) -> (i32, i32) {
    %c0_i32 = arith.constant 0 : i32
    %c0_i32_0 = arith.constant 0 : i32
    %c0_i32_1 = arith.constant 0 : i32
    return %c0_i32, %c0_i32_0 : i32, i32
  }
  func.func @transform_9(%arg0: i32) -> (i32, i32) {
    %c0_i32 = arith.constant 0 : i32
    %c0_i32_0 = arith.constant 0 : i32
    %c0_i32_1 = arith.constant 0 : i32
    return %c0_i32, %c0_i32_0 : i32, i32
  }
  func.func @transform_10(%arg0: i32) -> (i32, i32) {
    %c0_i32 = arith.constant 0 : i32
    %c0_i32_0 = arith.constant 0 : i32
    %c0_i32_1 = arith.constant 0 : i32
    return %c0_i32, %c0_i32_0 : i32, i32
  }
  func.func @transform_11(%arg0: i32) -> (i32, i32) {
    %c0_i32 = arith.constant 0 : i32
    %c0_i32_0 = arith.constant 0 : i32
    %c0_i32_1 = arith.constant 0 : i32
    return %c0_i32, %c0_i32_0 : i32, i32
  }
  func.func @transform_12(%arg0: i32) -> (i32, i32, i32, i32) {
    %c0_i32 = arith.constant 0 : i32
    %c0_i32_0 = arith.constant 0 : i32
    %c0_i32_1 = arith.constant 0 : i32
    %c0_i32_2 = arith.constant 0 : i32
    return %arg0, %c0_i32, %c0_i32_0, %c0_i32_1 : i32, i32, i32, i32
  }
  func.func @transform_13(%arg0: i32) -> (i32, i32, i32) {
    %c0_i32 = arith.constant 0 : i32
    %c0_i32_0 = arith.constant 0 : i32
    %c0_i32_1 = arith.constant 0 : i32
    return %arg0, %c0_i32, %c0_i32_0 : i32, i32, i32
  }
  func.func @transform_14(%arg0: i32) -> (i32, i32, i32) {
    %c0_i32 = arith.constant 0 : i32
    %c0_i32_0 = arith.constant 0 : i32
    %c0_i32_1 = arith.constant 0 : i32
    return %arg0, %c0_i32, %c0_i32_0 : i32, i32, i32
  }
  func.func @transform_15(%arg0: i32) -> (i32, i32, i32) {
    %c0_i32 = arith.constant 0 : i32
    %c0_i32_0 = arith.constant 0 : i32
    %c0_i32_1 = arith.constant 0 : i32
    return %arg0, %c0_i32, %c0_i32_0 : i32, i32, i32
  }
}

</mosaic_0001>

<bundles_post_ra>
// kernel: one_model_forward.1
= control target key start
LH: loop header
LB: loop body
LE: loop exit
PB: predicated region body
PF: predicated region fallthrough
CT: control target
= control target key end

     0   :  { %s17144_s0 = inlined_call_operand.vmem [shape: f32[2,16,16,3], index: 0, kind: input, shape index: {}]   ;;  %s17145_s1 = inlined_call_operand.vmem [shape: f32[2,16,16,3], index: 1, kind: input, shape index: {}]   ;;  %s17146_s2 = inlined_call_operand.vmem [shape: f32[2,1,64], index: 2, kind: input, shape index: {}]   ;;  %s17147_s3 = inlined_call_operand.vmem [shape: bf16[27,32], index: 3, kind: input, shape index: {}]   ;;  %s17148_s4 = inlined_call_operand.vmem [shape: f32[1,32], index: 4, kind: input, shape index: {}]   ;;  %s17149_s5 = inlined_call_operand.vmem [shape: bf16[288,64], index: 5, kind: input, shape index: {}]   ;;  %s17150_s6 = inlined_call_operand.vmem [shape: f32[1,64], index: 6, kind: input, shape index: {}]   ;;  %s17151_s7 = inlined_call_operand.vmem [shape: bf16[576,128], index: 7, kind: input, shape index: {}]   ;;  %s17152_s8 = inlined_call_operand.vmem [shape: f32[1,128], index: 8, kind: input, shape index: {}]   ;;  %s17153_s9 = inlined_call_operand.vmem [shape: bf16[1152,128], index: 9, kind: input, shape index: {}]   ;;  %s17154_s10 = inlined_call_operand.vmem [shape: f32[1,128], index: 10, kind: input, shape index: {}]   ;;  %s17155_s11 = inlined_call_operand.vmem [shape: bf16[2,128], index: 11, kind: input, shape index: {}]   ;;  %s17156_s12 = inlined_call_operand.hbm [shape: f32[2,8,8,64], index: 12, kind: output, shape index: {0}]   ;;  %s17157_s13 = inlined_call_operand.hbm [shape: f32[2,1,64], index: 13, kind: output, shape index: {1}]   ;;  %s17158_s14 = inlined_call_operand.vmem [shape: f32[2,64,1], index: 14, kind: output, shape index: {2}]   ;;  %s17159_s15 = inlined_call_operand.vmem [shape: f32[2,2,64], index: 15, kind: output, shape index: {3}]  }
   0x1   :  { %17194 = sst [smem:[#allocation17_spill]] %s17144_s0 }
   0x2   :  { %17195 = sst [smem:[#allocation18_spill]] %s17145_s1 }
   0x3   :  { %17196 = sst [smem:[#allocation19_spill]] %s17146_s2 }
   0x4   :  { %17197 = sst [smem:[#allocation20_spill]] %s17147_s3 }
   0x5   :  { %17198 = sst [smem:[#allocation21_spill]] %s17148_s4 }
   0x6   :  { %17199 = sst [smem:[#allocation22_spill]] %s17149_s5 }
   0x7   :  { %17200 = sst [smem:[#allocation23_spill]] %s17150_s6 }
   0x8   :  { %21 = vsyncpa [#allocation7], 0 }
   0x9   :  { %23 = vsyncpa [#allocation7 + $0x1], 0 }
   0xa   :  { %24 = vsyncpa [#allocation9], 0 }
   0xb   :  { %26 = vsyncpa [#allocation9 + $0x1], 0  ;;  %s12995_s18 = smov 0   ;;  %s12997_s19 = smov 0  }
   0xc   :  { %s12999_s20 = smov 0   ;;  %s13001_s21 = smov 0  }
   0xd LB: > { %17201 = sst [smem:[#allocation12_spill]] %s12881_s18  ;;  %s13016_s22 = sadd.s32 4294967295, %s12893_s21   ;;  %s12893_s21 = sphi %s13001_s21, %s17447_s21   ;;  %s12889_s20 = sphi %s12999_s20, %s17449_s20   ;;  %s12885_s19 = sphi %s12997_s19, %s17451_s19   ;;  %s12881_s18 = sphi %s12995_s18, %s17450_s18  }
   0xe   : > { %17202 = sst [smem:[#allocation13_spill]] %s12889_s20  ;;  %s10076_s23 = sadd.s32 4294967294, %s12893_s21  }
   0xf   : > { %s13020_s24 = sadd.s32 1, %s12893_s21   ;;  %s306_s25 = sadd.s32 1, %s12889_s20 }
  0x10   : > { %17203 = sst [smem:[#allocation14_spill]] %s13020_s24  ;;  %s303_s26 = ssub.s32 %s12893_s21, %s13020_s24 }
  0x11   : > { %p316_p0 = scmp.ne.s32.totalorder %s12889_s20, %s12885_s19  ;;  %p304_p1 = scmp.eq.s32.totalorder %s303_s26, 0 }
  0x12   : > { %p317_p2 = scmp.eq.s32.totalorder %s13016_s22, 1  ;;  %p322_p3 = scmp.ne.s32.totalorder %s12885_s19, %s12881_s18 }
  0x13   : > { %p323_p4 = scmp.eq.s32.totalorder %s10076_s23, 1  ;;  %p10079_p7 = scmp.ge.s32.totalorder %s12893_s21, 1 }
  0x14   : > { %s13031_s27 = scalar_select %p304_p1, %s12889_s20, %s306_s25  }
  0x15   : > { %p13033_p5 = por %p317_p2, %p316_p0  ;;  %p13037_p6 = por %p323_p4, %p322_p3 }
  0x16   : > { %17204 = sst [smem:[#allocation15_spill]] %s13031_s27  ;;  %p468_p8 = scmp.lt.s32.totalorder %s12893_s21, 3 }
  0x17   : > { %s17206_s29 = scalar_select %p13037_p6, 1, 0 }
  0x18   : > { %p469_p9 = pnand %p10079_p7, %p468_p8 }
  0x19   : > { %17207 = sst [smem:[#allocation16_spill]] %s17206_s29  ;;  %vm593_vm0 = vcmask (!%p469_p9), 23552   ;;  %vm693_vm1 = vcmask (!%p469_p9), 17408   ;;  %vm705_vm2 = vcmask (!%p469_p9), 16384   ;;  %v17191_v0 = vmov (!%p469_p9), 0.0   ;;  %p537_p10 = scmp.lt.s32.totalorder (!%p469_p9), %s13016_s22, 1 }
  0x1a   : > { %472 = sbr.rel (%p469_p9) target bundleno = 2402 (0x962), region = 68  ;;  %691 = vst.msk [vmem:[#allocation2] sm:$0xff] (!%p469_p9), %vm593_vm0, %v17191_v0  ;;  %692 = vst.msk [vmem:[#allocation2 + $0x8] sm:$0xff] (!%p469_p9), %vm593_vm0, %v17191_v0  ;;  %s17208_s0 = sld [smem:[#allocation17_spill]] (!%p469_p9)  ;;  %vm4073_vm3 = vcmask (!%p469_p9), 1044480   ;;  %vm4074_vm4 = vcmask (!%p469_p9), 1045504  }
  0x1b   : > { %694 = vst.msk [vmem:[#allocation2 + $0x10] sm:$0x3] (!%p469_p9), %vm693_vm1, %v17191_v0  ;;  %697 = vst.msk [vmem:[#allocation2 + $0x1c0] sm:$0x3] (!%p469_p9), %vm693_vm1, %v17191_v0  ;;  %s17167_s26 = smov (!%p469_p9), 3   ;;  %s17161_s17 = smov (!%p469_p9), 6  }
  0x1c   : > { %695 = vst.msk [vmem:[#allocation2 + $0x1b0] sm:$0xff] (!%p469_p9), %vm593_vm0, %v17191_v0  ;;  %696 = vst.msk [vmem:[#allocation2 + $0x1b8] sm:$0xff] (!%p469_p9), %vm593_vm0, %v17191_v0  ;;  %s17163_s23 = smov (!%p469_p9), 9   ;;  %v12901_v48 = vmov (!%p469_p9), 65535   ;;  %s17209_s3 = sld [smem:[#allocation20_spill]] (!%p469_p9)  ;;  %vm17189_vm5 = vcmask (!%p469_p9), 48128  }
  0x1d   : > { %699 = vst.msk [vmem:[#allocation2 + $0x198] sm:$0xff] (!%p469_p9), %vm593_vm0, %v17191_v0  ;;  %700 = vst.msk [vmem:[#allocation2 + $0x1a0] sm:$0xff] (!%p469_p9), %vm593_vm0, %v17191_v0  ;;  %v4075_v49 = vsel (!%p469_p9), %vm4073_vm3, 4294967295, %v12901_v48  ;;  %s17216_s27 = smov (!%p469_p9), 21   ;;  %s17217_s20 = smov (!%p469_p9), 24   ;;  %vm3532_vm6 = vcmask (!%p469_p9), 72704  }
  0x1e   : > { %701 = vst.msk [vmem:[#allocation2 + $0x1a8] sm:$0x3] (!%p469_p9), %vm693_vm1, %v17191_v0  ;;  %704 = vst.msk [vmem:[#allocation2 + $0x358] sm:$0x3] (!%p469_p9), %vm693_vm1, %v17191_v0  ;;  %v4076_v53 = vsel (!%p469_p9), %vm4074_vm4, %v4075_v49, 0  ;;  %s17219_s1 = sld [smem:[#allocation18_spill]] (!%p469_p9) }
  0x1f   : > { %702 = vst.msk [vmem:[#allocation2 + $0x348] sm:$0xff] (!%p469_p9), %vm593_vm0, %v17191_v0  ;;  %703 = vst.msk [vmem:[#allocation2 + $0x350] sm:$0xff] (!%p469_p9), %vm593_vm0, %v17191_v0  ;;  %vm17184_vm7 = vcmask (!%p469_p9), 97280   ;;  %vm17183_vm8 = vcmask (!%p469_p9), 121856   ;;  %vm3727_vm9 = vcmask (!%p469_p9), 146432   ;;  %vm17182_vm10 = vcmask (!%p469_p9), 171008  }
  0x20   : > { %707 = vst.msk [vmem:[#allocation2 + $0x18] sm:$0x1] (!%p469_p9), %vm705_vm2, %v17191_v0  ;;  %708 = vst.msk [vmem:[#allocation2 + $0x30] sm:$0x1] (!%p469_p9), %vm705_vm2, %v17191_v0  ;;  %vm3857_vm11 = vcmask (!%p469_p9), 195584   ;;  %vm3976_vm12 = vcmask (!%p469_p9), 220160  }
  0x21   : > { %709 = vst.msk [vmem:[#allocation2 + $0x48] sm:$0x1] %vm705_vm2, %v17191_v0  ;;  %710 = vst.msk [vmem:[#allocation2 + $0x60] sm:$0x1] %vm705_vm2, %v17191_v0  ;;  %s13233_s30 = scalar_select %p537_p10, %s13016_s22, 1  ;;  %v906_v4 = vld [vmem:[#allocation2 + $0x2] sm:$0xff] }
  0x22   : > { %711 = vst.msk [vmem:[#allocation2 + $0x78] sm:$0x1] %vm705_vm2, %v17191_v0  ;;  %712 = vst.msk [vmem:[#allocation2 + $0x90] sm:$0x1] %vm705_vm2, %v17191_v0  ;;  %v842_v5 = vld [vmem:[#allocation2 + $0x1] sm:$0xff]  ;;  %v843_v6 = vld [vmem:[#allocation2 + $0x9] sm:$0xff] }
  0x23   : > { %713 = vst.msk [vmem:[#allocation2 + $0xa8] sm:$0x1] %vm705_vm2, %v17191_v0  ;;  %714 = vst.msk [vmem:[#allocation2 + $0xc0] sm:$0x1] %vm705_vm2, %v17191_v0  ;;  %s17160_s16 = sshll.u32 %s13233_s30, 8  ;;  %v11022_v8 = vpack.i.bf16 %v843_v6, %v842_v5  ;;  %v12622_v52 = vld [vmem:[%s17209_s3] sm:$0xff]  }
  0x24   : > { %715 = vst.msk [vmem:[#allocation2 + $0xd8] sm:$0x1] %vm705_vm2, %v17191_v0  ;;  %716 = vst.msk [vmem:[#allocation2 + $0xf0] sm:$0x1] %vm705_vm2, %v17191_v0  ;;  %s13241_s25 = scalar_lea.vmem %s17208_s0, %s17160_s16  ;;  %s17165_s16 = smov 12   ;;  %10785 = vmatprep.subr.bf16.mxu0 %v12622_v52  ;;  %vm17185_vm13 = vcmask 261120  }
  0x25   : > { %717 = vst.msk [vmem:[#allocation2 + $0x108] sm:$0x1] %vm705_vm2, %v17191_v0  ;;  %718 = vst.msk [vmem:[#allocation2 + $0x120] sm:$0x1] %vm705_vm2, %v17191_v0  ;;  %v560_v1 = vld [vmem:[%s13241_s25] sm:$0xff]  ;;  %v561_v2 = vld [vmem:[%s13241_s25 + $0x8] sm:$0xff]  ;;  %11023 = vrot.lane.b32.xlu0 %v11022_v8, %s17167_s26  ;;  %10786 = vmatpush3.bf16.msra.mxu0 %v12622_v52 }
  0x26   : > { %719 = vst.msk [vmem:[#allocation2 + $0x138] sm:$0x1] %vm705_vm2, %v17191_v0  ;;  %720 = vst.msk [vmem:[#allocation2 + $0x150] sm:$0x1] %vm705_vm2, %v17191_v0  ;;  %v562_v3 = vld [vmem:[%s13241_s25 + $0x10] sm:$0xff]  ;;  %v563_v9 = vld [vmem:[%s13241_s25 + $0x18] sm:$0xff] }
  0x27   : > { %721 = vst.msk [vmem:[#allocation2 + $0x168] sm:$0x1] %vm705_vm2, %v17191_v0  ;;  %722 = vst.msk [vmem:[#allocation2 + $0x180] sm:$0x1] %vm705_vm2, %v17191_v0  ;;  %v564_v10 = vld [vmem:[%s13241_s25 + $0x20] sm:$0xff]  ;;  %v565_v12 = vld [vmem:[%s13241_s25 + $0x28] sm:$0xff] }
  0x28   : > { %725 = vst.msk [vmem:[#allocation2 + $0x1c8] sm:$0x1] %vm705_vm2, %v17191_v0  ;;  %726 = vst.msk [vmem:[#allocation2 + $0x1e0] sm:$0x1] %vm705_vm2, %v17191_v0  ;;  %v566_v13 = vld [vmem:[%s13241_s25 + $0x30] sm:$0xff]  ;;  %v567_v14 = vld [vmem:[%s13241_s25 + $0x38] sm:$0xff] }
  0x29   : > { %727 = vst.msk [vmem:[#allocation2 + $0x1f8] sm:$0x1] %vm705_vm2, %v17191_v0  ;;  %728 = vst.msk [vmem:[#allocation2 + $0x210] sm:$0x1] %vm705_vm2, %v17191_v0  ;;  %v568_v15 = vld [vmem:[%s13241_s25 + $0x40] sm:$0xff]  ;;  %v569_v16 = vld [vmem:[%s13241_s25 + $0x48] sm:$0xff] }
  0x2a   : > { %729 = vst.msk [vmem:[#allocation2 + $0x228] sm:$0x1] %vm705_vm2, %v17191_v0  ;;  %730 = vst.msk [vmem:[#allocation2 + $0x240] sm:$0x1] %vm705_vm2, %v17191_v0  ;;  %v570_v17 = vld [vmem:[%s13241_s25 + $0x50] sm:$0xff]  ;;  %v571_v18 = vld [vmem:[%s13241_s25 + $0x58] sm:$0xff] }
  0x2b   : > { %731 = vst.msk [vmem:[#allocation2 + $0x258] sm:$0x1] %vm705_vm2, %v17191_v0  ;;  %732 = vst.msk [vmem:[#allocation2 + $0x270] sm:$0x1] %vm705_vm2, %v17191_v0  ;;  %v572_v19 = vld [vmem:[%s13241_s25 + $0x60] sm:$0xff]  ;;  %v573_v20 = vld [vmem:[%s13241_s25 + $0x68] sm:$0xff] }
  0x2c   : > { %733 = vst.msk [vmem:[#allocation2 + $0x288] sm:$0x1] %vm705_vm2, %v17191_v0  ;;  %734 = vst.msk [vmem:[#allocation2 + $0x2a0] sm:$0x1] %vm705_vm2, %v17191_v0  ;;  %v574_v21 = vld [vmem:[%s13241_s25 + $0x70] sm:$0xff]  ;;  %v575_v22 = vld [vmem:[%s13241_s25 + $0x78] sm:$0xff] }
  0x2d   : > { %735 = vst.msk [vmem:[#allocation2 + $0x2b8] sm:$0x1] %vm705_vm2, %v17191_v0  ;;  %736 = vst.msk [vmem:[#allocation2 + $0x2d0] sm:$0x1] %vm705_vm2, %v17191_v0  ;;  %v576_v23 = vld [vmem:[%s13241_s25 + $0x80] sm:$0xff]  ;;  %v577_v24 = vld [vmem:[%s13241_s25 + $0x88] sm:$0xff] }
  0x2e   : > { %737 = vst.msk [vmem:[#allocation2 + $0x2e8] sm:$0x1] %vm705_vm2, %v17191_v0  ;;  %738 = vst.msk [vmem:[#allocation2 + $0x300] sm:$0x1] %vm705_vm2, %v17191_v0  ;;  %v578_v50 = vld [vmem:[%s13241_s25 + $0x90] sm:$0xff]  ;;  %v579_v51 = vld [vmem:[%s13241_s25 + $0x98] sm:$0xff] }
  0x2f   : > { %739 = vst.msk [vmem:[#allocation2 + $0x318] sm:$0x1] %vm705_vm2, %v17191_v0  ;;  %740 = vst.msk [vmem:[#allocation2 + $0x330] sm:$0x1] %vm705_vm2, %v17191_v0  ;;  %v12623_v55 = vld [vmem:[%s17209_s3 + $0x8] sm:$0x3f]  }
  0x30   : > { %743 = vst.msk [vmem:[#allocation2 + $0x29] sm:$0x1] %vm705_vm2, %v17191_v0  ;;  %744 = vst.msk [vmem:[#allocation2 + $0x41] sm:$0x1] %vm705_vm2, %v17191_v0  ;;  %v580_v56 = vld [vmem:[%s13241_s25 + $0xa0] sm:$0xff]  ;;  %v581_v57 = vld [vmem:[%s13241_s25 + $0xa8] sm:$0xff]  ;;  %v4078_v58 = vand.u32 %v12623_v55, %v4076_v53 }
  0x31   : > { %745 = vst.msk [vmem:[#allocation2 + $0x59] sm:$0x1] %vm705_vm2, %v17191_v0  ;;  %746 = vst.msk [vmem:[#allocation2 + $0x71] sm:$0x1] %vm705_vm2, %v17191_v0  ;;  %s17210_s0 = smov 3   ;;  %s17215_s3 = smov 18  }
  0x32   : > { %747 = vst.msk [vmem:[#allocation2 + $0x89] sm:$0x1] %vm705_vm2, %v17191_v0  ;;  %748 = vst.msk [vmem:[#allocation2 + $0xa1] sm:$0x1] %vm705_vm2, %v17191_v0  ;;  %10787 = vmatprep.subr.bf16.mxu0 %v4078_v58  ;;  %v591_v48 = vld [vmem:[%s13241_s25 + $0xf8] sm:$0xff]  ;;  %vm6603_vm14 = vcmask 254976  }
  0x33   : > { %749 = vst.msk [vmem:[#allocation2 + $0xb9] sm:$0x1] %vm705_vm2, %v17191_v0  ;;  %750 = vst.msk [vmem:[#allocation2 + $0xd1] sm:$0x1] %vm705_vm2, %v17191_v0  ;;  %10788 = vmatpush3.bf16.msra.mxu0 %v4078_v58  ;;  %vm6612_vm15 = vcmask 253952   ;;  %s17220_s4 = sld [smem:[#allocation21_spill]] }
  0x34   : > { %751 = vst.msk [vmem:[#allocation2 + $0xe9] sm:$0x1] %vm705_vm2, %v17191_v0  ;;  %752 = vst.msk [vmem:[#allocation2 + $0x101] sm:$0x1] %vm705_vm2, %v17191_v0  ;;  %vm6449_vm1 = vcmask 1041409   ;;  %vm6453_vm3 = vcmask 1043459  }
  0x35   : > { %753 = vst.msk [vmem:[#allocation2 + $0x119] sm:$0x1] %vm705_vm2, %v17191_v0  ;;  %754 = vst.msk [vmem:[#allocation2 + $0x131] sm:$0x1] %vm705_vm2, %v17191_v0  ;;  %vm17190_vm4 = vcmask 1044484   ;;  %s17276_s5 = sld [smem:[#allocation22_spill]] }
  0x36   : > { %755 = vst.msk [vmem:[#allocation2 + $0x149] sm:$0x1] %vm705_vm2, %v17191_v0  ;;  %756 = vst.msk [vmem:[#allocation2 + $0x161] sm:$0x1] %vm705_vm2, %v17191_v0  ;;  %s17442_s6 = sld [smem:[#allocation23_spill]]  ;;  %s17443_s2 = sld [smem:[#allocation19_spill]] }
  0x37   : > { %757 = vst.msk [vmem:[#allocation2 + $0x179] sm:$0x1] %vm705_vm2, %v17191_v0  ;;  %758 = vst.msk [vmem:[#allocation2 + $0x191] sm:$0x1] %vm705_vm2, %v17191_v0 }
  0x38   : > { %761 = vst.msk [vmem:[#allocation2 + $0x1d9] sm:$0x1] %vm705_vm2, %v17191_v0  ;;  %762 = vst.msk [vmem:[#allocation2 + $0x1f1] sm:$0x1] %vm705_vm2, %v17191_v0 }
  0x39   : > { %763 = vst.msk [vmem:[#allocation2 + $0x209] sm:$0x1] %vm705_vm2, %v17191_v0  ;;  %764 = vst.msk [vmem:[#allocation2 + $0x221] sm:$0x1] %vm705_vm2, %v17191_v0 }
  0x3a   : > { %765 = vst.msk [vmem:[#allocation2 + $0x239] sm:$0x1] %vm705_vm2, %v17191_v0  ;;  %766 = vst.msk [vmem:[#allocation2 + $0x251] sm:$0x1] %vm705_vm2, %v17191_v0 }
  0x3b   : > { %767 = vst.msk [vmem:[#allocation2 + $0x269] sm:$0x1] %vm705_vm2, %v17191_v0  ;;  %768 = vst.msk [vmem:[#allocation2 + $0x281] sm:$0x1] %vm705_vm2, %v17191_v0 }
  0x3c   : > { %769 = vst.msk [vmem:[#allocation2 + $0x299] sm:$0x1] %vm705_vm2, %v17191_v0  ;;  %770 = vst.msk [vmem:[#allocation2 + $0x2b1] sm:$0x1] %vm705_vm2, %v17191_v0 }
  0x3d   : > { %771 = vst.msk [vmem:[#allocation2 + $0x2c9] sm:$0x1] %vm705_vm2, %v17191_v0  ;;  %772 = vst.msk [vmem:[#allocation2 + $0x2e1] sm:$0x1] %vm705_vm2, %v17191_v0 }
  0x3e   : > { %773 = vst.msk [vmem:[#allocation2 + $0x2f9] sm:$0x1] %vm705_vm2, %v17191_v0  ;;  %774 = vst.msk [vmem:[#allocation2 + $0x311] sm:$0x1] %vm705_vm2, %v17191_v0 }
  0x3f   : > { %775 = vst.msk [vmem:[#allocation2 + $0x329] sm:$0x1] %vm705_vm2, %v17191_v0  ;;  %776 = vst.msk [vmem:[#allocation2 + $0x341] sm:$0x1] %vm705_vm2, %v17191_v0 }
  0x40   : > { %8774 = vst [vmem:[#allocation5] sm:$0xff] %v17191_v0  ;;  %8775 = vst [vmem:[#allocation5 + $0x8] sm:$0x3] %v17191_v0 }
  0x41   : > { %8777 = vst [vmem:[#allocation5 + $0x90] sm:$0xff] %v17191_v0  ;;  %8778 = vst [vmem:[#allocation5 + $0x98] sm:$0x3] %v17191_v0 }
  0x42   : > { %8780 = vst [vmem:[#allocation5 + $0x10] sm:$0x1] %v17191_v0  ;;  %8781 = vst [vmem:[#allocation5 + $0x20] sm:$0x1] %v17191_v0 }
  0x43   : > { %8782 = vst [vmem:[#allocation5 + $0x30] sm:$0x1] %v17191_v0  ;;  %8783 = vst [vmem:[#allocation5 + $0x40] sm:$0x1] %v17191_v0 }
  0x44   : > { %8784 = vst [vmem:[#allocation5 + $0x50] sm:$0x1] %v17191_v0  ;;  %8785 = vst [vmem:[#allocation5 + $0x60] sm:$0x1] %v17191_v0 }
  0x45   : > { %8786 = vst [vmem:[#allocation5 + $0x70] sm:$0x1] %v17191_v0  ;;  %8787 = vst [vmem:[#allocation5 + $0x80] sm:$0x1] %v17191_v0 }
  0x46   : > { %8790 = vst [vmem:[#allocation5 + $0x19] sm:$0x1] %v17191_v0  ;;  %8791 = vst [vmem:[#allocation5 + $0x29] sm:$0x1] %v17191_v0 }
  0x47   : > { %8792 = vst [vmem:[#allocation5 + $0x39] sm:$0x1] %v17191_v0  ;;  %8793 = vst [vmem:[#allocation5 + $0x49] sm:$0x1] %v17191_v0 }
  0x48   : > { %8794 = vst [vmem:[#allocation5 + $0x59] sm:$0x1] %v17191_v0  ;;  %8795 = vst [vmem:[#allocation5 + $0x69] sm:$0x1] %v17191_v0 }
  0x49   : > { %8796 = vst [vmem:[#allocation5 + $0x79] sm:$0x1] %v17191_v0  ;;  %8797 = vst [vmem:[#allocation5 + $0x89] sm:$0x1] %v17191_v0 }
  0x4a   : > { %742 = vst.msk [vmem:[#allocation2 + $0x11] sm:$0x1] %vm705_vm2, %v17191_v0  ;;  %706 = vst.msk [vmem:[#allocation2] sm:$0x1] %vm705_vm2, %v17191_v0 }
  0x4b   : > { %723 = vst.msk [vmem:[#allocation2 + $0x198] sm:$0x1] %vm705_vm2, %v17191_v0  ;;  %724 = vst.msk [vmem:[#allocation2 + $0x1b0] sm:$0x1] %vm705_vm2, %v17191_v0 }
  0x4c   : > { %741 = vst.msk [vmem:[#allocation2 + $0x348] sm:$0x1] %vm705_vm2, %v17191_v0  ;;  %759 = vst.msk [vmem:[#allocation2 + $0x1a9] sm:$0x1] %vm705_vm2, %v17191_v0 }
  0x4d   : > { %760 = vst.msk [vmem:[#allocation2 + $0x1c1] sm:$0x1] %vm705_vm2, %v17191_v0  ;;  %777 = vst.msk [vmem:[#allocation2 + $0x359] sm:$0x1] %vm705_vm2, %v17191_v0  ;;  %vm6451_vm2 = vcmask 1042434  }
  0x4e   : > { %8779 = vst [vmem:[#allocation5] sm:$0x1] %v17191_v0  ;;  %8788 = vst [vmem:[#allocation5 + $0x90] sm:$0x1] %v17191_v0 }
  0x4f   : > { %8789 = vst [vmem:[#allocation5 + $0x9] sm:$0x1] %v17191_v0  ;;  %8798 = vst [vmem:[#allocation5 + $0x99] sm:$0x1] %v17191_v0 }
  0x50   : > { %594 = vst.msk [vmem:[#allocation2 + $0x19] sm:$0xff] %vm593_vm0, %v560_v1  ;;  %595 = vst.msk [vmem:[#allocation2 + $0x21] sm:$0xff] %vm593_vm0, %v561_v2  ;;  %v582_v1 = vld [vmem:[%s13241_s25 + $0xb0] sm:$0xff]  ;;  %v583_v2 = vld [vmem:[%s13241_s25 + $0xb8] sm:$0xff] }
  0x51   : > { %596 = vst.msk [vmem:[#allocation2 + $0x31] sm:$0xff] %vm593_vm0, %v562_v3  ;;  %v907_v7 = vld [vmem:[#allocation2 + $0xa] sm:$0xff]  ;;  %597 = vst.msk [vmem:[#allocation2 + $0x39] sm:$0xff] %vm593_vm0, %v563_v9  ;;  %v584_v9 = vld [vmem:[%s13241_s25 + $0xc0] sm:$0xff] }
  0x52   : > { %v11027_v11 = vpack.i.bf16 %v907_v7, %v906_v4  ;;  %598 = vst.msk [vmem:[#allocation2 + $0x49] sm:$0xff] %vm593_vm0, %v564_v10  ;;  %599 = vst.msk [vmem:[#allocation2 + $0x51] sm:$0xff] %vm593_vm0, %v565_v12  ;;  %v585_v12 = vld [vmem:[%s13241_s25 + $0xc8] sm:$0xff] }
  0x53   : > { %600 = vst.msk [vmem:[#allocation2 + $0x61] sm:$0xff] %vm593_vm0, %v566_v13  ;;  %601 = vst.msk [vmem:[#allocation2 + $0x69] sm:$0xff] %vm593_vm0, %v567_v14 }
  0x54   : > { %11028 = vrot.lane.b32.xlu1 %v11027_v11, %s17161_s17  ;;  %602 = vst.msk [vmem:[#allocation2 + $0x79] sm:$0xff] %vm593_vm0, %v568_v15  ;;  %603 = vst.msk [vmem:[#allocation2 + $0x81] sm:$0xff] %vm593_vm0, %v569_v16 }
  0x55   : > { %604 = vst.msk [vmem:[#allocation2 + $0x91] sm:$0xff] %vm593_vm0, %v570_v17  ;;  %605 = vst.msk [vmem:[#allocation2 + $0x99] sm:$0xff] %vm593_vm0, %v571_v18 }
  0x56   : > { %606 = vst.msk [vmem:[#allocation2 + $0xa9] sm:$0xff] %vm593_vm0, %v572_v19  ;;  %607 = vst.msk [vmem:[#allocation2 + $0xb1] sm:$0xff] %vm593_vm0, %v573_v20 }
  0x57   : > { %608 = vst.msk [vmem:[#allocation2 + $0xc1] sm:$0xff] %vm593_vm0, %v574_v21  ;;  %609 = vst.msk [vmem:[#allocation2 + $0xc9] sm:$0xff] %vm593_vm0, %v575_v22  ;;  %v908_v25 = vld [vmem:[#allocation2 + $0x1a] sm:$0xff]  ;;  %v909_v26 = vld [vmem:[#allocation2 + $0x22] sm:$0xff] }
  0x58   : > { %v844_v27 = vld [vmem:[#allocation2 + $0x19] sm:$0xff]  ;;  %610 = vst.msk [vmem:[#allocation2 + $0xd9] sm:$0xff] %vm593_vm0, %v576_v23  ;;  %611 = vst.msk [vmem:[#allocation2 + $0xe1] sm:$0xff] %vm593_vm0, %v577_v24  ;;  %v11037_v28 = vpack.i.bf16 %v909_v26, %v908_v25  ;;  %v845_v29 = vld [vmem:[#allocation2 + $0x21] sm:$0xff] }
  0x59   : > { %v972_v30 = vld [vmem:[#allocation2 + $0x30] sm:$0xff]  ;;  %v13281_v31 = vld [vmem:[#allocation2 + $0x18] sm:$0xff]  ;;  %v11032_v32 = vpack.i.bf16 %v845_v29, %v844_v27  ;;  %v13283_v34 = vld [vmem:[#allocation2 + $0x20] sm:$0xff]  ;;  %612 = vst.msk [vmem:[#allocation2 + $0xf1] sm:$0xff] %vm593_vm0, %v578_v50 }
  0x5a   : > { %v973_v33 = vld [vmem:[#allocation2 + $0x38] sm:$0xff]  ;;  %11038 = vrot.lane.b32.xlu1 %v11037_v28, %s17161_s17  ;;  %v11042_v36 = vpack.i.bf16 %v13283_v34, %v13281_v31  ;;  %v1165_v43 = vld [vmem:[#allocation2 + $0x48] sm:$0xff]  ;;  %v1166_v44 = vld [vmem:[#allocation2 + $0x50] sm:$0xff]  ;;  %s17169_s17 = smov 15   ;;  %613 = vst.msk [vmem:[#allocation2 + $0xf9] sm:$0xff] %vm593_vm0, %v579_v51 }
  0x5b   : > { %v11047_v35 = vpack.i.bf16 %v973_v33, %v972_v30  ;;  %11033 = vrot.lane.b32.xlu0 %v11032_v32, %s17167_s26  ;;  %v1036_v37 = vld [vmem:[#allocation2 + $0x31] sm:$0xff]  ;;  %v1037_v38 = vld [vmem:[#allocation2 + $0x39] sm:$0xff]  ;;  %v11077_v45 = vpack.i.bf16 %v1166_v44, %v1165_v43  ;;  %v1229_v46 = vld [vmem:[#allocation2 + $0x49] sm:$0xff]  ;;  %s17175_s26 = smov 18   ;;  %614 = vst.msk [vmem:[#allocation2 + $0x109] sm:$0xff] %vm593_vm0, %v580_v56 }
  0x5c   : > { %v11057_v39 = vpack.i.bf16 %v1037_v38, %v1036_v37  ;;  %v1100_v40 = vld [vmem:[#allocation2 + $0x32] sm:$0xff]  ;;  %v1101_v41 = vld [vmem:[#allocation2 + $0x3a] sm:$0xff]  ;;  %615 = vst.msk [vmem:[#allocation2 + $0x111] sm:$0xff] %vm593_vm0, %v581_v57  ;;  %v1293_v59 = vld [vmem:[#allocation2 + $0x4a] sm:$0xff] }
  0x5d   : > { %v11067_v42 = vpack.i.bf16 %v1101_v41, %v1100_v40  ;;  %v1230_v47 = vld [vmem:[#allocation2 + $0x51] sm:$0xff]  ;;  %v976_v62 = vld [vmem:[#allocation2 + $0x60] sm:$0xff]  ;;  %v977_v63 = vld [vmem:[#allocation2 + $0x68] sm:$0xff]  ;;  %616 = vst.msk [vmem:[#allocation2 + $0x121] sm:$0xff] %vm593_vm0, %v582_v1 }
  0x5e   : > { %11048 = vrot.lane.b32.xlu1 %v11047_v35, %s17163_s23  ;;  %v11087_v54 = vpack.i.bf16 %v1230_v47, %v1229_v46  ;;  %v1294_v60 = vld [vmem:[#allocation2 + $0x52] sm:$0xff]  ;;  %617 = vst.msk [vmem:[#allocation2 + $0x129] sm:$0xff] %vm593_vm0, %v583_v2  ;;  %v1040_v3 = vld [vmem:[#allocation2 + $0x61] sm:$0xff]  ;;  %v1041_v4 = vld [vmem:[#allocation2 + $0x69] sm:$0xff]  ;;  %v11127_v5 = vpack.i.bf16 %v977_v63, %v976_v62 }
  0x5f   : > { %11043 = vrot.lane.b32.xlu0 %v11042_v36, %s17163_s23  ;;  %v11102_v61 = vpack.i.bf16 %v1294_v60, %v1293_v59  ;;  %s17211_s23 = smov 6   ;;  %v1104_v6 = vld [vmem:[#allocation2 + $0x62] sm:$0xff]  ;;  %v1105_v7 = vld [vmem:[#allocation2 + $0x6a] sm:$0xff]  ;;  %v11137_v8 = vpack.i.bf16 %v1041_v4, %v1040_v3  ;;  %v1169_v10 = vld [vmem:[#allocation2 + $0x78] sm:$0xff]  ;;  %618 = vst.msk [vmem:[#allocation2 + $0x139] sm:$0xff] %vm593_vm0, %v584_v9 }
  0x60   : > { %v1170_v11 = vld [vmem:[#allocation2 + $0x80] sm:$0xff]  ;;  %v11147_v13 = vpack.i.bf16 %v1105_v7, %v1104_v6  ;;  %619 = vst.msk [vmem:[#allocation2 + $0x141] sm:$0xff] %vm593_vm0, %v585_v12  ;;  %v586_v21 = vld [vmem:[%s13241_s25 + $0xd0] sm:$0xff]  ;;  %v981_v23 = vld [vmem:[#allocation2 + $0x98] sm:$0xff] }
  0x61   : > { %v1233_v14 = vld [vmem:[#allocation2 + $0x79] sm:$0xff]  ;;  %v1234_v15 = vld [vmem:[#allocation2 + $0x81] sm:$0xff]  ;;  %v11157_v16 = vpack.i.bf16 %v1170_v11, %v1169_v10  ;;  %v980_v22 = vld [vmem:[#allocation2 + $0x90] sm:$0xff]  ;;  %620 = vst.msk [vmem:[#allocation2 + $0x151] sm:$0xff] %vm593_vm0, %v586_v21 }
  0x62   : > { %11058 = vrot.lane.b32.xlu1 %v11057_v39, %s17165_s16  ;;  %v11167_v17 = vpack.i.bf16 %v1234_v15, %v1233_v14  ;;  %v1297_v18 = vld [vmem:[#allocation2 + $0x7a] sm:$0xff]  ;;  %v1298_v19 = vld [vmem:[#allocation2 + $0x82] sm:$0xff]  ;;  %v1044_v25 = vld [vmem:[#allocation2 + $0x91] sm:$0xff]  ;;  %v11207_v27 = vpack.i.bf16 %v981_v23, %v980_v22  ;;  %625 = vst.msk [vmem:[#allocation2 + $0x189] sm:$0xff] %vm593_vm0, %v591_v48 }
  0x63   : > { %11053 = vrot.lane.b32.xlu0 %v11032_v32, %s17165_s16  ;;  %s17171_s16 = smov 21   ;;  %v11182_v20 = vpack.i.bf16 %v1298_v19, %v1297_v18  ;;  %v587_v24 = vld [vmem:[%s13241_s25 + $0xd8] sm:$0xff]  ;;  %v588_v32 = vld [vmem:[%s13241_s25 + $0xe0] sm:$0xff]  ;;  %v1173_v33 = vld [vmem:[#allocation2 + $0xa8] sm:$0xff]  ;;  %6602 = vst.msk [vmem:[#allocation3] sm:$0xff] %vm17185_vm13, %v17191_v0 }
  0x64   : > { %621 = vst.msk [vmem:[#allocation2 + $0x159] sm:$0xff] %vm593_vm0, %v587_v24  ;;  %v1045_v26 = vld [vmem:[#allocation2 + $0x99] sm:$0xff]  ;;  %v589_v36 = vld [vmem:[%s13241_s25 + $0xe8] sm:$0xff]  ;;  %622 = vst.msk [vmem:[#allocation2 + $0x169] sm:$0xff] %vm593_vm0, %v588_v32 }
  0x65   : > { %v1109_v29 = vld [vmem:[#allocation2 + $0x9a] sm:$0xff]  ;;  %v11217_v30 = vpack.i.bf16 %v1045_v26, %v1044_v25  ;;  %623 = vst.msk [vmem:[#allocation2 + $0x171] sm:$0xff] %vm593_vm0, %v589_v36  ;;  %v1237_v38 = vld [vmem:[#allocation2 + $0xa9] sm:$0xff]  ;;  %v1302_v43 = vld [vmem:[#allocation2 + $0xb2] sm:$0xff] }
  0x66   : > { %11068 = vrot.lane.b32.xlu1 %v11067_v42, %s17169_s17  ;;  %v984_v46 = vld [vmem:[#allocation2 + $0xc0] sm:$0xff]  ;;  %v985_v47 = vld [vmem:[#allocation2 + $0xc8] sm:$0xff]  ;;  %v1177_v55 = vld [vmem:[#allocation2 + $0xd8] sm:$0xff]  ;;  %6605 = vst.msk [vmem:[#allocation3 + $0xa0] sm:$0xff] %vm17185_vm13, %v17191_v0 }
  0x67   : > { %11063 = vrot.lane.b32.xlu0 %v11037_v28, %s17169_s17  ;;  %s17173_s17 = smov 24   ;;  %v1108_v28 = vld [vmem:[#allocation2 + $0x92] sm:$0xff]  ;;  %v1048_v49 = vld [vmem:[#allocation2 + $0xc1] sm:$0xff]  ;;  %v1049_v50 = vld [vmem:[#allocation2 + $0xc9] sm:$0xff]  ;;  %v11287_v51 = vpack.i.bf16 %v985_v47, %v984_v46  ;;  %6608 = vst.msk [vmem:[#allocation3 + $0x90] sm:$0xff] %vm17185_vm13, %v17191_v0 }
  0x68   : > { %v11227_v37 = vpack.i.bf16 %v1109_v29, %v1108_v28  ;;  %v1112_v52 = vld [vmem:[#allocation2 + $0xc2] sm:$0xff]  ;;  %v1113_v53 = vld [vmem:[#allocation2 + $0xca] sm:$0xff]  ;;  %v1241_v58 = vld [vmem:[#allocation2 + $0xd9] sm:$0xff]  ;;  %6610 = vst.msk [vmem:[#allocation3 + $0x130] sm:$0xff] %vm17185_vm13, %v17191_v0 }
  0x69   : > { %v1178_v56 = vld [vmem:[#allocation2 + $0xe0] sm:$0xff]  ;;  %v11307_v57 = vpack.i.bf16 %v1113_v53, %v1112_v52  ;;  %v988_v14 = vld [vmem:[#allocation2 + $0xf0] sm:$0xff]  ;;  %v989_v15 = vld [vmem:[#allocation2 + $0xf8] sm:$0xff]  ;;  %6604 = vst.msk [vmem:[#allocation3 + $0x8] sm:$0x3] %vm6603_vm14, %v17191_v0 }
  0x6a   : > { %11078 = vrot.lane.b32.xlu1 %v11077_v45, %s17175_s26  ;;  %v1242_v59 = vld [vmem:[#allocation2 + $0xe1] sm:$0xff]  ;;  %v13428_v24 = vpack.i.bf16 %v989_v15, %v988_v14  ;;  %v1053_v28 = vld [vmem:[#allocation2 + $0xf9] sm:$0xff]  ;;  %6606 = vst.msk [vmem:[#allocation3 + $0xa8] sm:$0x3] %vm6603_vm14, %v17191_v0  ;;  %6609 = vst.msk [vmem:[#allocation3 + $0x98] sm:$0x3] %vm6603_vm14, %v17191_v0 }
  0x6b   : > { %11073 = vrot.lane.b32.xlu0 %v11047_v35, %s17175_s26  ;;  %s17214_s26 = smov 15   ;;  %v1174_v35 = vld [vmem:[#allocation2 + $0xb0] sm:$0xff]  ;;  %v13390_v63 = vpack.i.bf16 %v1242_v59, %v1241_v58  ;;  %v1305_v6 = vld [vmem:[#allocation2 + $0xda] sm:$0xff]  ;;  %v1306_v7 = vld [vmem:[#allocation2 + $0xe2] sm:$0xff]  ;;  %6611 = vst.msk [vmem:[#allocation3 + $0x138] sm:$0x3] %vm6603_vm14, %v17191_v0 }
  0x6c   : > { %v11237_v40 = vpack.i.bf16 %v1174_v35, %v1173_v33  ;;  %v13408_v9 = vpack.i.bf16 %v1306_v7, %v1305_v6  ;;  %v779_v19 = vld [vmem:[#allocation2 + $0x8] sm:$0xff]  ;;  %v1116_v29 = vld [vmem:[#allocation2 + $0xf2] sm:$0xff]  ;;  %6634 = vst.msk [vmem:[#allocation3 + $0x19] sm:$0x1] %vm6612_vm15, %v17191_v0  ;;  %6635 = vst.msk [vmem:[#allocation3 + $0x29] sm:$0x1] %vm6612_vm15, %v17191_v0 }
  0x6d   : > { %6613 = vst.msk [vmem:[#allocation3] sm:$0x1] %vm6612_vm15, %v17191_v0  ;;  %6614 = vst.msk [vmem:[#allocation3 + $0x10] sm:$0x1] %vm6612_vm15, %v17191_v0  ;;  %vm17188_vm14 = vcmask 1045509  }
  0x6e   : > { %11088 = vrot.lane.b32.xlu1 %v11087_v54, %s17171_s16  ;;  %6615 = vst.msk [vmem:[#allocation3 + $0x20] sm:$0x1] %vm6612_vm15, %v17191_v0  ;;  %6616 = vst.msk [vmem:[#allocation3 + $0x30] sm:$0x1] %vm6612_vm15, %v17191_v0 }
  0x6f   : > { %11083 = vrot.lane.b32.xlu0 %v11057_v39, %s17171_s16  ;;  %s17212_s16 = smov 9   ;;  %6617 = vst.msk [vmem:[#allocation3 + $0x40] sm:$0x1] %vm6612_vm15, %v17191_v0  ;;  %6618 = vst.msk [vmem:[#allocation3 + $0x50] sm:$0x1] %vm6612_vm15, %v17191_v0 }
  0x70   : > { %6619 = vst.msk [vmem:[#allocation3 + $0x60] sm:$0x1] %vm6612_vm15, %v17191_v0  ;;  %6620 = vst.msk [vmem:[#allocation3 + $0x70] sm:$0x1] %vm6612_vm15, %v17191_v0 }
  0x71   : > { %6621 = vst.msk [vmem:[#allocation3 + $0x80] sm:$0x1] %vm6612_vm15, %v17191_v0  ;;  %6622 = vst.msk [vmem:[#allocation3 + $0x90] sm:$0x1] %vm6612_vm15, %v17191_v0 }
  0x72   : > { %11098 = vrot.lane.b32.xlu1 %v11057_v39, %s17210_s0  ;;  %v1238_v39 = vld [vmem:[#allocation2 + $0xb1] sm:$0xff]  ;;  %6623 = vst.msk [vmem:[#allocation3 + $0xa0] sm:$0x1] %vm6612_vm15, %v17191_v0  ;;  %6624 = vst.msk [vmem:[#allocation3 + $0xb0] sm:$0x1] %vm6612_vm15, %v17191_v0 }
  0x73   : > { %11093 = vrot.lane.b32.xlu0 %v11067_v42, %s17173_s17  ;;  %v11247_v41 = vpack.i.bf16 %v1238_v39, %v1237_v38  ;;  %v1181_v38 = vld [vmem:[#allocation2 + $0x108] sm:$0xff]  ;;  %v1182_v39 = vld [vmem:[#allocation2 + $0x110] sm:$0xff]  ;;  %6625 = vst.msk [vmem:[#allocation3 + $0xc0] sm:$0x1] %vm6612_vm15, %v17191_v0  ;;  %6626 = vst.msk [vmem:[#allocation3 + $0xd0] sm:$0x1] %vm6612_vm15, %v17191_v0 }
  0x74   : > { %6627 = vst.msk [vmem:[#allocation3 + $0xe0] sm:$0x1] %vm6612_vm15, %v17191_v0  ;;  %6628 = vst.msk [vmem:[#allocation3 + $0xf0] sm:$0x1] %vm6612_vm15, %v17191_v0 }
  0x75   : > { %6629 = vst.msk [vmem:[#allocation3 + $0x100] sm:$0x1] %vm6612_vm15, %v17191_v0  ;;  %6630 = vst.msk [vmem:[#allocation3 + $0x110] sm:$0x1] %vm6612_vm15, %v17191_v0 }
  0x76   : > { %11108 = vrot.lane.b32.xlu1 %v11087_v54, %s17210_s0  ;;  %6631 = vst.msk [vmem:[#allocation3 + $0x120] sm:$0x1] %vm6612_vm15, %v17191_v0  ;;  %6632 = vst.msk [vmem:[#allocation3 + $0x130] sm:$0x1] %vm6612_vm15, %v17191_v0 }
  0x77   : > { %11103 = vrot.lane.b32.xlu0 %v11102_v61, %s17173_s17  ;;  %s17213_s17 = smov 12   ;;  %6636 = vst.msk [vmem:[#allocation3 + $0x39] sm:$0x1] %vm6612_vm15, %v17191_v0  ;;  %6637 = vst.msk [vmem:[#allocation3 + $0x49] sm:$0x1] %vm6612_vm15, %v17191_v0 }
  0x78   : > { %6638 = vst.msk [vmem:[#allocation3 + $0x59] sm:$0x1] %vm6612_vm15, %v17191_v0  ;;  %6639 = vst.msk [vmem:[#allocation3 + $0x69] sm:$0x1] %vm6612_vm15, %v17191_v0 }
  0x79   : > { %6640 = vst.msk [vmem:[#allocation3 + $0x79] sm:$0x1] %vm6612_vm15, %v17191_v0  ;;  %6641 = vst.msk [vmem:[#allocation3 + $0x89] sm:$0x1] %vm6612_vm15, %v17191_v0 }
  0x7a   : > { %11118 = vrot.lane.b32.xlu1 %v11102_v61, %s17211_s23  ;;  %6644 = vst.msk [vmem:[#allocation3 + $0xb9] sm:$0x1] %vm6612_vm15, %v17191_v0  ;;  %6645 = vst.msk [vmem:[#allocation3 + $0xc9] sm:$0x1] %vm6612_vm15, %v17191_v0 }
  0x7b   : > { %11113 = vrot.lane.b32.xlu0 %v11067_v42, %s17211_s23  ;;  %v1301_v42 = vld [vmem:[#allocation2 + $0xaa] sm:$0xff]  ;;  %6646 = vst.msk [vmem:[#allocation3 + $0xd9] sm:$0x1] %vm6612_vm15, %v17191_v0  ;;  %6647 = vst.msk [vmem:[#allocation3 + $0xe9] sm:$0x1] %vm6612_vm15, %v17191_v0 }
  0x7c   : > { %v11262_v44 = vpack.i.bf16 %v1302_v43, %v1301_v42  ;;  %6648 = vst.msk [vmem:[#allocation3 + $0xf9] sm:$0x1] %vm6612_vm15, %v17191_v0  ;;  %6649 = vst.msk [vmem:[#allocation3 + $0x109] sm:$0x1] %vm6612_vm15, %v17191_v0 }
  0x7d   : > { %6650 = vst.msk [vmem:[#allocation3 + $0x119] sm:$0x1] %vm6612_vm15, %v17191_v0  ;;  %6651 = vst.msk [vmem:[#allocation3 + $0x129] sm:$0x1] %vm6612_vm15, %v17191_v0 }
  0x7e   : > { %11128 = vrot.lane.b32.xlu1 %v11127_v5, %s17212_s16  ;;  %6633 = vst.msk [vmem:[#allocation3 + $0x9] sm:$0x1] %vm6612_vm15, %v17191_v0  ;;  %6642 = vst.msk [vmem:[#allocation3 + $0x99] sm:$0x1] %vm6612_vm15, %v17191_v0 }
  0x7f   : > { %11123 = vrot.lane.b32.xlu0 %v11077_v45, %s17212_s16  ;;  %v590_v45 = vld [vmem:[%s13241_s25 + $0xf0] sm:$0xff]  ;;  %s17218_s25 = sshll.u32 %s13233_s30, 8  ;;  %6643 = vst.msk [vmem:[#allocation3 + $0xa9] sm:$0x1] %vm6612_vm15, %v17191_v0  ;;  %6652 = vst.msk [vmem:[#allocation3 + $0x139] sm:$0x1] %vm6612_vm15, %v17191_v0 }
  0x80   : > { %624 = vst.msk [vmem:[#allocation2 + $0x181] sm:$0xff] %vm593_vm0, %v590_v45  ;;  %s13386_s18 = scalar_lea.vmem %s17219_s1, %s17218_s25  ;;  %vm17187_vm15 = vcmask 1046534  }
  0x81   : > { %v626_v2 = vld [vmem:[%s13386_s18] sm:$0xff]  ;;  %v627_v4 = vld [vmem:[%s13386_s18 + $0x8] sm:$0xff]  ;;  %v628_v12 = vld [vmem:[%s13386_s18 + $0x10] sm:$0xff] }
  0x82   : > { %11138 = vrot.lane.b32.xlu1 %v11137_v8, %s17213_s17  ;;  %659 = vst.msk [vmem:[#allocation2 + $0x1c9] sm:$0xff] %vm593_vm0, %v626_v2  ;;  %660 = vst.msk [vmem:[#allocation2 + $0x1d1] sm:$0xff] %vm593_vm0, %v627_v4 }
  0x83   : > { %11133 = vrot.lane.b32.xlu0 %v11087_v54, %s17213_s17  ;;  %v11297_v54 = vpack.i.bf16 %v1049_v50, %v1048_v49  ;;  %661 = vst.msk [vmem:[#allocation2 + $0x1e1] sm:$0xff] %vm593_vm0, %v628_v12  ;;  %v13457_v49 = vpack.i.bf16 %v1182_v39, %v1181_v38 }
  0x86   : > { %11148 = vrot.lane.b32.xlu1 %v11147_v13, %s17214_s26 }
  0x87   : > { %11143 = vrot.lane.b32.xlu0 %v11102_v61, %s17214_s26  ;;  %v13378_v61 = vpack.i.bf16 %v1178_v56, %v1177_v55  ;;  %v630_v55 = vld [vmem:[%s13386_s18 + $0x20] sm:$0xff] }
  0x88   : > { %663 = vst.msk [vmem:[#allocation2 + $0x1f9] sm:$0xff] %vm593_vm0, %v630_v55 }
  0x8a   : > { %11158 = vrot.lane.b32.xlu1 %v11157_v16, %s17215_s3 }
  0x8b   : > { %11153 = vrot.lane.b32.xlu0 %v11127_v5, %s17215_s3 }
  0x8e   : > { %11168 = vrot.lane.b32.xlu1 %v11167_v17, %s17216_s27 }
  0x8f   : > { %11163 = vrot.lane.b32.xlu0 %v11137_v8, %s17216_s27 }
  0x92   : > { %11178 = vrot.lane.b32.xlu1 %v11137_v8, %s17210_s0 }
  0x93   : > { %11173 = vrot.lane.b32.xlu0 %v11147_v13, %s17217_s20 }
  0x96   : > { %11188 = vrot.lane.b32.xlu1 %v11167_v17, %s17210_s0 }
  0x97   : > { %11183 = vrot.lane.b32.xlu0 %v11182_v20, %s17217_s20  ;;  %v11024_v62 = vpop.permute.xlu0 %11023 }
  0x9a   : > { %11198 = vrot.lane.b32.xlu1 %v11182_v20, %s17211_s23 }
  0x9b   : > { %11193 = vrot.lane.b32.xlu0 %v11147_v13, %s17211_s23  ;;  %v629_v13 = vld [vmem:[%s13386_s18 + $0x18] sm:$0xff] }
  0x9c   : > { %662 = vst.msk [vmem:[#allocation2 + $0x1e9] sm:$0xff] %vm593_vm0, %v629_v13 }
  0x9e   : > { %11208 = vrot.lane.b32.xlu1 %v11207_v27, %s17212_s16 }
  0x9f   : > { %11203 = vrot.lane.b32.xlu0 %v11157_v16, %s17212_s16  ;;  %v11026_v16 = vunpack.i.h.bf16 %v11024_v62 }
  0xa2   : > { %11218 = vrot.lane.b32.xlu1 %v11217_v30, %s17213_s17 }
  0xa3   : > { %11213 = vrot.lane.b32.xlu0 %v11167_v17, %s17213_s17  ;;  %v11025_v17 = vunpack.i.l.bf16 %v11024_v62 }
  0xa6   : > { %11228 = vrot.lane.b32.xlu1 %v11227_v37, %s17214_s26 }
  0xa7   : > { %11223 = vrot.lane.b32.xlu0 %v11182_v20, %s17214_s26  ;;  %v778_v20 = vld [vmem:[#allocation2] sm:$0xff] }
  0xa8   : > { %v3403_v32 = vsel %vm593_vm0, %v778_v20, %v11025_v17 }
  0xaa   : > { %11238 = vrot.lane.b32.xlu1 %v11237_v40, %s17215_s3 }
  0xab   : > { %11233 = vrot.lane.b32.xlu0 %v11207_v27, %s17215_s3  ;;  %v1052_v27 = vld [vmem:[#allocation2 + $0xf1] sm:$0xff] }
  0xac   : > { %v13449_v47 = vpack.i.bf16 %v1053_v28, %v1052_v27 }
  0xae   : > { %11248 = vrot.lane.b32.xlu1 %v11247_v41, %s17216_s27 }
  0xaf   : > { %11243 = vrot.lane.b32.xlu0 %v11217_v30, %s17216_s27 }
  0xb2   : > { %11258 = vrot.lane.b32.xlu1 %v11217_v30, %s17210_s0  ;;  %v3404_v30 = vsel %vm593_vm0, %v779_v19, %v11026_v16 }
  0xb3   : > { %11253 = vrot.lane.b32.xlu0 %v11227_v37, %s17217_s20 }
  0xb6   : > { %11268 = vrot.lane.b32.xlu1 %v11247_v41, %s17210_s0 }
  0xb7   : > { %11263 = vrot.lane.b32.xlu0 %v11262_v44, %s17217_s20 }
  0xba   : > { %11278 = vrot.lane.b32.xlu1 %v11262_v44, %s17211_s23 }
  0xbb   : > { %11273 = vrot.lane.b32.xlu0 %v11227_v37, %s17211_s23  ;;  %v1117_v37 = vld [vmem:[#allocation2 + $0xfa] sm:$0xff] }
  0xbc   : > { %v13455_v48 = vpack.i.bf16 %v1117_v37, %v1116_v29 }
  0xbe   : > { %11288 = vrot.lane.b32.xlu1 %v11287_v51, %s17212_s16 }
  0xbf   : > { %11283 = vrot.lane.b32.xlu0 %v11237_v40, %s17212_s16 }
  0xc2   : > { %11298 = vrot.lane.b32.xlu1 %v11297_v54, %s17213_s17 }
  0xc3   : > { %11293 = vrot.lane.b32.xlu0 %v11247_v41, %s17213_s17 }
  0xc6   : > { %11308 = vrot.lane.b32.xlu1 %v11307_v57, %s17214_s26  ;;  %v13376_v60 = vpop.permute.xlu1 %11028 }
  0xc7   : > { %11303 = vrot.lane.b32.xlu0 %v11262_v44, %s17214_s26  ;;  %v11031_v25 = vunpack.i.h.bf16 %v13376_v60  ;;  %v11030_v26 = vunpack.i.l.bf16 %v13376_v60 }
  0xca   : > { %11318 = vrot.lane.b32.xlu1 %v13378_v61, %s17215_s3 }
  0xcb   : > { %11313 = vrot.lane.b32.xlu0 %v11287_v51, %s17215_s3 }
  0xcc   : > { %v13393_v1 = vpop.permute.xlu1 %11038 }
  0xcd   : > { %v11034_v3 = vpop.permute.xlu0 %11033  ;;  %v11041_v33 = vunpack.i.h.bf16 %v13393_v1  ;;  %v11040_v35 = vunpack.i.l.bf16 %v13393_v1 }
  0xce   : > { %11328 = vrot.lane.b32.xlu1 %v13390_v63, %s17216_s27  ;;  %v11036_v21 = vunpack.i.h.bf16 %v11034_v3  ;;  %v11035_v22 = vunpack.i.l.bf16 %v11034_v3 }
  0xcf   : > { %11323 = vrot.lane.b32.xlu0 %v11297_v54, %s17216_s27 }
  0xd0   : > { %v13402_v5 = vpop.permute.xlu1 %11048  ;;  %v3405_v40 = vsel %vm593_vm0, %v13281_v31, %v11035_v22  ;;  %v3406_v41 = vsel %vm593_vm0, %v13283_v34, %v11036_v21  ;;  %v3468_v31 = vsel %vm17189_vm5, %v3403_v32, %v11030_v26  ;;  %v3469_v34 = vsel %vm17189_vm5, %v3404_v30, %v11031_v25  ;;  %v1245_v22 = vld [vmem:[#allocation2 + $0x109] sm:$0xff] }
  0xd1   : > { %v13404_v8 = vpop.permute.xlu0 %11043  ;;  %v11051_v42 = vunpack.i.h.bf16 %v13402_v5  ;;  %v11050_v43 = vunpack.i.l.bf16 %v13402_v5  ;;  %v3470_v50 = vsel %vm17189_vm5, %v3405_v40, %v11040_v35  ;;  %v3471_v51 = vsel %vm17189_vm5, %v3406_v41, %v11041_v33 }
  0xd2   : > { %11338 = vrot.lane.b32.xlu1 %v11297_v54, %s17210_s0  ;;  %v11046_v45 = vunpack.i.h.bf16 %v13404_v8  ;;  %v11045_v46 = vunpack.i.l.bf16 %v13404_v8 }
  0xd3   : > { %11333 = vrot.lane.b32.xlu0 %v11307_v57, %s17217_s20  ;;  %v3535_v56 = vsel %vm3532_vm6, %v3470_v50, %v11050_v43 }
  0xd4   : > { %v13410_v10 = vpop.permute.xlu1 %11058  ;;  %v3534_v62 = vsel %vm3532_vm6, %v3469_v34, %v11046_v45  ;;  %v3533_v1 = vsel %vm3532_vm6, %v3468_v31, %v11045_v46 }
  0xd5   : > { %v13412_v11 = vpop.permute.xlu0 %11053  ;;  %v11061_v4 = vunpack.i.h.bf16 %v13410_v10  ;;  %v11060_v5 = vunpack.i.l.bf16 %v13410_v10 }
  0xd6   : > { %11348 = vrot.lane.b32.xlu1 %v13390_v63, %s17210_s0  ;;  %v11056_v52 = vunpack.i.h.bf16 %v13412_v11  ;;  %v11055_v53 = vunpack.i.l.bf16 %v13412_v11 }
  0xd7   : > { %11343 = vrot.lane.b32.xlu0 %v13408_v9, %s17217_s20  ;;  %v3600_v29 = vsel %vm17184_vm7, %v3535_v56, %v11060_v5 }
  0xd8   : > { %v13422_v18 = vpop.permute.xlu1 %11068  ;;  %v3598_v8 = vsel %vm17184_vm7, %v3533_v1, %v11055_v53  ;;  %v3599_v11 = vsel %vm17184_vm7, %v3534_v62, %v11056_v52  ;;  %v1309_v52 = vld [vmem:[#allocation2 + $0x10a] sm:$0xff]  ;;  %v1310_v53 = vld [vmem:[#allocation2 + $0x112] sm:$0xff]  ;;  %v1056_v1 = vld [vmem:[#allocation2 + $0x121] sm:$0xff] }
  0xd9   : > { %v13424_v23 = vpop.permute.xlu0 %11063  ;;  %v11071_v12 = vunpack.i.h.bf16 %v13422_v18  ;;  %v11070_v13 = vunpack.i.l.bf16 %v13422_v18  ;;  %v13535_v55 = vpack.i.bf16 %v1310_v53, %v1309_v52 }
  0xda   : > { %11358 = vrot.lane.b32.xlu1 %v13408_v9, %s17211_s23  ;;  %v11066_v58 = vunpack.i.h.bf16 %v13424_v23  ;;  %v11065_v59 = vunpack.i.l.bf16 %v13424_v23  ;;  %v1246_v23 = vld [vmem:[#allocation2 + $0x111] sm:$0xff] }
  0xdb   : > { %11353 = vrot.lane.b32.xlu0 %v11307_v57, %s17211_s23  ;;  %v3536_v57 = vsel %vm3532_vm6, %v3471_v51, %v11051_v42  ;;  %v13505_v39 = vpack.i.bf16 %v1246_v23, %v1245_v22  ;;  %v12784_v23 = vld [vmem:[#allocation2 + $0x50] sm:$0xff] }
  0xdc   : > { %v13437_v36 = vpop.permute.xlu1 %11078  ;;  %v3663_v15 = vsel %vm17183_vm8, %v3598_v8, %v11065_v59  ;;  %v3664_v16 = vsel %vm17183_vm8, %v3599_v11, %v11066_v58  ;;  %v3601_v30 = vsel %vm17184_vm7, %v3536_v57, %v11061_v4  ;;  %v632_v57 = vld [vmem:[%s13386_s18 + $0x30] sm:$0xff]  ;;  %v633_v59 = vld [vmem:[%s13386_s18 + $0x38] sm:$0xff]  ;;  %v1186_v11 = vld [vmem:[#allocation2 + $0x140] sm:$0xff] }
  0xdd   : > { %v11074_v44 = vpop.permute.xlu0 %11073  ;;  %v11081_v10 = vunpack.i.h.bf16 %v13437_v36  ;;  %v11080_v17 = vunpack.i.l.bf16 %v13437_v36  ;;  %v3665_v36 = vsel %vm17183_vm8, %v3600_v29, %v11070_v13  ;;  %v3666_v37 = vsel %vm17183_vm8, %v3601_v30, %v11071_v12  ;;  %665 = vst.msk [vmem:[#allocation2 + $0x211] sm:$0xff] %vm593_vm0, %v632_v57  ;;  %666 = vst.msk [vmem:[#allocation2 + $0x219] sm:$0xff] %vm593_vm0, %v633_v59  ;;  %v1185_v8 = vld [vmem:[#allocation2 + $0x138] sm:$0xff] }
  0xde   : > { %11368 = vrot.lane.b32.xlu1 %v13428_v24, %s17212_s16  ;;  %v11076_v2 = vunpack.i.h.bf16 %v11074_v44  ;;  %v11075_v3 = vunpack.i.l.bf16 %v11074_v44  ;;  %v13575_v22 = vpack.i.bf16 %v1186_v11, %v1185_v8  ;;  %v12786_v29 = vld [vmem:[#allocation2 + $0x38] sm:$0xff]  ;;  %v1250_v11 = vld [vmem:[#allocation2 + $0x141] sm:$0xff] }
  0xdf   : > { %11363 = vrot.lane.b32.xlu0 %v13378_v61, %s17212_s16  ;;  %v631_v61 = vld [vmem:[%s13386_s18 + $0x28] sm:$0xff]  ;;  %v3730_v40 = vsel %vm3727_vm9, %v3665_v36, %v11080_v17  ;;  %v3731_v41 = vsel %vm3727_vm9, %v3666_v37, %v11081_v10 }
  0xe0   : > { %v11089_v54 = vpop.permute.xlu1 %11088  ;;  %664 = vst.msk [vmem:[#allocation2 + $0x201] sm:$0xff] %vm593_vm0, %v631_v61  ;;  %v3728_v21 = vsel %vm3727_vm9, %v3663_v15, %v11075_v3  ;;  %v3729_v18 = vsel %vm3727_vm9, %v3664_v16, %v11076_v2  ;;  %v1057_v2 = vld [vmem:[#allocation2 + $0x129] sm:$0xff] }
  0xe1   : > { %v11084_v60 = vpop.permute.xlu0 %11083  ;;  %v11091_v25 = vunpack.i.h.bf16 %v11089_v54  ;;  %v11090_v26 = vunpack.i.l.bf16 %v11089_v54  ;;  %v1120_v3 = vld [vmem:[#allocation2 + $0x122] sm:$0xff] }
  0xe2   : > { %11378 = vrot.lane.b32.xlu1 %v13449_v47, %s17213_s17  ;;  %v11086_v6 = vunpack.i.h.bf16 %v11084_v60  ;;  %v11085_v7 = vunpack.i.l.bf16 %v11084_v60  ;;  %v993_v60 = vld [vmem:[#allocation2 + $0x128] sm:$0xff] }
  0xe3   : > { %11373 = vrot.lane.b32.xlu0 %v13390_v63, %s17213_s17  ;;  %v3795_v44 = vsel %vm17182_vm10, %v3730_v40, %v11090_v26  ;;  %v3796_v45 = vsel %vm17182_vm10, %v3731_v41, %v11091_v25  ;;  %v12785_v25 = vld [vmem:[#allocation2 + $0x48] sm:$0xff] }
  0xe4   : > { %v13483_v14 = vpop.permute.xlu1 %11098  ;;  %v3793_v27 = vsel %vm17182_vm10, %v3728_v21, %v11085_v7  ;;  %v3794_v28 = vsel %vm17182_vm10, %v3729_v18, %v11086_v6  ;;  %v1121_v7 = vld [vmem:[#allocation2 + $0x12a] sm:$0xff] }
  0xe5   : > { %v11094_v19 = vpop.permute.xlu0 %11093  ;;  %v11101_v12 = vunpack.i.h.bf16 %v13483_v14  ;;  %v11100_v13 = vunpack.i.l.bf16 %v13483_v14  ;;  %v13573_v18 = vpack.i.bf16 %v1121_v7, %v1120_v3 }
  0xe6   : > { %v11096_v63 = vunpack.i.h.bf16 %v11094_v19  ;;  %v11095_v20 = vunpack.i.l.bf16 %v11094_v19  ;;  %11388 = vrot.lane.b32.xlu1 %v13455_v48, %s17214_s26 }
  0xe7   : > { %11383 = vrot.lane.b32.xlu0 %v13408_v9, %s17214_s26  ;;  %v3408_v30 = vsel %vm593_vm0, %v12786_v29, %v11101_v12 }
  0xe8   : > { %v13499_v32 = vpop.permute.xlu1 %11108  ;;  %v3858_v33 = vsel %vm3857_vm11, %v3793_v27, %v11095_v20  ;;  %v3859_v35 = vsel %vm3857_vm11, %v3794_v28, %v11096_v63  ;;  %v13569_v63 = vpack.i.bf16 %v1057_v2, %v1056_v1 }
  0xe9   : > { %v11104_v38 = vpop.permute.xlu0 %11103  ;;  %v3922_v9 = vpack.c.bf16 %v3859_v35, %v3858_v33  ;;  %v11111_v4 = vunpack.i.h.bf16 %v13499_v32  ;;  %v11110_v5 = vunpack.i.l.bf16 %v13499_v32  ;;  %v12787_v32 = vld [vmem:[#allocation2 + $0x30] sm:$0xff] }
  0xea   : > { %v11106_v42 = vunpack.i.h.bf16 %v11104_v38  ;;  %v11105_v43 = vunpack.i.l.bf16 %v11104_v38  ;;  %11398 = vrot.lane.b32.xlu1 %v13457_v49, %s17215_s3  ;;  %v3407_v33 = vsel %vm593_vm0, %v12787_v32, %v11100_v13 }
  0xeb   : > { %11393 = vrot.lane.b32.xlu0 %v13428_v24, %s17215_s3  ;;  %10789 = vmatprep.mubr.msk.bf16.mxu0 %vm3976_vm12, %v3922_v9  ;;  %v3409_v26 = vsel %vm593_vm0, %v12785_v25, %v11110_v5 }
  0xec   : > { %v3860_v46 = vsel %vm3857_vm11, %v3795_v44, %v11105_v43  ;;  %v3861_v31 = vsel %vm3857_vm11, %v3796_v45, %v11106_v42  ;;  %v13518_v34 = vpop.permute.xlu1 %11118  ;;  %v634_v42 = vld [vmem:[%s13386_s18 + $0x40] sm:$0xff] }
  0xed   : > { %v13520_v50 = vpop.permute.xlu0 %11113  ;;  %v3923_v51 = vpack.c.bf16 %v3861_v31, %v3860_v46  ;;  %v11121_v15 = vunpack.i.h.bf16 %v13518_v34  ;;  %v11120_v16 = vunpack.i.l.bf16 %v13518_v34  ;;  %667 = vst.msk [vmem:[#allocation2 + $0x229] sm:$0xff] %vm593_vm0, %v634_v42 }
  0xee   : > { %11408 = vrot.lane.b32.xlu1 %v13505_v39, %s17216_s27  ;;  %v11116_v10 = vunpack.i.h.bf16 %v13520_v50  ;;  %v11115_v17 = vunpack.i.l.bf16 %v13520_v50 }
  0xef   : > { %11403 = vrot.lane.b32.xlu0 %v13449_v47, %s17216_s27  ;;  %10790 = vmatmul.mubr.msk.bf16.vlgmr.msra.gmra.mrb[0].mxu0 %vm3976_vm12, %v3923_v51  ;;  %v3474_v35 = vsel %vm17189_vm5, %v3409_v26, %v11120_v16 }
  0xf0   : > { %v13527_v24 = vpop.permute.xlu1 %11128  ;;  %v3473_v37 = vsel %vm17189_vm5, %v3408_v30, %v11116_v10  ;;  %v3472_v38 = vsel %vm17189_vm5, %v3407_v33, %v11115_v17 }
  0xf1   : > { %v13529_v54 = vpop.permute.xlu0 %11123  ;;  %v11131_v20 = vunpack.i.h.bf16 %v13527_v24  ;;  %v11130_v21 = vunpack.i.l.bf16 %v13527_v24 }
  0xf2   : > { %11418 = vrot.lane.b32.xlu1 %v13449_v47, %s17210_s0  ;;  %v992_v47 = vld [vmem:[#allocation2 + $0x120] sm:$0xff]  ;;  %v11126_v27 = vunpack.i.h.bf16 %v13529_v54  ;;  %v11125_v28 = vunpack.i.l.bf16 %v13529_v54 }
  0xf3   : > { %11413 = vrot.lane.b32.xlu0 %v13455_v48, %s17217_s20  ;;  %v13557_v6 = vpack.i.bf16 %v993_v60, %v992_v47  ;;  %v3539_v43 = vsel %vm3532_vm6, %v3474_v35, %v11130_v21 }
  0xf4   : > { %v13537_v56 = vpop.permute.xlu1 %11138  ;;  %v3537_v34 = vsel %vm3532_vm6, %v3472_v38, %v11125_v28  ;;  %v3538_v50 = vsel %vm3532_vm6, %v3473_v37, %v11126_v27 }
  0xf5   : > { %v13540_v58 = vpop.permute.xlu0 %11133  ;;  %v11141_v52 = vunpack.i.h.bf16 %v13537_v56  ;;  %v11140_v53 = vunpack.i.l.bf16 %v13537_v56 }
  0xf6   : > { %11428 = vrot.lane.b32.xlu1 %v13505_v39, %s17210_s0  ;;  %v11136_v9 = vunpack.i.h.bf16 %v13540_v58  ;;  %v11135_v40 = vunpack.i.l.bf16 %v13540_v58 }
  0xf7   : > { %11423 = vrot.lane.b32.xlu0 %v13535_v55, %s17217_s20  ;;  %v3604_v10 = vsel %vm17184_vm7, %v3539_v43, %v11140_v53 }
  0xf8   : > { %v13549_v61 = vpop.permute.xlu1 %11148  ;;  %v3602_v58 = vsel %vm17184_vm7, %v3537_v34, %v11135_v40  ;;  %v3603_v59 = vsel %vm17184_vm7, %v3538_v50, %v11136_v9  ;;  %v1313_v9 = vld [vmem:[#allocation2 + $0x13a] sm:$0xff]  ;;  %v1314_v40 = vld [vmem:[#allocation2 + $0x142] sm:$0xff]  ;;  %v1060_v50 = vld [vmem:[#allocation2 + $0x151] sm:$0xff] }
  0xf9   : > { %v13551_v62 = vpop.permute.xlu0 %11143  ;;  %v11151_v47 = vunpack.i.h.bf16 %v13549_v61  ;;  %v11150_v60 = vunpack.i.l.bf16 %v13549_v61  ;;  %v1249_v61 = vld [vmem:[#allocation2 + $0x139] sm:$0xff]  ;;  %v13665_v42 = vpack.i.bf16 %v1314_v40, %v1313_v9 }
  0xfa   : > { %11438 = vrot.lane.b32.xlu1 %v13535_v55, %s17211_s23  ;;  %v11146_v45 = vunpack.i.h.bf16 %v13551_v62  ;;  %v11145_v46 = vunpack.i.l.bf16 %v13551_v62  ;;  %v13635_v26 = vpack.i.bf16 %v1250_v11, %v1249_v61  ;;  %v12788_v11 = vld [vmem:[#allocation2 + $0x80] sm:$0xff] }
  0xfb   : > { %11433 = vrot.lane.b32.xlu0 %v13455_v48, %s17211_s23  ;;  %v3410_v48 = vsel %vm593_vm0, %v12784_v23, %v11111_v4 }
  0xfc   : > { %v13567_v19 = vpop.permute.xlu1 %11158  ;;  %v3475_v36 = vsel %vm17189_vm5, %v3410_v48, %v11121_v15  ;;  %v3667_v1 = vsel %vm17183_vm8, %v3602_v58, %v11145_v46  ;;  %v3668_v2 = vsel %vm17183_vm8, %v3603_v59, %v11146_v45  ;;  %v637_v46 = vld [vmem:[%s13386_s18 + $0x58] sm:$0xff]  ;;  %v1189_v58 = vld [vmem:[#allocation2 + $0x168] sm:$0xff]  ;;  %v1190_v59 = vld [vmem:[#allocation2 + $0x170] sm:$0xff] }
  0xfd   : > { %v11154_v14 = vpop.permute.xlu0 %11153  ;;  %v3540_v44 = vsel %vm3532_vm6, %v3475_v36, %v11131_v20  ;;  %v11161_v56 = vunpack.i.h.bf16 %v13567_v19  ;;  %v11160_v3 = vunpack.i.l.bf16 %v13567_v19  ;;  %670 = vst.msk [vmem:[#allocation2 + $0x249] sm:$0xff] %vm593_vm0, %v637_v46  ;;  %v13705_v61 = vpack.i.bf16 %v1190_v59, %v1189_v58  ;;  %v1254_v59 = vld [vmem:[#allocation2 + $0x171] sm:$0xff] }
  0xfe   : > { %11448 = vrot.lane.b32.xlu1 %v13557_v6, %s17212_s16  ;;  %v11156_v51 = vunpack.i.h.bf16 %v11154_v14  ;;  %v11155_v24 = vunpack.i.l.bf16 %v11154_v14  ;;  %v3605_v17 = vsel %vm17184_vm7, %v3540_v44, %v11141_v52  ;;  %v3669_v14 = vsel %vm17183_vm8, %v3604_v10, %v11150_v60  ;;  %v636_v44 = vld [vmem:[%s13386_s18 + $0x50] sm:$0xff]  ;;  %v12790_v10 = vld [vmem:[#allocation2 + $0x68] sm:$0xff] }
  0xff   : > { %11443 = vrot.lane.b32.xlu0 %v13457_v49, %s17212_s16  ;;  %v635_v49 = vld [vmem:[%s13386_s18 + $0x48] sm:$0xff]  ;;  %v3670_v23 = vsel %vm17183_vm8, %v3605_v17, %v11151_v47  ;;  %669 = vst.msk [vmem:[#allocation2 + $0x241] sm:$0xff] %vm593_vm0, %v636_v44 }
 0x100   : > { %v11169_v41 = vpop.permute.xlu1 %11168  ;;  %668 = vst.msk [vmem:[#allocation2 + $0x231] sm:$0xff] %vm593_vm0, %v635_v49  ;;  %v3733_v5 = vsel %vm3727_vm9, %v3668_v2, %v11156_v51  ;;  %v3735_v27 = vsel %vm3727_vm9, %v3670_v23, %v11161_v56  ;;  %v1061_v51 = vld [vmem:[#allocation2 + $0x159] sm:$0xff] }
 0x101   : > { %v11164_v31 = vpop.permute.xlu0 %11163  ;;  %v11171_v12 = vunpack.i.h.bf16 %v11169_v41  ;;  %v11170_v13 = vunpack.i.l.bf16 %v11169_v41 }
 0x102   : > { %11458 = vrot.lane.b32.xlu1 %v13569_v63, %s17213_s17  ;;  %v11166_v54 = vunpack.i.h.bf16 %v11164_v31  ;;  %v11165_v57 = vunpack.i.l.bf16 %v11164_v31  ;;  %v997_v31 = vld [vmem:[#allocation2 + $0x158] sm:$0xff] }
 0x103   : > { %11453 = vrot.lane.b32.xlu0 %v13505_v39, %s17213_s17  ;;  %v3732_v39 = vsel %vm3727_vm9, %v3667_v1, %v11155_v24  ;;  %v3800_v32 = vsel %vm17182_vm10, %v3735_v27, %v11171_v12  ;;  %v1124_v24 = vld [vmem:[#allocation2 + $0x152] sm:$0xff] }
 0x104   : > { %v13613_v62 = vpop.permute.xlu1 %11178  ;;  %v3797_v15 = vsel %vm17182_vm10, %v3732_v39, %v11165_v57  ;;  %v3798_v16 = vsel %vm17182_vm10, %v3733_v5, %v11166_v54  ;;  %v1125_v57 = vld [vmem:[#allocation2 + $0x15a] sm:$0xff]  ;;  %v13699_v39 = vpack.i.bf16 %v1061_v51, %v1060_v50 }
 0x105   : > { %v11174_v4 = vpop.permute.xlu0 %11173  ;;  %v11181_v47 = vunpack.i.h.bf16 %v13613_v62  ;;  %v11180_v60 = vunpack.i.l.bf16 %v13613_v62  ;;  %v12789_v12 = vld [vmem:[#allocation2 + $0x78] sm:$0xff] }
 0x106   : > { %v11176_v7 = vunpack.i.h.bf16 %v11174_v4  ;;  %v11175_v8 = vunpack.i.l.bf16 %v11174_v4  ;;  %11468 = vrot.lane.b32.xlu1 %v13573_v18, %s17214_s26 }
 0x107   : > { %11463 = vrot.lane.b32.xlu0 %v13535_v55, %s17214_s26  ;;  %v3734_v55 = vsel %vm3727_vm9, %v3669_v14, %v11160_v3  ;;  %v3412_v17 = vsel %vm593_vm0, %v12790_v10, %v11181_v47 }
 0x108   : > { %v3862_v19 = vsel %vm3857_vm11, %v3797_v15, %v11175_v8  ;;  %v3863_v20 = vsel %vm3857_vm11, %v3798_v16, %v11176_v7  ;;  %v13631_v21 = vpop.permute.xlu1 %11188  ;;  %v3799_v30 = vsel %vm17182_vm10, %v3734_v55, %v11170_v13  ;;  %v13703_v8 = vpack.i.bf16 %v1125_v57, %v1124_v24 }
 0x109   : > { %v11184_v48 = vpop.permute.xlu0 %11183  ;;  %v3924_v25 = vpack.c.bf16 %v3863_v20, %v3862_v19  ;;  %v11191_v52 = vunpack.i.h.bf16 %v13631_v21  ;;  %v11190_v53 = vunpack.i.l.bf16 %v13631_v21  ;;  %v12791_v19 = vld [vmem:[#allocation2 + $0x60] sm:$0xff] }
 0x10a   : > { %v11186_v28 = vunpack.i.h.bf16 %v11184_v48  ;;  %v11185_v29 = vunpack.i.l.bf16 %v11184_v48  ;;  %11478 = vrot.lane.b32.xlu1 %v13575_v22, %s17215_s3  ;;  %v3411_v20 = vsel %vm593_vm0, %v12791_v19, %v11180_v60 }
 0x10b   : > { %11473 = vrot.lane.b32.xlu0 %v13557_v6, %s17215_s3  ;;  %10793 = vmatprep.mubr.msk.bf16.mxu0 %vm3976_vm12, %v3924_v25  ;;  %v3413_v13 = vsel %vm593_vm0, %v12789_v12, %v11190_v53 }
 0x10c   : > { %v3865_v33 = vsel %vm3857_vm11, %v3800_v32, %v11186_v28  ;;  %v3864_v35 = vsel %vm3857_vm11, %v3799_v30, %v11185_v29  ;;  %v13648_v36 = vpop.permute.xlu1 %11198  ;;  %v638_v28 = vld [vmem:[%s13386_s18 + $0x60] sm:$0xff] }
 0x10d   : > { %v13650_v37 = vpop.permute.xlu0 %11193  ;;  %v3925_v38 = vpack.c.bf16 %v3865_v33, %v3864_v35  ;;  %v11201_v1 = vunpack.i.h.bf16 %v13648_v36  ;;  %v11200_v2 = vunpack.i.l.bf16 %v13648_v36  ;;  %671 = vst.msk [vmem:[#allocation2 + $0x259] sm:$0xff] %vm593_vm0, %v638_v28 }
 0x10e   : > { %11488 = vrot.lane.b32.xlu1 %v13635_v26, %s17216_s27  ;;  %v11196_v56 = vunpack.i.h.bf16 %v13650_v37  ;;  %v11195_v3 = vunpack.i.l.bf16 %v13650_v37 }
 0x10f   : > { %11483 = vrot.lane.b32.xlu0 %v13569_v63, %s17216_s27  ;;  %10794 = vmatmul.mubr.msk.bf16.gmra.mrb[4].mxu0 %vm3976_vm12, %v3925_v38  ;;  %v3478_v21 = vsel %vm17189_vm5, %v3413_v13, %v11200_v2 }
 0x110   : > { %v13657_v6 = vpop.permute.xlu1 %11208  ;;  %v3477_v23 = vsel %vm17189_vm5, %v3412_v17, %v11196_v56  ;;  %v3476_v48 = vsel %vm17189_vm5, %v3411_v20, %v11195_v3 }
 0x111   : > { %v13659_v41 = vpop.permute.xlu0 %11203  ;;  %v11211_v5 = vunpack.i.h.bf16 %v13657_v6  ;;  %v11210_v7 = vunpack.i.l.bf16 %v13657_v6 }
 0x112   : > { %11498 = vrot.lane.b32.xlu1 %v13569_v63, %s17210_s0  ;;  %v996_v63 = vld [vmem:[#allocation2 + $0x150] sm:$0xff]  ;;  %v11206_v15 = vunpack.i.h.bf16 %v13659_v41  ;;  %v11205_v16 = vunpack.i.l.bf16 %v13659_v41 }
 0x113   : > { %11493 = vrot.lane.b32.xlu0 %v13573_v18, %s17217_s20  ;;  %v13687_v54 = vpack.i.bf16 %v997_v31, %v996_v63  ;;  %v3543_v29 = vsel %vm3532_vm6, %v3478_v21, %v11210_v7 }
 0x114   : > { %v13667_v43 = vpop.permute.xlu1 %11218  ;;  %v3541_v36 = vsel %vm3532_vm6, %v3476_v48, %v11205_v16  ;;  %v3542_v37 = vsel %vm3532_vm6, %v3477_v23, %v11206_v15 }
 0x115   : > { %v13670_v45 = vpop.permute.xlu0 %11213  ;;  %v11221_v9 = vunpack.i.h.bf16 %v13667_v43  ;;  %v11220_v40 = vunpack.i.l.bf16 %v13667_v43 }
 0x116   : > { %11508 = vrot.lane.b32.xlu1 %v13635_v26, %s17210_s0  ;;  %v11216_v25 = vunpack.i.h.bf16 %v13670_v45  ;;  %v11215_v55 = vunpack.i.l.bf16 %v13670_v45 }
 0x117   : > { %11503 = vrot.lane.b32.xlu0 %v13665_v42, %s17217_s20  ;;  %v3608_v56 = vsel %vm17184_vm7, %v3543_v29, %v11220_v40 }
 0x118   : > { %v13679_v49 = vpop.permute.xlu1 %11228  ;;  %v3606_v45 = vsel %vm17184_vm7, %v3541_v36, %v11215_v55  ;;  %v3607_v46 = vsel %vm17184_vm7, %v3542_v37, %v11216_v25  ;;  %v1317_v25 = vld [vmem:[#allocation2 + $0x16a] sm:$0xff]  ;;  %v1318_v55 = vld [vmem:[#allocation2 + $0x172] sm:$0xff]  ;;  %v1064_v37 = vld [vmem:[#allocation2 + $0x181] sm:$0xff] }
 0x119   : > { %v13681_v34 = vpop.permute.xlu0 %11223  ;;  %v11231_v63 = vunpack.i.h.bf16 %v13679_v49  ;;  %v11230_v31 = vunpack.i.l.bf16 %v13679_v49  ;;  %v1253_v49 = vld [vmem:[#allocation2 + $0x169] sm:$0xff]  ;;  %v13795_v28 = vpack.i.bf16 %v1318_v55, %v1317_v25 }
 0x11a   : > { %11518 = vrot.lane.b32.xlu1 %v13665_v42, %s17211_s23  ;;  %v11226_v32 = vunpack.i.h.bf16 %v13681_v34  ;;  %v11225_v33 = vunpack.i.l.bf16 %v13681_v34  ;;  %v13765_v13 = vpack.i.bf16 %v1254_v59, %v1253_v49 }
 0x11b   : > { %11513 = vrot.lane.b32.xlu0 %v13573_v18, %s17211_s23  ;;  %v3414_v18 = vsel %vm593_vm0, %v12788_v11, %v11191_v52 }
 0x11c   : > { %v13697_v4 = vpop.permute.xlu1 %11238  ;;  %v3479_v14 = vsel %vm17189_vm5, %v3414_v18, %v11201_v1  ;;  %v3671_v50 = vsel %vm17183_vm8, %v3606_v45, %v11225_v33  ;;  %v3672_v51 = vsel %vm17183_vm8, %v3607_v46, %v11226_v32  ;;  %v641_v33 = vld [vmem:[%s13386_s18 + $0x78] sm:$0xff]  ;;  %v13821_v46 = vld [vmem:[#allocation2 + $0x1a0] sm:$0xff] }
 0x11d   : > { %v11234_v62 = vpop.permute.xlu0 %11233  ;;  %v3544_v30 = vsel %vm3532_vm6, %v3479_v14, %v11211_v5  ;;  %v11241_v43 = vunpack.i.h.bf16 %v13697_v4  ;;  %v11240_v24 = vunpack.i.l.bf16 %v13697_v4  ;;  %674 = vst.msk [vmem:[#allocation2 + $0x279] sm:$0xff] %vm593_vm0, %v641_v33  ;;  %v13819_v45 = vld [vmem:[#allocation2 + $0x198] sm:$0xff] }
 0x11e   : > { %11528 = vrot.lane.b32.xlu1 %v13687_v54, %s17212_s16  ;;  %v11236_v38 = vunpack.i.h.bf16 %v11234_v62  ;;  %v11235_v6 = vunpack.i.l.bf16 %v11234_v62  ;;  %v3609_v3 = vsel %vm17184_vm7, %v3544_v30, %v11221_v9  ;;  %v3673_v62 = vsel %vm17183_vm8, %v3608_v56, %v11230_v31  ;;  %v640_v30 = vld [vmem:[%s13386_s18 + $0x70] sm:$0xff] }
 0x11f   : > { %11523 = vrot.lane.b32.xlu0 %v13575_v22, %s17212_s16  ;;  %v639_v22 = vld [vmem:[%s13386_s18 + $0x68] sm:$0xff]  ;;  %v3674_v11 = vsel %vm17183_vm8, %v3609_v3, %v11231_v63  ;;  %673 = vst.msk [vmem:[#allocation2 + $0x271] sm:$0xff] %vm593_vm0, %v640_v30 }
 0x120   : > { %v11249_v27 = vpop.permute.xlu1 %11248  ;;  %672 = vst.msk [vmem:[#allocation2 + $0x261] sm:$0xff] %vm593_vm0, %v639_v22  ;;  %v3737_v53 = vsel %vm3727_vm9, %v3672_v51, %v11236_v38  ;;  %v3739_v15 = vsel %vm3727_vm9, %v3674_v11, %v11241_v43  ;;  %v1065_v38 = vld [vmem:[#allocation2 + $0x189] sm:$0xff] }
 0x121   : > { %v11244_v35 = vpop.permute.xlu0 %11243  ;;  %v11251_v47 = vunpack.i.h.bf16 %v11249_v27  ;;  %v11250_v60 = vunpack.i.l.bf16 %v11249_v27  ;;  %v793_v51 = vld [vmem:[#allocation2 + $0xb0] sm:$0xff]  ;;  %v13833_v49 = vpack.i.bf16 %v1065_v38, %v1064_v37 }
 0x122   : > { %11538 = vrot.lane.b32.xlu1 %v13699_v39, %s17213_s17  ;;  %v11246_v41 = vunpack.i.h.bf16 %v11244_v35  ;;  %v11245_v44 = vunpack.i.l.bf16 %v11244_v35  ;;  %v1001_v35 = vld [vmem:[#allocation2 + $0x188] sm:$0xff] }
 0x123   : > { %11533 = vrot.lane.b32.xlu0 %v13635_v26, %s17213_s17  ;;  %v3736_v26 = vsel %vm3727_vm9, %v3671_v50, %v11235_v6  ;;  %v3804_v19 = vsel %vm17182_vm10, %v3739_v15, %v11251_v47  ;;  %v1128_v6 = vld [vmem:[#allocation2 + $0x182] sm:$0xff] }
 0x124   : > { %v13743_v34 = vpop.permute.xlu1 %11258  ;;  %v3801_v1 = vsel %vm17182_vm10, %v3736_v26, %v11245_v44  ;;  %v3802_v2 = vsel %vm17182_vm10, %v3737_v53, %v11246_v41  ;;  %v1129_v44 = vld [vmem:[#allocation2 + $0x18a] sm:$0xff]  ;;  %v791_v26 = vld [vmem:[#allocation2 + $0x98] sm:$0xff] }
 0x125   : > { %v11254_v52 = vpop.permute.xlu0 %11253  ;;  %v11261_v63 = vunpack.i.h.bf16 %v13743_v34  ;;  %v11260_v31 = vunpack.i.l.bf16 %v13743_v34  ;;  %v792_v50 = vld [vmem:[#allocation2 + $0xa8] sm:$0xff] }
 0x126   : > { %v11256_v57 = vunpack.i.h.bf16 %v11254_v52  ;;  %v11255_v58 = vunpack.i.l.bf16 %v11254_v52  ;;  %11548 = vrot.lane.b32.xlu1 %v13703_v8, %s17214_s26  ;;  %v790_v52 = vld [vmem:[#allocation2 + $0x90] sm:$0xff] }
 0x127   : > { %11543 = vrot.lane.b32.xlu0 %v13665_v42, %s17214_s26  ;;  %v3738_v42 = vsel %vm3727_vm9, %v3673_v62, %v11240_v24 }
 0x128   : > { %v3866_v4 = vsel %vm3857_vm11, %v3801_v1, %v11255_v58  ;;  %v3867_v5 = vsel %vm3857_vm11, %v3802_v2, %v11256_v57  ;;  %v13761_v7 = vpop.permute.xlu1 %11268  ;;  %v3803_v17 = vsel %vm17182_vm10, %v3738_v42, %v11250_v60  ;;  %v13837_v60 = vpack.i.bf16 %v1129_v44, %v1128_v6 }
 0x129   : > { %v11264_v18 = vpop.permute.xlu0 %11263  ;;  %v3926_v12 = vpack.c.bf16 %v3867_v5, %v3866_v4  ;;  %v11271_v9 = vunpack.i.h.bf16 %v13761_v7  ;;  %v11270_v40 = vunpack.i.l.bf16 %v13761_v7  ;;  %v3416_v4 = vsel %vm593_vm0, %v791_v26, %v11261_v63 }
 0x12a   : > { %v11266_v16 = vunpack.i.h.bf16 %v11264_v18  ;;  %v11265_v10 = vunpack.i.l.bf16 %v11264_v18  ;;  %11558 = vrot.lane.b32.xlu1 %v13705_v61, %s17215_s3  ;;  %v3415_v5 = vsel %vm593_vm0, %v790_v52, %v11260_v31  ;;  %v1258_v31 = vld [vmem:[#allocation2 + $0x1a1] sm:$0xff] }
 0x12b   : > { %11553 = vrot.lane.b32.xlu0 %v13687_v54, %s17215_s3  ;;  %10797 = vmatprep.mubr.msk.bf16.mxu0 %vm3976_vm12, %v3926_v12  ;;  %v3418_v1 = vsel %vm593_vm0, %v793_v51, %v11271_v9  ;;  %v3417_v2 = vsel %vm593_vm0, %v792_v50, %v11270_v40 }
 0x12c   : > { %v3869_v20 = vsel %vm3857_vm11, %v3804_v19, %v11266_v16  ;;  %v3868_v21 = vsel %vm3857_vm11, %v3803_v17, %v11265_v10  ;;  %v13778_v14 = vpop.permute.xlu1 %11278 }
 0x12d   : > { %v13780_v23 = vpop.permute.xlu0 %11273  ;;  %v3927_v48 = vpack.c.bf16 %v3869_v20, %v3868_v21  ;;  %v11281_v43 = vunpack.i.h.bf16 %v13778_v14  ;;  %v11280_v24 = vunpack.i.l.bf16 %v13778_v14  ;;  %v642_v21 = vld [vmem:[%s13386_s18 + $0x80] sm:$0xff] }
 0x12e   : > { %11568 = vrot.lane.b32.xlu1 %v13765_v13, %s17216_s27  ;;  %v11276_v53 = vunpack.i.h.bf16 %v13780_v23  ;;  %v11275_v57 = vunpack.i.l.bf16 %v13780_v23  ;;  %675 = vst.msk [vmem:[#allocation2 + $0x289] sm:$0xff] %vm593_vm0, %v642_v21 }
 0x12f   : > { %11563 = vrot.lane.b32.xlu0 %v13699_v39, %s17216_s27  ;;  %10798 = vmatmul.mubr.msk.bf16.gmra.mrb[8].mxu0 %vm3976_vm12, %v3927_v48  ;;  %v3482_v7 = vsel %vm17189_vm5, %v3417_v2, %v11280_v24  ;;  %v3483_v62 = vsel %vm17189_vm5, %v3418_v1, %v11281_v43 }
 0x130   : > { %v13787_v54 = vpop.permute.xlu1 %11288  ;;  %v3481_v11 = vsel %vm17189_vm5, %v3416_v4, %v11276_v53  ;;  %v3480_v18 = vsel %vm17189_vm5, %v3415_v5, %v11275_v57 }
 0x131   : > { %v13789_v27 = vpop.permute.xlu0 %11283  ;;  %v11291_v34 = vunpack.i.h.bf16 %v13787_v54  ;;  %v11290_v59 = vunpack.i.l.bf16 %v13787_v54 }
 0x132   : > { %11578 = vrot.lane.b32.xlu1 %v13699_v39, %s17210_s0  ;;  %v1000_v39 = vld [vmem:[#allocation2 + $0x180] sm:$0xff]  ;;  %v11286_v56 = vunpack.i.h.bf16 %v13789_v27  ;;  %v11285_v3 = vunpack.i.l.bf16 %v13789_v27 }
 0x133   : > { %11573 = vrot.lane.b32.xlu0 %v13703_v8, %s17217_s20  ;;  %v13817_v41 = vpack.i.bf16 %v1001_v35, %v1000_v39  ;;  %v3547_v16 = vsel %vm3532_vm6, %v3482_v7, %v11290_v59  ;;  %v3548_v10 = vsel %vm3532_vm6, %v3483_v62, %v11291_v34  ;;  %v874_v62 = vld [vmem:[#allocation2 + $0x1b1] sm:$0xff] }
 0x134   : > { %v13797_v29 = vpop.permute.xlu1 %11298  ;;  %v3545_v14 = vsel %vm3532_vm6, %v3480_v18, %v11285_v3  ;;  %v3546_v23 = vsel %vm3532_vm6, %v3481_v11, %v11286_v56  ;;  %v875_v11 = vld [vmem:[#allocation2 + $0x1b9] sm:$0xff] }
 0x135   : > { %v13800_v32 = vpop.permute.xlu0 %11293  ;;  %v11301_v25 = vunpack.i.h.bf16 %v13797_v29  ;;  %v11300_v55 = vunpack.i.l.bf16 %v13797_v29 }
 0x136   : > { %11588 = vrot.lane.b32.xlu1 %v13765_v13, %s17210_s0  ;;  %v11296_v12 = vunpack.i.h.bf16 %v13800_v32  ;;  %v11295_v42 = vunpack.i.l.bf16 %v13800_v32 }
 0x137   : > { %11583 = vrot.lane.b32.xlu0 %v13795_v28, %s17217_s20  ;;  %v3612_v52 = vsel %vm17184_vm7, %v3547_v16, %v11300_v55  ;;  %v3613_v26 = vsel %vm17184_vm7, %v3548_v10, %v11301_v25  ;;  %v1321_v10 = vld [vmem:[#allocation2 + $0x19a] sm:$0xff]  ;;  %v1002_v55 = vld [vmem:[#allocation2 + $0x1c8] sm:$0xff] }
 0x138   : > { %v13809_v22 = vpop.permute.xlu1 %11308  ;;  %v3610_v32 = vsel %vm17184_vm7, %v3545_v14, %v11295_v42  ;;  %v3611_v33 = vsel %vm17184_vm7, %v3546_v23, %v11296_v12  ;;  %v938_v23 = vld [vmem:[#allocation2 + $0x1b2] sm:$0xff] }
 0x139   : > { %v13811_v36 = vpop.permute.xlu0 %11303  ;;  %v11311_v39 = vunpack.i.h.bf16 %v13809_v22  ;;  %v11310_v35 = vunpack.i.l.bf16 %v13809_v22  ;;  %v1257_v22 = vld [vmem:[#allocation2 + $0x199] sm:$0xff] }
 0x13a   : > { %11598 = vrot.lane.b32.xlu1 %v13795_v28, %s17211_s23  ;;  %v11306_v17 = vunpack.i.h.bf16 %v13811_v36  ;;  %v11305_v19 = vunpack.i.l.bf16 %v13811_v36  ;;  %v11647_v2 = vpack.i.bf16 %v1258_v31, %v1257_v22 }
 0x13b   : > { %11593 = vrot.lane.b32.xlu0 %v13703_v8, %s17211_s23  ;;  %v11637_v8 = vpack.i.bf16 %v13821_v46, %v13819_v45  ;;  %v3677_v34 = vsel %vm17183_vm8, %v3612_v52, %v11310_v35  ;;  %v3678_v59 = vsel %vm17183_vm8, %v3613_v26, %v11311_v39  ;;  %v11657_v46 = vpack.i.bf16 %v875_v11, %v874_v62  ;;  %v1069_v35 = vld [vmem:[#allocation2 + $0x1e9] sm:$0xff] }
 0x13c   : > { %v13831_v58 = vpop.permute.xlu1 %11318  ;;  %v3675_v37 = vsel %vm17183_vm8, %v3610_v32, %v11305_v19  ;;  %v3676_v38 = vsel %vm17183_vm8, %v3611_v33, %v11306_v17  ;;  %v1322_v17 = vld [vmem:[#allocation2 + $0x1a2] sm:$0xff] }
 0x13d   : > { %v11314_v47 = vpop.permute.xlu0 %11313  ;;  %v11321_v29 = vunpack.i.h.bf16 %v13831_v58  ;;  %v11320_v6 = vunpack.i.l.bf16 %v13831_v58  ;;  %v11662_v21 = vpack.i.bf16 %v1322_v17, %v1321_v10  ;;  %v1005_v32 = vld [vmem:[#allocation2 + $0x1e8] sm:$0xff] }
 0x13e   : > { %11608 = vrot.lane.b32.xlu1 %v13817_v41, %s17212_s16  ;;  %v11316_v48 = vunpack.i.h.bf16 %v11314_v47  ;;  %v11315_v54 = vunpack.i.l.bf16 %v11314_v47  ;;  %v1068_v33 = vld [vmem:[#allocation2 + $0x1e1] sm:$0xff] }
 0x13f   : > { %11603 = vrot.lane.b32.xlu0 %v13705_v61, %s17212_s16  ;;  %v643_v61 = vld [vmem:[%s13386_s18 + $0x88] sm:$0xff]  ;;  %v3742_v56 = vsel %vm3727_vm9, %v3677_v34, %v11320_v6  ;;  %v13953_v26 = vpack.i.bf16 %v1069_v35, %v1068_v33 }
 0x140   : > { %v11329_v15 = vpop.permute.xlu1 %11328  ;;  %676 = vst.msk [vmem:[#allocation2 + $0x291] sm:$0xff] %vm593_vm0, %v643_v61  ;;  %v3741_v40 = vsel %vm3727_vm9, %v3676_v38, %v11316_v48  ;;  %v940_v61 = vld [vmem:[#allocation2 + $0x1ca] sm:$0xff]  ;;  %v939_v48 = vld [vmem:[#allocation2 + $0x1ba] sm:$0xff] }
 0x141   : > { %v11324_v20 = vpop.permute.xlu0 %11323  ;;  %v11331_v50 = vunpack.i.h.bf16 %v11329_v15  ;;  %v11330_v51 = vunpack.i.l.bf16 %v11329_v15  ;;  %v1133_v38 = vld [vmem:[#allocation2 + $0x1ea] sm:$0xff] }
 0x142   : > { %11618 = vrot.lane.b32.xlu1 %v13833_v49, %s17213_s17  ;;  %v11326_v27 = vunpack.i.h.bf16 %v11324_v20  ;;  %v11325_v30 = vunpack.i.l.bf16 %v11324_v20 }
 0x143   : > { %11613 = vrot.lane.b32.xlu0 %v13765_v13, %s17213_s17  ;;  %v3740_v13 = vsel %vm3727_vm9, %v3675_v37, %v11315_v54  ;;  %v3807_v5 = vsel %vm17182_vm10, %v3742_v56, %v11330_v51  ;;  %v1132_v37 = vld [vmem:[#allocation2 + $0x1e2] sm:$0xff] }
 0x144   : > { %v13877_v36 = vpop.permute.xlu1 %11338  ;;  %v3805_v43 = vsel %vm17182_vm10, %v3740_v13, %v11325_v30  ;;  %v3806_v24 = vsel %vm17182_vm10, %v3741_v40, %v11326_v27  ;;  %v1003_v27 = vld [vmem:[#allocation2 + $0x1d0] sm:$0xff]  ;;  %v11672_v30 = vpack.i.bf16 %v939_v48, %v938_v23  ;;  %v1197_v13 = vld [vmem:[#allocation2 + $0x1f8] sm:$0xff]  ;;  %v1198_v40 = vld [vmem:[#allocation2 + $0x200] sm:$0xff] }
 0x145   : > { %v11334_v9 = vpop.permute.xlu0 %11333  ;;  %v11340_v6 = vunpack.i.l.bf16 %v13877_v36  ;;  %v11682_v51 = vpack.i.bf16 %v1003_v27, %v1002_v55 }
 0x146   : > { %v11336_v44 = vunpack.i.h.bf16 %v11334_v9  ;;  %v11335_v63 = vunpack.i.l.bf16 %v11334_v9  ;;  %11628 = vrot.lane.b32.xlu1 %v13837_v60, %s17214_s26 }
 0x147   : > { %11623 = vrot.lane.b32.xlu0 %v13795_v28, %s17214_s26  ;;  %v3743_v28 = vsel %vm3727_vm9, %v3678_v59, %v11321_v29  ;;  %v11341_v29 = vunpack.i.h.bf16 %v13877_v36  ;;  %v13961_v59 = vpack.i.bf16 %v1198_v40, %v1197_v13 }
 0x148   : > { %v3870_v53 = vsel %vm3857_vm11, %v3805_v43, %v11335_v63  ;;  %v3871_v57 = vsel %vm3857_vm11, %v3806_v24, %v11336_v44  ;;  %v13895_v58 = vpop.permute.xlu1 %11348  ;;  %v3808_v7 = vsel %vm17182_vm10, %v3743_v28, %v11331_v50  ;;  %v794_v44 = vld [vmem:[#allocation2 + $0xc0] sm:$0xff]  ;;  %v795_v63 = vld [vmem:[#allocation2 + $0xc8] sm:$0xff]  ;;  %v796_v43 = vld [vmem:[#allocation2 + $0xd8] sm:$0xff] }
 0x149   : > { %v11344_v47 = vpop.permute.xlu0 %11343  ;;  %v3928_v1 = vpack.c.bf16 %v3871_v57, %v3870_v53  ;;  %v11351_v22 = vunpack.i.h.bf16 %v13895_v58  ;;  %v11350_v31 = vunpack.i.l.bf16 %v13895_v58  ;;  %v797_v24 = vld [vmem:[#allocation2 + $0xe0] sm:$0xff]  ;;  %v13955_v53 = vpack.i.bf16 %v1133_v38, %v1132_v37 }
 0x14a   : > { %v11346_v3 = vunpack.i.h.bf16 %v11344_v47  ;;  %v11345_v4 = vunpack.i.l.bf16 %v11344_v47  ;;  %11638 = vrot.lane.b32.xlu1 %v11637_v8, %s17215_s3  ;;  %v877_v8 = vld [vmem:[#allocation2 + $0x1d1] sm:$0xff]  ;;  %v3420_v47 = vsel %vm593_vm0, %v795_v63, %v11341_v29  ;;  %v1261_v63 = vld [vmem:[#allocation2 + $0x1f9] sm:$0xff] }
 0x14b   : > { %11633 = vrot.lane.b32.xlu0 %v13817_v41, %s17215_s3  ;;  %10801 = vmatprep.mubr.msk.bf16.mxu0 %vm3976_vm12, %v3928_v1  ;;  %v876_v41 = vld [vmem:[#allocation2 + $0x1c9] sm:$0xff]  ;;  %v3419_v1 = vsel %vm593_vm0, %v794_v44, %v11340_v6 }
 0x14c   : > { %v3873_v18 = vsel %vm3857_vm11, %v3808_v7, %v11346_v3  ;;  %v3872_v12 = vsel %vm3857_vm11, %v3807_v5, %v11345_v4  ;;  %v13912_v42 = vpop.permute.xlu1 %11358  ;;  %v13925_v20 = vpack.i.bf16 %v877_v8, %v876_v41  ;;  %v3422_v3 = vsel %vm593_vm0, %v797_v24, %v11351_v22  ;;  %v1262_v22 = vld [vmem:[#allocation2 + $0x201] sm:$0xff] }
 0x14d   : > { %v13914_v15 = vpop.permute.xlu0 %11353  ;;  %v3929_v45 = vpack.c.bf16 %v3873_v18, %v3872_v12  ;;  %v11361_v36 = vunpack.i.h.bf16 %v13912_v42  ;;  %v11360_v52 = vunpack.i.l.bf16 %v13912_v42  ;;  %v3421_v4 = vsel %vm593_vm0, %v796_v43, %v11350_v31  ;;  %v644_v42 = vld [vmem:[%s13386_s18 + $0x90] sm:$0xff] }
 0x14e   : > { %11648 = vrot.lane.b32.xlu1 %v11647_v2, %s17216_s27  ;;  %v11356_v57 = vunpack.i.h.bf16 %v13914_v15  ;;  %v11355_v58 = vunpack.i.l.bf16 %v13914_v15  ;;  %677 = vst.msk [vmem:[#allocation2 + $0x2a1] sm:$0xff] %vm593_vm0, %v644_v42 }
 0x14f   : > { %11643 = vrot.lane.b32.xlu0 %v13833_v49, %s17216_s27  ;;  %10802 = vmatmul.mubr.msk.bf16.gmra.mrb[12].mxu0 %vm3976_vm12, %v3929_v45  ;;  %v941_v49 = vld [vmem:[#allocation2 + $0x1d2] sm:$0xff]  ;;  %v3486_v62 = vsel %vm17189_vm5, %v3421_v4, %v11360_v52  ;;  %v3487_v11 = vsel %vm17189_vm5, %v3422_v3, %v11361_v36 }
 0x150   : > { %v13920_v16 = vpop.permute.xlu1 %11368  ;;  %v13935_v25 = vpack.i.bf16 %v941_v49, %v940_v61  ;;  %v3485_v15 = vsel %vm17189_vm5, %v3420_v47, %v11356_v57  ;;  %v3484_v45 = vsel %vm17189_vm5, %v3419_v1, %v11355_v58 }
 0x151   : > { %v13922_v19 = vpop.permute.xlu0 %11363  ;;  %v11371_v2 = vunpack.i.h.bf16 %v13920_v16  ;;  %v11370_v56 = vunpack.i.l.bf16 %v13920_v16  ;;  %v645_v16 = vld [vmem:[%s13386_s18 + $0x98] sm:$0xff] }
 0x152   : > { %11658 = vrot.lane.b32.xlu1 %v11657_v46, %s17210_s0  ;;  %v11366_v5 = vunpack.i.h.bf16 %v13922_v19  ;;  %v11365_v7 = vunpack.i.l.bf16 %v13922_v19  ;;  %678 = vst.msk [vmem:[#allocation2 + $0x2a9] sm:$0xff] %vm593_vm0, %v645_v16 }
 0x153   : > { %11653 = vrot.lane.b32.xlu0 %v13837_v60, %s17217_s20  ;;  %v1004_v60 = vld [vmem:[#allocation2 + $0x1e0] sm:$0xff]  ;;  %v3551_v10 = vsel %vm3532_vm6, %v3486_v62, %v11370_v56  ;;  %v3552_v17 = vsel %vm3532_vm6, %v3487_v11, %v11371_v2  ;;  %v14122_v56 = vpack.i.bf16 %v1262_v22, %v1261_v63  ;;  %v647_v62 = vld [vmem:[%s13386_s18 + $0xa8] sm:$0xff] }
 0x154   : > { %v13929_v14 = vpop.permute.xlu1 %11378  ;;  %v13948_v50 = vpack.i.bf16 %v1005_v32, %v1004_v60  ;;  %v3549_v49 = vsel %vm3532_vm6, %v3484_v45, %v11365_v7  ;;  %v3550_v23 = vsel %vm3532_vm6, %v3485_v15, %v11366_v5  ;;  %680 = vst.msk [vmem:[#allocation2 + $0x2c1] sm:$0xff] %vm593_vm0, %v647_v62  ;;  %v1325_v45 = vld [vmem:[#allocation2 + $0x1fa] sm:$0xff] }
 0x155   : > { %v13931_v54 = vpop.permute.xlu0 %11373  ;;  %v11381_v48 = vunpack.i.h.bf16 %v13929_v14 }
 0x156   : > { %11668 = vrot.lane.b32.xlu1 %v13925_v20, %s17210_s0  ;;  %v11376_v18 = vunpack.i.h.bf16 %v13931_v54  ;;  %v11375_v12 = vunpack.i.l.bf16 %v13931_v54  ;;  %v11380_v54 = vunpack.i.l.bf16 %v13929_v14 }
 0x157   : > { %11663 = vrot.lane.b32.xlu0 %v11662_v21, %s17217_s20  ;;  %v3617_v36 = vsel %vm17184_vm7, %v3552_v17, %v11381_v48  ;;  %v1008_v17 = vld [vmem:[#allocation2 + $0x210] sm:$0xff] }
 0x158   : > { %v13938_v39 = vpop.permute.xlu1 %11388  ;;  %v3614_v55 = vsel %vm17184_vm7, %v3549_v49, %v11375_v12  ;;  %v3615_v27 = vsel %vm17184_vm7, %v3550_v23, %v11376_v18  ;;  %v3616_v24 = vsel %vm17184_vm7, %v3551_v10, %v11380_v54  ;;  %v1073_v49 = vld [vmem:[#allocation2 + $0x219] sm:$0xff] }
 0x159   : > { %v13942_v9 = vpop.permute.xlu0 %11383  ;;  %v11391_v32 = vunpack.i.h.bf16 %v13938_v39  ;;  %v11390_v33 = vunpack.i.l.bf16 %v13938_v39  ;;  %v1136_v23 = vld [vmem:[#allocation2 + $0x212] sm:$0xff] }
 0x15a   : > { %11678 = vrot.lane.b32.xlu1 %v13935_v25, %s17211_s23  ;;  %v11386_v46 = vunpack.i.h.bf16 %v13942_v9  ;;  %v11385_v41 = vunpack.i.l.bf16 %v13942_v9 }
 0x15b   : > { %11673 = vrot.lane.b32.xlu0 %v11672_v30, %s17211_s23  ;;  %v3682_v47 = vsel %vm17183_vm8, %v3617_v36, %v11391_v32 }
 0x15c   : > { %v13959_v34 = vpop.permute.xlu1 %11398  ;;  %v3679_v35 = vsel %vm17183_vm8, %v3614_v55, %v11385_v41  ;;  %v3680_v14 = vsel %vm17183_vm8, %v3615_v27, %v11386_v46  ;;  %v1326_v46 = vld [vmem:[#allocation2 + $0x202] sm:$0xff]  ;;  %v1137_v27 = vld [vmem:[#allocation2 + $0x21a] sm:$0xff] }
 0x15d   : > { %v11394_v28 = vpop.permute.xlu0 %11393  ;;  %v11401_v38 = vunpack.i.h.bf16 %v13959_v34  ;;  %v11400_v29 = vunpack.i.l.bf16 %v13959_v34  ;;  %v646_v34 = vld [vmem:[%s13386_s18 + $0xa0] sm:$0xff] }
 0x15e   : > { %11688 = vrot.lane.b32.xlu1 %v13948_v50, %s17212_s16  ;;  %v11396_v19 = vunpack.i.h.bf16 %v11394_v28  ;;  %v11395_v21 = vunpack.i.l.bf16 %v11394_v28  ;;  %679 = vst.msk [vmem:[#allocation2 + $0x2b9] sm:$0xff] %vm593_vm0, %v646_v34 }
 0x15f   : > { %11683 = vrot.lane.b32.xlu0 %v11682_v51, %s17212_s16  ;;  %v3747_v3 = vsel %vm3727_vm9, %v3682_v47, %v11401_v38  ;;  %v648_v47 = vld [vmem:[%s13386_s18 + $0xb0] sm:$0xff] }
 0x160   : > { %v13991_v8 = vpop.permute.xlu1 %11408  ;;  %v3744_v6 = vsel %vm3727_vm9, %v3679_v35, %v11395_v21  ;;  %v3745_v9 = vsel %vm3727_vm9, %v3680_v14, %v11396_v19  ;;  %v1009_v19 = vld [vmem:[#allocation2 + $0x218] sm:$0xff]  ;;  %v800_v35 = vld [vmem:[#allocation2 + $0x108] sm:$0xff]  ;;  %v801_v14 = vld [vmem:[#allocation2 + $0x110] sm:$0xff]  ;;  %681 = vst.msk [vmem:[#allocation2 + $0x2d1] sm:$0xff] %vm593_vm0, %v648_v47 }
 0x161   : > { %v11404_v61 = vpop.permute.xlu0 %11403  ;;  %v11410_v31 = vunpack.i.l.bf16 %v13991_v8  ;;  %v14178_v55 = vpack.i.bf16 %v1009_v19, %v1008_v17 }
 0x162   : > { %11698 = vrot.lane.b32.xlu1 %v13953_v26, %s17213_s17  ;;  %v11406_v30 = vunpack.i.h.bf16 %v11404_v61  ;;  %v11405_v60 = vunpack.i.l.bf16 %v11404_v61  ;;  %v1072_v61 = vld [vmem:[#allocation2 + $0x211] sm:$0xff] }
 0x163   : > { %11693 = vrot.lane.b32.xlu0 %v13925_v20, %s17213_s17  ;;  %v11411_v20 = vunpack.i.h.bf16 %v13991_v8  ;;  %v14160_v8 = vpack.i.bf16 %v1326_v46, %v1325_v45 }
 0x164   : > { %v14012_v37 = vpop.permute.xlu1 %11418  ;;  %v3809_v51 = vsel %vm17182_vm10, %v3744_v6, %v11405_v60  ;;  %v3810_v43 = vsel %vm17182_vm10, %v3745_v9, %v11406_v30  ;;  %v1201_v30 = vld [vmem:[#allocation2 + $0x228] sm:$0xff]  ;;  %v1202_v60 = vld [vmem:[#allocation2 + $0x230] sm:$0xff]  ;;  %v799_v9 = vld [vmem:[#allocation2 + $0xf8] sm:$0xff] }
 0x165   : > { %v11414_v13 = vpop.permute.xlu0 %11413  ;;  %v3812_v7 = vsel %vm17182_vm10, %v3747_v3, %v11411_v20  ;;  %v11421_v32 = vunpack.i.h.bf16 %v14012_v37  ;;  %v798_v6 = vld [vmem:[#allocation2 + $0xf0] sm:$0xff] }
 0x166   : > { %v11416_v40 = vunpack.i.h.bf16 %v11414_v13  ;;  %v11415_v44 = vunpack.i.l.bf16 %v11414_v13  ;;  %11708 = vrot.lane.b32.xlu1 %v13955_v53, %s17214_s26 }
 0x167   : > { %11703 = vrot.lane.b32.xlu0 %v13935_v25, %s17214_s26  ;;  %v3681_v25 = vsel %vm17183_vm8, %v3616_v24, %v11390_v33  ;;  %v11420_v33 = vunpack.i.l.bf16 %v14012_v37 }
 0x168   : > { %v3874_v52 = vsel %vm3857_vm11, %v3809_v51, %v11415_v44  ;;  %v3875_v57 = vsel %vm3857_vm11, %v3810_v43, %v11416_v40  ;;  %v14034_v58 = vpop.permute.xlu1 %11428  ;;  %v3746_v28 = vsel %vm3727_vm9, %v3681_v25, %v11400_v29  ;;  %v14186_v44 = vpack.i.bf16 %v1073_v49, %v1072_v61 }
 0x169   : > { %v11424_v1 = vpop.permute.xlu0 %11423  ;;  %v3930_v2 = vpack.c.bf16 %v3875_v57, %v3874_v52  ;;  %v3811_v39 = vsel %vm17182_vm10, %v3746_v28, %v11410_v31  ;;  %v11431_v48 = vunpack.i.h.bf16 %v14034_v58  ;;  %v11430_v54 = vunpack.i.l.bf16 %v14034_v58 }
 0x16a   : > { %v11426_v4 = vunpack.i.h.bf16 %v11424_v1  ;;  %v11425_v5 = vunpack.i.l.bf16 %v11424_v1  ;;  %11718 = vrot.lane.b32.xlu1 %v13961_v59, %s17215_s3  ;;  %v14190_v31 = vpack.i.bf16 %v1137_v27, %v1136_v23  ;;  %v14192_v51 = vpack.i.bf16 %v1202_v60, %v1201_v30  ;;  %v1266_v60 = vld [vmem:[#allocation2 + $0x231] sm:$0xff] }
 0x16b   : > { %11713 = vrot.lane.b32.xlu0 %v13948_v50, %s17215_s3  ;;  %10805 = vmatprep.mubr.msk.bf16.mxu0 %vm3976_vm12, %v3930_v2  ;;  %v3425_v43 = vsel %vm593_vm0, %v800_v35, %v11430_v54  ;;  %v3424_v52 = vsel %vm593_vm0, %v799_v9, %v11421_v32  ;;  %v3423_v57 = vsel %vm593_vm0, %v798_v6, %v11420_v33 }
 0x16c   : > { %v3877_v11 = vsel %vm3857_vm11, %v3812_v7, %v11426_v4  ;;  %v3876_v18 = vsel %vm3857_vm11, %v3811_v39, %v11425_v5  ;;  %v11439_v12 = vpop.permute.xlu1 %11438  ;;  %v649_v5 = vld [vmem:[%s13386_s18 + $0xb8] sm:$0xff] }
 0x16d   : > { %v11434_v42 = vpop.permute.xlu0 %11433  ;;  %v3931_v15 = vpack.c.bf16 %v3877_v11, %v3876_v18  ;;  %v11441_v38 = vunpack.i.h.bf16 %v11439_v12  ;;  %v11440_v29 = vunpack.i.l.bf16 %v11439_v12  ;;  %682 = vst.msk [vmem:[#allocation2 + $0x2d9] sm:$0xff] %vm593_vm0, %v649_v5 }
 0x16e   : > { %11728 = vrot.lane.b32.xlu1 %v14122_v56, %s17216_s27  ;;  %v11436_v13 = vunpack.i.h.bf16 %v11434_v42  ;;  %v11435_v20 = vunpack.i.l.bf16 %v11434_v42 }
 0x16f   : > { %11723 = vrot.lane.b32.xlu0 %v13953_v26, %s17216_s27  ;;  %10806 = vmatmul.mubr.msk.bf16.gmra.mrb[16].mxu0 %vm3976_vm12, %v3931_v15  ;;  %v3490_v58 = vsel %vm17189_vm5, %v3425_v43, %v11440_v29 }
 0x170   : > { %v14152_v50 = vpop.permute.xlu1 %11448  ;;  %v3489_v1 = vsel %vm17189_vm5, %v3424_v52, %v11436_v13  ;;  %v3488_v2 = vsel %vm17189_vm5, %v3423_v57, %v11435_v20  ;;  %v650_v57 = vld [vmem:[%s13386_s18 + $0xc0] sm:$0xff] }
 0x171   : > { %v14154_v41 = vpop.permute.xlu0 %11443  ;;  %v11451_v63 = vunpack.i.h.bf16 %v14152_v50  ;;  %v11450_v37 = vunpack.i.l.bf16 %v14152_v50  ;;  %683 = vst.msk [vmem:[#allocation2 + $0x2e9] sm:$0xff] %vm593_vm0, %v650_v57 }
 0x172   : > { %11738 = vrot.lane.b32.xlu1 %v13953_v26, %s17210_s0  ;;  %v11446_v24 = vunpack.i.h.bf16 %v14154_v41  ;;  %v11445_v36 = vunpack.i.l.bf16 %v14154_v41 }
 0x173   : > { %11733 = vrot.lane.b32.xlu0 %v13955_v53, %s17217_s20  ;;  %v3555_v39 = vsel %vm3532_vm6, %v3490_v58, %v11450_v37  ;;  %v651_v58 = vld [vmem:[%s13386_s18 + $0xc8] sm:$0xff] }
 0x174   : > { %v14162_v16 = vpop.permute.xlu1 %11458  ;;  %v3553_v11 = vsel %vm3532_vm6, %v3488_v2, %v11445_v36  ;;  %v3554_v18 = vsel %vm3532_vm6, %v3489_v1, %v11446_v24  ;;  %684 = vst.msk [vmem:[#allocation2 + $0x2f1] sm:$0xff] %vm593_vm0, %v651_v58 }
 0x175   : > { %v14164_v10 = vpop.permute.xlu0 %11453  ;;  %v11461_v15 = vunpack.i.h.bf16 %v14162_v16  ;;  %v11460_v50 = vunpack.i.l.bf16 %v14162_v16 }
 0x176   : > { %11748 = vrot.lane.b32.xlu1 %v14122_v56, %s17210_s0  ;;  %v11456_v28 = vunpack.i.h.bf16 %v14164_v10  ;;  %v11455_v3 = vunpack.i.l.bf16 %v14164_v10 }
 0x177   : > { %11743 = vrot.lane.b32.xlu0 %v14160_v8, %s17217_s20 }
 0x178   : > { %v14170_v21 = vpop.permute.xlu1 %11468  ;;  %v3618_v41 = vsel %vm17184_vm7, %v3553_v11, %v11455_v3  ;;  %v3619_v10 = vsel %vm17184_vm7, %v3554_v18, %v11456_v28  ;;  %v1329_v3 = vld [vmem:[#allocation2 + $0x22a] sm:$0xff]  ;;  %v1076_v11 = vld [vmem:[#allocation2 + $0x241] sm:$0xff] }
 0x179   : > { %v14172_v26 = vpop.permute.xlu0 %11463  ;;  %v11471_v17 = vunpack.i.h.bf16 %v14170_v21  ;;  %v11470_v19 = vunpack.i.l.bf16 %v14170_v21  ;;  %v1265_v21 = vld [vmem:[#allocation2 + $0x229] sm:$0xff] }
 0x17a   : > { %11758 = vrot.lane.b32.xlu1 %v14160_v8, %s17211_s23  ;;  %v11466_v34 = vunpack.i.h.bf16 %v14172_v26  ;;  %v1077_v18 = vld [vmem:[#allocation2 + $0x249] sm:$0xff] }
 0x17b   : > { %11753 = vrot.lane.b32.xlu0 %v13955_v53, %s17211_s23  ;;  %v3426_v53 = vsel %vm593_vm0, %v801_v14, %v11431_v48 }
 0x17c   : > { %v14184_v40 = vpop.permute.xlu1 %11478  ;;  %v3491_v25 = vsel %vm17189_vm5, %v3426_v53, %v11441_v38  ;;  %v3684_v49 = vsel %vm17183_vm8, %v3619_v10, %v11466_v34  ;;  %v3620_v38 = vsel %vm17184_vm7, %v3555_v39, %v11460_v50  ;;  %v1141_v50 = vld [vmem:[#allocation2 + $0x24a] sm:$0xff] }
 0x17d   : > { %v11474_v22 = vpop.permute.xlu0 %11473  ;;  %v3556_v7 = vsel %vm3532_vm6, %v3491_v25, %v11451_v63  ;;  %v11481_v16 = vunpack.i.h.bf16 %v14184_v40  ;;  %v11480_v23 = vunpack.i.l.bf16 %v14184_v40  ;;  %v3685_v20 = vsel %vm17183_vm8, %v3620_v38, %v11470_v19  ;;  %v1269_v19 = vld [vmem:[#allocation2 + $0x259] sm:$0xff] }
 0x17e   : > { %11768 = vrot.lane.b32.xlu1 %v14178_v55, %s17212_s16  ;;  %v11476_v12 = vunpack.i.h.bf16 %v11474_v22  ;;  %v11475_v42 = vunpack.i.l.bf16 %v11474_v22  ;;  %v3621_v29 = vsel %vm17184_vm7, %v3556_v7, %v11461_v15  ;;  %v14252_v22 = vpack.i.bf16 %v1266_v60, %v1265_v21 }
 0x17f   : > { %11763 = vrot.lane.b32.xlu0 %v13961_v59, %s17212_s16  ;;  %v11465_v59 = vunpack.i.l.bf16 %v14172_v26  ;;  %v3686_v40 = vsel %vm17183_vm8, %v3621_v29, %v11471_v17  ;;  %v14306_v17 = vpack.i.bf16 %v1077_v18, %v1076_v11 }
 0x180   : > { %v11489_v4 = vpop.permute.xlu1 %11488  ;;  %v3749_v54 = vsel %vm3727_vm9, %v3684_v49, %v11476_v12  ;;  %v3751_v53 = vsel %vm3727_vm9, %v3686_v40, %v11481_v16  ;;  %v1140_v12 = vld [vmem:[#allocation2 + $0x242] sm:$0xff] }
 0x181   : > { %v11484_v62 = vpop.permute.xlu0 %11483  ;;  %v3683_v61 = vsel %vm17183_vm8, %v3618_v41, %v11465_v59  ;;  %v11491_v32 = vunpack.i.h.bf16 %v11489_v4  ;;  %v11490_v33 = vunpack.i.l.bf16 %v11489_v4  ;;  %v1330_v4 = vld [vmem:[#allocation2 + $0x232] sm:$0xff]  ;;  %v1012_v59 = vld [vmem:[#allocation2 + $0x240] sm:$0xff] }
 0x182   : > { %11778 = vrot.lane.b32.xlu1 %v14186_v44, %s17213_s17  ;;  %v11486_v45 = vunpack.i.h.bf16 %v11484_v62  ;;  %v11485_v46 = vunpack.i.l.bf16 %v11484_v62  ;;  %v14286_v39 = vpack.i.bf16 %v1330_v4, %v1329_v3  ;;  %v1013_v62 = vld [vmem:[#allocation2 + $0x248] sm:$0xff] }
 0x183   : > { %11773 = vrot.lane.b32.xlu0 %v14122_v56, %s17213_s17  ;;  %v3748_v56 = vsel %vm3727_vm9, %v3683_v61, %v11475_v42  ;;  %v3816_v52 = vsel %vm17182_vm10, %v3751_v53, %v11491_v32  ;;  %v14300_v15 = vpack.i.bf16 %v1013_v62, %v1012_v59  ;;  %v1270_v61 = vld [vmem:[#allocation2 + $0x261] sm:$0xff] }
 0x184   : > { %v14230_v26 = vpop.permute.xlu1 %11498  ;;  %v3813_v35 = vsel %vm17182_vm10, %v3748_v56, %v11485_v46  ;;  %v3814_v14 = vsel %vm17182_vm10, %v3749_v54, %v11486_v45  ;;  %v1205_v45 = vld [vmem:[#allocation2 + $0x258] sm:$0xff]  ;;  %v1206_v46 = vld [vmem:[#allocation2 + $0x260] sm:$0xff]  ;;  %v14324_v29 = vpack.i.bf16 %v1270_v61, %v1269_v19 }
 0x185   : > { %v11494_v48 = vpop.permute.xlu0 %11493  ;;  %v11501_v49 = vunpack.i.h.bf16 %v14230_v26  ;;  %v11500_v16 = vunpack.i.l.bf16 %v14230_v26  ;;  %v14320_v26 = vpack.i.bf16 %v1206_v46, %v1205_v45 }
 0x186   : > { %v11496_v27 = vunpack.i.h.bf16 %v11494_v48  ;;  %v11495_v30 = vunpack.i.l.bf16 %v11494_v48  ;;  %11788 = vrot.lane.b32.xlu1 %v14190_v31, %s17214_s26  ;;  %v805_v48 = vld [vmem:[#allocation2 + $0x140] sm:$0xff] }
 0x187   : > { %11783 = vrot.lane.b32.xlu0 %v14160_v8, %s17214_s26  ;;  %v3750_v8 = vsel %vm3727_vm9, %v3685_v20, %v11480_v23  ;;  %v804_v23 = vld [vmem:[#allocation2 + $0x138] sm:$0xff] }
 0x188   : > { %v3878_v6 = vsel %vm3857_vm11, %v3813_v35, %v11495_v30  ;;  %v3879_v9 = vsel %vm3857_vm11, %v3814_v14, %v11496_v27  ;;  %v14248_v13 = vpop.permute.xlu1 %11508  ;;  %v3815_v36 = vsel %vm17182_vm10, %v3750_v8, %v11490_v33  ;;  %v802_v27 = vld [vmem:[#allocation2 + $0x120] sm:$0xff]  ;;  %v803_v30 = vld [vmem:[#allocation2 + $0x128] sm:$0xff]  ;;  %v14318_v33 = vpack.i.bf16 %v1141_v50, %v1140_v12 }
 0x189   : > { %v11504_v63 = vpop.permute.xlu0 %11503  ;;  %v3932_v37 = vpack.c.bf16 %v3879_v9, %v3878_v6  ;;  %v11511_v41 = vunpack.i.h.bf16 %v14248_v13  ;;  %v11510_v10 = vunpack.i.l.bf16 %v14248_v13 }
 0x18a   : > { %v11506_v43 = vunpack.i.h.bf16 %v11504_v63  ;;  %v11505_v24 = vunpack.i.l.bf16 %v11504_v63  ;;  %11798 = vrot.lane.b32.xlu1 %v14192_v51, %s17215_s3  ;;  %v3428_v63 = vsel %vm593_vm0, %v803_v30, %v11501_v49 }
 0x18b   : > { %11793 = vrot.lane.b32.xlu0 %v14178_v55, %s17215_s3  ;;  %10809 = vmatprep.mubr.msk.bf16.mxu0 %vm3976_vm12, %v3932_v37  ;;  %v3430_v9 = vsel %vm593_vm0, %v805_v48, %v11511_v41  ;;  %v3429_v13 = vsel %vm593_vm0, %v804_v23, %v11510_v10  ;;  %v3427_v37 = vsel %vm593_vm0, %v802_v27, %v11500_v16 }
 0x18c   : > { %v3881_v25 = vsel %vm3857_vm11, %v3816_v52, %v11506_v43  ;;  %v3880_v47 = vsel %vm3857_vm11, %v3815_v36, %v11505_v24  ;;  %v14267_v1 = vpop.permute.xlu1 %11518  ;;  %v652_v43 = vld [vmem:[%s13386_s18 + $0xd0] sm:$0xff] }
 0x18d   : > { %v14271_v2 = vpop.permute.xlu0 %11513  ;;  %v3933_v28 = vpack.c.bf16 %v3881_v25, %v3880_v47  ;;  %v11521_v56 = vunpack.i.h.bf16 %v14267_v1  ;;  %v11520_v54 = vunpack.i.l.bf16 %v14267_v1  ;;  %v653_v25 = vld [vmem:[%s13386_s18 + $0xd8] sm:$0xff]  ;;  %685 = vst.msk [vmem:[#allocation2 + $0x301] sm:$0xff] %vm593_vm0, %v652_v43 }
 0x18e   : > { %11808 = vrot.lane.b32.xlu1 %v14252_v22, %s17216_s27  ;;  %v11516_v21 = vunpack.i.h.bf16 %v14271_v2  ;;  %v11515_v60 = vunpack.i.l.bf16 %v14271_v2  ;;  %686 = vst.msk [vmem:[#allocation2 + $0x309] sm:$0xff] %vm593_vm0, %v653_v25  ;;  %v1017_v25 = vld [vmem:[#allocation2 + $0x278] sm:$0xff] }
 0x18f   : > { %11803 = vrot.lane.b32.xlu0 %v14186_v44, %s17216_s27  ;;  %10810 = vmatmul.mubr.msk.bf16.gmra.mrb[20].mxu0 %vm3976_vm12, %v3933_v28  ;;  %v3494_v8 = vsel %vm17189_vm5, %v3429_v13, %v11520_v54  ;;  %v3495_v53 = vsel %vm17189_vm5, %v3430_v9, %v11521_v56 }
 0x190   : > { %v14278_v55 = vpop.permute.xlu1 %11528  ;;  %v3493_v24 = vsel %vm17189_vm5, %v3428_v63, %v11516_v21  ;;  %v3492_v36 = vsel %vm17189_vm5, %v3427_v37, %v11515_v60  ;;  %v654_v37 = vld [vmem:[%s13386_s18 + $0xe0] sm:$0xff] }
 0x191   : > { %v14280_v5 = vpop.permute.xlu0 %11523  ;;  %v11531_v35 = vunpack.i.h.bf16 %v14278_v55  ;;  %v11530_v14 = vunpack.i.l.bf16 %v14278_v55  ;;  %687 = vst.msk [vmem:[#allocation2 + $0x319] sm:$0xff] %vm593_vm0, %v654_v37 }
 0x192   : > { %11818 = vrot.lane.b32.xlu1 %v14186_v44, %s17210_s0  ;;  %v11526_v20 = vunpack.i.h.bf16 %v14280_v5  ;;  %v11525_v40 = vunpack.i.l.bf16 %v14280_v5 }
 0x193   : > { %11813 = vrot.lane.b32.xlu0 %v14190_v31, %s17217_s20  ;;  %v3559_v47 = vsel %vm3532_vm6, %v3494_v8, %v11530_v14  ;;  %v3560_v1 = vsel %vm3532_vm6, %v3495_v53, %v11531_v35  ;;  %v655_v8 = vld [vmem:[%s13386_s18 + $0xe8] sm:$0xff] }
 0x194   : > { %v14288_v7 = vpop.permute.xlu1 %11538  ;;  %v3557_v55 = vsel %vm3532_vm6, %v3492_v36, %v11525_v40  ;;  %v3558_v3 = vsel %vm3532_vm6, %v3493_v24, %v11526_v20  ;;  %v1333_v36 = vld [vmem:[#allocation2 + $0x25a] sm:$0xff]  ;;  %688 = vst.msk [vmem:[#allocation2 + $0x321] sm:$0xff] %vm593_vm0, %v655_v8  ;;  %v1217_v8 = vld [vmem:[#allocation2 + $0x2e8] sm:$0xff] }
 0x195   : > { %v14290_v34 = vpop.permute.xlu0 %11533  ;;  %v11540_v59 = vunpack.i.l.bf16 %v14288_v7 }
 0x196   : > { %11828 = vrot.lane.b32.xlu1 %v14252_v22, %s17210_s0  ;;  %v11536_v52 = vunpack.i.h.bf16 %v14290_v34  ;;  %v11535_v57 = vunpack.i.l.bf16 %v14290_v34  ;;  %v11541_v34 = vunpack.i.h.bf16 %v14288_v7 }
 0x197   : > { %11823 = vrot.lane.b32.xlu0 %v14286_v39, %s17217_s20  ;;  %v3624_v54 = vsel %vm17184_vm7, %v3559_v47, %v11540_v59  ;;  %v1080_v47 = vld [vmem:[#allocation2 + $0x271] sm:$0xff] }
 0x198   : > { %v14296_v44 = vpop.permute.xlu1 %11548  ;;  %v3622_v18 = vsel %vm17184_vm7, %v3557_v55, %v11535_v57  ;;  %v3623_v12 = vsel %vm17184_vm7, %v3558_v3, %v11536_v52  ;;  %v3625_v27 = vsel %vm17184_vm7, %v3560_v1, %v11541_v34  ;;  %v1334_v52 = vld [vmem:[#allocation2 + $0x262] sm:$0xff]  ;;  %v1081_v1 = vld [vmem:[#allocation2 + $0x279] sm:$0xff]  ;;  %v1274_v34 = vld [vmem:[#allocation2 + $0x291] sm:$0xff] }
 0x199   : > { %v14298_v42 = vpop.permute.xlu0 %11543  ;;  %v11550_v50 = vunpack.i.l.bf16 %v14296_v44  ;;  %v1209_v3 = vld [vmem:[#allocation2 + $0x288] sm:$0xff] }
 0x19a   : > { %11838 = vrot.lane.b32.xlu1 %v14286_v39, %s17211_s23  ;;  %v11546_v2 = vunpack.i.h.bf16 %v14298_v42  ;;  %v1337_v59 = vld [vmem:[#allocation2 + $0x28a] sm:$0xff] }
 0x19b   : > { %11833 = vrot.lane.b32.xlu0 %v14190_v31, %s17211_s23  ;;  %v12905_v31 = vmov 1983009808  }
 0x19c   : > { %v14316_v32 = vpop.permute.xlu1 %11558  ;;  %v14326_v6 = vunpack.c.l.s4 %v12905_v31  ;;  %v3688_v41 = vsel %vm17183_vm8, %v3623_v12, %v11546_v2  ;;  %v4501_v31 = vlaneseq  ;;  %v1144_v2 = vld [vmem:[#allocation2 + $0x272] sm:$0xff]  ;;  %v1084_v12 = vld [vmem:[#allocation2 + $0x2a1] sm:$0xff] }
 0x19d   : > { %v11554_v38 = vpop.permute.xlu0 %11553  ;;  %v11561_v7 = vunpack.i.h.bf16 %v14316_v32  ;;  %v11560_v10 = vunpack.i.l.bf16 %v14316_v32  ;;  %v3689_v32 = vsel %vm17183_vm8, %v3624_v54, %v11550_v50  ;;  %v1148_v50 = vld [vmem:[#allocation2 + $0x2a2] sm:$0xff]  ;;  %v1024_v54 = vld [vmem:[#allocation2 + $0x2d0] sm:$0xff] }
 0x19e   : > { %11848 = vrot.lane.b32.xlu1 %v14300_v15, %s17212_s16  ;;  %v11556_v4 = vunpack.i.h.bf16 %v11554_v38  ;;  %v11555_v5 = vunpack.i.l.bf16 %v11554_v38  ;;  %v4502_v55 = vshrl.u32 %v4501_v31, 7  ;;  %v1153_v31 = vld [vmem:[#allocation2 + $0x2da] sm:$0xff] }
 0x19f   : > { %11843 = vrot.lane.b32.xlu0 %v14192_v51, %s17212_s16  ;;  %v11545_v51 = vunpack.i.l.bf16 %v14298_v42  ;;  %v11551_v42 = vunpack.i.h.bf16 %v14296_v44 }
 0x1a0   : > { %v11569_v58 = vpop.permute.xlu1 %11568  ;;  %v3753_v61 = vsel %vm3727_vm9, %v3688_v41, %v11556_v4  ;;  %v1210_v4 = vld [vmem:[#allocation2 + $0x290] sm:$0xff] }
 0x1a1   : > { %v11564_v28 = vpop.permute.xlu0 %11563  ;;  %v3687_v46 = vsel %vm17183_vm8, %v3622_v18, %v11545_v51  ;;  %v11571_v44 = vunpack.i.h.bf16 %v11569_v58  ;;  %v11570_v23 = vunpack.i.l.bf16 %v11569_v58  ;;  %v3690_v35 = vsel %vm17183_vm8, %v3625_v27, %v11551_v42  ;;  %v1145_v51 = vld [vmem:[#allocation2 + $0x27a] sm:$0xff]  ;;  %v1021_v18 = vld [vmem:[#allocation2 + $0x2a8] sm:$0xff] }
 0x1a2   : > { %11858 = vrot.lane.b32.xlu1 %v14306_v17, %s17213_s17  ;;  %v11566_v62 = vunpack.i.h.bf16 %v11564_v28  ;;  %v11565_v11 = vunpack.i.l.bf16 %v11564_v28  ;;  %v3755_v9 = vsel %vm3727_vm9, %v3690_v35, %v11561_v7  ;;  %v4500_v28 = vunpack.c.0.s8 %v14326_v6  ;;  %v1085_v42 = vld [vmem:[#allocation2 + $0x2a9] sm:$0xff]  ;;  %v1213_v6 = vld [vmem:[#allocation2 + $0x2b8] sm:$0xff]  ;;  %v1214_v7 = vld [vmem:[#allocation2 + $0x2c0] sm:$0xff] }
 0x1a3   : > { %11853 = vrot.lane.b32.xlu0 %v14252_v22, %s17213_s17  ;;  %v3752_v22 = vsel %vm3727_vm9, %v3687_v46, %v11555_v5  ;;  %v3820_v63 = vsel %vm17182_vm10, %v3755_v9, %v11571_v44  ;;  %v1273_v5 = vld [vmem:[#allocation2 + $0x289] sm:$0xff]  ;;  %v1025_v27 = vld [vmem:[#allocation2 + $0x2d8] sm:$0xff]  ;;  %v14445_v37 = vpack.i.bf16 %v1214_v7, %v1213_v6 }
 0x1a4   : > { %v14364_v45 = vpop.permute.xlu1 %11578  ;;  %v3817_v48 = vsel %vm17182_vm10, %v3752_v22, %v11565_v11  ;;  %v3818_v56 = vsel %vm17182_vm10, %v3753_v61, %v11566_v62  ;;  %v1338_v62 = vld [vmem:[#allocation2 + $0x292] sm:$0xff]  ;;  %v1020_v11 = vld [vmem:[#allocation2 + $0x2a0] sm:$0xff]  ;;  %v1149_v46 = vld [vmem:[#allocation2 + $0x2aa] sm:$0xff]  ;;  %v14415_v22 = vpack.i.bf16 %v1334_v52, %v1333_v36  ;;  %v14433_v35 = vpack.i.bf16 %v1274_v34, %v1273_v5 }
 0x1a5   : > { %v11574_v19 = vpop.permute.xlu0 %11573  ;;  %v1278_v61 = vld [vmem:[#allocation2 + $0x2c1] sm:$0xff]  ;;  %v807_v9 = vld [vmem:[#allocation2 + $0x158] sm:$0xff]  ;;  %v11581_v36 = vunpack.i.h.bf16 %v14364_v45  ;;  %v11580_v52 = vunpack.i.l.bf16 %v14364_v45  ;;  %v14460_v45 = vpack.i.bf16 %v1025_v27, %v1024_v54  ;;  %v809_v34 = vld [vmem:[#allocation2 + $0x170] sm:$0xff] }
 0x1a6   : > { %v11576_v49 = vunpack.i.h.bf16 %v11574_v19  ;;  %v11575_v16 = vunpack.i.l.bf16 %v11574_v19  ;;  %11868 = vrot.lane.b32.xlu1 %v14318_v33, %s17214_s26  ;;  %v1029_v5 = vld [vmem:[#allocation2 + $0x308] sm:$0xff] }
 0x1a7   : > { %11863 = vrot.lane.b32.xlu0 %v14286_v39, %s17214_s26  ;;  %v3754_v39 = vsel %vm3727_vm9, %v3689_v32, %v11560_v10  ;;  %v1277_v10 = vld [vmem:[#allocation2 + $0x2b9] sm:$0xff]  ;;  %v14431_v32 = vpack.i.bf16 %v1210_v4, %v1209_v3 }
 0x1a8   : > { %v3882_v30 = vsel %vm3857_vm11, %v3817_v48, %v11575_v16  ;;  %v3883_v21 = vsel %vm3857_vm11, %v3818_v56, %v11576_v49  ;;  %v14382_v60 = vpop.permute.xlu1 %11588  ;;  %v3819_v40 = vsel %vm17182_vm10, %v3754_v39, %v11570_v23  ;;  %v1341_v49 = vld [vmem:[#allocation2 + $0x2ba] sm:$0xff]  ;;  %v1342_v16 = vld [vmem:[#allocation2 + $0x2c2] sm:$0xff]  ;;  %v14421_v23 = vpack.i.bf16 %v1081_v1, %v1080_v47  ;;  %v806_v39 = vld [vmem:[#allocation2 + $0x150] sm:$0xff] }
 0x1a9   : > { %v11584_v14 = vpop.permute.xlu0 %11583  ;;  %v3934_v38 = vpack.c.bf16 %v3883_v21, %v3882_v30  ;;  %v14423_v48 = vsub.s32 %v4500_v28, %v4502_v55  ;;  %v14425_v56 = vpack.i.bf16 %v1145_v51, %v1144_v2  ;;  %v1088_v30 = vld [vmem:[#allocation2 + $0x2d1] sm:$0xff]  ;;  %v14429_v21 = vsub.s32 0, %v4502_v55  ;;  %v808_v51 = vld [vmem:[#allocation2 + $0x168] sm:$0xff]  ;;  %v1028_v4 = vld [vmem:[#allocation2 + $0x300] sm:$0xff] }
 0x1aa   : > { %v11586_v13 = vunpack.i.h.bf16 %v11584_v14  ;;  %v11585_v20 = vunpack.i.l.bf16 %v11584_v14  ;;  %11878 = vrot.lane.b32.xlu1 %v14320_v26, %s17215_s3  ;;  %v1089_v14 = vld [vmem:[#allocation2 + $0x2d9] sm:$0xff]  ;;  %v1282_v47 = vld [vmem:[#allocation2 + $0x2f1] sm:$0xff]  ;;  %v11591_v28 = vunpack.i.h.bf16 %v14382_v60  ;;  %v14458_v3 = vpack.i.bf16 %v1342_v16, %v1341_v49 }
 0x1ab   : > { %11873 = vrot.lane.b32.xlu0 %v14300_v15, %s17215_s3  ;;  %10813 = vmatprep.mubr.msk.bf16.mxu0 %vm3976_vm12, %v3934_v38  ;;  %v1016_v15 = vld [vmem:[#allocation2 + $0x270] sm:$0xff]  ;;  %v14480_v16 = vpack.i.bf16 %v1029_v5, %v1028_v4 }
 0x1ac   : > { %v3885_v53 = vsel %vm3857_vm11, %v3820_v63, %v11586_v13  ;;  %v3884_v43 = vsel %vm3857_vm11, %v3819_v40, %v11585_v20  ;;  %v14399_v24 = vpop.permute.xlu1 %11598  ;;  %v14419_v44 = vpack.i.bf16 %v1017_v25, %v1016_v15  ;;  %v1152_v38 = vld [vmem:[#allocation2 + $0x2d2] sm:$0xff]  ;;  %v14439_v20 = vpack.i.bf16 %v1021_v18, %v1020_v11  ;;  %v1345_v1 = vld [vmem:[#allocation2 + $0x2ea] sm:$0xff]  ;;  %v1092_v18 = vld [vmem:[#allocation2 + $0x301] sm:$0xff] }
 0x1ad   : > { %v14403_v57 = vpop.permute.xlu0 %11593  ;;  %v3935_v58 = vpack.c.bf16 %v3885_v53, %v3884_v43  ;;  %v14441_v40 = vpack.i.bf16 %v1085_v42, %v1084_v12  ;;  %v14443_v63 = vpack.i.bf16 %v1149_v46, %v1148_v50  ;;  %v1218_v53 = vld [vmem:[#allocation2 + $0x2f0] sm:$0xff]  ;;  %v14452_v25 = vpack.i.bf16 %v1278_v61, %v1277_v10 }
 0x1ae   : > { %11888 = vrot.lane.b32.xlu1 %v14324_v29, %s17216_s27  ;;  %v1281_v43 = vld [vmem:[#allocation2 + $0x2e9] sm:$0xff]  ;;  %v1346_v2 = vld [vmem:[#allocation2 + $0x2f2] sm:$0xff]  ;;  %v11600_v55 = vunpack.i.l.bf16 %v14399_v24  ;;  %v14469_v11 = vpack.i.bf16 %v1218_v53, %v1217_v8  ;;  %v11596_v42 = vunpack.i.h.bf16 %v14403_v57  ;;  %v11595_v50 = vunpack.i.l.bf16 %v14403_v57 }
 0x1af   : > { %11883 = vrot.lane.b32.xlu0 %v14306_v17, %s17216_s27  ;;  %10814 = vmatmul.mubr.msk.bf16.gmra.mrb[24].mxu0 %vm3976_vm12, %v3935_v58  ;;  %v11590_v58 = vunpack.i.l.bf16 %v14382_v60  ;;  %v14467_v60 = vpack.i.bf16 %v1153_v31, %v1152_v38  ;;  %v1093_v12 = vld [vmem:[#allocation2 + $0x309] sm:$0xff]  ;;  %v14473_v6 = vpack.i.bf16 %v1282_v47, %v1281_v43  ;;  %v14475_v7 = vpack.i.bf16 %v1346_v2, %v1345_v1  ;;  %v1221_v47 = vld [vmem:[#allocation2 + $0x318] sm:$0xff]  ;;  %v1222_v1 = vld [vmem:[#allocation2 + $0x320] sm:$0xff] }
 0x1b0   : > { %v14411_v41 = vpop.permute.xlu1 %11608  ;;  %v3431_v10 = vsel %vm593_vm0, %v806_v39, %v11580_v52  ;;  %v3434_v54 = vsel %vm593_vm0, %v809_v34, %v11591_v28  ;;  %v1157_v38 = vld [vmem:[#allocation2 + $0x30a] sm:$0xff]  ;;  %v1286_v34 = vld [vmem:[#allocation2 + $0x321] sm:$0xff] }
 0x1b1   : > { %v14413_v19 = vpop.permute.xlu0 %11603  ;;  %v3433_v61 = vsel %vm593_vm0, %v808_v51, %v11590_v58  ;;  %v11610_v57 = vunpack.i.l.bf16 %v14411_v41  ;;  %v11611_v39 = vunpack.i.h.bf16 %v14411_v41  ;;  %v3496_v43 = vsel %vm17189_vm5, %v3431_v10, %v11595_v50 }
 0x1b2   : > { %11898 = vrot.lane.b32.xlu1 %v14306_v17, %s17210_s0  ;;  %v14435_v17 = vpack.i.bf16 %v1338_v62, %v1337_v59  ;;  %v11601_v59 = vunpack.i.h.bf16 %v14399_v24  ;;  %v14465_v62 = vpack.i.bf16 %v1089_v14, %v1088_v30  ;;  %v3432_v24 = vsel %vm593_vm0, %v807_v9, %v11581_v36  ;;  %v1156_v14 = vld [vmem:[#allocation2 + $0x302] sm:$0xff] }
 0x1b3   : > { %11893 = vrot.lane.b32.xlu0 %v14318_v33, %s17217_s20  ;;  %v3498_v27 = vsel %vm17189_vm5, %v3433_v61, %v11600_v55  ;;  %v14487_v30 = vpack.i.bf16 %v1093_v12, %v1092_v18  ;;  %v11606_v9 = vunpack.i.h.bf16 %v14413_v19  ;;  %v11605_v8 = vunpack.i.l.bf16 %v14413_v19 }
 0x1b4   : > { %v14437_v13 = vpop.permute.xlu1 %11618  ;;  %v3499_v31 = vsel %vm17189_vm5, %v3434_v54, %v11601_v59  ;;  %v3497_v53 = vsel %vm17189_vm5, %v3432_v24, %v11596_v42  ;;  %v3563_v28 = vsel %vm3532_vm6, %v3498_v27, %v11610_v57  ;;  %v14513_v12 = vpack.i.bf16 %v1222_v1, %v1221_v47  ;;  %v656_v42 = vld [vmem:[%s13386_s18 + $0xf0] sm:$0xff]  ;;  %v657_v54 = vld [vmem:[%s13386_s18 + $0xf8] sm:$0xff] }
 0x1b5   : > { %v14450_v15 = vpop.permute.xlu0 %11613  ;;  %v11621_v36 = vunpack.i.h.bf16 %v14437_v13  ;;  %v11620_v52 = vunpack.i.l.bf16 %v14437_v13  ;;  %v1285_v13 = vld [vmem:[#allocation2 + $0x319] sm:$0xff]  ;;  %v3564_v59 = vsel %vm3532_vm6, %v3499_v31, %v11611_v39  ;;  %v3562_v18 = vsel %vm3532_vm6, %v3497_v53, %v11606_v9  ;;  %689 = vst.msk [vmem:[#allocation2 + $0x331] sm:$0xff] %vm593_vm0, %v656_v42  ;;  %690 = vst.msk [vmem:[#allocation2 + $0x339] sm:$0xff] %vm593_vm0, %v657_v54 }
 0x1b6   : > { %11908 = vrot.lane.b32.xlu1 %v14324_v29, %s17210_s0  ;;  %v11616_v41 = vunpack.i.h.bf16 %v14450_v15  ;;  %v11615_v2 = vunpack.i.l.bf16 %v14450_v15  ;;  %v3561_v15 = vsel %vm3532_vm6, %v3496_v43, %v11605_v8 }
 0x1b7   : > { %11903 = vrot.lane.b32.xlu0 %v14415_v22, %s17217_s20  ;;  %v3628_v50 = vsel %vm17184_vm7, %v3563_v28, %v11620_v52 }
 0x1b8   : > { %v11629_v46 = vpop.permute.xlu1 %11628  ;;  %v3627_v27 = vsel %vm17184_vm7, %v3562_v18, %v11616_v41 }
 0x1b9   : > { %v11624_v49 = vpop.permute.xlu0 %11623  ;;  %v11630_v19 = vunpack.i.l.bf16 %v11629_v46  ;;  %v11631_v55 = vunpack.i.h.bf16 %v11629_v46  ;;  %v3629_v46 = vsel %vm17184_vm7, %v3564_v59, %v11621_v36 }
 0x1ba   : > { %11918 = vrot.lane.b32.xlu1 %v14415_v22, %s17211_s23  ;;  %v11626_v4 = vunpack.i.h.bf16 %v11624_v49  ;;  %v11625_v5 = vunpack.i.l.bf16 %v11624_v49  ;;  %v14523_v49 = vld [vmem:[%s17220_s4] ss:$0 sm:$0xff] }
 0x1bb   : > { %11913 = vrot.lane.b32.xlu0 %v14318_v33, %s17211_s23  ;;  %v14503_v33 = vpack.i.bf16 %v1157_v38, %v1156_v14  ;;  %v3693_v57 = vsel %vm17183_vm8, %v3628_v50, %v11630_v19  ;;  %v14530_v38 = vpack.i.bf16 %v1286_v34, %v1285_v13  ;;  %v3694_v31 = vsel %vm17183_vm8, %v3629_v46, %v11631_v55  ;;  %v1349_v50 = vld [vmem:[#allocation2 + $0x31a] sm:$0xff]  ;;  %v1350_v46 = vld [vmem:[#allocation2 + $0x322] sm:$0xff] }
 0x1bc   : > { %v14499_v58 = vpop.permute.xlu1 %11638  ;;  %v3692_v9 = vsel %vm17183_vm8, %v3627_v27, %v11626_v4  ;;  %v810_v27 = vld [vmem:[#allocation2 + $0x1b0] sm:$0xff] }
 0x1bd   : > { %v11634_v51 = vpop.permute.xlu0 %11633  ;;  %v11641_v43 = vunpack.i.h.bf16 %v14499_v58  ;;  %v11640_v36 = vunpack.i.l.bf16 %v14499_v58 }
 0x1be   : > { %11928 = vrot.lane.b32.xlu1 %v14419_v44, %s17212_s16  ;;  %v11636_v24 = vunpack.i.h.bf16 %v11634_v51  ;;  %v11635_v10 = vunpack.i.l.bf16 %v11634_v51 }
 0x1bf   : > { %11923 = vrot.lane.b32.xlu0 %v14320_v26, %s17212_s16  ;;  %v3626_v26 = vsel %vm17184_vm7, %v3561_v15, %v11615_v2 }
 0x1c0   : > { %v14518_v61 = vpop.permute.xlu1 %11648  ;;  %v3691_v39 = vsel %vm17183_vm8, %v3626_v26, %v11625_v5  ;;  %v3757_v2 = vsel %vm3727_vm9, %v3692_v9, %v11636_v24 }
 0x1c1   : > { %v11644_v14 = vpop.permute.xlu0 %11643  ;;  %v3756_v41 = vsel %vm3727_vm9, %v3691_v39, %v11635_v10  ;;  %v11651_v19 = vunpack.i.h.bf16 %v14518_v61  ;;  %v11650_v4 = vunpack.i.l.bf16 %v14518_v61 }
 0x1c2   : > { %v11645_v8 = vunpack.i.l.bf16 %v11644_v14  ;;  %v10791_v53 = vpop.f32.mrb[0].mxu0  ;;  %11938 = vrot.lane.b32.xlu1 %v14421_v23, %s17213_s17  ;;  %v11646_v52 = vunpack.i.h.bf16 %v11644_v14  ;;  %v811_v14 = vld [vmem:[#allocation2 + $0x1b8] sm:$0xff] }
 0x1c3   : > { %v4123_v47 = vadd.f32 %v10791_v53, %v14523_v49  ;;  %11933 = vrot.lane.b32.xlu0 %v14324_v29, %s17213_s17  ;;  %v4114_v1 = vpop.f32.mrb[1].mxu0 }
 0x1c4   : > { %v4115_v51 = vadd.f32 %v14523_v49, %v4114_v1  ;;  %v10792_v28 = vpop.f32.mrb[2].mxu0  ;;  %v11659_v55 = vpop.permute.xlu1 %11658  ;;  %v3821_v58 = vsel %vm17182_vm10, %v3756_v41, %v11645_v8  ;;  %v3822_v24 = vsel %vm17182_vm10, %v3757_v2, %v11646_v52  ;;  %v3759_v52 = vsel %vm3727_vm9, %v3694_v31, %v11641_v43 }
 0x1c5   : > { %v4371_v5 = vmax.f32 %v4123_v47, 0.0  ;;  %v4126_v13 = vadd.f32 %v10792_v28, %v14523_v49  ;;  %v11654_v34 = vpop.permute.xlu0 %11653  ;;  %v4117_v29 = vpop.f32.mrb[3].mxu0  ;;  %v11661_v61 = vunpack.i.h.bf16 %v11659_v55  ;;  %v11660_v54 = vunpack.i.l.bf16 %v11659_v55 }
 0x1c6   : > { %v4369_v59 = vmax.f32 %v4115_v51, 0.0  ;;  %v11656_v15 = vunpack.i.h.bf16 %v11654_v34  ;;  %v11655_v18 = vunpack.i.l.bf16 %v11654_v34  ;;  %v4118_v42 = vadd.f32 %v14523_v49, %v4117_v29  ;;  %11948 = vrot.lane.b32.xlu1 %v14425_v56, %s17214_s26 }
 0x1c7   : > { %v4372_v10 = vmax.f32 %v4126_v13, 0.0  ;;  %11943 = vrot.lane.b32.xlu0 %v14415_v22, %s17214_s26  ;;  %v3758_v47 = vsel %vm3727_vm9, %v3693_v57, %v11640_v36  ;;  %v14562_v2 = vpack.i.bf16 %v1350_v46, %v1349_v50  ;;  %v14570_v57 = vsel %vm593_vm0, %v811_v14, %v11661_v61 }
 0x1c8   : > { %v4433_v26 = vadd.f32 %v4371_v5, %v4369_v59  ;;  %v3886_v39 = vsel %vm3857_vm11, %v3821_v58, %v11655_v18  ;;  %v3887_v9 = vsel %vm3857_vm11, %v3822_v24, %v11656_v15  ;;  %v4370_v8 = vmax.f32 %v4118_v42, 0.0  ;;  %v14558_v53 = vpop.permute.xlu1 %11668 }
 0x1c9   : > { %v11664_v1 = vpop.permute.xlu0 %11663  ;;  %v3936_v41 = vpack.c.bf16 %v3887_v9, %v3886_v39  ;;  %v3823_v22 = vsel %vm17182_vm10, %v3758_v47, %v11650_v4  ;;  %v3824_v58 = vsel %vm17182_vm10, %v3759_v52, %v11651_v19  ;;  %v14573_v31 = vsel %vm593_vm0, %v810_v27, %v11660_v54 }
 0x1ca   : > { %v4497_v51 = vcombine.high %v4433_v26, %v4433_v26  ;;  %v4504_v28 = vrot.slane %v4433_v26, %v14423_v48  ;;  %v4434_v55 = vadd.f32 %v4372_v10, %v4370_v8  ;;  %11958 = vrot.lane.b32.xlu1 %v14431_v32, %s17215_s3  ;;  %v11666_v43 = vunpack.i.h.bf16 %v11664_v1 }
 0x1cb   : > { %11953 = vrot.lane.b32.xlu0 %v14419_v44, %s17215_s3  ;;  %10817 = vmatprep.mubr.msk.bf16.mxu0 %vm3976_vm12, %v3936_v41  ;;  %v11671_v29 = vunpack.i.h.bf16 %v14558_v53  ;;  %v11670_v59 = vunpack.i.l.bf16 %v14558_v53  ;;  %v11665_v15 = vunpack.i.l.bf16 %v11664_v1  ;;  %vm17186_vm10 = vcmask 1047559  }
 0x1cc   : > { %v4511_v36 = vrot.slane %v4497_v51, %v14423_v48  ;;  %v4512_v4 = vcombine.high %v4504_v28, %v4504_v28  ;;  %v10123_v5 = vrot.slane %v4504_v28, 9  ;;  %v4514_v13 = vcombine.high %v4434_v55, %v4434_v55  ;;  %v14579_v19 = vpop.permute.xlu1 %11678 }
 0x1cd   : > { %v4521_v34 = vrot.slane %v4434_v55, %v14423_v48  ;;  %v14584_v18 = vpop.permute.xlu0 %11673  ;;  %v14590_v54 = vsel %vm3857_vm11, %v3824_v58, %v11666_v43  ;;  %v3888_v58 = vsel %vm3857_vm11, %v3823_v22, %v11665_v15  ;;  %v813_v22 = vld [vmem:[#allocation2 + $0x1d0] sm:$0xff] }
 0x1ce   : > { %v4513_v44 = vcombine.high %v4511_v36, %v4511_v36  ;;  %v10124_v42 = vrot.slane %v4512_v4, 9  ;;  %v10125_v50 = vrot.slane %v4511_v36, 9  ;;  %v5553_v46 = vadd.f32 %v10123_v5, %v4504_v28  ;;  %11968 = vrot.lane.b32.xlu1 %v14433_v35, %s17216_s27 }
 0x1cf   : > { %v4528_v24 = vrot.slane %v4514_v13, %v14423_v48  ;;  %v4529_v10 = vcombine.high %v4521_v34, %v4521_v34  ;;  %v10127_v61 = vrot.slane %v4521_v34, 9  ;;  %11963 = vrot.lane.b32.xlu0 %v14421_v23, %s17216_s27  ;;  %v1032_v13 = vld [vmem:[#allocation2 + $0x330] sm:$0xff] }
 0x1d0   : > { %v10126_v26 = vrot.slane %v4513_v44, 9  ;;  %v5554_v27 = vadd.f32 %v10124_v42, %v4512_v4  ;;  %v5555_v14 = vadd.f32 %v10125_v50, %v4511_v36  ;;  %v5681_v39 = vmul.f32 0.25, %v5553_v46  ;;  %v14594_v9 = vpop.permute.xlu1 %11688 }
 0x1d1   : > { %v4530_v8 = vcombine.high %v4528_v24, %v4528_v24  ;;  %v10128_v47 = vrot.slane %v4529_v10, 9  ;;  %v10129_v52 = vrot.slane %v4528_v24, 9  ;;  %v5557_v1 = vadd.f32 %v10127_v61, %v4521_v34  ;;  %v14596_v41 = vpop.permute.xlu0 %11683  ;;  %v1033_v34 = vld [vmem:[#allocation2 + $0x338] sm:$0xff] }
 0x1d2   : > { %v5556_v51 = vadd.f32 %v10126_v26, %v4513_v44  ;;  %v5682_v28 = vmul.f32 0.25, %v5554_v27  ;;  %v5683_v55 = vmul.f32 0.25, %v5555_v14  ;;  %11978 = vrot.lane.b32.xlu1 %v14421_v23, %s17210_s0  ;;  %v5940_v50 = vrot.slane %v5681_v39, %v14429_v21 }
 0x1d3   : > { %v10130_v43 = vrot.slane %v4530_v8, 9  ;;  %v5558_v36 = vadd.f32 %v10128_v47, %v4529_v10  ;;  %v5559_v4 = vadd.f32 %v10129_v52, %v4528_v24  ;;  %v5685_v5 = vmul.f32 0.25, %v5557_v1  ;;  %11973 = vrot.lane.b32.xlu0 %v14425_v56, %s17217_s20  ;;  %v812_v24 = vld [vmem:[#allocation2 + $0x1c8] sm:$0xff] }
 0x1d4   : > { %v5684_v42 = vmul.f32 0.25, %v5556_v51  ;;  %v5944_v44 = vrot.slane %v5682_v28, %v14429_v21  ;;  %v5948_v46 = vrot.slane %v5683_v55, %v14429_v21  ;;  %v14606_v15 = vpop.permute.xlu1 %11698  ;;  %v11680_v26 = vunpack.i.l.bf16 %v14579_v19 }
 0x1d5   : > { %v5560_v23 = vadd.f32 %v10130_v43, %v4530_v8  ;;  %v5686_v61 = vmul.f32 0.25, %v5558_v36  ;;  %v5687_v10 = vmul.f32 0.25, %v5559_v4  ;;  %v11694_v27 = vpop.permute.xlu0 %11693  ;;  %v11681_v39 = vunpack.i.h.bf16 %v14579_v19 }
 0x1d6   : > { %v5952_v14 = vrot.slane %v5684_v42, %v14429_v21  ;;  %v6450_v47 = vsel %vm6449_vm1, %v5944_v44, %v5940_v50  ;;  %11988 = vrot.lane.b32.xlu1 %v14433_v35, %s17210_s0  ;;  %v14614_v52 = vpack.i.bf16 %v1033_v34, %v1032_v13  ;;  %v5956_v51 = vrot.slane %v5685_v5, %v14429_v21 }
 0x1d7   : > { %v6452_v1 = vsel %vm6451_vm2, %v5948_v46, %v6450_v47  ;;  %v5688_v8 = vmul.f32 0.25, %v5560_v23  ;;  %v3438_v28 = vsel %vm593_vm0, %v813_v22, %v11671_v29  ;;  %11983 = vrot.lane.b32.xlu0 %v14435_v17, %s17217_s20  ;;  %v5960_v55 = vrot.slane %v5686_v61, %v14429_v21 }
 0x1d8   : > { %v6454_v43 = vsel %vm6453_vm3, %v5952_v14, %v6452_v1  ;;  %v3437_v19 = vsel %vm593_vm0, %v812_v24, %v11670_v59  ;;  %v3937_v36 = vpack.c.bf16 %v14590_v54, %v3888_v58  ;;  %v11709_v4 = vpop.permute.xlu1 %11708  ;;  %v5964_v13 = vrot.slane %v5687_v10, %v14429_v21 }
 0x1d9   : > { %v6456_v5 = vsel %vm17190_vm4, %v5956_v51, %v6454_v43  ;;  %v3502_v29 = vsel %vm17189_vm5, %v3437_v19, %v11680_v26  ;;  %v11676_v34 = vunpack.i.h.bf16 %v14584_v18  ;;  %v11704_v42 = vpop.permute.xlu0 %11703  ;;  %v5968_v50 = vrot.slane %v5688_v8, %v14429_v21 }
 0x1da   : > { %v6458_v44 = vsel %vm17188_vm14, %v5960_v55, %v6456_v5  ;;  %v3503_v53 = vsel %vm17189_vm5, %v3438_v28, %v11681_v39  ;;  %v11675_v59 = vunpack.i.l.bf16 %v14584_v18  ;;  %10818 = vmatmul.mubr.msk.bf16.gmra.mrb[28].mxu0 %vm3976_vm12, %v3937_v36  ;;  %11998 = vrot.lane.b32.xlu1 %v14435_v17, %s17211_s23  ;;  %v11691_v58 = vunpack.i.h.bf16 %v14594_v9 }
 0x1db   : > { %v6460_v54 = vsel %vm17187_vm15, %v5964_v13, %v6458_v44  ;;  %v11690_v46 = vunpack.i.l.bf16 %v14594_v9  ;;  %v11685_v22 = vunpack.i.l.bf16 %v14596_v41  ;;  %11993 = vrot.lane.b32.xlu0 %v14425_v56, %s17211_s23  ;;  %v11686_v18 = vunpack.i.h.bf16 %v14596_v41 }
 0x1dc   : > { %v6462_v23 = vsel %vm17186_vm10, %v5968_v50, %v6460_v54  ;;  %v11701_v61 = vunpack.i.h.bf16 %v14606_v15  ;;  %v11700_v10 = vunpack.i.l.bf16 %v14606_v15  ;;  %v14648_v24 = vpop.permute.xlu1 %11718  ;;  %v3501_v9 = vsel %vm17189_vm5, %v14570_v57, %v11676_v34 }
 0x1dd   : > { %6586 = vst.msk [vmem:[#allocation3 + $0x11] sm:$0xff] %vm17185_vm13, %v6462_v23  ;;  %v11696_v26 = vunpack.i.h.bf16 %v11694_v27  ;;  %v11695_v14 = vunpack.i.l.bf16 %v11694_v27  ;;  %v11711_v47 = vunpack.i.h.bf16 %v11709_v4  ;;  %v11714_v39 = vpop.permute.xlu0 %11713  ;;  %v3500_v56 = vsel %vm17189_vm5, %v14573_v31, %v11675_v59 }
 0x1de   : > { %v11710_v1 = vunpack.i.l.bf16 %v11709_v4  ;;  %v11706_v41 = vunpack.i.h.bf16 %v11704_v42  ;;  %v11705_v8 = vunpack.i.l.bf16 %v11704_v42  ;;  %12008 = vrot.lane.b32.xlu1 %v14439_v20, %s17212_s16  ;;  %v3567_v15 = vsel %vm3532_vm6, %v3502_v29, %v11690_v46 }
 0x1df   : > { %v3568_v51 = vsel %vm3532_vm6, %v3503_v53, %v11691_v58  ;;  %v3565_v28 = vsel %vm3532_vm6, %v3500_v56, %v11685_v22  ;;  %v11721_v57 = vunpack.i.h.bf16 %v14648_v24  ;;  %12003 = vrot.lane.b32.xlu0 %v14431_v32, %s17212_s16  ;;  %v3566_v27 = vsel %vm3532_vm6, %v3501_v9, %v11686_v18 }
 0x1e0   : > { %v3632_v31 = vsel %vm17184_vm7, %v3567_v15, %v11700_v10  ;;  %v3633_v55 = vsel %vm17184_vm7, %v3568_v51, %v11701_v61  ;;  %v3630_v43 = vsel %vm17184_vm7, %v3565_v28, %v11695_v14  ;;  %v11729_v19 = vpop.permute.xlu1 %11728  ;;  %v3631_v36 = vsel %vm17184_vm7, %v3566_v27, %v11696_v26  ;;  %v1096_v15 = vld [vmem:[#allocation2 + $0x331] sm:$0xff]  ;;  %v1097_v51 = vld [vmem:[#allocation2 + $0x339] sm:$0xff] }
 0x1e1   : > { %v3698_v4 = vsel %vm17183_vm8, %v3633_v55, %v11711_v47  ;;  %v11716_v13 = vunpack.i.h.bf16 %v11714_v39  ;;  %v11715_v5 = vunpack.i.l.bf16 %v11714_v39  ;;  %v11724_v29 = vpop.permute.xlu0 %11723  ;;  %v3697_v34 = vsel %vm17183_vm8, %v3632_v31, %v11710_v1  ;;  %v814_v27 = vld [vmem:[#allocation2 + $0x1e0] sm:$0xff] }
 0x1e2   : > { %v3695_v32 = vsel %vm17183_vm8, %v3630_v43, %v11705_v8  ;;  %v3696_v42 = vsel %vm17183_vm8, %v3631_v36, %v11706_v41  ;;  %v11725_v50 = vunpack.i.l.bf16 %v11724_v29  ;;  %v10795_v44 = vpop.f32.mrb[4].mxu0  ;;  %12018 = vrot.lane.b32.xlu1 %v14441_v40, %s17213_s17  ;;  %v11720_v53 = vunpack.i.l.bf16 %v14648_v24 }
 0x1e3   : > { %v3763_v59 = vsel %vm3727_vm9, %v3698_v4, %v11721_v57  ;;  %v11726_v54 = vunpack.i.h.bf16 %v11724_v29  ;;  %v4139_v58 = vadd.f32 %v10795_v44, %v14523_v49  ;;  %12013 = vrot.lane.b32.xlu0 %v14433_v35, %s17213_s17  ;;  %v4130_v46 = vpop.f32.mrb[5].mxu0  ;;  %v3760_v22 = vsel %vm3727_vm9, %v3695_v32, %v11715_v5  ;;  %v1160_v29 = vld [vmem:[#allocation2 + $0x332] sm:$0xff]  ;;  %v1161_v32 = vld [vmem:[#allocation2 + $0x33a] sm:$0xff] }
 0x1e4   : > { %v11731_v23 = vunpack.i.h.bf16 %v11729_v19  ;;  %v11730_v18 = vunpack.i.l.bf16 %v11729_v19  ;;  %v4131_v61 = vadd.f32 %v14523_v49, %v4130_v46  ;;  %v10796_v10 = vpop.f32.mrb[6].mxu0  ;;  %v11739_v9 = vpop.permute.xlu1 %11738  ;;  %v3761_v26 = vsel %vm3727_vm9, %v3696_v42, %v11716_v13  ;;  %v815_v19 = vld [vmem:[#allocation2 + $0x1e8] sm:$0xff] }
 0x1e5   : > { %vm17221_vm8 = vcmask 171008   ;;  %v4375_v14 = vmax.f32 %v4139_v58, 0.0  ;;  %v4142_v47 = vadd.f32 %v10796_v10, %v14523_v49  ;;  %v11734_v39 = vpop.permute.xlu0 %11733  ;;  %v4133_v56 = vpop.f32.mrb[7].mxu0  ;;  %v11741_v31 = vunpack.i.h.bf16 %v11739_v9 }
 0x1e6   : > { %v3825_v24 = vsel %vm17221_vm8, %v3760_v22, %v11725_v50  ;;  %v4373_v1 = vmax.f32 %v4131_v61, 0.0  ;;  %v11736_v35 = vunpack.i.h.bf16 %v11734_v39  ;;  %v11735_v41 = vunpack.i.l.bf16 %v11734_v39  ;;  %12028 = vrot.lane.b32.xlu1 %v14443_v63, %s17214_s26  ;;  %vm17222_vm7 = vmmov %vm17221_vm8 }
 0x1e7   : > { %v4134_v8 = vadd.f32 %v14523_v49, %v4133_v56  ;;  %v3826_v28 = vsel %vm17222_vm7, %v3761_v26, %v11726_v54  ;;  %v4376_v57 = vmax.f32 %v4142_v47, 0.0  ;;  %v11740_v55 = vunpack.i.l.bf16 %v11739_v9  ;;  %12023 = vrot.lane.b32.xlu0 %v14435_v17, %s17214_s26  ;;  %vm17223_vm8 = vmmov %vm17222_vm7 }
 0x1e8   : > { %v4435_v43 = vadd.f32 %v4375_v14, %v4373_v1  ;;  %v3890_v36 = vsel %vm3857_vm11, %v3825_v24, %v11735_v41  ;;  %v3891_v4 = vsel %vm3857_vm11, %v3826_v28, %v11736_v35  ;;  %v14692_v5 = vpop.permute.xlu1 %11748  ;;  %v3762_v42 = vsel %vm3727_vm9, %v3697_v34, %v11720_v53 }
 0x1e9   : > { %v4374_v13 = vmax.f32 %v4134_v8, 0.0  ;;  %v3828_v50 = vsel %vm17222_vm7, %v3763_v59, %v11731_v23  ;;  %v11744_v44 = vpop.permute.xlu0 %11743  ;;  %v3938_v54 = vpack.c.bf16 %v3891_v4, %v3890_v36  ;;  %v14696_v58 = vpack.i.bf16 %v1097_v51, %v1096_v15 }
 0x1ea   : > { %v3827_v17 = vsel %vm17223_vm8, %v3762_v42, %v11730_v18  ;;  %v4531_v46 = vcombine.high %v4435_v43, %v4435_v43  ;;  %v4538_v22 = vrot.slane %v4435_v43, %v14423_v48  ;;  %12038 = vrot.lane.b32.xlu1 %v14445_v37, %s17215_s3  ;;  %v14703_v10 = vsel %vm593_vm0, %v815_v19, %v11741_v31 }
 0x1eb   : > { %v4436_v61 = vadd.f32 %v4376_v57, %v4374_v13  ;;  %v14706_v34 = vsel %vm593_vm0, %v814_v27, %v11740_v55  ;;  %v11746_v53 = vunpack.i.h.bf16 %v11744_v44  ;;  %12033 = vrot.lane.b32.xlu0 %v14439_v20, %s17215_s3  ;;  %10821 = vmatprep.mubr.msk.bf16.mxu0 %vm3976_vm12, %v3938_v54  ;;  %v14711_v59 = vpack.i.bf16 %v1161_v32, %v1160_v29 }
 0x1ec   : > { %v4545_v23 = vrot.slane %v4531_v46, %v14423_v48  ;;  %v4546_v18 = vcombine.high %v4538_v22, %v4538_v22  ;;  %v10131_v9 = vrot.slane %v4538_v22, 9  ;;  %v14714_v24 = vpop.permute.xlu1 %11758  ;;  %v11751_v47 = vunpack.i.h.bf16 %v14692_v5 }
 0x1ed   : > { %v4548_v26 = vcombine.high %v4436_v61, %v4436_v61  ;;  %v4555_v14 = vrot.slane %v4436_v61, %v14423_v48  ;;  %v11750_v39 = vunpack.i.l.bf16 %v14692_v5  ;;  %v11745_v56 = vunpack.i.l.bf16 %v11744_v44  ;;  %v14719_v1 = vpop.permute.xlu0 %11753 }
 0x1ee   : > { %v4547_v20 = vcombine.high %v4545_v23, %v4545_v23  ;;  %v10132_v35 = vrot.slane %v4546_v18, 9  ;;  %v10133_v41 = vrot.slane %v4545_v23, 9  ;;  %v5561_v8 = vadd.f32 %v10131_v9, %v4538_v22  ;;  %12048 = vrot.lane.b32.xlu1 %v14452_v25, %s17216_s27 }
 0x1ef   : > { %v4562_v15 = vrot.slane %v4548_v26, %v14423_v48  ;;  %v4563_v51 = vcombine.high %v4555_v14, %v4555_v14  ;;  %v10135_v28 = vrot.slane %v4555_v14, 9  ;;  %v3893_v57 = vsel %vm3857_vm11, %v3828_v50, %v11746_v53  ;;  %12043 = vrot.lane.b32.xlu0 %v14441_v40, %s17216_s27  ;;  %v14736_v53 = vld [vmem:[#allocation2 + $0x348] sm:$0xff] }
 0x1f0   : > { %v10134_v27 = vrot.slane %v4547_v20, 9  ;;  %v5562_v31 = vadd.f32 %v10132_v35, %v4546_v18  ;;  %v5563_v55 = vadd.f32 %v10133_v41, %v4545_v23  ;;  %v5689_v43 = vmul.f32 0.25, %v5561_v8  ;;  %v14727_v19 = vpop.permute.xlu1 %11768  ;;  %v14738_v23 = vld [vmem:[#allocation2 + $0x350] sm:$0xff]  ;;  %v816_v41 = vld [vmem:[#allocation2 + $0x1f8] sm:$0xff] }
 0x1f1   : > { %v4564_v36 = vcombine.high %v4562_v15, %v4562_v15  ;;  %v10136_v4 = vrot.slane %v4563_v51, 9  ;;  %v10137_v13 = vrot.slane %v4562_v15, 9  ;;  %v5565_v5 = vadd.f32 %v10135_v28, %v4555_v14  ;;  %v14729_v29 = vpop.permute.xlu0 %11763  ;;  %v817_v14 = vld [vmem:[#allocation2 + $0x200] sm:$0xff] }
 0x1f2   : > { %v5564_v32 = vadd.f32 %v10134_v27, %v4547_v20  ;;  %v5690_v42 = vmul.f32 0.25, %v5562_v31  ;;  %v5691_v44 = vmul.f32 0.25, %v5563_v55  ;;  %v3892_v50 = vsel %vm3857_vm11, %v3827_v17, %v11745_v56  ;;  %12058 = vrot.lane.b32.xlu1 %v14441_v40, %s17210_s0 }
 0x1f3   : > { %v10138_v54 = vrot.slane %v4564_v36, 9  ;;  %v5566_v46 = vadd.f32 %v10136_v4, %v4563_v51  ;;  %v5567_v22 = vadd.f32 %v10137_v13, %v4562_v15  ;;  %v5693_v61 = vmul.f32 0.25, %v5565_v5  ;;  %12053 = vrot.lane.b32.xlu0 %v14443_v63, %s17217_s20 }
 0x1f4   : > { %v5692_v18 = vmul.f32 0.25, %v5564_v32  ;;  %v5972_v9 = vrot.slane %v5689_v43, %v14429_v21  ;;  %v5976_v26 = vrot.slane %v5690_v42, %v14429_v21  ;;  %v5980_v17 = vrot.slane %v5691_v44, %v14429_v21  ;;  %v14743_v40 = vpop.permute.xlu1 %11778 }
 0x1f5   : > { %v5568_v56 = vadd.f32 %v10138_v54, %v4564_v36  ;;  %v5694_v20 = vmul.f32 0.25, %v5566_v46  ;;  %v5695_v35 = vmul.f32 0.25, %v5567_v22  ;;  %v11760_v8 = vunpack.i.l.bf16 %v14714_v24  ;;  %v11774_v15 = vpop.permute.xlu0 %11773 }
 0x1f6   : > { %v5984_v51 = vrot.slane %v5692_v18, %v14429_v21  ;;  %v6463_v28 = vsel %vm6449_vm1, %v5976_v26, %v5972_v9  ;;  %v11761_v27 = vunpack.i.h.bf16 %v14714_v24  ;;  %12068 = vrot.lane.b32.xlu1 %v14452_v25, %s17210_s0  ;;  %v12277_v31 = vpack.i.bf16 %v14738_v23, %v14736_v53 }
 0x1f7   : > { %v6464_v55 = vsel %vm6451_vm2, %v5980_v17, %v6463_v28  ;;  %v5696_v43 = vmul.f32 0.25, %v5568_v56  ;;  %v5988_v36 = vrot.slane %v5693_v61, %v14429_v21  ;;  %v3442_v4 = vsel %vm593_vm0, %v817_v14, %v11751_v47  ;;  %12063 = vrot.lane.b32.xlu0 %v14458_v3, %s17217_s20 }
 0x1f8   : > { %v5992_v13 = vrot.slane %v5694_v20, %v14429_v21  ;;  %v6465_v24 = vsel %vm6453_vm3, %v5984_v51, %v6464_v55  ;;  %v3441_v5 = vsel %vm593_vm0, %v816_v41, %v11750_v39  ;;  %v3939_v32 = vpack.c.bf16 %v3893_v57, %v3892_v50  ;;  %v11789_v42 = vpop.permute.xlu1 %11788 }
 0x1f9   : > { %v5996_v44 = vrot.slane %v5695_v35, %v14429_v21  ;;  %v6466_v54 = vsel %vm17190_vm4, %v5988_v36, %v6465_v24  ;;  %v3506_v46 = vsel %vm17189_vm5, %v3441_v5, %v11760_v8  ;;  %v11756_v22 = vunpack.i.h.bf16 %v14719_v1  ;;  %v11784_v47 = vpop.permute.xlu0 %11783 }
 0x1fa   : > { %v6000_v61 = vrot.slane %v5696_v43, %v14429_v21  ;;  %v6467_v18 = vsel %vm17188_vm14, %v5992_v13, %v6466_v54  ;;  %v3507_v9 = vsel %vm17189_vm5, %v3442_v4, %v11761_v27  ;;  %v11755_v26 = vunpack.i.l.bf16 %v14719_v1  ;;  %10822 = vmatmul.mubr.msk.bf16.gmra.mrb[32].mxu0 %vm3976_vm12, %v3939_v32  ;;  %12078 = vrot.lane.b32.xlu1 %v14458_v3, %s17211_s23 }
 0x1fb   : > { %v6468_v39 = vsel %vm17187_vm15, %v5996_v44, %v6467_v18  ;;  %v11771_v57 = vunpack.i.h.bf16 %v14727_v19  ;;  %v11770_v50 = vunpack.i.l.bf16 %v14727_v19  ;;  %v11765_v17 = vunpack.i.l.bf16 %v14729_v29  ;;  %12073 = vrot.lane.b32.xlu0 %v14443_v63, %s17211_s23 }
 0x1fc   : > { %v6469_v14 = vsel %vm17186_vm10, %v6000_v61, %v6468_v39  ;;  %v11766_v1 = vunpack.i.h.bf16 %v14729_v29  ;;  %v11781_v56 = vunpack.i.h.bf16 %v14743_v40  ;;  %v11780_v20 = vunpack.i.l.bf16 %v14743_v40  ;;  %v14782_v35 = vpop.permute.xlu1 %11798 }
 0x1fd   : > { %6587 = vst.msk [vmem:[#allocation3 + $0x21] sm:$0xff] %vm17185_vm13, %v6469_v14  ;;  %v3505_v19 = vsel %vm17189_vm5, %v14703_v10, %v11756_v22  ;;  %v11776_v41 = vunpack.i.h.bf16 %v11774_v15  ;;  %v11775_v8 = vunpack.i.l.bf16 %v11774_v15  ;;  %v11791_v51 = vunpack.i.h.bf16 %v11789_v42  ;;  %v11794_v28 = vpop.permute.xlu0 %11793 }
 0x1fe   : > { %v3504_v63 = vsel %vm17189_vm5, %v14706_v34, %v11755_v26  ;;  %v11790_v27 = vunpack.i.l.bf16 %v11789_v42  ;;  %v11786_v29 = vunpack.i.h.bf16 %v11784_v47  ;;  %v11785_v55 = vunpack.i.l.bf16 %v11784_v47  ;;  %12088 = vrot.lane.b32.xlu1 %v14460_v45, %s17212_s16 }
 0x1ff   : > { %v3571_v40 = vsel %vm3532_vm6, %v3506_v46, %v11770_v50  ;;  %v3572_v43 = vsel %vm3532_vm6, %v3507_v9, %v11771_v57  ;;  %v3569_v36 = vsel %vm3532_vm6, %v3504_v63, %v11765_v17  ;;  %v11801_v10 = vunpack.i.h.bf16 %v14782_v35  ;;  %12083 = vrot.lane.b32.xlu0 %v14445_v37, %s17212_s16 }
 0x200   : > { %v3570_v15 = vsel %vm3532_vm6, %v3505_v19, %v11766_v1  ;;  %vm17224_vm7 = vcmask 97280   ;;  %v11809_v24 = vpop.permute.xlu1 %11808  ;;  %vm17228_vm15 = vcmask 121856   ;;  %v11796_v42 = vunpack.i.h.bf16 %v11794_v28 }
 0x201   : > { %v3636_v34 = vsel %vm17224_vm7, %v3571_v40, %v11780_v20  ;;  %vm17225_vm8 = vmmov %vm17224_vm7  ;;  %v11795_v44 = vunpack.i.l.bf16 %v11794_v28  ;;  %v11804_v54 = vpop.permute.xlu0 %11803  ;;  %v11800_v18 = vunpack.i.l.bf16 %v14782_v35  ;;  %v11811_v17 = vunpack.i.h.bf16 %v11809_v24  ;;  %v14823_v40 = vld [vmem:[#allocation2 + $0x351] sm:$0xff] }
 0x202   : > { %v3637_v4 = vsel %vm17225_vm8, %v3572_v43, %v11781_v56  ;;  %vm17226_vm13 = vmmov %vm17224_vm7  ;;  %v11805_v47 = vunpack.i.l.bf16 %v11804_v54  ;;  %v10799_v61 = vpop.f32.mrb[8].mxu0  ;;  %12098 = vrot.lane.b32.xlu1 %v14465_v62, %s17213_s17  ;;  %v11806_v26 = vunpack.i.h.bf16 %v11804_v54  ;;  %v11810_v14 = vunpack.i.l.bf16 %v11809_v24 }
 0x203   : > { %v3634_v13 = vsel %vm17226_vm13, %v3569_v36, %v11775_v8  ;;  %vm17227_vm10 = vmmov %vm17224_vm7  ;;  %v3702_v32 = vsel %vm17228_vm15, %v3637_v4, %v11791_v51  ;;  %v4155_v39 = vadd.f32 %v10799_v61, %v14523_v49  ;;  %12093 = vrot.lane.b32.xlu0 %v14452_v25, %s17213_s17  ;;  %v4146_v57 = vpop.f32.mrb[9].mxu0  ;;  %vm17238_vm7 = vcmask 1045509  }
 0x204   : > { %v3635_v5 = vsel %vm17227_vm10, %v3570_v15, %v11776_v41  ;;  %vm17229_vm14 = vmmov %vm17228_vm15  ;;  %v3767_v9 = vsel %vm3727_vm9, %v3702_v32, %v11801_v10  ;;  %v4147_v1 = vadd.f32 %v14523_v49, %v4146_v57  ;;  %v10800_v56 = vpop.f32.mrb[10].mxu0  ;;  %v11819_v20 = vpop.permute.xlu1 %11818  ;;  %v818_v10 = vld [vmem:[#allocation2 + $0x210] sm:$0xff]  ;;  %vm17237_vm15 = vcmask 48128  }
 0x205   : > { %v3701_v46 = vsel %vm17229_vm14, %v3636_v34, %v11790_v27  ;;  %vm17230_vm5 = vmmov %vm17229_vm14  ;;  %v4379_v41 = vmax.f32 %v4155_v39, 0.0  ;;  %v4158_v8 = vadd.f32 %v10800_v56, %v14523_v49  ;;  %v11814_v51 = vpop.permute.xlu0 %11813  ;;  %v4149_v28 = vpop.f32.mrb[11].mxu0  ;;  %v11821_v15 = vunpack.i.h.bf16 %v11819_v20 }
 0x206   : > { %v3699_v37 = vsel %vm17230_vm5, %v3634_v13, %v11785_v55  ;;  %vm17231_vm4 = vmmov %vm17230_vm5  ;;  %vm17232_vm5 = vcmask 171008   ;;  %v4377_v63 = vmax.f32 %v4147_v1, 0.0  ;;  %v11816_v25 = vunpack.i.h.bf16 %v11814_v51  ;;  %12108 = vrot.lane.b32.xlu1 %v14467_v60, %s17214_s26  ;;  %v14821_v55 = vld [vmem:[#allocation2 + $0x349] sm:$0xff]  ;;  %v819_v13 = vld [vmem:[#allocation2 + $0x218] sm:$0xff] }
 0x207   : > { %v3700_v22 = vsel %vm17231_vm4, %v3635_v5, %v11786_v29  ;;  %v3764_v50 = vsel %vm3727_vm9, %v3699_v37, %v11795_v44  ;;  %v11815_v27 = vunpack.i.l.bf16 %v11814_v51  ;;  %v4150_v29 = vadd.f32 %v14523_v49, %v4149_v28  ;;  %vm17233_vm10 = vmmov %vm17232_vm5  ;;  %12103 = vrot.lane.b32.xlu0 %v14458_v3, %s17214_s26  ;;  %v14834_v44 = vld [vmem:[#allocation2 + $0x352] sm:$0xff] }
 0x208   : > { %v3765_v19 = vsel %vm3727_vm9, %v3700_v22, %v11796_v42  ;;  %v3829_v35 = vsel %vm17232_vm5, %v3764_v50, %v11805_v47  ;;  %v4380_v36 = vmax.f32 %v4158_v8, 0.0  ;;  %v11820_v34 = vunpack.i.l.bf16 %v11819_v20  ;;  %v14830_v32 = vpop.permute.xlu1 %11828  ;;  %v14832_v42 = vld [vmem:[#allocation2 + $0x34a] sm:$0xff]  ;;  %vm17234_vm13 = vmmov %vm17232_vm5 }
 0x209   : > { %v3830_v43 = vsel %vm17233_vm10, %v3765_v19, %v11806_v26  ;;  %v4437_v4 = vadd.f32 %v4379_v41, %v4377_v63  ;;  %v3894_v49 = vsel %vm3857_vm11, %v3829_v35, %v11815_v27  ;;  %v4378_v5 = vmax.f32 %v4150_v29, 0.0  ;;  %v11824_v22 = vpop.permute.xlu0 %11823  ;;  %vm17235_vm4 = vmmov %vm17232_vm5 }
 0x20a   : > { %v3895_v24 = vsel %vm3857_vm11, %v3830_v43, %v11816_v25  ;;  %v3766_v54 = vsel %vm3727_vm9, %v3701_v46, %v11800_v18  ;;  %v3832_v37 = vsel %vm17234_vm13, %v3767_v9, %v11811_v17  ;;  %v12287_v3 = vpack.i.bf16 %v14823_v40, %v14821_v55  ;;  %12118 = vrot.lane.b32.xlu1 %v14469_v11, %s17215_s3  ;;  %vm17239_vm8 = vmmov %vm17237_vm15  ;;  %v12629_v55 = vld [vmem:[%s17276_s5 + $0x10] sm:$0xff]  }
 0x20b   : > { %v3940_v47 = vpack.c.bf16 %v3895_v24, %v3894_v49  ;;  %v3831_v61 = vsel %vm17235_vm4, %v3766_v54, %v11810_v14  ;;  %v4565_v26 = vcombine.high %v4437_v4, %v4437_v4  ;;  %v4572_v39 = vrot.slane %v4437_v4, %v14423_v48  ;;  %12113 = vrot.lane.b32.xlu0 %v14460_v45, %s17215_s3  ;;  %vm17243_vm4 = vmmov %vm17239_vm8 }
 0x20c   : > { %v4438_v57 = vadd.f32 %v4380_v36, %v4378_v5  ;;  %v14845_v50 = vsel %vm593_vm0, %v819_v13, %v11821_v15  ;;  %v14848_v46 = vsel %vm593_vm0, %v818_v10, %v11820_v34  ;;  %v11826_v18 = vunpack.i.h.bf16 %v11824_v22  ;;  %v14856_v20 = vpop.permute.xlu1 %11838 }
 0x20d   : > { %10825 = vmatprep.mubr.msk.bf16.mxu0 %vm3976_vm12, %v3940_v47  ;;  %v12297_v9 = vpack.i.bf16 %v14834_v44, %v14832_v42  ;;  %v4579_v17 = vrot.slane %v4565_v26, %v14423_v48  ;;  %v4580_v14 = vcombine.high %v4572_v39, %v4572_v39  ;;  %v10139_v1 = vrot.slane %v4572_v39, 9  ;;  %v14861_v45 = vpop.permute.xlu0 %11833 }
 0x20e   : > { %v4582_v56 = vcombine.high %v4438_v57, %v4438_v57  ;;  %v4589_v19 = vrot.slane %v4438_v57, %v14423_v48  ;;  %v11831_v35 = vunpack.i.h.bf16 %v14830_v32  ;;  %v11830_v41 = vunpack.i.l.bf16 %v14830_v32  ;;  %12128 = vrot.lane.b32.xlu1 %v14473_v6, %s17216_s27 }
 0x20f   : > { %v11825_v8 = vunpack.i.l.bf16 %v11824_v22  ;;  %v4581_v51 = vcombine.high %v4579_v17, %v4579_v17  ;;  %v10140_v28 = vrot.slane %v4580_v14, 9  ;;  %v10141_v63 = vrot.slane %v4579_v17, 9  ;;  %12123 = vrot.lane.b32.xlu0 %v14465_v62, %s17216_s27 }
 0x210   : > { %v5569_v25 = vadd.f32 %v10139_v1, %v4572_v39  ;;  %v4596_v27 = vrot.slane %v4582_v56, %v14423_v48  ;;  %v4597_v29 = vcombine.high %v4589_v19, %v4589_v19  ;;  %v10143_v43 = vrot.slane %v4589_v19, 9  ;;  %v14869_v13 = vpop.permute.xlu1 %11848 }
 0x211   : > { %v3897_v36 = vsel %vm3857_vm11, %v3832_v37, %v11826_v18  ;;  %v10142_v10 = vrot.slane %v4581_v51, 9  ;;  %v5570_v15 = vadd.f32 %v10140_v28, %v4580_v14  ;;  %v5571_v34 = vadd.f32 %v10141_v63, %v4579_v17  ;;  %v14871_v54 = vpop.permute.xlu0 %11843  ;;  %v14878_v14 = vld [vmem:[#allocation3 + $0x22] sm:$0xff] }
 0x212   : > { %v5697_v4 = vmul.f32 0.25, %v5569_v25  ;;  %v4598_v49 = vcombine.high %v4596_v27, %v4596_v27  ;;  %v10144_v24 = vrot.slane %v4597_v29, 9  ;;  %v10145_v5 = vrot.slane %v4596_v27, 9  ;;  %12138 = vrot.lane.b32.xlu1 %v14465_v62, %s17210_s0  ;;  %v820_v25 = vld [vmem:[#allocation2 + $0x228] sm:$0xff] }
 0x213   : > { %v5573_v32 = vadd.f32 %v10143_v43, %v4589_v19  ;;  %v5572_v22 = vadd.f32 %v10142_v10, %v4581_v51  ;;  %v5698_v47 = vmul.f32 0.25, %v5570_v15  ;;  %v5699_v26 = vmul.f32 0.25, %v5571_v34  ;;  %12133 = vrot.lane.b32.xlu0 %v14467_v60, %s17217_s20  ;;  %v14886_v43 = vld [vmem:[#allocation3 + $0x12] sm:$0xff] }
 0x214   : > { %v3896_v37 = vsel %vm3857_vm11, %v3831_v61, %v11825_v8  ;;  %v10146_v39 = vrot.slane %v4598_v49, 9  ;;  %v5574_v57 = vadd.f32 %v10144_v24, %v4597_v29  ;;  %v5575_v18 = vadd.f32 %v10145_v5, %v4596_v27  ;;  %v821_v61 = vld [vmem:[#allocation2 + $0x230] sm:$0xff]  ;;  %v14883_v8 = vpop.permute.xlu1 %11858 }
 0x215   : > { %v5701_v17 = vmul.f32 0.25, %v5573_v32  ;;  %v5700_v1 = vmul.f32 0.25, %v5572_v22  ;;  %v6004_v56 = vrot.slane %v5697_v4, %v14429_v21  ;;  %v6008_v19 = vrot.slane %v5698_v47, %v14429_v21  ;;  %v11854_v29 = vpop.permute.xlu0 %11853 }
 0x216   : > { %v6012_v51 = vrot.slane %v5699_v26, %v14429_v21  ;;  %v5576_v62 = vadd.f32 %v10146_v39, %v4598_v49  ;;  %v5702_v28 = vmul.f32 0.25, %v5574_v57  ;;  %v5703_v63 = vmul.f32 0.25, %v5575_v18  ;;  %12148 = vrot.lane.b32.xlu1 %v14473_v6, %s17210_s0 }
 0x217   : > { %v11840_v27 = vunpack.i.l.bf16 %v14856_v20  ;;  %v6016_v10 = vrot.slane %v5700_v1, %v14429_v21  ;;  %v6470_v15 = vsel %vm6449_vm1, %v6008_v19, %v6004_v56  ;;  %v11841_v34 = vunpack.i.h.bf16 %v14856_v20  ;;  %12143 = vrot.lane.b32.xlu0 %v14475_v7, %s17217_s20 }
 0x218   : > { %v12302_v4 = vpack.i.bf16 %v14878_v14, %v14886_v43  ;;  %v6471_v49 = vsel %vm6451_vm2, %v6012_v51, %v6470_v15  ;;  %v5704_v24 = vmul.f32 0.25, %v5576_v62  ;;  %v6020_v5 = vrot.slane %v5701_v17, %v14429_v21  ;;  %v11869_v39 = vpop.permute.xlu1 %11868 }
 0x219   : > { %v3446_v32 = vsel %vm593_vm0, %v821_v61, %v11831_v35  ;;  %v6024_v22 = vrot.slane %v5702_v28, %v14429_v21  ;;  %v6472_v20 = vsel %vm6453_vm3, %v6016_v10, %v6471_v49  ;;  %v3445_v47 = vsel %vm593_vm0, %v820_v25, %v11830_v41  ;;  %v11864_v35 = vpop.permute.xlu0 %11863 }
 0x21a   : > { %v3941_v26 = vpack.c.bf16 %v3897_v36, %v3896_v37  ;;  %v6028_v57 = vrot.slane %v5703_v63, %v14429_v21  ;;  %vm17236_vm14 = vcmask 1044484   ;;  %v3510_v1 = vsel %vm17237_vm15, %v3445_v47, %v11840_v27  ;;  %12158 = vrot.lane.b32.xlu1 %v14475_v7, %s17211_s23 }
 0x21b   : > { %v6473_v18 = vsel %vm17236_vm14, %v6020_v5, %v6472_v20  ;;  %v11836_v17 = vunpack.i.h.bf16 %v14861_v45  ;;  %v6032_v56 = vrot.slane %v5704_v24, %v14429_v21  ;;  %v3511_v51 = vsel %vm17239_vm8, %v3446_v32, %v11841_v34  ;;  %12153 = vrot.lane.b32.xlu0 %v14467_v60, %s17211_s23  ;;  %vm17244_vm14 = vmmov %vm17243_vm4 }
 0x21c   : > { %v6474_v19 = vsel %vm17238_vm7, %v6024_v22, %v6473_v18  ;;  %v11835_v61 = vunpack.i.l.bf16 %v14861_v45  ;;  %10826 = vmatmul.mubr.msk.bf16.gmra.mrb[36].mxu0 %vm3976_vm12, %v3941_v26  ;;  %vm17240_vm5 = vcmask 1046534   ;;  %v11851_v36 = vunpack.i.h.bf16 %v14869_v13  ;;  %v14924_v27 = vpop.permute.xlu1 %11878 }
 0x21d   : > { %v6475_v41 = vsel %vm17240_vm5, %v6028_v57, %v6474_v19  ;;  %v11850_v37 = vunpack.i.l.bf16 %v14869_v13  ;;  %v11845_v62 = vunpack.i.l.bf16 %v14871_v54  ;;  %vm17241_vm10 = vcmask 1047559   ;;  %v11874_v49 = vpop.permute.xlu0 %11873 }
 0x21e   : > { %v6476_v28 = vsel %vm17241_vm10, %v6032_v56, %v6475_v41  ;;  %v11846_v45 = vunpack.i.h.bf16 %v14871_v54  ;;  %v11861_v63 = vunpack.i.h.bf16 %v14883_v8  ;;  %v11860_v25 = vunpack.i.l.bf16 %v14883_v8  ;;  %12168 = vrot.lane.b32.xlu1 %v14480_v16, %s17212_s16 }
 0x21f   : > { %vm17242_vm13 = vcmask 261120   ;;  %v3509_v13 = vsel %vm17243_vm4, %v14845_v50, %v11836_v17  ;;  %v11856_v10 = vunpack.i.h.bf16 %v11854_v29  ;;  %v11855_v15 = vunpack.i.l.bf16 %v11854_v29  ;;  %12163 = vrot.lane.b32.xlu0 %v14469_v11, %s17212_s16 }
 0x220   : > { %6588 = vst.msk [vmem:[#allocation3 + $0x31] sm:$0xff] %vm17242_vm13, %v6476_v28  ;;  %v11871_v34 = vunpack.i.h.bf16 %v11869_v39  ;;  %v3508_v60 = vsel %vm17244_vm14, %v14848_v46, %v11835_v61  ;;  %v11870_v24 = vunpack.i.l.bf16 %v11869_v39  ;;  %v11866_v54 = vunpack.i.h.bf16 %v11864_v35  ;;  %v11889_v26 = vpop.permute.xlu1 %11888 }
 0x221   : > { %v11865_v5 = vunpack.i.l.bf16 %v11864_v35  ;;  %v3575_v8 = vsel %vm3532_vm6, %v3510_v1, %v11850_v37  ;;  %v3576_v32 = vsel %vm3532_vm6, %v3511_v51, %v11851_v36  ;;  %v3573_v22 = vsel %vm3532_vm6, %v3508_v60, %v11845_v62  ;;  %v11884_v17 = vpop.permute.xlu0 %11883  ;;  %v14955_v37 = vld [vmem:[%s17220_s4] ss:$0 sm:$0xff] }
 0x222   : > { %v11881_v50 = vunpack.i.h.bf16 %v14924_v27  ;;  %v3574_v29 = vsel %vm3532_vm6, %v3509_v13, %v11846_v45  ;;  %vm17245_vm15 = vcmask 97280   ;;  %vm17249_vm10 = vcmask 121856   ;;  %v10803_v51 = vpop.f32.mrb[12].mxu0  ;;  %12178 = vrot.lane.b32.xlu1 %v14487_v30, %s17213_s17 }
 0x223   : > { %v3640_v46 = vsel %vm17245_vm15, %v3575_v8, %v11860_v25  ;;  %vm17246_vm7 = vmmov %vm17245_vm15  ;;  %v11876_v18 = vunpack.i.h.bf16 %v11874_v49  ;;  %v11875_v1 = vunpack.i.l.bf16 %v11874_v49  ;;  %v11885_v19 = vunpack.i.l.bf16 %v11884_v17  ;;  %12173 = vrot.lane.b32.xlu0 %v14473_v6, %s17213_s17  ;;  %v4162_v28 = vpop.f32.mrb[13].mxu0 }
 0x224   : > { %v3641_v20 = vsel %vm17246_vm7, %v3576_v32, %v11861_v63  ;;  %vm17247_vm8 = vmmov %vm17246_vm7  ;;  %v11880_v61 = vunpack.i.l.bf16 %v14924_v27  ;;  %v11886_v36 = vunpack.i.h.bf16 %v11884_v17  ;;  %v4171_v62 = vadd.f32 %v14955_v37, %v10803_v51  ;;  %v10804_v13 = vpop.f32.mrb[14].mxu0 }
 0x225   : > { %v3638_v47 = vsel %vm17247_vm8, %v3573_v22, %v11855_v15  ;;  %vm17248_vm5 = vmmov %vm17246_vm7  ;;  %v3706_v57 = vsel %vm17249_vm10, %v3641_v20, %v11871_v34  ;;  %v11891_v63 = vunpack.i.h.bf16 %v11889_v26  ;;  %v11890_v25 = vunpack.i.l.bf16 %v11889_v26  ;;  %v14968_v22 = vld [vmem:[#allocation3 + $0x1] sm:$0xff] }
 0x226   : > { %v3639_v39 = vsel %vm17248_vm5, %v3574_v29, %v11856_v10  ;;  %vm17250_vm13 = vmmov %vm17249_vm10  ;;  %v3771_v41 = vsel %vm3727_vm9, %v3706_v57, %v11881_v50  ;;  %v4163_v27 = vadd.f32 %v14955_v37, %v4162_v28  ;;  %v11899_v10 = vpop.permute.xlu1 %11898  ;;  %vm17253_vm15 = vcmask 171008   ;;  %12188 = vrot.lane.b32.xlu1 %v14503_v33, %s17214_s26  ;;  %v14970_v50 = vld [vmem:[#allocation3 + $0x11] sm:$0xff]  ;;  %v823_v57 = vld [vmem:[#allocation2 + $0x248] sm:$0xff] }
 0x227   : > { %v3705_v35 = vsel %vm17250_vm13, %v3640_v46, %v11870_v24  ;;  %vm17251_vm4 = vmmov %vm17249_vm10  ;;  %v4383_v49 = vmax.f32 %v4171_v62, 0.0  ;;  %v4174_v60 = vadd.f32 %v14955_v37, %v10804_v13  ;;  %v11894_v24 = vpop.permute.xlu0 %11893  ;;  %v11901_v20 = vunpack.i.h.bf16 %v11899_v10  ;;  %12183 = vrot.lane.b32.xlu0 %v14475_v7, %s17214_s26 }
 0x228   : > { %v3703_v11 = vsel %vm17251_vm4, %v3638_v47, %v11865_v5  ;;  %vm17252_vm14 = vmmov %vm17251_vm4  ;;  %v4381_v5 = vmax.f32 %v4163_v27, 0.0  ;;  %v11896_v6 = vunpack.i.h.bf16 %v11894_v24  ;;  %v11895_v8 = vunpack.i.l.bf16 %v11894_v24 }
 0x229   : > { %v3704_v56 = vsel %vm17252_vm14, %v3639_v39, %v11866_v54  ;;  %v3768_v45 = vsel %vm3727_vm9, %v3703_v11, %v11875_v1  ;;  %v4165_v54 = vpop.f32.mrb[15].mxu0  ;;  %vm17254_vm7 = vmmov %vm17253_vm15  ;;  %v4384_v46 = vmax.f32 %v4174_v60, 0.0  ;;  %v11900_v47 = vunpack.i.l.bf16 %v11899_v10  ;;  %v822_v39 = vld [vmem:[#allocation2 + $0x240] sm:$0xff] }
 0x22a   : > { %v3769_v15 = vsel %vm3727_vm9, %v3704_v56, %v11876_v18  ;;  %v3833_v34 = vsel %vm17253_vm15, %v3768_v45, %v11885_v19  ;;  %v4166_v32 = vadd.f32 %v14955_v37, %v4165_v54  ;;  %v4439_v26 = vadd.f32 %v4383_v49, %v4381_v5  ;;  %v14977_v11 = vpop.permute.xlu1 %11908  ;;  %v14979_v56 = vld [vmem:[#allocation3 + $0x30] sm:$0xff]  ;;  %vm17255_vm8 = vmmov %vm17254_vm7  ;;  %12198 = vrot.lane.b32.xlu1 %v14513_v12, %s17215_s3  ;;  %v14993_v10 = vld [vmem:[#allocation3 + $0x20] sm:$0xff] }
 0x22b   : > { %v3834_v29 = vsel %vm17254_vm7, %v3769_v15, %v11886_v36  ;;  %v3898_v18 = vsel %vm3857_vm11, %v3833_v34, %v11895_v8  ;;  %v3770_v19 = vsel %vm3727_vm9, %v3705_v35, %v11880_v61  ;;  %v3836_v51 = vsel %vm17255_vm8, %v3771_v41, %v11891_v63  ;;  %v14983_v36 = vpop.permute.xlu0 %11903  ;;  %vm17256_vm5 = vmmov %vm17254_vm7  ;;  %12193 = vrot.lane.b32.xlu0 %v14480_v16, %s17215_s3 }
 0x22c   : > { %v3899_v1 = vsel %vm3857_vm11, %v3834_v29, %v11896_v6  ;;  %v4382_v17 = vmax.f32 %v4166_v32, 0.0  ;;  %v12307_v7 = vpack.i.bf16 %v14970_v50, %v14968_v22  ;;  %v14988_v28 = vsel %vm17256_vm5, %v3770_v19, %v11890_v25 }
 0x22d   : > { %v3942_v62 = vpack.c.bf16 %v3899_v1, %v3898_v18  ;;  %v4599_v45 = vcombine.high %v4439_v26, %v4439_v26  ;;  %v4606_v27 = vrot.slane %v4439_v26, %v14423_v48  ;;  %v14996_v35 = vsel %vm593_vm0, %v823_v57, %v11901_v20 }
 0x22e   : > { %v4440_v13 = vadd.f32 %v4384_v46, %v4382_v17  ;;  %v14999_v61 = vsel %vm593_vm0, %v822_v39, %v11900_v47  ;;  %v12312_v41 = vpack.i.bf16 %v14979_v56, %v14993_v10  ;;  %v15007_v49 = vpop.permute.xlu1 %11918  ;;  %v11911_v24 = vunpack.i.h.bf16 %v14977_v11  ;;  %12208 = vrot.lane.b32.xlu1 %v14530_v38, %s17216_s27 }
 0x22f   : > { %10829 = vmatprep.mubr.msk.bf16.mxu0 %vm3976_vm12, %v3942_v62  ;;  %v4613_v63 = vrot.slane %v4599_v45, %v14423_v48  ;;  %v4614_v25 = vcombine.high %v4606_v27, %v4606_v27  ;;  %v10147_v15 = vrot.slane %v4606_v27, 9  ;;  %v11910_v54 = vunpack.i.l.bf16 %v14977_v11  ;;  %v15013_v5 = vpop.permute.xlu0 %11913  ;;  %12203 = vrot.lane.b32.xlu0 %v14487_v30, %s17216_s27 }
 0x230   : > { %v4616_v34 = vcombine.high %v4440_v13, %v4440_v13  ;;  %v4623_v60 = vrot.slane %v4440_v13, %v14423_v48  ;;  %v11906_v16 = vunpack.i.h.bf16 %v14983_v36  ;;  %v11905_v26 = vunpack.i.l.bf16 %v14983_v36 }
 0x231   : > { %v4615_v6 = vcombine.high %v4613_v63, %v4613_v63  ;;  %v10148_v8 = vrot.slane %v4614_v25, 9  ;;  %v10149_v32 = vrot.slane %v4613_v63, 9  ;;  %v5577_v29 = vadd.f32 %v10147_v15, %v4606_v27 }
 0x232   : > { %v4630_v46 = vrot.slane %v4616_v34, %v14423_v48  ;;  %v4631_v20 = vcombine.high %v4623_v60, %v4623_v60  ;;  %v10151_v47 = vrot.slane %v4623_v60, 9  ;;  %v15021_v17 = vpop.permute.xlu1 %11928  ;;  %v3901_v36 = vsel %vm3857_vm11, %v3836_v51, %v11906_v16  ;;  %12218 = vrot.lane.b32.xlu1 %v14487_v30, %s17210_s0  ;;  %v824_v16 = vld [vmem:[#allocation2 + $0x258] sm:$0xff] }
 0x233   : > { %v10150_v39 = vrot.slane %v4615_v6, 9  ;;  %v5578_v57 = vadd.f32 %v10148_v8, %v4614_v25  ;;  %v5579_v18 = vadd.f32 %v10149_v32, %v4613_v63  ;;  %v5705_v1 = vmul.f32 0.25, %v5577_v29  ;;  %v15023_v27 = vpop.permute.xlu0 %11923  ;;  %v825_v32 = vld [vmem:[#allocation2 + $0x260] sm:$0xff]  ;;  %12213 = vrot.lane.b32.xlu0 %v14503_v33, %s17217_s20 }
 0x234   : > { %v4632_v11 = vcombine.high %v4630_v46, %v4630_v46  ;;  %v10152_v19 = vrot.slane %v4631_v20, 9  ;;  %v10153_v62 = vrot.slane %v4630_v46, 9  ;;  %v5581_v45 = vadd.f32 %v10151_v47, %v4623_v60  ;;  %v15030_v29 = vld [vmem:[#allocation3 + $0x2] sm:$0xff] }
 0x235   : > { %v5580_v13 = vadd.f32 %v10150_v39, %v4615_v6  ;;  %v5706_v15 = vmul.f32 0.25, %v5578_v57  ;;  %v5707_v34 = vmul.f32 0.25, %v5579_v18  ;;  %v6036_v6 = vrot.slane %v5705_v1, %v14429_v21 }
 0x236   : > { %v10154_v0 = vrot.slane %v4632_v11, 9  ;;  %v5582_v25 = vadd.f32 %v10152_v19, %v4631_v20  ;;  %v5583_v63 = vadd.f32 %v10153_v62, %v4630_v46  ;;  %v5709_v8 = vmul.f32 0.25, %v5581_v45  ;;  %v15035_v39 = vpop.permute.xlu1 %11938  ;;  %v6767_v19 = vld [vmem:[#allocation3 + $0x31] sm:$0xff]  ;;  %12228 = vrot.lane.b32.xlu1 %v14530_v38, %s17210_s0 }
 0x237   : > { %v5708_v60 = vmul.f32 0.25, %v5580_v13  ;;  %v6040_v47 = vrot.slane %v5706_v15, %v14429_v21  ;;  %v6044_v51 = vrot.slane %v5707_v34, %v14429_v21  ;;  %v3900_v57 = vsel %vm3857_vm11, %v14988_v28, %v11905_v26  ;;  %v15039_v18 = vpop.permute.xlu0 %11933  ;;  %12223 = vrot.lane.b32.xlu0 %v14562_v2, %s17217_s20  ;;  %v6766_v15 = vld [vmem:[#allocation3 + $0x21] sm:$0xff] }
 0x238   : > { %v5584_v30 = vadd.f32 %v10154_v0, %v4632_v11  ;;  %v5710_v20 = vmul.f32 0.25, %v5582_v25  ;;  %v5711_v46 = vmul.f32 0.25, %v5583_v63  ;;  %v3450_v45 = vsel %vm593_vm0, %v825_v32, %v11911_v24 }
 0x239   : > { %v6048_v62 = vrot.slane %v5708_v60, %v14429_v21  ;;  %v6477_v1 = vsel %vm6449_vm1, %v6040_v47, %v6036_v6  ;;  %v12317_v0 = vpack.i.bf16 %v14886_v43, %v15030_v29  ;;  %v6052_v28 = vrot.slane %v5709_v8, %v14429_v21 }
 0x23a   : > { %v6478_v11 = vsel %vm6451_vm2, %v6044_v51, %v6477_v1  ;;  %v5712_v13 = vmul.f32 0.25, %v5584_v30  ;;  %v3449_v26 = vsel %vm593_vm0, %v824_v16, %v11910_v54  ;;  %v6056_v34 = vrot.slane %v5710_v20, %v14429_v21  ;;  %v11949_v63 = vpop.permute.xlu1 %11948  ;;  %12238 = vrot.lane.b32.xlu1 %v14562_v2, %s17211_s23 }
 0x23b   : > { %v6479_v24 = vsel %vm6453_vm3, %v6048_v62, %v6478_v11  ;;  %v3943_v25 = vpack.c.bf16 %v3901_v36, %v3900_v57  ;;  %v15055_v32 = vpack.i.bf16 %v6767_v19, %v6766_v15  ;;  %v6060_v60 = vrot.slane %v5711_v46, %v14429_v21  ;;  %v11944_v47 = vpop.permute.xlu0 %11943  ;;  %12233 = vrot.lane.b32.xlu0 %v14503_v33, %s17211_s23 }
 0x23c   : > { %vm17257_vm10 = vcmask 1044484   ;;  %v11921_v8 = vunpack.i.h.bf16 %v15007_v49  ;;  %v11920_v54 = vunpack.i.l.bf16 %v15007_v49  ;;  %v6064_v51 = vrot.slane %v5712_v13, %v14429_v21 }
 0x23d   : > { %v6480_v6 = vsel %vm17257_vm10, %v6052_v28, %v6479_v24  ;;  %vm17258_vm13 = vcmask 1045509   ;;  %v11916_v30 = vunpack.i.h.bf16 %v15013_v5  ;;  %v11915_v36 = vunpack.i.l.bf16 %v15013_v5  ;;  %10830 = vmatmul.mubr.msk.bf16.gmra.mrb[40].mxu0 %vm3976_vm12, %v3943_v25 }
 0x23e   : > { %v6481_v16 = vsel %vm17258_vm13, %v6056_v34, %v6480_v6  ;;  %vm17259_vm4 = vcmask 1046534   ;;  %v11931_v46 = vunpack.i.h.bf16 %v15021_v17  ;;  %v11930_v49 = vunpack.i.l.bf16 %v15021_v17  ;;  %v15078_v11 = vpop.permute.xlu1 %11958  ;;  %12248 = vrot.lane.b32.xlu1 %v14614_v52, %s17212_s16 }
 0x23f   : > { %v6482_v20 = vsel %vm17259_vm4, %v6060_v60, %v6481_v16  ;;  %v11926_v57 = vunpack.i.h.bf16 %v15023_v27  ;;  %vm17260_vm14 = vcmask 1047559   ;;  %v11925_v5 = vunpack.i.l.bf16 %v15023_v27  ;;  %v11954_v15 = vpop.permute.xlu0 %11953  ;;  %12243 = vrot.lane.b32.xlu0 %v14513_v12, %s17212_s16 }
 0x240   : > { %v6483_v19 = vsel %vm17260_vm14, %v6064_v51, %v6482_v20  ;;  %v11941_v62 = vunpack.i.h.bf16 %v15035_v39  ;;  %v11940_v1 = vunpack.i.l.bf16 %v15035_v39  ;;  %vm17261_vm15 = vcmask 261120  }
 0x241   : > { %6589 = vst.msk [vmem:[#allocation3 + $0x41] sm:$0xff] %vm17261_vm15, %v6483_v19  ;;  %vm17262_vm7 = vcmask 48128   ;;  %v11936_v28 = vunpack.i.h.bf16 %v15039_v18  ;;  %v11935_v33 = vunpack.i.l.bf16 %v15039_v18  ;;  %v11951_v34 = vunpack.i.h.bf16 %v11949_v63 }
 0x242   : > { %v3514_v13 = vsel %vm17262_vm7, %v3449_v26, %v11920_v54  ;;  %vm17263_vm8 = vmmov %vm17262_vm7  ;;  %v11950_v24 = vunpack.i.l.bf16 %v11949_v63  ;;  %v11945_v25 = vunpack.i.l.bf16 %v11944_v47  ;;  %v11946_v60 = vunpack.i.h.bf16 %v11944_v47  ;;  %12258 = vrot.lane.b32.xlu1 %v14696_v58, %s17213_s17 }
 0x243   : > { %v3515_v17 = vsel %vm17263_vm8, %v3450_v45, %v11921_v8  ;;  %vm17264_vm5 = vmmov %vm17262_vm7  ;;  %v3579_v26 = vsel %vm3532_vm6, %v3514_v13, %v11930_v49  ;;  %vm17266_vm13 = vcmask 97280   ;;  %v15099_v8 = vpop.permute.xlu1 %11968  ;;  %v11956_v51 = vunpack.i.h.bf16 %v11954_v15  ;;  %v11964_v47 = vpop.permute.xlu0 %11963  ;;  %12253 = vrot.lane.b32.xlu0 %v14530_v38, %s17213_s17  ;;  %s549_s17 = scalar_lea.vmem %s17443_s2, %s13233_s30 }
 0x244   : > { %v3513_v27 = vsel %vm17264_vm5, %v14996_v35, %v11916_v30  ;;  %vm17265_vm10 = vmmov %vm17264_vm5  ;;  %v3580_v45 = vsel %vm3532_vm6, %v3515_v17, %v11931_v46  ;;  %v3644_v63 = vsel %vm17266_vm13, %v3579_v26, %v11940_v1  ;;  %v11955_v16 = vunpack.i.l.bf16 %v11954_v15  ;;  %v10807_v46 = vpop.f32.mrb[16].mxu0 }
 0x245   : > { %v3512_v39 = vsel %vm17265_vm10, %v14999_v61, %v11915_v36  ;;  %v3578_v35 = vsel %vm3532_vm6, %v3513_v27, %v11926_v57  ;;  %vm17267_vm4 = vmmov %vm17266_vm13  ;;  %vm17270_vm7 = vcmask 121856   ;;  %v11961_v20 = vunpack.i.h.bf16 %v15078_v11 }
 0x246   : > { %v3577_v18 = vsel %vm3532_vm6, %v3512_v39, %v11925_v5  ;;  %v3645_v6 = vsel %vm17267_vm4, %v3580_v45, %v11941_v62  ;;  %vm17268_vm14 = vmmov %vm17267_vm4  ;;  %v3709_v30 = vsel %vm17270_vm7, %v3644_v63, %v11950_v24  ;;  %v11966_v57 = vunpack.i.h.bf16 %v11964_v47  ;;  %v4178_v62 = vpop.f32.mrb[17].mxu0  ;;  %12268 = vrot.lane.b32.xlu1 %v14711_v59, %s17214_s26 }
 0x247   : > { %v3642_v61 = vsel %vm17268_vm14, %v3577_v18, %v11935_v33  ;;  %vm17269_vm15 = vmmov %vm17267_vm4  ;;  %v11965_v19 = vunpack.i.l.bf16 %v11964_v47  ;;  %v4187_v5 = vadd.f32 %v14955_v37, %v10807_v46  ;;  %v11960_v1 = vunpack.i.l.bf16 %v15078_v11  ;;  %v10808_v33 = vpop.f32.mrb[18].mxu0  ;;  %v11979_v15 = vpop.permute.xlu1 %11978  ;;  %12263 = vrot.lane.b32.xlu0 %v14562_v2, %s17214_s26  ;;  %s12908_s26 = smov 96  }
 0x248   : > { %v3643_v54 = vsel %vm17269_vm15, %v3578_v35, %v11936_v28  ;;  %vm17271_vm8 = vmmov %vm17270_vm7  ;;  %v11971_v13 = vunpack.i.h.bf16 %v15099_v8  ;;  %v11970_v17 = vunpack.i.l.bf16 %v15099_v8  ;;  %v4179_v28 = vadd.f32 %v14955_v37, %v4178_v62  ;;  %v11974_v39 = vpop.permute.xlu0 %11973  ;;  %v4181_v38 = vpop.f32.mrb[19].mxu0  ;;  %v12626_v62 = vld [vmem:[%s17276_s5 + $0x48] sm:$0xff]  }
 0x249   : > { %v3710_v12 = vsel %vm17271_vm8, %v3645_v6, %v11951_v34  ;;  %vm17272_vm5 = vmmov %vm17270_vm7  ;;  %v4387_v24 = vmax.f32 %v4187_v5, 0.0  ;;  %v11976_v45 = vunpack.i.h.bf16 %v11974_v39  ;;  %v11975_v11 = vunpack.i.l.bf16 %v11974_v39  ;;  %v12625_v5 = vld [vmem:[%s17276_s5] sm:$0xff]  }
 0x24a   : > { %v3707_v36 = vsel %vm17272_vm5, %v3642_v61, %v11945_v25  ;;  %vm17273_vm10 = vmmov %vm17272_vm5  ;;  %v4190_v25 = vadd.f32 %v14955_v37, %v10808_v33  ;;  %v4385_v26 = vmax.f32 %v4179_v28, 0.0  ;;  %vm17274_vm13 = vcmask 171008   ;;  %v827_v61 = vld [vmem:[#allocation2 + $0x278] sm:$0xff]  ;;  %12278 = vrot.lane.b32.xlu1 %v12277_v31, %s17215_s3  ;;  %v12627_v31 = vld [vmem:[%s17276_s5 + $0x8] sm:$0xff]  }
 0x24b   : > { %v3708_v49 = vsel %vm17273_vm10, %v3643_v54, %v11946_v60  ;;  %v3772_v27 = vsel %vm3727_vm9, %v3707_v36, %v11955_v16  ;;  %v4182_v60 = vadd.f32 %v14955_v37, %v4181_v38  ;;  %vm17275_vm4 = vmmov %vm17274_vm13  ;;  %v11981_v6 = vunpack.i.h.bf16 %v11979_v15  ;;  %v15129_v47 = vpop.permute.xlu1 %11988  ;;  %v12624_v36 = vld [vmem:[%s17276_s5 + $0x40] sm:$0xff]   ;;  %12273 = vrot.lane.b32.xlu0 %v14614_v52, %s17215_s3  ;;  %v12628_v38 = vld [vmem:[%s17276_s5 + $0x50] sm:$0xff]   ;;  %s16260_s3 = sand.u32 1, %s12885_s19  }
 0x24c   : > { %v3773_v34 = vsel %vm3727_vm9, %v3708_v49, %v11956_v51  ;;  %v3837_v18 = vsel %vm17274_vm13, %v3772_v27, %v11965_v19  ;;  %v4388_v63 = vmax.f32 %v4190_v25, 0.0  ;;  %v4441_v8 = vadd.f32 %v4387_v24, %v4385_v26  ;;  %v15136_v19 = vpop.permute.xlu0 %11983  ;;  %v826_v27 = vld [vmem:[#allocation2 + $0x270] sm:$0xff]  ;;  %10437 = vmatprep.subr.bf16.mxu1 %v12624_v36  ;;  %vm17277_vm14 = vmmov %vm17275_vm4  ;;  %s10080_s25 = sshll.u32 %s16260_s3, 6 }
 0x24d   : > { %v3838_v35 = vsel %vm17275_vm4, %v3773_v34, %v11966_v57  ;;  %v3902_v54 = vsel %vm3857_vm11, %v3837_v18, %v11975_v11  ;;  %v4386_v16 = vmax.f32 %v4182_v60, 0.0  ;;  %v3774_v46 = vsel %vm3727_vm9, %v3709_v30, %v11960_v1  ;;  %vm17278_vm15 = vmmov %vm17275_vm4  ;;  %10438 = vmatpush3.bf16.msra.mxu1 %v12625_v5 }
 0x24e   : > { %v3903_v51 = vsel %vm3857_vm11, %v3838_v35, %v11976_v45  ;;  %v3775_v49 = vsel %vm3727_vm9, %v3710_v12, %v11961_v20  ;;  %v11980_v57 = vunpack.i.l.bf16 %v11979_v15  ;;  %v4633_v28 = vcombine.high %v4441_v8, %v4441_v8  ;;  %10439 = vmatprep.subr.bf16.mxu1 %v12626_v62  ;;  %12288 = vrot.lane.b32.xlu1 %v12287_v3, %s17216_s27 }
 0x24f   : > { %v3944_v2 = vpack.c.bf16 %v3903_v51, %v3902_v54  ;;  %v4640_v33 = vrot.slane %v4441_v8, %v14423_v48  ;;  %v4442_v34 = vadd.f32 %v4388_v63, %v4386_v16  ;;  %v15150_v30 = vsel %vm17277_vm14, %v3774_v46, %v11970_v17  ;;  %v15160_v23 = vpop.permute.xlu1 %11998  ;;  %12283 = vrot.lane.b32.xlu0 %v14696_v58, %s17216_s27  ;;  %s12907_s27 = smov 64  }
 0x250   : > { %v3840_v12 = vsel %vm17278_vm15, %v3775_v49, %v11971_v13  ;;  %v15154_v20 = vsel %vm593_vm0, %v827_v61, %v11981_v6  ;;  %v4647_v1 = vrot.slane %v4633_v28, %v14423_v48  ;;  %v15166_v13 = vsel %vm593_vm0, %v826_v27, %v11980_v57  ;;  %v15171_v39 = vpop.permute.xlu0 %11993 }
 0x251   : > { %10833 = vmatprep.mubr.msk.bf16.mxu0 %vm3976_vm12, %v3944_v2  ;;  %v4648_v15 = vcombine.high %v4640_v33, %v4640_v33  ;;  %v10155_v24 = vrot.slane %v4640_v33, 9  ;;  %v4650_v53 = vcombine.high %v4442_v34, %v4442_v34  ;;  %v4657_v17 = vrot.slane %v4442_v34, %v14423_v48  ;;  %10440 = vmatpush3.bf16.msra.mxu1 %v12627_v31 }
 0x252   : > { %v11991_v52 = vunpack.i.h.bf16 %v15129_v47  ;;  %v11986_v25 = vunpack.i.h.bf16 %v15136_v19  ;;  %v4649_v26 = vcombine.high %v4647_v1, %v4647_v1  ;;  %v10157_v11 = vrot.slane %v4647_v1, 9  ;;  %10441 = vmatprep.subr.bf16.mxu1 %v12628_v38  ;;  %12298 = vrot.lane.b32.xlu1 %v12297_v9, %s17217_s20 }
 0x253   : > { %v10156_v45 = vrot.slane %v4648_v15, 9  ;;  %v5585_v60 = vadd.f32 %v10155_v24, %v4640_v33  ;;  %v4664_v18 = vrot.slane %v4650_v53, %v14423_v48  ;;  %v4665_v35 = vcombine.high %v4657_v17, %v4657_v17  ;;  %v15184_v16 = vpop.permute.xlu1 %12008  ;;  %12293 = vrot.lane.b32.xlu0 %v14711_v59, %s17217_s20  ;;  %v15203_v24 = vld [vmem:[#allocation3 + $0x42] sm:$0xff]  ;;  %v829_v53 = vld [vmem:[#allocation2 + $0x290] sm:$0xff]  ;;  %s12906_s20 = smov 32  }
 0x254   : > { %v10159_v63 = vrot.slane %v4657_v17, 9  ;;  %v11985_v6 = vunpack.i.l.bf16 %v15136_v19  ;;  %v10158_v8 = vrot.slane %v4649_v26, 9  ;;  %v5587_v54 = vadd.f32 %v10157_v11, %v4647_v1  ;;  %v15189_v49 = vpop.permute.xlu0 %12003  ;;  %v15217_v11 = vld [vmem:[#allocation3 + $0x32] sm:$0xff] }
 0x255   : > { %v5586_v61 = vadd.f32 %v10156_v45, %v4648_v15  ;;  %v5713_v51 = vmul.f32 0.25, %v5585_v60  ;;  %v4666_v40 = vcombine.high %v4664_v18, %v4664_v18  ;;  %v10160_v3 = vrot.slane %v4665_v35, 9  ;;  %10442 = vmatpush3.bf16.msra.mxu1 %v12629_v55 }
 0x256   : > { %v10161_v36 = vrot.slane %v4664_v18, 9  ;;  %v5589_v46 = vadd.f32 %v10159_v63, %v4657_v17  ;;  %v5588_v57 = vadd.f32 %v10158_v8, %v4649_v26  ;;  %v5715_v19 = vmul.f32 0.25, %v5587_v54  ;;  %v6701_v17 = vld [vmem:[#allocation3 + $0x10] sm:$0xff]  ;;  %12308 = vrot.lane.b32.xlu1 %v12307_v7, %s12906_s20 }
 0x257   : > { %v5714_v58 = vmul.f32 0.25, %v5586_v61  ;;  %v3905_v2 = vsel %vm3857_vm11, %v3840_v12, %v11986_v25  ;;  %v10162_v5 = vrot.slane %v4666_v40, 9  ;;  %v5590_v62 = vadd.f32 %v10160_v3, %v4665_v35  ;;  %v15201_v12 = vpop.permute.xlu1 %12018  ;;  %v828_v35 = vld [vmem:[#allocation2 + $0x288] sm:$0xff]  ;;  %12303 = vrot.lane.b32.xlu0 %v12302_v4, %s12906_s20 }
 0x258   : > { %v5591_v28 = vadd.f32 %v10161_v36, %v4664_v18  ;;  %v5717_v33 = vmul.f32 0.25, %v5589_v46  ;;  %v5716_v27 = vmul.f32 0.25, %v5588_v57  ;;  %v6068_v34 = vrot.slane %v5713_v51, %v14429_v21  ;;  %v15207_v59 = vpop.permute.xlu0 %12013 }
 0x259   : > { %v6072_v1 = vrot.slane %v5714_v58, %v14429_v21  ;;  %v6076_v15 = vrot.slane %v5715_v19, %v14429_v21  ;;  %v5592_v42 = vadd.f32 %v10162_v5, %v4666_v40  ;;  %v5718_v44 = vmul.f32 0.25, %v5590_v62 }
 0x25a   : > { %v5719_v9 = vmul.f32 0.25, %v5591_v28  ;;  %v3904_v31 = vsel %vm3857_vm11, %v15150_v30, %v11985_v6  ;;  %v6080_v25 = vrot.slane %v5716_v27, %v14429_v21  ;;  %v11990_v26 = vunpack.i.l.bf16 %v15129_v47  ;;  %12318 = vrot.lane.b32.xlu1 %v12317_v0, %s12907_s27 }
 0x25b   : > { %v6484_v38 = vsel %vm6449_vm1, %v6072_v1, %v6068_v34  ;;  %v12327_v45 = vpack.i.bf16 %v14993_v10, %v6701_v17  ;;  %v5720_v60 = vmul.f32 0.25, %v5592_v42  ;;  %v6084_v18 = vrot.slane %v5717_v33, %v14429_v21  ;;  %v15232_v8 = vpop.permute.xlu1 %12028  ;;  %12313 = vrot.lane.b32.xlu0 %v12312_v41, %s12907_s27 }
 0x25c   : > { %v6485_v30 = vsel %vm6451_vm2, %v6076_v15, %v6484_v38  ;;  %v12332_v63 = vpack.i.bf16 %v15203_v24, %v15217_v11  ;;  %v6088_v22 = vrot.slane %v5718_v44, %v14429_v21  ;;  %v3454_v7 = vsel %vm593_vm0, %v829_v53, %v11991_v52  ;;  %v12024_v55 = vpop.permute.xlu0 %12023 }
 0x25d   : > { %v6486_v50 = vsel %vm6453_vm3, %v6080_v25, %v6485_v30  ;;  %v3945_v6 = vpack.c.bf16 %v3905_v2, %v3904_v31  ;;  %v6092_v61 = vrot.slane %v5719_v9, %v14429_v21  ;;  %vm17279_vm7 = vcmask 1044484   ;;  %v12631_v30 = vld [vmem:[%s17276_s5 + $0x18] sm:$0xff]  }
 0x25e   : > { %v6487_v54 = vsel %vm17279_vm7, %v6084_v18, %v6486_v50  ;;  %v12001_v4 = vunpack.i.h.bf16 %v15160_v23  ;;  %v12000_v51 = vunpack.i.l.bf16 %v15160_v23  ;;  %v6096_v40 = vrot.slane %v5720_v60, %v14429_v21  ;;  %12328 = vrot.lane.b32.xlu1 %v12327_v45, %s12908_s26  ;;  %v12630_v45 = vld [vmem:[%s17276_s5 + $0x58] sm:$0xff]  }
 0x25f   : > { %vm17280_vm8 = vcmask 1045509   ;;  %v3453_v47 = vsel %vm593_vm0, %v828_v35, %v11990_v26  ;;  %v11996_v52 = vunpack.i.h.bf16 %v15171_v39  ;;  %10834 = vmatmul.mubr.msk.bf16.gmra.mrb[44].mxu0 %vm3976_vm12, %v3945_v6  ;;  %vm17281_vm5 = vcmask 1046534   ;;  %v15259_v0 = vpop.permute.xlu1 %12038  ;;  %12323 = vrot.lane.b32.xlu0 %v15055_v32, %s12908_s26 }
 0x260   : > { %v6488_v3 = vsel %vm17280_vm8, %v6088_v22, %v6487_v54  ;;  %v11995_v23 = vunpack.i.l.bf16 %v15171_v39  ;;  %v12011_v46 = vunpack.i.h.bf16 %v15184_v16  ;;  %v12010_v57 = vunpack.i.l.bf16 %v15184_v16  ;;  %v12034_v10 = vpop.permute.xlu0 %12033  ;;  %10443 = vmatprep.subr.bf16.mxu1 %v12630_v45 }
 0x261   : > { %v6489_v36 = vsel %vm17281_vm5, %v6092_v61, %v6488_v3  ;;  %vm17282_vm10 = vcmask 1047559   ;;  %v12006_v19 = vunpack.i.h.bf16 %v15189_v49  ;;  %v12005_v43 = vunpack.i.l.bf16 %v15189_v49  ;;  %10444 = vmatpush3.bf16.msra.mxu1 %v12631_v30 }
 0x262   : > { %v6490_v58 = vsel %vm17282_vm10, %v6096_v40, %v6489_v36  ;;  %v12021_v29 = vunpack.i.h.bf16 %v15201_v12  ;;  %vm17283_vm13 = vcmask 261120   ;;  %vm17284_vm4 = vcmask 48128   ;;  %v10811_v26 = vpop.f32.mrb[20].mxu0  ;;  %12338 = vrot.lane.b32.xlu1 %v15055_v32, %s12906_s20 }
 0x263   : > { %6590 = vst.msk [vmem:[#allocation3 + $0x51] sm:$0xff] %vm17283_vm13, %v6490_v58  ;;  %v3518_v39 = vsel %vm17284_vm4, %v3453_v47, %v12000_v51  ;;  %vm17285_vm14 = vmmov %vm17284_vm4  ;;  %v12020_v2 = vunpack.i.l.bf16 %v15201_v12  ;;  %v12347_v41 = vpack.i.bf16 %v15217_v11, %v14878_v14  ;;  %v12016_v49 = vunpack.i.h.bf16 %v15207_v59  ;;  %v15282_v42 = vpop.permute.xlu1 %12048  ;;  %v4194_v50 = vpop.f32.mrb[21].mxu0  ;;  %12333 = vrot.lane.b32.xlu0 %v12332_v63, %s12906_s20 }
 0x264   : > { %v3519_v16 = vsel %vm17285_vm14, %v3454_v7, %v12001_v4  ;;  %vm17286_vm15 = vmmov %vm17284_vm4  ;;  %v12015_v62 = vunpack.i.l.bf16 %v15207_v59  ;;  %v12031_v28 = vunpack.i.h.bf16 %v15232_v8  ;;  %v3583_v27 = vsel %vm3532_vm6, %v3518_v39, %v12010_v57  ;;  %v12044_v31 = vpop.permute.xlu0 %12043  ;;  %v10812_v61 = vpop.f32.mrb[22].mxu0 }
 0x265   : > { %v3517_v5 = vsel %vm17286_vm15, %v15154_v20, %v11996_v52  ;;  %vm17287_vm7 = vmmov %vm17284_vm4  ;;  %v3584_v34 = vsel %vm3532_vm6, %v3519_v16, %v12011_v46  ;;  %v12025_v14 = vunpack.i.l.bf16 %v12024_v55  ;;  %vm17288_vm8 = vcmask 97280   ;;  %v4197_v3 = vpop.f32.mrb[23].mxu0  ;;  %v6752_v46 = vld [vmem:[#allocation3 + $0x40] sm:$0xff] }
 0x266   : > { %v3516_v33 = vsel %vm17287_vm7, %v15166_v13, %v11995_v23  ;;  %v3582_v1 = vsel %vm3532_vm6, %v3517_v5, %v12006_v19  ;;  %v3649_v15 = vsel %vm17288_vm8, %v3584_v34, %v12021_v29  ;;  %v12026_v12 = vunpack.i.h.bf16 %v12024_v55  ;;  %vm17289_vm5 = vmmov %vm17288_vm8  ;;  %12348 = vrot.lane.b32.xlu1 %v12347_v41, %s12907_s27  ;;  %v12633_v41 = vld [vmem:[%s17276_s5 + $0x20] sm:$0xff]  }
 0x267   : > { %v3581_v20 = vsel %vm3532_vm6, %v3516_v33, %v12005_v43  ;;  %v3648_v44 = vsel %vm17289_vm5, %v3583_v27, %v12020_v2  ;;  %v12030_v13 = vunpack.i.l.bf16 %v15232_v8  ;;  %v12036_v9 = vunpack.i.h.bf16 %v12034_v10  ;;  %vm17290_vm10 = vmmov %vm17289_vm5  ;;  %v15308_v54 = vpop.permute.xlu1 %12058  ;;  %v12634_v27 = vld [vmem:[%s17276_s5 + $0x68] sm:$0xff]  }
 0x268   : > { %v12035_v53 = vunpack.i.l.bf16 %v12034_v10  ;;  %v3646_v59 = vsel %vm17290_vm10, %v3581_v20, %v12015_v62  ;;  %vm17291_vm13 = vmmov %vm17289_vm5  ;;  %vm17292_vm4 = vcmask 121856   ;;  %v12041_v38 = vunpack.i.h.bf16 %v15259_v0  ;;  %v12054_v40 = vpop.permute.xlu0 %12053 }
 0x269   : > { %v3647_v17 = vsel %vm17291_vm13, %v3582_v1, %v12016_v49  ;;  %v3714_v25 = vsel %vm17292_vm4, %v3649_v15, %v12031_v28  ;;  %vm17293_vm14 = vmmov %vm17292_vm4  ;;  %v12046_v18 = vunpack.i.h.bf16 %v12044_v31  ;;  %v12045_v35 = vunpack.i.l.bf16 %v12044_v31  ;;  %v6768_v15 = vld [vmem:[#allocation3 + $0x41] sm:$0xff] }
 0x26a   : > { %v3711_v60 = vsel %vm17293_vm14, %v3646_v59, %v12025_v14  ;;  %v4203_v22 = vadd.f32 %v14955_v37, %v10811_v26  ;;  %vm17294_vm15 = vmmov %vm17292_vm4  ;;  %v12040_v7 = vunpack.i.l.bf16 %v15259_v0  ;;  %v12051_v6 = vunpack.i.h.bf16 %v15282_v42  ;;  %v15310_v4 = vld [vmem:[#allocation3 + $0x50] sm:$0xff] }
 0x26b   : > { %v3712_v32 = vsel %vm17294_vm15, %v3647_v17, %v12026_v12  ;;  %v4195_v8 = vadd.f32 %v14955_v37, %v4194_v50  ;;  %v3776_v51 = vsel %vm3727_vm9, %v3711_v60, %v12035_v53  ;;  %v4206_v63 = vadd.f32 %v14955_v37, %v10812_v61  ;;  %v15322_v2 = vpop.permute.xlu1 %12068  ;;  %v6769_v10 = vld [vmem:[#allocation3 + $0x51] sm:$0xff]  ;;  %vm17297_vm5 = vmmov %vm17292_vm4 }
 0x26c   : > { %v3777_v55 = vsel %vm3727_vm9, %v3712_v32, %v12036_v9  ;;  %v4391_v11 = vmax.f32 %v4203_v22, 0.0  ;;  %v12056_v52 = vunpack.i.h.bf16 %v12054_v40  ;;  %v12055_v36 = vunpack.i.l.bf16 %v12054_v40  ;;  %v15334_v28 = vpop.permute.xlu0 %12063  ;;  %v12638_v40 = vld [vmem:[%s17276_s5 + $0x78] sm:$0xff]  }
 0x26d   : > { %v4389_v47 = vmax.f32 %v4195_v8, 0.0  ;;  %v4198_v23 = vadd.f32 %v14955_v37, %v4197_v3  ;;  %vm17295_vm7 = vcmask 171008   ;;  %v4392_v19 = vmax.f32 %v4206_v63, 0.0  ;;  %v12632_v37 = vld [vmem:[%s17276_s5 + $0x60] sm:$0xff]   ;;  %v12637_v8 = vld [vmem:[%s17276_s5 + $0x30] sm:$0xff]  }
 0x26e   : > { %v3841_v57 = vsel %vm17295_vm7, %v3776_v51, %v12045_v35  ;;  %vm17296_vm8 = vmmov %vm17295_vm7  ;;  %v12342_v43 = vpack.i.bf16 %v15310_v4, %v6752_v46  ;;  %v3713_v5 = vsel %vm17297_vm5, %v3648_v44, %v12030_v13  ;;  %v3779_v49 = vsel %vm3727_vm9, %v3714_v25, %v12041_v38  ;;  %10445 = vmatprep.subr.bf16.mxu1 %v12632_v37  ;;  %v12635_v13 = vld [vmem:[%s17276_s5 + $0x28] sm:$0xff]   ;;  %v12636_v25 = vld [vmem:[%s17276_s5 + $0x70] sm:$0xff]  }
 0x26f   : > { %v3842_v58 = vsel %vm17296_vm8, %v3777_v55, %v12046_v18  ;;  %v4443_v29 = vadd.f32 %v4391_v11, %v4389_v47  ;;  %v3906_v0 = vsel %vm3857_vm11, %v3841_v57, %v12055_v36  ;;  %v4390_v16 = vmax.f32 %v4198_v23, 0.0  ;;  %vm17298_vm10 = vmmov %vm17295_vm7  ;;  %10446 = vmatpush3.bf16.msra.mxu1 %v12633_v41  ;;  %v15348_v17 = vpop.permute.xlu1 %12078 }
 0x270   : > { %v3907_v39 = vsel %vm3857_vm11, %v3842_v58, %v12056_v52  ;;  %v12050_v62 = vunpack.i.l.bf16 %v15282_v42  ;;  %12343 = vrot.lane.b32.xlu0 %v12342_v43, %s12907_s27  ;;  %v3778_v34 = vsel %vm3727_vm9, %v3713_v5, %v12040_v7  ;;  %v3844_v12 = vsel %vm17298_vm10, %v3779_v49, %v12051_v6  ;;  %10447 = vmatprep.subr.bf16.mxu1 %v12634_v27  ;;  %vm17299_vm13 = vmmov %vm17295_vm7  ;;  %v15359_v30 = vpop.permute.xlu0 %12073  ;;  %v831_v49 = vld [vmem:[#allocation2 + $0x2a8] sm:$0xff] }
 0x271   : > { %v3946_v33 = vpack.c.bf16 %v3907_v39, %v3906_v0  ;;  %v4667_v14 = vcombine.high %v4443_v29, %v4443_v29  ;;  %v4674_v20 = vrot.slane %v4443_v29, %v14423_v48  ;;  %v4444_v1 = vadd.f32 %v4392_v19, %v4390_v16  ;;  %v12639_v16 = vld [vmem:[%s17276_s5 + $0x38] sm:$0xff]  }
 0x272   : > { %v12352_v42 = vpack.i.bf16 %v6769_v10, %v6768_v15  ;;  %v12357_v44 = vpack.i.bf16 %v6752_v46, %v14979_v56  ;;  %v3843_v38 = vsel %vm17299_vm13, %v3778_v34, %v12050_v62  ;;  %v12061_v56 = vunpack.i.h.bf16 %v15308_v54 }
 0x273   : > { %10837 = vmatprep.mubr.msk.bf16.mxu0 %vm3976_vm12, %v3946_v33  ;;  %v4681_v9 = vrot.slane %v4667_v14, %v14423_v48  ;;  %v4682_v53 = vcombine.high %v4674_v20, %v4674_v20  ;;  %v10163_v31 = vrot.slane %v4674_v20, 9  ;;  %v4684_v59 = vcombine.high %v4444_v1, %v4444_v1  ;;  %10448 = vmatpush3.bf16.msra.mxu1 %v12635_v13  ;;  %v15366_v63 = vpop.permute.xlu1 %12088 }
 0x274   : > { %v4691_v26 = vrot.slane %v4444_v1, %v14423_v48  ;;  %v12066_v45 = vunpack.i.h.bf16 %v15334_v28  ;;  %12353 = vrot.lane.b32.xlu0 %v12352_v42, %s12908_s26  ;;  %12358 = vrot.lane.b32.xlu1 %v12357_v44, %s12908_s26  ;;  %v12065_v6 = vunpack.i.l.bf16 %v15334_v28  ;;  %v15372_v23 = vpop.permute.xlu0 %12083  ;;  %v12060_v15 = vunpack.i.l.bf16 %v15308_v54 }
 0x275   : > { %v4683_v60 = vcombine.high %v4681_v9, %v4681_v9  ;;  %v10164_v18 = vrot.slane %v4682_v53, 9  ;;  %v10165_v35 = vrot.slane %v4681_v9, 9  ;;  %v5593_v22 = vadd.f32 %v10163_v31, %v4674_v20  ;;  %10449 = vmatprep.subr.bf16.mxu1 %v12636_v25  ;;  %v15395_v25 = vld [vmem:[#allocation3 + $0x52] sm:$0xff] }
 0x276   : > { %v4698_v50 = vrot.slane %v4684_v59, %v14423_v48  ;;  %v4699_v32 = vcombine.high %v4691_v26, %v4691_v26  ;;  %v10167_v7 = vrot.slane %v4691_v26, 9  ;;  %v3909_v19 = vsel %vm3857_vm11, %v3844_v12, %v12066_v45 }
 0x277   : > { %v10166_v61 = vrot.slane %v4683_v60, 9  ;;  %v5594_v51 = vadd.f32 %v10164_v18, %v4682_v53  ;;  %v5595_v55 = vadd.f32 %v10165_v35, %v4681_v9  ;;  %v5721_v11 = vmul.f32 0.25, %v5593_v22  ;;  %10450 = vmatpush3.bf16.msra.mxu1 %v12637_v8  ;;  %v15381_v62 = vpop.permute.xlu1 %12098  ;;  %v830_v18 = vld [vmem:[#allocation2 + $0x2a0] sm:$0xff] }
 0x278   : > { %v4700_v3 = vcombine.high %v4698_v50, %v4698_v50  ;;  %v10168_v47 = vrot.slane %v4699_v32, 9  ;;  %v10169_v52 = vrot.slane %v4698_v50, 9  ;;  %v5597_v36 = vadd.f32 %v10167_v7, %v4691_v26  ;;  %12368 = vrot.lane.b32.xlu1 %v12352_v42, %s12906_s20  ;;  %10451 = vmatprep.subr.bf16.mxu1 %v12638_v40  ;;  %v15384_v14 = vpop.permute.xlu0 %12093 }
 0x279   : > { %v5596_v46 = vadd.f32 %v10166_v61, %v4683_v60  ;;  %v5722_v57 = vmul.f32 0.25, %v5594_v51  ;;  %v5723_v58 = vmul.f32 0.25, %v5595_v55  ;;  %v6100_v37 = vrot.slane %v5721_v11, %v14429_v21 }
 0x27a   : > { %v10170_v43 = vrot.slane %v4700_v3, 9  ;;  %v5598_v29 = vadd.f32 %v10168_v47, %v4699_v32  ;;  %v5599_v0 = vadd.f32 %v10169_v52, %v4698_v50  ;;  %v5725_v39 = vmul.f32 0.25, %v5597_v36  ;;  %v832_v50 = vld [vmem:[#allocation2 + $0x2b8] sm:$0xff]  ;;  %v833_v32 = vld [vmem:[#allocation2 + $0x2c0] sm:$0xff] }
 0x27b   : > { %v5724_v10 = vmul.f32 0.25, %v5596_v46  ;;  %v6104_v41 = vrot.slane %v5722_v57, %v14429_v21  ;;  %v6108_v5 = vrot.slane %v5723_v58, %v14429_v21  ;;  %v3908_v34 = vsel %vm3857_vm11, %v3843_v38, %v12065_v6  ;;  %10452 = vmatpush3.bf16.msra.mxu1 %v12639_v16  ;;  %v15397_v38 = vpop.permute.xlu1 %12108 }
 0x27c   : > { %v5600_v28 = vadd.f32 %v10170_v43, %v4700_v3  ;;  %v5726_v33 = vmul.f32 0.25, %v5598_v29  ;;  %v5727_v27 = vmul.f32 0.25, %v5599_v0  ;;  %v3456_v42 = vsel %vm593_vm0, %v831_v49, %v12061_v56  ;;  %v12104_v60 = vpop.permute.xlu0 %12103 }
 0x27d   : > { %v6112_v20 = vrot.slane %v5724_v10, %v14429_v21  ;;  %v6491_v1 = vsel %vm6449_vm1, %v6104_v41, %v6100_v37  ;;  %v6116_v13 = vrot.slane %v5725_v39, %v14429_v21  ;;  %v12071_v31 = vunpack.i.h.bf16 %v15322_v2 }
 0x27e   : > { %v6492_v12 = vsel %vm6451_vm2, %v6108_v5, %v6491_v1  ;;  %v5728_v44 = vmul.f32 0.25, %v5600_v28  ;;  %v6120_v9 = vrot.slane %v5726_v33, %v14429_v21  ;;  %v3947_v59 = vpack.c.bf16 %v3909_v19, %v3908_v34 }
 0x27f   : > { %v6493_v53 = vsel %vm6453_vm3, %v6112_v20, %v6492_v12  ;;  %v6124_v54 = vrot.slane %v5727_v27, %v14429_v21  ;;  %vm17300_vm4 = vcmask 1044484   ;;  %v12070_v56 = vunpack.i.l.bf16 %v15322_v2  ;;  %v15417_v3 = vpop.permute.xlu1 %12118 }
 0x280   : > { %v6494_v26 = vsel %vm17300_vm4, %v6116_v13, %v6493_v53  ;;  %v12081_v45 = vunpack.i.h.bf16 %v15348_v17  ;;  %v6128_v35 = vrot.slane %v5728_v44, %v14429_v21  ;;  %vm17301_vm14 = vcmask 1045509   ;;  %10838 = vmatmul.mubr.msk.bf16.gmra.mrb[48].mxu0 %vm3976_vm12, %v3947_v59  ;;  %v12114_v36 = vpop.permute.xlu0 %12113 }
 0x281   : > { %v6495_v22 = vsel %vm17301_vm14, %v6120_v9, %v6494_v26  ;;  %v12080_v7 = vunpack.i.l.bf16 %v15348_v17  ;;  %v12076_v6 = vunpack.i.h.bf16 %v15359_v30  ;;  %vm17302_vm15 = vcmask 1046534  }
 0x282   : > { %v6496_v8 = vsel %vm17302_vm15, %v6124_v54, %v6495_v22  ;;  %v12075_v2 = vunpack.i.l.bf16 %v15359_v30  ;;  %v12090_v61 = vunpack.i.l.bf16 %v15366_v63  ;;  %v12377_v51 = vpack.i.bf16 %v15395_v25, %v15203_v24  ;;  %v10815_v1 = vpop.f32.mrb[24].mxu0 }
 0x283   : > { %vm17303_vm7 = vcmask 1047559   ;;  %v12091_v11 = vunpack.i.h.bf16 %v15366_v63  ;;  %v12086_v40 = vunpack.i.h.bf16 %v15372_v23  ;;  %v12085_v17 = vunpack.i.l.bf16 %v15372_v23  ;;  %v12129_v37 = vpop.permute.xlu1 %12128  ;;  %v4210_v44 = vpop.f32.mrb[25].mxu0 }
 0x284   : > { %v6497_v55 = vsel %vm17303_vm7, %v6128_v35, %v6496_v8  ;;  %v3455_v47 = vsel %vm593_vm0, %v830_v18, %v12060_v15  ;;  %vm17304_vm8 = vcmask 261120   ;;  %v3458_v30 = vsel %vm593_vm0, %v833_v32, %v12071_v31  ;;  %12378 = vrot.lane.b32.xlu1 %v12377_v51, %s12907_s27  ;;  %v12124_v33 = vpop.permute.xlu0 %12123  ;;  %v15447_v31 = vld [vmem:[%s17220_s4] ss:$0 sm:$0xff] }
 0x285   : > { %6591 = vst.msk [vmem:[#allocation3 + $0x61] sm:$0xff] %vm17304_vm8, %v6497_v55  ;;  %v3457_v52 = vsel %vm593_vm0, %v832_v50, %v12070_v56  ;;  %v12095_v24 = vunpack.i.l.bf16 %v15384_v14  ;;  %vm17305_vm5 = vcmask 48128   ;;  %v12096_v23 = vunpack.i.h.bf16 %v15384_v14 }
 0x286   : > { %v3522_v63 = vsel %vm17305_vm5, %v3457_v52, %v12080_v7  ;;  %vm17306_vm10 = vmmov %vm17305_vm5  ;;  %v12105_v57 = vunpack.i.l.bf16 %v12104_v60  ;;  %v12106_v29 = vunpack.i.h.bf16 %v12104_v60  ;;  %v12101_v10 = vunpack.i.h.bf16 %v15381_v62 }
 0x287   : > { %v3523_v46 = vsel %vm17306_vm10, %v3458_v30, %v12081_v45  ;;  %vm17307_vm13 = vmmov %vm17305_vm5  ;;  %v3587_v43 = vsel %vm3532_vm6, %v3522_v63, %v12090_v61  ;;  %v12100_v41 = vunpack.i.l.bf16 %v15381_v62  ;;  %vm17309_vm14 = vcmask 97280   ;;  %v15450_v54 = vpop.permute.xlu1 %12138 }
 0x288   : > { %v3521_v58 = vsel %vm17307_vm13, %v3456_v42, %v12076_v6  ;;  %vm17308_vm4 = vmmov %vm17305_vm5  ;;  %v3588_v0 = vsel %vm3532_vm6, %v3523_v46, %v12091_v11  ;;  %v12116_v49 = vunpack.i.h.bf16 %v12114_v36  ;;  %v12115_v28 = vunpack.i.l.bf16 %v12114_v36  ;;  %v12134_v18 = vpop.permute.xlu0 %12133 }
 0x289   : > { %v3520_v19 = vsel %vm17308_vm4, %v3455_v47, %v12075_v2  ;;  %v3586_v16 = vsel %vm3532_vm6, %v3521_v58, %v12086_v40  ;;  %vm17310_vm15 = vmmov %vm17309_vm14  ;;  %v12111_v34 = vunpack.i.h.bf16 %v15397_v38  ;;  %v12110_v14 = vunpack.i.l.bf16 %v15397_v38  ;;  %v10816_v38 = vpop.f32.mrb[26].mxu0 }
 0x28a   : > { %v3585_v39 = vsel %vm3532_vm6, %v3520_v19, %v12085_v17  ;;  %v3651_v27 = vsel %vm17310_vm15, %v3586_v16, %v12096_v23  ;;  %vm17311_vm7 = vcmask 121856   ;;  %v12121_v12 = vunpack.i.h.bf16 %v15417_v3  ;;  %v4213_v35 = vpop.f32.mrb[27].mxu0  ;;  %vm17315_vm13 = vmmov %vm17309_vm14 }
 0x28b   : > { %v3650_v5 = vsel %vm17309_vm14, %v3585_v39, %v12095_v24  ;;  %vm17312_vm8 = vmmov %vm17311_vm7  ;;  %v12126_v42 = vunpack.i.h.bf16 %v12124_v33  ;;  %v12125_v62 = vunpack.i.l.bf16 %v12124_v33  ;;  %v12120_v13 = vunpack.i.l.bf16 %v15417_v3  ;;  %v15467_v47 = vpop.permute.xlu1 %12148 }
 0x28c   : > { %v3715_v20 = vsel %vm17311_vm7, %v3650_v5, %v12105_v57  ;;  %v3716_v15 = vsel %vm17312_vm8, %v3651_v27, %v12106_v29  ;;  %v12131_v9 = vunpack.i.h.bf16 %v12129_v37  ;;  %v12130_v53 = vunpack.i.l.bf16 %v12129_v37  ;;  %v15456_v22 = vld [vmem:[#allocation3 + $0x62] sm:$0xff]  ;;  %vm17316_vm4 = vmmov %vm17315_vm13  ;;  %v12144_v63 = vpop.permute.xlu0 %12143 }
 0x28d   : > { %v4219_v59 = vadd.f32 %v15447_v31, %v10815_v1  ;;  %v3780_v26 = vsel %vm3727_vm9, %v3715_v20, %v12115_v28  ;;  %v3781_v56 = vsel %vm3727_vm9, %v3716_v15, %v12116_v49  ;;  %v4211_v45 = vadd.f32 %v15447_v31, %v4210_v44  ;;  %v15459_v8 = vld [vmem:[#allocation3 + $0x60] sm:$0xff]  ;;  %vm17317_vm14 = vmmov %vm17311_vm7 }
 0x28e   : > { %v4222_v60 = vadd.f32 %v15447_v31, %v10816_v38  ;;  %v12136_v32 = vunpack.i.h.bf16 %v12134_v18  ;;  %v12135_v7 = vunpack.i.l.bf16 %v12134_v18  ;;  %v4214_v6 = vadd.f32 %v15447_v31, %v4213_v35  ;;  %vm17318_vm15 = vmmov %vm17311_vm7 }
 0x28f   : > { %v4395_v50 = vmax.f32 %v4219_v59, 0.0  ;;  %vm17313_vm5 = vcmask 171008   ;;  %v4393_v51 = vmax.f32 %v4211_v45, 0.0  ;;  %v12362_v3 = vpack.i.bf16 %v15456_v22, %v15395_v25 }
 0x290   : > { %v3845_v2 = vsel %vm17313_vm5, %v3780_v26, %v12125_v62  ;;  %vm17314_vm10 = vmmov %vm17313_vm5  ;;  %v4396_v55 = vmax.f32 %v4222_v60, 0.0  ;;  %v4394_v17 = vmax.f32 %v4214_v6, 0.0  ;;  %v3652_v30 = vsel %vm17315_vm13, %v3587_v43, %v12100_v41  ;;  %v15487_v28 = vpop.permute.xlu0 %12153 }
 0x291   : > { %v3846_v61 = vsel %vm17314_vm10, %v3781_v56, %v12126_v42  ;;  %v3910_v11 = vsel %vm3857_vm11, %v3845_v2, %v12135_v7  ;;  %v3653_v52 = vsel %vm17316_vm4, %v3588_v0, %v12101_v10  ;;  %v4445_v24 = vadd.f32 %v4395_v50, %v4393_v51  ;;  %12363 = vrot.lane.b32.xlu0 %v12362_v3, %s12906_s20  ;;  %vm17319_vm7 = vmmov %vm17313_vm5  ;;  %v15484_v10 = vpop.permute.xlu1 %12158 }
 0x292   : > { %v3911_v40 = vsel %vm3857_vm11, %v3846_v61, %v12136_v32  ;;  %v12387_v36 = vpack.i.bf16 %v15459_v8, %v15310_v4  ;;  %v3717_v46 = vsel %vm17317_vm14, %v3652_v30, %v12110_v14  ;;  %v3718_v23 = vsel %vm17318_vm15, %v3653_v52, %v12111_v34  ;;  %vm17320_vm8 = vmmov %vm17313_vm5  ;;  %v835_v61 = vld [vmem:[#allocation2 + $0x2d8] sm:$0xff] }
 0x293   : > { %v4446_v57 = vadd.f32 %v4396_v55, %v4394_v17  ;;  %v3948_v58 = vpack.c.bf16 %v3911_v40, %v3910_v11  ;;  %v3782_v25 = vsel %vm3727_vm9, %v3717_v46, %v12120_v13  ;;  %v3783_v19 = vsel %vm3727_vm9, %v3718_v23, %v12121_v12 }
 0x294   : > { %v4701_v43 = vcombine.high %v4445_v24, %v4445_v24  ;;  %v4708_v29 = vrot.slane %v4445_v24, %v14423_v48  ;;  %12388 = vrot.lane.b32.xlu1 %v12387_v36, %s12908_s26  ;;  %v3847_v4 = vsel %vm17319_vm7, %v3782_v25, %v12130_v53  ;;  %v3848_v0 = vsel %vm17320_vm8, %v3783_v19, %v12131_v9  ;;  %v15492_v56 = vpop.permute.xlu0 %12163 }
 0x295   : > { %v4718_v39 = vcombine.high %v4446_v57, %v4446_v57  ;;  %v4725_v16 = vrot.slane %v4446_v57, %v14423_v48  ;;  %10841 = vmatprep.mubr.msk.bf16.mxu0 %vm3976_vm12, %v3948_v58  ;;  %v12146_v49 = vunpack.i.h.bf16 %v12144_v63  ;;  %v12145_v14 = vunpack.i.l.bf16 %v12144_v63  ;;  %v15490_v9 = vpop.permute.xlu1 %12168  ;;  %v834_v57 = vld [vmem:[#allocation2 + $0x2d0] sm:$0xff] }
 0x296   : > { %v4715_v37 = vrot.slane %v4701_v43, %v14423_v48  ;;  %v4716_v41 = vcombine.high %v4708_v29, %v4708_v29  ;;  %v10171_v5 = vrot.slane %v4708_v29, 9  ;;  %v12141_v45 = vunpack.i.h.bf16 %v15450_v54 }
 0x297   : > { %v4732_v33 = vrot.slane %v4718_v39, %v14423_v48  ;;  %v4733_v27 = vcombine.high %v4725_v16, %v4725_v16  ;;  %v10175_v34 = vrot.slane %v4725_v16, 9  ;;  %v3913_v6 = vsel %vm3857_vm11, %v3848_v0, %v12146_v49 }
 0x298   : > { %v4717_v20 = vcombine.high %v4715_v37, %v4715_v37  ;;  %v10172_v1 = vrot.slane %v4716_v41, 9  ;;  %v10173_v15 = vrot.slane %v4715_v37, 9  ;;  %v5601_v12 = vadd.f32 %v10171_v5, %v4708_v29  ;;  %v15502_v24 = vpop.permute.xlu0 %12173 }
 0x299   : > { %v4734_v42 = vcombine.high %v4732_v33, %v4732_v33  ;;  %v10176_v62 = vrot.slane %v4733_v27, 9  ;;  %v10177_v44 = vrot.slane %v4732_v33, 9  ;;  %v5605_v13 = vadd.f32 %v10175_v34, %v4725_v16  ;;  %v15498_v40 = vpop.permute.xlu1 %12178  ;;  %v836_v16 = vld [vmem:[#allocation2 + $0x2e8] sm:$0xff]  ;;  %v837_v34 = vld [vmem:[#allocation2 + $0x2f0] sm:$0xff] }
 0x29a   : > { %v10174_v53 = vrot.slane %v4717_v20, 9  ;;  %v5602_v59 = vadd.f32 %v10172_v1, %v4716_v41  ;;  %v5603_v38 = vadd.f32 %v10173_v15, %v4715_v37  ;;  %v5729_v26 = vmul.f32 0.25, %v5601_v12 }
 0x29b   : > { %v10178_v60 = vrot.slane %v4734_v42, 9  ;;  %v5606_v18 = vadd.f32 %v10176_v62, %v4733_v27  ;;  %v5607_v35 = vadd.f32 %v10177_v44, %v4732_v33  ;;  %v5733_v55 = vmul.f32 0.25, %v5605_v13 }
 0x29c   : > { %v5604_v50 = vadd.f32 %v10174_v53, %v4717_v20  ;;  %v5730_v32 = vmul.f32 0.25, %v5602_v59  ;;  %v5731_v7 = vmul.f32 0.25, %v5603_v38  ;;  %v6132_v2 = vrot.slane %v5729_v26, %v14429_v21  ;;  %v12184_v5 = vpop.permute.xlu0 %12183 }
 0x29d   : > { %v5608_v51 = vadd.f32 %v10178_v60, %v4734_v42  ;;  %v3912_v11 = vsel %vm3857_vm11, %v3847_v4, %v12145_v14  ;;  %v5734_v52 = vmul.f32 0.25, %v5606_v18  ;;  %v12140_v36 = vunpack.i.l.bf16 %v15450_v54  ;;  %v15511_v0 = vpop.permute.xlu1 %12188 }
 0x29e   : > { %v5732_v17 = vmul.f32 0.25, %v5604_v50  ;;  %v6136_v3 = vrot.slane %v5730_v32, %v14429_v21  ;;  %v6140_v30 = vrot.slane %v5731_v7, %v14429_v21  ;;  %v5735_v63 = vmul.f32 0.25, %v5607_v35 }
 0x29f   : > { %v3460_v58 = vsel %vm593_vm0, %v835_v61, %v12141_v45  ;;  %v5736_v25 = vmul.f32 0.25, %v5608_v51  ;;  %v6148_v43 = vrot.slane %v5733_v55, %v14429_v21  ;;  %v12150_v29 = vunpack.i.l.bf16 %v15467_v47 }
 0x2a0   : > { %v6144_v46 = vrot.slane %v5732_v17, %v14429_v21  ;;  %v6498_v23 = vsel %vm6449_vm1, %v6136_v3, %v6132_v2  ;;  %v3949_v4 = vpack.c.bf16 %v3913_v6, %v3912_v11  ;;  %v6152_v54 = vrot.slane %v5734_v52, %v14429_v21  ;;  %v12194_v26 = vpop.permute.xlu0 %12193 }
 0x2a1   : > { %v6499_v19 = vsel %vm6451_vm2, %v6140_v30, %v6498_v23  ;;  %v12151_v37 = vunpack.i.h.bf16 %v15467_v47  ;;  %v12160_v41 = vunpack.i.l.bf16 %v15484_v10  ;;  %v3459_v49 = vsel %vm593_vm0, %v834_v57, %v12140_v36  ;;  %v15530_v13 = vpop.permute.xlu1 %12198 }
 0x2a2   : > { %v6500_v39 = vsel %vm6453_vm3, %v6144_v46, %v6499_v19  ;;  %v6156_v33 = vrot.slane %v5735_v63, %v14429_v21  ;;  %vm17321_vm5 = vcmask 1044484   ;;  %v12161_v14 = vunpack.i.h.bf16 %v15484_v10  ;;  %10842 = vmatmul.mubr.msk.bf16.gmra.mrb[52].mxu0 %vm3976_vm12, %v3949_v4 }
 0x2a3   : > { %v6501_v27 = vsel %vm17321_vm5, %v6148_v43, %v6500_v39  ;;  %v6160_v20 = vrot.slane %v5736_v25, %v14429_v21  ;;  %vm17322_vm10 = vcmask 1045509   ;;  %v12156_v47 = vunpack.i.h.bf16 %v15487_v28 }
 0x2a4   : > { %v6502_v1 = vsel %vm17322_vm10, %v6152_v54, %v6501_v27  ;;  %v12155_v15 = vunpack.i.l.bf16 %v15487_v28  ;;  %vm17323_vm13 = vcmask 1046534   ;;  %v3461_v42 = vsel %vm593_vm0, %v836_v16, %v12150_v29  ;;  %v12204_v17 = vpop.permute.xlu0 %12203 }
 0x2a5   : > { %v6503_v12 = vsel %vm17323_vm13, %v6156_v33, %v6502_v1  ;;  %v12171_v62 = vunpack.i.h.bf16 %v15490_v9  ;;  %v12170_v44 = vunpack.i.l.bf16 %v15490_v9  ;;  %vm17324_vm4 = vcmask 1047559   ;;  %v12209_v61 = vpop.permute.xlu1 %12208 }
 0x2a6   : > { %v6504_v10 = vsel %vm17324_vm4, %v6160_v20, %v6503_v12  ;;  %v3462_v53 = vsel %vm593_vm0, %v837_v34, %v12151_v37  ;;  %vm17325_vm14 = vcmask 48128   ;;  %v12166_v38 = vunpack.i.h.bf16 %v15492_v56  ;;  %v15568_v37 = vld [vmem:[#allocation3 + $0x61] sm:$0xff] }
 0x2a7   : > { %v3526_v59 = vsel %vm17325_vm14, %v3461_v42, %v12160_v41  ;;  %vm17326_vm15 = vcmask 261120   ;;  %v12165_v28 = vunpack.i.l.bf16 %v15492_v56  ;;  %v12181_v45 = vunpack.i.h.bf16 %v15498_v40  ;;  %vm17327_vm7 = vmmov %vm17325_vm14 }
 0x2a8   : > { %6592 = vst.msk [vmem:[#allocation3 + $0x71] sm:$0xff] %vm17326_vm15, %v6504_v10  ;;  %v12180_v60 = vunpack.i.l.bf16 %v15498_v40  ;;  %v12176_v9 = vunpack.i.h.bf16 %v15502_v24  ;;  %v3527_v18 = vsel %vm17327_vm7, %v3462_v53, %v12161_v14  ;;  %vm17328_vm8 = vmmov %vm17327_vm7  ;;  %v12175_v32 = vunpack.i.l.bf16 %v15502_v24  ;;  %v12214_v39 = vpop.permute.xlu0 %12213 }
 0x2a9   : > { %v3525_v35 = vsel %vm17328_vm8, %v3460_v58, %v12156_v47  ;;  %vm17329_vm5 = vmmov %vm17327_vm7  ;;  %v3591_v7 = vsel %vm3532_vm6, %v3526_v59, %v12170_v44  ;;  %v3592_v6 = vsel %vm3532_vm6, %v3527_v18, %v12171_v62  ;;  %v12186_v2 = vunpack.i.h.bf16 %v12184_v5  ;;  %v12219_v19 = vpop.permute.xlu1 %12218  ;;  %v839_v18 = vld [vmem:[#allocation2 + $0x308] sm:$0xff] }
 0x2aa   : > { %v3524_v50 = vsel %vm17329_vm5, %v3459_v49, %v12155_v15  ;;  %v12185_v56 = vunpack.i.l.bf16 %v12184_v5  ;;  %v3590_v51 = vsel %vm3532_vm6, %v3525_v35, %v12166_v38  ;;  %v12190_v55 = vunpack.i.l.bf16 %v15511_v0 }
 0x2ab   : > { %v12196_v11 = vunpack.i.h.bf16 %v12194_v26  ;;  %v12195_v40 = vunpack.i.l.bf16 %v12194_v26  ;;  %v3589_v3 = vsel %vm3532_vm6, %v3524_v50, %v12165_v28  ;;  %vm17330_vm10 = vcmask 97280   ;;  %v841_v50 = vld [vmem:[#allocation2 + $0x320] sm:$0xff] }
 0x2ac   : > { %v3656_v30 = vsel %vm17330_vm10, %v3591_v7, %v12180_v60  ;;  %vm17331_vm13 = vmmov %vm17330_vm10  ;;  %v12206_v63 = vunpack.i.h.bf16 %v12204_v17  ;;  %v12205_v46 = vunpack.i.l.bf16 %v12204_v17  ;;  %vm7198_vm15 = vcmask 523264   ;;  %v12224_v10 = vpop.permute.xlu0 %12223 }
 0x2ad   : > { %v3657_v52 = vsel %vm17331_vm13, %v3592_v6, %v12181_v45  ;;  %vm17332_vm4 = vmmov %vm17330_vm10  ;;  %v12191_v23 = vunpack.i.h.bf16 %v15511_v0  ;;  %vm17334_vm7 = vcmask 121856   ;;  %v12201_v25 = vunpack.i.h.bf16 %v15530_v13 }
 0x2ae   : > { %v3655_v24 = vsel %vm17332_vm4, %v3590_v51, %v12176_v9  ;;  %vm17333_vm14 = vmmov %vm17332_vm4  ;;  %v17336_v43 = vmov 0.0   ;;  %v12200_v4 = vunpack.i.l.bf16 %v15530_v13  ;;  %v12216_v5 = vunpack.i.h.bf16 %v12214_v39  ;;  %v838_v9 = vld [vmem:[#allocation2 + $0x300] sm:$0xff] }
 0x2af   : > { %v3654_v36 = vsel %vm17333_vm14, %v3589_v3, %v12175_v32  ;;  %vm17335_vm8 = vmmov %vm17334_vm7  ;;  %7782 = vst.msk [vmem:[#allocation4] sm:$0xff] %vm7198_vm15, %v17336_v43  ;;  %v15566_v16 = vld [vmem:[#allocation3 + $0x70] sm:$0xff]  ;;  %v12215_v49 = vunpack.i.l.bf16 %v12214_v39  ;;  %v12211_v34 = vunpack.i.h.bf16 %v12209_v61  ;;  %v12210_v14 = vunpack.i.l.bf16 %v12209_v61 }
 0x2b0   : > { %v3719_v57 = vsel %vm17334_vm7, %v3654_v36, %v12185_v56  ;;  %v3720_v58 = vsel %vm17335_vm8, %v3655_v24, %v12186_v2  ;;  %7786 = vst.msk [vmem:[#allocation4 + $0x90] sm:$0xff] %vm7198_vm15, %v17336_v43  ;;  %vm17337_vm5 = vmmov %vm17334_vm7  ;;  %v6676_v41 = vld [vmem:[#allocation3 + $0x71] sm:$0xff]  ;;  %v12372_v33 = vpack.i.bf16 %v15566_v16, %v15459_v8  ;;  %vm17338_vm10 = vcmask 171008   ;;  %v12229_v8 = vpop.permute.xlu1 %12228  ;;  %v12234_v56 = vpop.permute.xlu0 %12233 }
 0x2b1   : > { %v3721_v29 = vsel %vm17337_vm5, %v3656_v30, %v12190_v55  ;;  %v3784_v54 = vsel %vm3727_vm9, %v3719_v57, %v12195_v40  ;;  %v3785_v0 = vsel %vm3727_vm9, %v3720_v58, %v12196_v11  ;;  %v12397_v27 = vpack.i.bf16 %v6676_v41, %v15568_v37  ;;  %vm17339_vm13 = vmmov %vm17338_vm10  ;;  %v15575_v47 = vld [vmem:[#allocation3 + $0x72] sm:$0xff] }
 0x2b2   : > { %v3849_v20 = vsel %vm17338_vm10, %v3784_v54, %v12205_v46  ;;  %v3850_v1 = vsel %vm17339_vm13, %v3785_v0, %v12206_v63  ;;  %vm17340_vm4 = vmmov %vm17337_vm5  ;;  %12373 = vrot.lane.b32.xlu0 %v12372_v33, %s12907_s27  ;;  %v3786_v62 = vsel %vm3727_vm9, %v3721_v29, %v12200_v4  ;;  %v12221_v13 = vunpack.i.h.bf16 %v12219_v19  ;;  %v840_v30 = vld [vmem:[#allocation2 + $0x318] sm:$0xff] }
 0x2b3   : > { %v3722_v15 = vsel %vm17340_vm4, %v3657_v52, %v12191_v23  ;;  %v3914_v12 = vsel %vm3857_vm11, %v3849_v20, %v12215_v49  ;;  %v3915_v42 = vsel %vm3857_vm11, %v3850_v1, %v12216_v5  ;;  %12398 = vrot.lane.b32.xlu1 %v12397_v27, %s12906_s20  ;;  %v12220_v59 = vunpack.i.l.bf16 %v12219_v19  ;;  %vm17341_vm14 = vmmov %vm17338_vm10 }
 0x2b4   : > { %v3787_v44 = vsel %vm3727_vm9, %v3722_v15, %v12201_v25  ;;  %v3950_v53 = vpack.c.bf16 %v3915_v42, %v3914_v12  ;;  %v12226_v38 = vunpack.i.h.bf16 %v12224_v10  ;;  %v12225_v26 = vunpack.i.l.bf16 %v12224_v10  ;;  %vm17342_vm7 = vmmov %vm17338_vm10  ;;  %v12239_v6 = vpop.permute.xlu1 %12238  ;;  %v12244_v0 = vpop.permute.xlu0 %12243 }
 0x2b5   : > { %v12407_v28 = vpack.i.bf16 %v15575_v47, %v15456_v22  ;;  %v3851_v45 = vsel %vm17341_vm14, %v3786_v62, %v12210_v14  ;;  %v3852_v60 = vsel %vm17342_vm7, %v3787_v44, %v12211_v34  ;;  %v12231_v35 = vunpack.i.h.bf16 %v12229_v8  ;;  %v10819_v22 = vpop.f32.mrb[28].mxu0 }
 0x2b6   : > { %10845 = vmatprep.mubr.msk.bf16.mxu0 %vm3976_vm12, %v3950_v53  ;;  %v3917_v32 = vsel %vm3857_vm11, %v3852_v60, %v12226_v38  ;;  %v3916_v7 = vsel %vm3857_vm11, %v3851_v45, %v12225_v26  ;;  %12383 = vrot.lane.b32.xlu0 %v12397_v27, %s12908_s26  ;;  %v4235_v61 = vadd.f32 %v15447_v31, %v10819_v22  ;;  %v4226_v51 = vpop.f32.mrb[29].mxu0  ;;  %v12230_v40 = vunpack.i.l.bf16 %v12229_v8 }
 0x2b7   : > { %12408 = vrot.lane.b32.xlu1 %v12407_v28, %s12907_s27  ;;  %v3951_v2 = vpack.c.bf16 %v3917_v32, %v3916_v7  ;;  %v3464_v55 = vsel %vm593_vm0, %v839_v18, %v12221_v13  ;;  %v3463_v11 = vsel %vm593_vm0, %v838_v9, %v12220_v59  ;;  %v4227_v17 = vadd.f32 %v15447_v31, %v4226_v51  ;;  %v10820_v3 = vpop.f32.mrb[30].mxu0 }
 0x2b8   : > { %v3466_v52 = vsel %vm593_vm0, %v841_v50, %v12231_v35  ;;  %v12241_v24 = vunpack.i.h.bf16 %v12239_v6  ;;  %v12240_v36 = vunpack.i.l.bf16 %v12239_v6  ;;  %v4399_v63 = vmax.f32 %v4235_v61, 0.0  ;;  %v4229_v23 = vpop.f32.mrb[31].mxu0  ;;  %v12249_v25 = vpop.permute.xlu1 %12248 }
 0x2b9   : > { %10846 = vmatmul.mubr.msk.bf16.gmra.mrb[56].mxu0 %vm3976_vm12, %v3951_v2  ;;  %v4238_v46 = vadd.f32 %v15447_v31, %v10820_v3  ;;  %v12236_v57 = vunpack.i.h.bf16 %v12234_v56  ;;  %v12235_v58 = vunpack.i.l.bf16 %v12234_v56  ;;  %v4397_v19 = vmax.f32 %v4227_v17, 0.0  ;;  %v12254_v10 = vpop.permute.xlu0 %12253 }
 0x2ba   : > { %v4230_v29 = vadd.f32 %v15447_v31, %v4229_v23  ;;  %v12251_v4 = vunpack.i.h.bf16 %v12249_v25  ;;  %v12250_v54 = vunpack.i.l.bf16 %v12249_v25  ;;  %v3465_v41 = vsel %vm593_vm0, %v840_v30, %v12230_v40 }
 0x2bb   : > { %v4400_v39 = vmax.f32 %v4238_v46, 0.0  ;;  %v12246_v5 = vunpack.i.h.bf16 %v12244_v0  ;;  %v12245_v49 = vunpack.i.l.bf16 %v12244_v0  ;;  %v4447_v33 = vadd.f32 %v4399_v63, %v4397_v19 }
 0x2bc   : > { %v4398_v27 = vmax.f32 %v4230_v29, 0.0  ;;  %vm17343_vm8 = vcmask 48128   ;;  %v12259_v42 = vpop.permute.xlu1 %12258  ;;  %v12255_v26 = vunpack.i.l.bf16 %v12254_v10  ;;  %vm17347_vm0 = vcmask 97280  }
 0x2bd   : > { %v3530_v34 = vsel %vm17343_vm8, %v3465_v41, %v12240_v36  ;;  %vm17344_vm5 = vmmov %vm17343_vm8  ;;  %v4735_v8 = vcombine.high %v4447_v33, %v4447_v33  ;;  %v4742_v62 = vrot.slane %v4447_v33, %v14423_v48  ;;  %v12261_v13 = vunpack.i.h.bf16 %v12259_v42  ;;  %v12264_v61 = vpop.permute.xlu0 %12263 }
 0x2be   : > { %v3531_v14 = vsel %vm17344_vm5, %v3466_v52, %v12241_v24  ;;  %vm17345_vm10 = vmmov %vm17344_vm5  ;;  %v3595_v15 = vsel %vm3532_vm6, %v3530_v34, %v12250_v54  ;;  %v4448_v44 = vadd.f32 %v4400_v39, %v4398_v27  ;;  %v12260_v38 = vunpack.i.l.bf16 %v12259_v42 }
 0x2bf   : > { %v3529_v20 = vsel %vm17345_vm10, %v3464_v55, %v12236_v57  ;;  %vm17346_vm13 = vmmov %vm17344_vm5  ;;  %v3596_v12 = vsel %vm3532_vm6, %v3531_v14, %v12251_v4  ;;  %v4749_v28 = vrot.slane %v4735_v8, %v14423_v48  ;;  %v4750_v45 = vcombine.high %v4742_v62, %v4742_v62 }
 0x2c0   : > { %v3528_v1 = vsel %vm17346_vm13, %v3463_v11, %v12235_v58  ;;  %v3594_v59 = vsel %vm3532_vm6, %v3529_v20, %v12246_v5  ;;  %v10179_v60 = vrot.slane %v4742_v62, 9  ;;  %v4752_v9 = vcombine.high %v4448_v44, %v4448_v44  ;;  %vm17348_vm4 = vmmov %vm17347_vm0  ;;  %v12269_v7 = vpop.permute.xlu1 %12268 }
 0x2c1   : > { %v3593_v53 = vsel %vm3532_vm6, %v3528_v1, %v12245_v49  ;;  %v4759_v18 = vrot.slane %v4448_v44, %v14423_v48  ;;  %v3660_v35 = vsel %vm17347_vm0, %v3595_v15, %v12260_v38  ;;  %v3661_v50 = vsel %vm17348_vm4, %v3596_v12, %v12261_v13  ;;  %vm17349_vm6 = vmmov %vm17347_vm0  ;;  %v12274_v29 = vpop.permute.xlu0 %12273 }
 0x2c2   : > { %v12256_v32 = vunpack.i.h.bf16 %v12254_v10  ;;  %v4751_v6 = vcombine.high %v4749_v28, %v4749_v28  ;;  %v10180_v22 = vrot.slane %v4750_v45, 9  ;;  %v10181_v2 = vrot.slane %v4749_v28, 9  ;;  %vm17350_vm14 = vmmov %vm17347_vm0 }
 0x2c3   : > { %v5609_v56 = vadd.f32 %v10179_v60, %v4742_v62  ;;  %v4766_v51 = vrot.slane %v4752_v9, %v14423_v48  ;;  %v4767_v55 = vcombine.high %v4759_v18, %v4759_v18  ;;  %v10183_v11 = vrot.slane %v4759_v18, 9 }
 0x2c4   : > { %v3658_v40 = vsel %vm17349_vm6, %v3593_v53, %v12255_v26  ;;  %v10182_v17 = vrot.slane %v4751_v6, 9  ;;  %v5610_v3 = vadd.f32 %v10180_v22, %v4750_v45  ;;  %v5611_v30 = vadd.f32 %v10181_v2, %v4749_v28  ;;  %v12279_v23 = vpop.permute.xlu1 %12278 }
 0x2c5   : > { %v5737_v52 = vmul.f32 0.25, %v5609_v56  ;;  %v4768_v24 = vcombine.high %v4766_v51, %v4766_v51  ;;  %v10184_v36 = vrot.slane %v4767_v55, 9  ;;  %v10185_v63 = vrot.slane %v4766_v51, 9  ;;  %v12284_v62 = vpop.permute.xlu0 %12283 }
 0x2c6   : > { %v5613_v46 = vadd.f32 %v10183_v11, %v4759_v18  ;;  %v5612_v57 = vadd.f32 %v10182_v17, %v4751_v6  ;;  %v5738_v58 = vmul.f32 0.25, %v5610_v3  ;;  %v5739_v25 = vmul.f32 0.25, %v5611_v30 }
 0x2c7   : > { %v6164_v19 = vrot.slane %v5737_v52, %v14429_v21  ;;  %v10186_v4 = vrot.slane %v4768_v24, 9  ;;  %v5614_v54 = vadd.f32 %v10184_v36, %v4767_v55  ;;  %v5615_v0 = vadd.f32 %v10185_v63, %v4766_v51 }
 0x2c8   : > { %v5741_v39 = vmul.f32 0.25, %v5613_v46  ;;  %v5740_v41 = vmul.f32 0.25, %v5612_v57  ;;  %v6168_v5 = vrot.slane %v5738_v58, %v14429_v21  ;;  %v6172_v49 = vrot.slane %v5739_v25, %v14429_v21  ;;  %v12289_v1 = vpop.permute.xlu1 %12288 }
 0x2c9   : > { %v12271_v33 = vunpack.i.h.bf16 %v12269_v7  ;;  %v5616_v27 = vadd.f32 %v10186_v4, %v4768_v24  ;;  %v5742_v34 = vmul.f32 0.25, %v5614_v54  ;;  %v5743_v14 = vmul.f32 0.25, %v5615_v0  ;;  %v12294_v2 = vpop.permute.xlu0 %12293 }
 0x2ca   : > { %v3659_v20 = vsel %vm17350_vm14, %v3594_v59, %v12256_v32  ;;  %v6176_v15 = vrot.slane %v5740_v41, %v14429_v21  ;;  %v6505_v12 = vsel %vm6449_vm1, %v6168_v5, %v6164_v19  ;;  %v6180_v42 = vrot.slane %v5741_v39, %v14429_v21 }
 0x2cb   : > { %v12270_v8 = vunpack.i.l.bf16 %v12269_v7  ;;  %v6506_v44 = vsel %vm6451_vm2, %v6172_v49, %v6505_v12  ;;  %v5744_v13 = vmul.f32 0.25, %v5616_v27  ;;  %v6184_v10 = vrot.slane %v5742_v34, %v14429_v21 }
 0x2cc   : > { %vm17351_vm7 = vcmask 121856   ;;  %v6188_v38 = vrot.slane %v5743_v14, %v14429_v21  ;;  %v6507_v59 = vsel %vm6453_vm3, %v6176_v15, %v6506_v44  ;;  %v12266_v26 = vunpack.i.h.bf16 %v12264_v61  ;;  %v12299_v32 = vpop.permute.xlu1 %12298 }
 0x2cd   : > { %v3726_v53 = vsel %vm17351_vm7, %v3661_v50, %v12271_v33  ;;  %v12265_v28 = vunpack.i.l.bf16 %v12264_v61  ;;  %vm17352_vm8 = vcmask 1044484   ;;  %vm17353_vm5 = vmmov %vm17351_vm7  ;;  %v12281_v9 = vunpack.i.h.bf16 %v12279_v23  ;;  %v15643_v58 = vpop.permute.xlu0 %12303  ;;  %v6653_v33 = vld [vmem:[#allocation3] sm:$0xff] }
 0x2ce   : > { %v6508_v45 = vsel %vm17352_vm8, %v6180_v42, %v6507_v59  ;;  %v3725_v60 = vsel %vm17353_vm5, %v3660_v35, %v12270_v8  ;;  %v12280_v18 = vunpack.i.l.bf16 %v12279_v23  ;;  %v6192_v7 = vrot.slane %v5744_v13, %v14429_v21  ;;  %vm17355_vm13 = vmmov %vm17353_vm5 }
 0x2cf   : > { %vm17354_vm10 = vcmask 1045509   ;;  %v3723_v22 = vsel %vm17355_vm13, %v3658_v40, %v12265_v28  ;;  %v12276_v50 = vunpack.i.h.bf16 %v12274_v29  ;;  %vm17356_vm0 = vcmask 1046534   ;;  %vm17357_vm4 = vmmov %vm17353_vm5 }
 0x2d0   : > { %v6509_v6 = vsel %vm17354_vm10, %v6184_v10, %v6508_v45  ;;  %v3724_v51 = vsel %vm17357_vm4, %v3659_v20, %v12266_v26  ;;  %v3790_v61 = vsel %vm3727_vm9, %v3725_v60, %v12280_v18  ;;  %v12275_v55 = vunpack.i.l.bf16 %v12274_v29  ;;  %v12309_v36 = vpop.permute.xlu1 %12308  ;;  %v10823_v20 = vpop.f32.mrb[32].mxu0  ;;  %v6717_v10 = vld [vmem:[#allocation3 + $0x11] sm:$0xff] }
 0x2d1   : > { %v6510_v56 = vsel %vm17356_vm0, %v6188_v38, %v6509_v6  ;;  %vm17358_vm6 = vcmask 1047559   ;;  %v3791_v11 = vsel %vm3727_vm9, %v3726_v53, %v12281_v9  ;;  %v12291_v17 = vunpack.i.h.bf16 %v12289_v1  ;;  %v12314_v15 = vpop.permute.xlu0 %12313  ;;  %v4242_v42 = vpop.f32.mrb[33].mxu0 }
 0x2d2   : > { %v6511_v35 = vsel %vm17358_vm6, %v6192_v7, %v6510_v56  ;;  %v12290_v3 = vunpack.i.l.bf16 %v12289_v1  ;;  %vm17359_vm14 = vcmask 261120   ;;  %v3789_v30 = vsel %vm3727_vm9, %v3724_v51, %v12276_v50  ;;  %v10824_v38 = vpop.f32.mrb[34].mxu0 }
 0x2d3   : > { %6593 = vst.msk [vmem:[#allocation3 + $0x81] sm:$0xff] %vm17359_vm14, %v6511_v35  ;;  %v12286_v40 = vunpack.i.h.bf16 %v12284_v62  ;;  %v12285_v52 = vunpack.i.l.bf16 %v12284_v62  ;;  %v12301_v24 = vunpack.i.h.bf16 %v12299_v32  ;;  %v3788_v63 = vsel %vm3727_vm9, %v3723_v22, %v12275_v55  ;;  %v6654_v62 = vld [vmem:[#allocation3 + $0x10] sm:$0xff] }
 0x2d4   : > { %vm17360_vm7 = vcmask 171008   ;;  %v12300_v23 = vunpack.i.l.bf16 %v12299_v32  ;;  %v12296_v57 = vunpack.i.h.bf16 %v12294_v2  ;;  %v12295_v4 = vunpack.i.l.bf16 %v12294_v2  ;;  %v12319_v14 = vpop.permute.xlu1 %12318  ;;  %v4245_v32 = vpop.f32.mrb[35].mxu0  ;;  %v6757_v22 = vld [vmem:[#allocation3 + $0x90] sm:$0xff] }
 0x2d5   : > { %v3856_v46 = vsel %vm17360_vm7, %v3791_v11, %v12291_v17  ;;  %vm17361_vm8 = vmmov %vm17360_vm7  ;;  %v12305_v41 = vunpack.i.l.bf16 %v15643_v58  ;;  %v12311_v27 = vunpack.i.h.bf16 %v12309_v36  ;;  %v12310_v34 = vunpack.i.l.bf16 %v12309_v36  ;;  %v6773_v2 = vld [vmem:[#allocation3 + $0x91] sm:$0xff]  ;;  %v15669_v11 = vpop.permute.xlu0 %12323  ;;  %v6718_v36 = vld [vmem:[#allocation3 + $0x21] sm:$0xff] }
 0x2d6   : > { %v3855_v25 = vsel %vm17361_vm8, %v3790_v61, %v12290_v3  ;;  %vm17362_vm5 = vmmov %vm17360_vm7  ;;  %v3921_v29 = vsel %vm3857_vm11, %v3856_v46, %v12301_v24  ;;  %vm7215_vm9 = vcmask 785408   ;;  %v4251_v12 = vadd.f32 %v15447_v31, %v10823_v20 }
 0x2d7   : > { %v3854_v19 = vsel %vm17362_vm5, %v3789_v30, %v12286_v40  ;;  %vm17363_vm10 = vmmov %vm17362_vm5  ;;  %v3920_v0 = vsel %vm3857_vm11, %v3855_v25, %v12300_v23  ;;  %v12306_v8 = vunpack.i.h.bf16 %v15643_v58  ;;  %v12321_v44 = vunpack.i.h.bf16 %v12319_v14 }
 0x2d8   : > { %v3853_v54 = vsel %vm17363_vm10, %v3788_v63, %v12285_v52  ;;  %v3919_v39 = vsel %vm3857_vm11, %v3854_v19, %v12296_v57  ;;  %v3953_v5 = vpack.c.bf16 %v3921_v29, %v3920_v0  ;;  %v12320_v13 = vunpack.i.l.bf16 %v12319_v14  ;;  %v15666_v56 = vpop.permute.xlu1 %12328 }
 0x2d9   : > { %v3918_v49 = vsel %vm3857_vm11, %v3853_v54, %v12295_v4  ;;  %v4243_v53 = vadd.f32 %v15447_v31, %v4242_v42  ;;  %vm17364_vm11 = vmmov %vm17359_vm14  ;;  %v4403_v9 = vmax.f32 %v4251_v12, 0.0  ;;  %v4254_v18 = vadd.f32 %v15447_v31, %v10824_v38  ;;  %v12334_v4 = vpop.permute.xlu0 %12333 }
 0x2da   : > { %v3952_v1 = vpack.c.bf16 %v3919_v39, %v3918_v49  ;;  %v6740_v59 = vld [vmem:[#allocation3 + $0x82] sm:$0xff]  ;;  %v7182_v28 = vsel %vm17364_vm11, %v6653_v33, %v12310_v34  ;;  %vm17365_vm13 = vmmov %vm17364_vm11  ;;  %v4246_v61 = vadd.f32 %v15447_v31, %v4245_v32  ;;  %v12316_v55 = vunpack.i.h.bf16 %v12314_v15 }
 0x2db   : > { %v6708_v26 = vld [vmem:[#allocation3 + $0x80] sm:$0xff]  ;;  %v7183_v45 = vsel %vm17365_vm13, %v6654_v62, %v12311_v27  ;;  %vm17366_vm0 = vmmov %vm17364_vm11  ;;  %v12392_v7 = vpack.i.bf16 %v6740_v59, %v15575_v47  ;;  %v4401_v51 = vmax.f32 %v4243_v53, 0.0  ;;  %v12315_v35 = vunpack.i.l.bf16 %v12314_v15 }
 0x2dc   : > { %10849 = vmatprep.mubr.msk.bf16.mxu0 %vm3976_vm12, %v3952_v1  ;;  %v7232_v60 = vsel %vm17366_vm0, %v6717_v10, %v12305_v41  ;;  %v12417_v6 = vpack.i.bf16 %v6708_v26, %v15566_v16  ;;  %v15664_v50 = vld [vmem:[#allocation3 + $0x81] sm:$0xff]  ;;  %v4404_v17 = vmax.f32 %v4254_v18, 0.0  ;;  %v15674_v16 = vsel %vm7198_vm15, %v7182_v28, %v12320_v13  ;;  %v15682_v57 = vpop.permute.xlu1 %12338  ;;  %vm17368_vm4 = vmmov %vm17366_vm0 }
 0x2dd   : > { %10850 = vmatmul.mubr.msk.bf16.gmra.mrb[60].mxu0 %vm3976_vm12, %v3953_v5  ;;  %12393 = vrot.lane.b32.xlu0 %v12392_v7, %s12906_s20  ;;  %v7200_v47 = vsel %vm7198_vm15, %v7183_v45, %v12321_v44  ;;  %v12331_v3 = vunpack.i.h.bf16 %v15666_v56  ;;  %v4449_v30 = vadd.f32 %v4403_v9, %v4401_v51  ;;  %v4402_v40 = vmax.f32 %v4246_v61, 0.0  ;;  %vm17367_vm12 = vmmov %vm17366_vm0  ;;  %v6720_v44 = vld [vmem:[#allocation3 + $0x41] sm:$0xff] }
 0x2de   : > { %12418 = vrot.lane.b32.xlu1 %v12417_v6, %s12908_s26  ;;  %v12402_v52 = vpack.i.bf16 %v6757_v22, %v6708_v26  ;;  %v12412_v24 = vpack.i.bf16 %v6773_v2, %v15664_v50  ;;  %v12326_v63 = vunpack.i.h.bf16 %v15669_v11  ;;  %v12325_v46 = vunpack.i.l.bf16 %v15669_v11  ;;  %vm17369_vm6 = vmmov %vm17366_vm0 }
 0x2df   : > { %v12330_v23 = vunpack.i.l.bf16 %v15666_v56  ;;  %v7233_v58 = vsel %vm17367_vm12, %v6718_v36, %v12306_v8  ;;  %v4769_v25 = vcombine.high %v4449_v30, %v4449_v30  ;;  %v4776_v19 = vrot.slane %v4449_v30, %v14423_v48  ;;  %v6719_v30 = vld [vmem:[#allocation3 + $0x31] sm:$0xff]  ;;  %vm17372_vm8 = vmmov %vm17366_vm0 }
 0x2e0   : > { %v4450_v29 = vadd.f32 %v4404_v17, %v4402_v40  ;;  %v7248_v54 = vsel %vm7198_vm15, %v7232_v60, %v12315_v35  ;;  %v12336_v0 = vunpack.i.h.bf16 %v12334_v4  ;;  %v12341_v39 = vunpack.i.h.bf16 %v15682_v57  ;;  %v12349_v11 = vpop.permute.xlu1 %12348  ;;  %vm17374_vm10 = vmmov %vm17366_vm0 }
 0x2e1   : > { %12403 = vrot.lane.b32.xlu0 %v12402_v52, %s12907_s27  ;;  %v7249_v41 = vsel %vm7198_vm15, %v7233_v58, %v12316_v55  ;;  %v15691_v5 = vsel %vm7215_vm9, %v7200_v47, %v12331_v3  ;;  %v4783_v49 = vrot.slane %v4769_v25, %v14423_v48  ;;  %v4784_v33 = vcombine.high %v4776_v19, %v4776_v19  ;;  %vm17376_vm13 = vmmov %vm17366_vm0 }
 0x2e2   : > { %v10187_v27 = vrot.slane %v4776_v19, 9  ;;  %v4786_v34 = vcombine.high %v4450_v29, %v4450_v29  ;;  %v4793_v14 = vrot.slane %v4450_v29, %v14423_v48  ;;  %v12335_v20 = vunpack.i.l.bf16 %v12334_v4  ;;  %v12344_v7 = vpop.permute.xlu0 %12343 }
 0x2e3   : > { %v12340_v1 = vunpack.i.l.bf16 %v15682_v57  ;;  %v7264_v15 = vsel %vm7215_vm9, %v7248_v54, %v12325_v46  ;;  %v4785_v12 = vcombine.high %v4783_v49, %v4783_v49  ;;  %v10188_v42 = vrot.slane %v4784_v33, 9 }
 0x2e4   : > { %v10189_v8 = vrot.slane %v4783_v49, 9  ;;  %v5617_v62 = vadd.f32 %v10187_v27, %v4776_v19  ;;  %v4800_v13 = vrot.slane %v4786_v34, %v14423_v48  ;;  %v4801_v10 = vcombine.high %v4793_v14, %v4793_v14 }
 0x2e5   : > { %v10191_v53 = vrot.slane %v4793_v14, 9  ;;  %12413 = vrot.lane.b32.xlu0 %v12412_v24, %s12908_s26  ;;  %v7235_v38 = vsel %vm17368_vm4, %v6720_v44, %v12336_v0  ;;  %v10190_v59 = vrot.slane %v4785_v12, 9  ;;  %v5618_v26 = vadd.f32 %v10188_v42, %v4784_v33 }
 0x2e6   : > { %v5619_v28 = vadd.f32 %v10189_v8, %v4783_v49  ;;  %v5745_v45 = vmul.f32 0.25, %v5617_v62  ;;  %v4802_v60 = vcombine.high %v4800_v13, %v4800_v13  ;;  %v10192_v9 = vrot.slane %v4801_v10, 9  ;;  %v6655_v62 = vld [vmem:[#allocation3 + $0x20] sm:$0xff] }
 0x2e7   : > { %v10193_v18 = vrot.slane %v4800_v13, 9  ;;  %v5621_v32 = vadd.f32 %v10191_v53, %v4793_v14  ;;  %v5620_v6 = vadd.f32 %v10190_v59, %v4785_v12  ;;  %v5746_v22 = vmul.f32 0.25, %v5618_v26  ;;  %v12359_v12 = vpop.permute.xlu1 %12358 }
 0x2e8   : > { %v5747_v2 = vmul.f32 0.25, %v5619_v28  ;;  %v6196_v56 = vrot.slane %v5745_v45, %v14429_v21  ;;  %v10194_v51 = vrot.slane %v4802_v60, 9  ;;  %v5622_v61 = vadd.f32 %v10192_v9, %v4801_v10 }
 0x2e9   : > { %v5623_v55 = vadd.f32 %v10193_v18, %v4800_v13  ;;  %v5749_v35 = vmul.f32 0.25, %v5621_v32  ;;  %v5748_v17 = vmul.f32 0.25, %v5620_v6  ;;  %v6200_v47 = vrot.slane %v5746_v22, %v14429_v21 }
 0x2ea   : > { %v6204_v3 = vrot.slane %v5747_v2, %v14429_v21  ;;  %v7265_v40 = vsel %vm7215_vm9, %v7249_v41, %v12326_v63  ;;  %v5624_v52 = vadd.f32 %v10194_v51, %v4802_v60  ;;  %v5750_v24 = vmul.f32 0.25, %v5622_v61  ;;  %v12354_v41 = vpop.permute.xlu0 %12353 }
 0x2eb   : > { %v5751_v36 = vmul.f32 0.25, %v5623_v55  ;;  %v7234_v46 = vsel %vm17369_vm6, %v6719_v30, %v12335_v20  ;;  %v6208_v58 = vrot.slane %v5748_v17, %v14429_v21  ;;  %v6512_v25 = vsel %vm6449_vm1, %v6200_v47, %v6196_v56  ;;  %v6677_v56 = vld [vmem:[#allocation3 + $0xa1] sm:$0xff] }
 0x2ec   : > { %v7281_v19 = vpack.c.bf16 %v7265_v40, %v7264_v15  ;;  %v7216_v29 = vsel %vm7215_vm9, %v15674_v16, %v12330_v23  ;;  %v6513_v4 = vsel %vm6451_vm2, %v6204_v3, %v6512_v25  ;;  %v5752_v54 = vmul.f32 0.25, %v5624_v52  ;;  %v6656_v16 = vld [vmem:[#allocation3 + $0x30] sm:$0xff]  ;;  %v15741_v3 = vld [vmem:[%s17220_s4] ss:$0 sm:$0xff] }
 0x2ed   : > { %v6212_v0 = vrot.slane %v5749_v35, %v14429_v21  ;;  %v6216_v63 = vrot.slane %v5750_v24, %v14429_v21  ;;  %v6514_v49 = vsel %vm6453_vm3, %v6208_v58, %v6513_v4  ;;  %v7280_v33 = vpack.c.bf16 %v15691_v5, %v7216_v29  ;;  %v6693_v24 = vld [vmem:[#allocation3 + $0xa2] sm:$0xff] }
 0x2ee   : > { %7511 = vmatprep.mubr.bf16.mxu1 %v7281_v19  ;;  %v12346_v27 = vunpack.i.h.bf16 %v12344_v7  ;;  %v12345_v34 = vunpack.i.l.bf16 %v12344_v7  ;;  %v6220_v14 = vrot.slane %v5751_v36, %v14429_v21  ;;  %vm17370_vm14 = vcmask 1044484  }
 0x2ef   : > { %v6515_v20 = vsel %vm17370_vm14, %v6212_v0, %v6514_v49  ;;  %v12351_v23 = vunpack.i.h.bf16 %v12349_v11  ;;  %v12350_v15 = vunpack.i.l.bf16 %v12349_v11  ;;  %v6224_v42 = vrot.slane %v5752_v54, %v14429_v21  ;;  %7512 = vmatmul.mubr.bf16.vlgmr.msra.gmra.mrb[0].mxu1 %v7280_v33  ;;  %vm17377_vm0 = vmmov %vm17370_vm14 }
 0x2f0   : > { %vm17371_vm7 = vcmask 1045509   ;;  %v7185_v44 = vsel %vm17372_vm8, %v6656_v16, %v12341_v39  ;;  %v12356_v5 = vunpack.i.h.bf16 %v12354_v41  ;;  %vm17373_vm5 = vcmask 1046534   ;;  %vm17381_vm14 = vmmov %vm17372_vm8 }
 0x2f1   : > { %v6516_v8 = vsel %vm17371_vm7, %v6216_v63, %v6515_v20  ;;  %v7184_v10 = vsel %vm17374_vm10, %v6655_v62, %v12340_v1  ;;  %v7250_v53 = vsel %vm7198_vm15, %v7234_v46, %v12345_v34  ;;  %v12355_v59 = vunpack.i.l.bf16 %v12354_v41  ;;  %vm17378_vm12 = vmmov %vm17371_vm7 }
 0x2f2   : > { %v6517_v13 = vsel %vm17373_vm5, %v6220_v14, %v6516_v8  ;;  %vm17375_vm11 = vcmask 1047559   ;;  %v7251_v28 = vsel %vm7198_vm15, %v7235_v38, %v12346_v27  ;;  %v12361_v45 = vunpack.i.h.bf16 %v12359_v12  ;;  %v10827_v38 = vpop.f32.mrb[36].mxu0  ;;  %vm17379_vm4 = vmmov %vm17373_vm5 }
 0x2f3   : > { %v6518_v26 = vsel %vm17375_vm11, %v6224_v42, %v6517_v13  ;;  %v12360_v60 = vunpack.i.l.bf16 %v12359_v12  ;;  %v7201_v39 = vsel %vm7198_vm15, %v7184_v10, %v12350_v15  ;;  %v7202_v9 = vsel %vm7198_vm15, %v7185_v44, %v12351_v23  ;;  %v4258_v2 = vpop.f32.mrb[37].mxu0  ;;  %vm17380_vm6 = vmmov %vm17375_vm11 }
 0x2f4   : > { %6594 = vst.msk [vmem:[#allocation3 + $0xb1] sm:$0xff] %vm17376_vm13, %v6518_v26  ;;  %v7266_v18 = vsel %vm7215_vm9, %v7250_v53, %v12355_v59  ;;  %v7267_v57 = vsel %vm7215_vm9, %v7251_v28, %v12356_v5  ;;  %v7219_v7 = vsel %vm7215_vm9, %v7202_v9, %v12361_v45  ;;  %v4267_v22 = vadd.f32 %v15447_v31, %v10827_v38  ;;  %v10828_v61 = vpop.f32.mrb[38].mxu0  ;;  %vm17382_vm7 = vmmov %vm17372_vm8 }
 0x2f5   : > { %v7284_v1 = vpack.c.bf16 %v7267_v57, %v7266_v18  ;;  %v7218_v32 = vsel %vm7215_vm9, %v7201_v39, %v12360_v60  ;;  %v4259_v51 = vadd.f32 %v15447_v31, %v4258_v2  ;;  %v4270_v11 = vadd.f32 %v15447_v31, %v10828_v61  ;;  %v4261_v17 = vpop.f32.mrb[39].mxu0  ;;  %vm17383_vm8 = vmmov %vm17382_vm7 }
 0x2f6   : > { %v7283_v6 = vpack.c.bf16 %v7219_v7, %v7218_v32  ;;  %v4407_v35 = vmax.f32 %v4267_v22, 0.0  ;;  %v4262_v30 = vadd.f32 %v15741_v3, %v4261_v17  ;;  %vm17384_vm5 = vmmov %vm17382_vm7 }
 0x2f7   : > { %7519 = vmatprep.mubr.bf16.mxu1 %v7284_v1  ;;  %v4405_v47 = vmax.f32 %v4259_v51, 0.0  ;;  %v4408_v52 = vmax.f32 %v4270_v11, 0.0  ;;  %vm17385_vm10 = vmmov %vm17384_vm5 }
 0x2f8   : > { %7520 = vmatmul.mubr.bf16.gmra.mrb[4].mxu1 %v7283_v6  ;;  %v4406_v58 = vmax.f32 %v4262_v30, 0.0  ;;  %v12369_v30 = vpop.permute.xlu1 %12368  ;;  %vm17386_vm11 = vmmov %vm17377_vm0 }
 0x2f9   : > { %v4451_v46 = vadd.f32 %v4407_v35, %v4405_v47  ;;  %vm17387_vm13 = vmmov %vm17378_vm12 }
 0x2fa   : > { %v4452_v19 = vadd.f32 %v4408_v52, %v4406_v58 }
 0x2fb   : > { %v6678_v55 = vld [vmem:[#allocation3 + $0xb1] sm:$0xff]  ;;  %v4803_v25 = vcombine.high %v4451_v46, %v4451_v46  ;;  %v4810_v31 = vrot.slane %v4451_v46, %v14423_v48 }
 0x2fc   : > { %v12427_v40 = vpack.i.bf16 %v6678_v55, %v6677_v56  ;;  %v15744_v36 = vld [vmem:[#allocation3 + $0xb2] sm:$0xff]  ;;  %v4820_v63 = vcombine.high %v4452_v19, %v4452_v19  ;;  %v4827_v41 = vrot.slane %v4452_v19, %v14423_v48  ;;  %v12379_v46 = vpop.permute.xlu1 %12378 }
 0x2fd   : > { %v12437_v29 = vpack.i.bf16 %v15744_v36, %v6693_v24  ;;  %v4817_v4 = vrot.slane %v4803_v25, %v14423_v48  ;;  %v4818_v54 = vcombine.high %v4810_v31, %v4810_v31  ;;  %v10195_v0 = vrot.slane %v4810_v31, 9  ;;  %v15773_v19 = vld [vmem:[#allocation3 + $0xb0] sm:$0xff] }
 0x2fe   : > { %12428 = vrot.lane.b32.xlu1 %v12427_v40, %s12906_s20  ;;  %v4834_v14 = vrot.slane %v4820_v63, %v14423_v48  ;;  %v4835_v20 = vcombine.high %v4827_v41, %v4827_v41  ;;  %v10199_v16 = vrot.slane %v4827_v41, 9 }
 0x2ff   : > { %v4819_v49 = vcombine.high %v4817_v4, %v4817_v4  ;;  %v10196_v33 = vrot.slane %v4818_v54, 9  ;;  %v10197_v27 = vrot.slane %v4817_v4, 9  ;;  %v5625_v34 = vadd.f32 %v10195_v0, %v4810_v31 }
 0x300   : > { %v4836_v8 = vcombine.high %v4834_v14, %v4834_v14  ;;  %v10200_v62 = vrot.slane %v4835_v20, 9  ;;  %v10201_v44 = vrot.slane %v4834_v14, 9  ;;  %v5629_v5 = vadd.f32 %v10199_v16, %v4827_v41 }
 0x301   : > { %v10198_v23 = vrot.slane %v4819_v49, 9  ;;  %v5626_v15 = vadd.f32 %v10196_v33, %v4818_v54  ;;  %v5627_v12 = vadd.f32 %v10197_v27, %v4817_v4  ;;  %v5753_v42 = vmul.f32 0.25, %v5625_v34 }
 0x302   : > { %12438 = vrot.lane.b32.xlu1 %v12437_v29, %s12907_s27  ;;  %v10202_v59 = vrot.slane %v4836_v8, 9  ;;  %v5630_v26 = vadd.f32 %v10200_v62, %v4835_v20  ;;  %v5631_v28 = vadd.f32 %v10201_v44, %v4834_v14  ;;  %v5757_v45 = vmul.f32 0.25, %v5629_v5 }
 0x303   : > { %v5628_v13 = vadd.f32 %v10198_v23, %v4819_v49  ;;  %v5754_v10 = vmul.f32 0.25, %v5626_v15  ;;  %v5755_v53 = vmul.f32 0.25, %v5627_v12  ;;  %v6228_v39 = vrot.slane %v5753_v42, %v14429_v21  ;;  %v6657_v15 = vld [vmem:[#allocation3 + $0x40] sm:$0xff]  ;;  %v6658_v42 = vld [vmem:[#allocation3 + $0x50] sm:$0xff] }
 0x304   : > { %v5632_v57 = vadd.f32 %v10202_v59, %v4836_v8  ;;  %v5758_v1 = vmul.f32 0.25, %v5630_v26  ;;  %v5759_v32 = vmul.f32 0.25, %v5631_v28  ;;  %v6244_v2 = vrot.slane %v5757_v45, %v14429_v21  ;;  %v12364_v8 = vpop.permute.xlu0 %12363 }
 0x305   : > { %v5756_v60 = vmul.f32 0.25, %v5628_v13  ;;  %v6232_v9 = vrot.slane %v5754_v10, %v14429_v21  ;;  %v6236_v18 = vrot.slane %v5755_v53, %v14429_v21  ;;  %v12370_v49 = vunpack.i.l.bf16 %v12369_v30 }
 0x306   : > { %v5760_v22 = vmul.f32 0.25, %v5632_v57  ;;  %v6248_v56 = vrot.slane %v5758_v1, %v14429_v21  ;;  %v6252_v61 = vrot.slane %v5759_v32, %v14429_v21  ;;  %v12371_v34 = vunpack.i.h.bf16 %v12369_v30  ;;  %v12389_v53 = vpop.permute.xlu1 %12388 }
 0x307   : > { %v6240_v7 = vrot.slane %v5756_v60, %v14429_v21  ;;  %v6519_v6 = vsel %vm6449_vm1, %v6232_v9, %v6228_v39  ;;  %v12380_v14 = vunpack.i.l.bf16 %v12379_v46  ;;  %v12381_v12 = vunpack.i.h.bf16 %v12379_v46 }
 0x308   : > { %v6520_v38 = vsel %vm6451_vm2, %v6236_v18, %v6519_v6  ;;  %v6256_v35 = vrot.slane %v5760_v22, %v14429_v21  ;;  %v7187_v13 = vsel %vm17383_vm8, %v6658_v42, %v12371_v34  ;;  %v12366_v39 = vunpack.i.h.bf16 %v12364_v8 }
 0x309   : > { %v6521_v51 = vsel %vm6453_vm3, %v6240_v7, %v6520_v38  ;;  %v7204_v60 = vsel %vm7198_vm15, %v7187_v13, %v12381_v12  ;;  %v12365_v9 = vunpack.i.l.bf16 %v12364_v8  ;;  %v12391_v6 = vunpack.i.h.bf16 %v12389_v53 }
 0x30a   : > { %v6522_v55 = vsel %vm17377_vm0, %v6244_v2, %v6521_v51  ;;  %vm17388_vm0 = vmmov %vm17379_vm4 }
 0x30b   : > { %v6523_v11 = vsel %vm17378_vm12, %v6248_v56, %v6522_v55  ;;  %vm17389_vm12 = vmmov %vm17380_vm6 }
 0x30c   : > { %v6524_v17 = vsel %vm17379_vm4, %v6252_v61, %v6523_v11  ;;  %vm17390_vm4 = vmmov %vm17384_vm5 }
 0x30d   : > { %v6525_v47 = vsel %vm17380_vm6, %v6256_v35, %v6524_v17  ;;  %vm17391_vm6 = vmmov %vm17386_vm11 }
 0x30e   : > { %6595 = vst.msk [vmem:[#allocation3 + $0xc1] sm:$0xff] %vm17381_vm14, %v6525_v47  ;;  %vm17392_vm14 = vmmov %vm17387_vm13 }
 0x30f   : > { %vm17394_vm8 = vmmov %vm17389_vm12 }
 0x310   : > { %v10831_v40 = vpop.f32.mrb[40].mxu0 }
 0x311   : > { %v4283_v52 = vadd.f32 %v15741_v3, %v10831_v40  ;;  %v4274_v24 = vpop.f32.mrb[41].mxu0  ;;  %v12390_v40 = vunpack.i.l.bf16 %v12389_v53  ;;  %v7221_v53 = vsel %vm7215_vm9, %v7204_v60, %v12391_v6 }
 0x312   : > { %v4275_v58 = vadd.f32 %v15741_v3, %v4274_v24  ;;  %v10832_v25 = vpop.f32.mrb[42].mxu0 }
 0x313   : > { %v4411_v4 = vmax.f32 %v4283_v52, 0.0  ;;  %v4286_v54 = vadd.f32 %v15741_v3, %v10832_v25  ;;  %v4277_v0 = vpop.f32.mrb[43].mxu0 }
 0x314   : > { %v4409_v33 = vmax.f32 %v4275_v58, 0.0  ;;  %v4278_v27 = vadd.f32 %v15741_v3, %v4277_v0 }
 0x315   : > { %v15771_v31 = vld [vmem:[#allocation3 + $0xc2] sm:$0xff]  ;;  %v4412_v20 = vmax.f32 %v4286_v54, 0.0 }
 0x316   : > { %v15775_v29 = vld [vmem:[#allocation3 + $0xc0] sm:$0xff]  ;;  %v12422_v63 = vpack.i.bf16 %v15771_v31, %v15744_v36  ;;  %v4453_v16 = vadd.f32 %v4411_v4, %v4409_v33  ;;  %v4410_v23 = vmax.f32 %v4278_v27, 0.0  ;;  %v7186_v36 = vsel %vm17382_vm7, %v6657_v15, %v12370_v49  ;;  %vm17393_vm7 = vmmov %vm17388_vm0 }
 0x317   : > { %v12447_v41 = vpack.i.bf16 %v15775_v29, %v15773_v19  ;;  %v7203_v10 = vsel %vm7198_vm15, %v7186_v36, %v12380_v14  ;;  %v7237_v33 = vsel %vm17384_vm5, %v15568_v37, %v12366_v39  ;;  %vm17395_vm5 = vmmov %vm17390_vm4 }
 0x318   : > { %12423 = vrot.lane.b32.xlu0 %v12422_v63, %s12906_s20  ;;  %v4837_v62 = vcombine.high %v4453_v16, %v4453_v16  ;;  %v4844_v44 = vrot.slane %v4453_v16, %v14423_v48  ;;  %v4454_v5 = vadd.f32 %v4412_v20, %v4410_v23  ;;  %v6721_v20 = vld [vmem:[#allocation3 + $0x51] sm:$0xff]  ;;  %v7220_v13 = vsel %vm7215_vm9, %v7203_v10, %v12390_v40 }
 0x319   : > { %12448 = vrot.lane.b32.xlu1 %v12447_v41, %s12908_s26  ;;  %v7236_v36 = vsel %vm17385_vm10, %v6721_v20, %v12365_v9  ;;  %v7286_v6 = vpack.c.bf16 %v7221_v53, %v7220_v13  ;;  %vm17396_vm10 = vmmov %vm17390_vm4 }
 0x31a   : > { %v4851_v59 = vrot.slane %v4837_v62, %v14423_v48  ;;  %v4852_v26 = vcombine.high %v4844_v44, %v4844_v44  ;;  %v10203_v28 = vrot.slane %v4844_v44, 9  ;;  %v4854_v45 = vcombine.high %v4454_v5, %v4454_v5 }
 0x31b   : > { %v4861_v18 = vrot.slane %v4454_v5, %v14423_v48 }
 0x31c   : > { %v4853_v57 = vcombine.high %v4851_v59, %v4851_v59  ;;  %v10204_v1 = vrot.slane %v4852_v26, 9  ;;  %v10205_v32 = vrot.slane %v4851_v59, 9  ;;  %v5633_v7 = vadd.f32 %v10203_v28, %v4844_v44 }
 0x31d   : > { %v4868_v38 = vrot.slane %v4854_v45, %v14423_v48  ;;  %v4869_v22 = vcombine.high %v4861_v18, %v4861_v18  ;;  %v10207_v2 = vrot.slane %v4861_v18, 9 }
 0x31e   : > { %v10206_v56 = vrot.slane %v4853_v57, 9  ;;  %v5634_v51 = vadd.f32 %v10204_v1, %v4852_v26  ;;  %v5635_v61 = vadd.f32 %v10205_v32, %v4851_v59  ;;  %v5761_v55 = vmul.f32 0.25, %v5633_v7 }
 0x31f   : > { %v4870_v11 = vcombine.high %v4868_v38, %v4868_v38  ;;  %v10208_v17 = vrot.slane %v4869_v22, 9  ;;  %v10209_v47 = vrot.slane %v4868_v38, 9  ;;  %v5637_v30 = vadd.f32 %v10207_v2, %v4861_v18 }
 0x320   : > { %v5636_v52 = vadd.f32 %v10206_v56, %v4853_v57  ;;  %v5762_v24 = vmul.f32 0.25, %v5634_v51  ;;  %v5763_v46 = vmul.f32 0.25, %v5635_v61  ;;  %v6260_v63 = vrot.slane %v5761_v55, %v14429_v21  ;;  %v15822_v55 = vld [vmem:[#allocation3 + $0xc1] sm:$0xff] }
 0x321   : > { %v10210_v58 = vrot.slane %v4870_v11, 9  ;;  %v5638_v25 = vadd.f32 %v10208_v17, %v4869_v22  ;;  %v5639_v4 = vadd.f32 %v10209_v47, %v4868_v38  ;;  %v5765_v54 = vmul.f32 0.25, %v5637_v30 }
 0x322   : > { %v5764_v0 = vmul.f32 0.25, %v5636_v52  ;;  %v6264_v41 = vrot.slane %v5762_v24, %v14429_v21  ;;  %v6268_v49 = vrot.slane %v5763_v46, %v14429_v21 }
 0x323   : > { %v5640_v27 = vadd.f32 %v10210_v58, %v4870_v11  ;;  %v5766_v34 = vmul.f32 0.25, %v5638_v25  ;;  %v5767_v14 = vmul.f32 0.25, %v5639_v4  ;;  %v6276_v44 = vrot.slane %v5765_v54, %v14429_v21 }
 0x324   : > { %v12374_v35 = vpop.permute.xlu0 %12373  ;;  %v6272_v16 = vrot.slane %v5764_v0, %v14429_v21  ;;  %v6526_v23 = vsel %vm6449_vm1, %v6264_v41, %v6260_v63 }
 0x325   : > { %v12376_v15 = vunpack.i.h.bf16 %v12374_v35  ;;  %v12375_v12 = vunpack.i.l.bf16 %v12374_v35  ;;  %v6527_v8 = vsel %vm6451_vm2, %v6268_v49, %v6526_v23  ;;  %v5768_v62 = vmul.f32 0.25, %v5640_v27  ;;  %v12399_v53 = vpop.permute.xlu1 %12398 }
 0x326   : > { %v6280_v37 = vrot.slane %v5766_v34, %v14429_v21  ;;  %v6528_v5 = vsel %vm6453_vm3, %v6272_v16, %v6527_v8  ;;  %v6284_v59 = vrot.slane %v5767_v14, %v14429_v21 }
 0x327   : > { %v6529_v26 = vsel %vm17386_vm11, %v6276_v44, %v6528_v5  ;;  %v6288_v39 = vrot.slane %v5768_v62, %v14429_v21  ;;  %v7252_v18 = vsel %vm7198_vm15, %v7236_v36, %v12375_v12  ;;  %v7253_v57 = vsel %vm7198_vm15, %v7237_v33, %v12376_v15  ;;  %vm17397_vm11 = vmmov %vm17390_vm4 }
 0x328   : > { %v12384_v42 = vpop.permute.xlu0 %12383  ;;  %v6530_v9 = vsel %vm17387_vm13, %v6280_v37, %v6529_v26  ;;  %vm17398_vm13 = vmmov %vm17390_vm4 }
 0x329   : > { %v12386_v28 = vunpack.i.h.bf16 %v12384_v42  ;;  %v12385_v45 = vunpack.i.l.bf16 %v12384_v42  ;;  %v6531_v1 = vsel %vm17388_vm0, %v6284_v59, %v6530_v9  ;;  %vm17399_vm0 = vmmov %vm17390_vm4 }
 0x32a   : > { %v6532_v32 = vsel %vm17389_vm12, %v6288_v39, %v6531_v1  ;;  %vm17400_vm12 = vmmov %vm17391_vm6 }
 0x32b   : > { %v7268_v10 = vsel %vm7215_vm9, %v7252_v18, %v12385_v45  ;;  %v7269_v60 = vsel %vm7215_vm9, %v7253_v57, %v12386_v28  ;;  %6596 = vst.msk [vmem:[#allocation3 + $0xd1] sm:$0xff] %vm17390_vm4, %v6532_v32  ;;  %vm17401_vm4 = vmmov %vm17392_vm14 }
 0x32c   : > { %v7287_v7 = vpack.c.bf16 %v7269_v60, %v7268_v10 }
 0x32e   : > { %7527 = vmatprep.mubr.bf16.mxu1 %v7287_v7 }
 0x32f   : > { %7528 = vmatmul.mubr.bf16.gmra.mrb[8].mxu1 %v7286_v6 }
 0x332   : > { %v10835_v38 = vpop.f32.mrb[44].mxu0  ;;  %v15820_v61 = vld [vmem:[#allocation3 + $0xd0] sm:$0xff] }
 0x333   : > { %v4299_v22 = vadd.f32 %v15741_v3, %v10835_v38  ;;  %v4290_v2 = vpop.f32.mrb[45].mxu0  ;;  %v15824_v35 = vld [vmem:[#allocation3 + $0xd1] sm:$0xff]  ;;  %v12432_v30 = vpack.i.bf16 %v15820_v61, %v15775_v29 }
 0x334   : > { %v4291_v56 = vadd.f32 %v15741_v3, %v4290_v2  ;;  %v10836_v51 = vpop.f32.mrb[46].mxu0  ;;  %v12457_v40 = vpack.i.bf16 %v15824_v35, %v15822_v55  ;;  %v15832_v46 = vld [vmem:[#allocation3 + $0xd2] sm:$0xff] }
 0x335   : > { %v4415_v11 = vmax.f32 %v4299_v22, 0.0  ;;  %v4302_v17 = vadd.f32 %v15741_v3, %v10836_v51  ;;  %v4293_v47 = vpop.f32.mrb[47].mxu0  ;;  %12433 = vrot.lane.b32.xlu0 %v12432_v30, %s12907_s27  ;;  %v12467_v54 = vpack.i.bf16 %v15832_v46, %v15771_v31 }
 0x336   : > { %v4413_v52 = vmax.f32 %v4291_v56, 0.0  ;;  %v4294_v24 = vadd.f32 %v15741_v3, %v4293_v47  ;;  %12458 = vrot.lane.b32.xlu1 %v12457_v40, %s12906_s20 }
 0x337   : > { %v4416_v58 = vmax.f32 %v4302_v17, 0.0 }
 0x338   : > { %v4455_v25 = vadd.f32 %v4415_v11, %v4413_v52  ;;  %v4414_v4 = vmax.f32 %v4294_v24, 0.0  ;;  %v12409_v11 = vpop.permute.xlu1 %12408 }
 0x339   : > { %12443 = vrot.lane.b32.xlu0 %v12457_v40, %s12908_s26 }
 0x33a   : > { %v4871_v0 = vcombine.high %v4455_v25, %v4455_v25  ;;  %v4878_v29 = vrot.slane %v4455_v25, %v14423_v48  ;;  %v4456_v63 = vadd.f32 %v4416_v58, %v4414_v4  ;;  %12468 = vrot.lane.b32.xlu1 %v12467_v54, %s12907_s27  ;;  %v12401_v4 = vunpack.i.h.bf16 %v12399_v53 }
 0x33b   : > { %v12400_v54 = vunpack.i.l.bf16 %v12399_v53 }
 0x33c   : > { %v4885_v41 = vrot.slane %v4871_v0, %v14423_v48  ;;  %v4886_v49 = vcombine.high %v4878_v29, %v4878_v29  ;;  %v10211_v33 = vrot.slane %v4878_v29, 9  ;;  %v4888_v27 = vcombine.high %v4456_v63, %v4456_v63 }
 0x33d   : > { %v4895_v34 = vrot.slane %v4456_v63, %v14423_v48  ;;  %v12411_v63 = vunpack.i.h.bf16 %v12409_v11 }
 0x33e   : > { %v4887_v14 = vcombine.high %v4885_v41, %v4885_v41  ;;  %v10212_v20 = vrot.slane %v4886_v49, 9  ;;  %v10213_v16 = vrot.slane %v4885_v41, 9  ;;  %v5641_v23 = vadd.f32 %v10211_v33, %v4878_v29 }
 0x33f   : > { %v4902_v31 = vrot.slane %v4888_v27, %v14423_v48  ;;  %v4903_v15 = vcombine.high %v4895_v34, %v4895_v34  ;;  %v10215_v12 = vrot.slane %v4895_v34, 9 }
 0x340   : > { %v10214_v42 = vrot.slane %v4887_v14, 9  ;;  %v5642_v36 = vadd.f32 %v10212_v20, %v4886_v49  ;;  %v5643_v8 = vadd.f32 %v10213_v16, %v4885_v41  ;;  %v5769_v62 = vmul.f32 0.25, %v5641_v23  ;;  %v12795_v23 = vld [vmem:[#allocation3 + $0x70] sm:$0xff] }
 0x341   : > { %v4904_v44 = vcombine.high %v4902_v31, %v4902_v31  ;;  %v10216_v37 = vrot.slane %v4903_v15, 9  ;;  %v10217_v5 = vrot.slane %v4902_v31, 9  ;;  %v5645_v13 = vadd.f32 %v10215_v12, %v4895_v34  ;;  %v6659_v34 = vld [vmem:[#allocation3 + $0x60] sm:$0xff] }
 0x342   : > { %v5644_v59 = vadd.f32 %v10214_v42, %v4887_v14  ;;  %v5770_v26 = vmul.f32 0.25, %v5642_v36  ;;  %v5771_v28 = vmul.f32 0.25, %v5643_v8  ;;  %v6292_v1 = vrot.slane %v5769_v62, %v14429_v21  ;;  %v6723_v8 = vld [vmem:[#allocation3 + $0x71] sm:$0xff] }
 0x343   : > { %v10218_v45 = vrot.slane %v4904_v44, 9  ;;  %v5646_v39 = vadd.f32 %v10216_v37, %v4903_v15  ;;  %v5647_v9 = vadd.f32 %v10217_v5, %v4902_v31  ;;  %v5773_v18 = vmul.f32 0.25, %v5645_v13 }
 0x344   : > { %v5772_v57 = vmul.f32 0.25, %v5644_v59  ;;  %v6296_v10 = vrot.slane %v5770_v26, %v14429_v21  ;;  %v6300_v60 = vrot.slane %v5771_v28, %v14429_v21  ;;  %v12410_v41 = vunpack.i.l.bf16 %v12409_v11 }
 0x345   : > { %v5648_v32 = vadd.f32 %v10218_v45, %v4904_v44  ;;  %v5774_v7 = vmul.f32 0.25, %v5646_v39  ;;  %v5775_v6 = vmul.f32 0.25, %v5647_v9  ;;  %v6308_v51 = vrot.slane %v5773_v18, %v14429_v21 }
 0x346   : > { %v6304_v38 = vrot.slane %v5772_v57, %v14429_v21  ;;  %v6533_v22 = vsel %vm6449_vm1, %v6296_v10, %v6292_v1  ;;  %v7189_v31 = vsel %vm17396_vm10, %v12795_v23, %v12401_v4  ;;  %v7188_v15 = vsel %vm17397_vm11, %v6659_v34, %v12400_v54 }
 0x347   : > { %v6534_v2 = vsel %vm6451_vm2, %v6300_v60, %v6533_v22  ;;  %v5776_v56 = vmul.f32 0.25, %v5648_v32  ;;  %v6312_v17 = vrot.slane %v5774_v7, %v14429_v21  ;;  %v6316_v30 = vrot.slane %v5775_v6, %v14429_v21 }
 0x348   : > { %v6535_v47 = vsel %vm6453_vm3, %v6304_v38, %v6534_v2  ;;  %v7205_v42 = vsel %vm7198_vm15, %v7188_v15, %v12410_v41  ;;  %v7206_v36 = vsel %vm7198_vm15, %v7189_v31, %v12411_v63 }
 0x349   : > { %v6536_v40 = vsel %vm17391_vm6, %v6308_v51, %v6535_v47  ;;  %v6320_v24 = vrot.slane %v5776_v56, %v14429_v21  ;;  %vm17402_vm6 = vmmov %vm17393_vm7 }
 0x34a   : > { %v6537_v58 = vsel %vm17392_vm14, %v6312_v17, %v6536_v40  ;;  %vm17403_vm14 = vmmov %vm17394_vm8 }
 0x34b   : > { %v6538_v25 = vsel %vm17393_vm7, %v6316_v30, %v6537_v58  ;;  %vm17404_vm7 = vmmov %vm17399_vm0 }
 0x34c   : > { %v6539_v0 = vsel %vm17394_vm8, %v6320_v24, %v6538_v25  ;;  %vm17405_vm8 = vmmov %vm17400_vm12 }
 0x34d   : > { %6597 = vst.msk [vmem:[#allocation3 + $0xe1] sm:$0xff] %vm17395_vm5, %v6539_v0  ;;  %vm17406_vm5 = vmmov %vm17401_vm4 }
 0x34e   : > { %vm17407_vm10 = vmmov %vm17402_vm6 }
 0x34f   : > { %v12394_v52 = vpop.permute.xlu0 %12393  ;;  %vm17408_vm11 = vmmov %vm17403_vm14 }
 0x350   : > { %v12419_v29 = vpop.permute.xlu1 %12418  ;;  %v12396_v33 = vunpack.i.h.bf16 %v12394_v52  ;;  %v12395_v27 = vunpack.i.l.bf16 %v12394_v52 }
 0x351   : > { %v12421_v14 = vunpack.i.h.bf16 %v12419_v29  ;;  %v12420_v12 = vunpack.i.l.bf16 %v12419_v29 }
 0x352   : > { %v7239_v44 = vsel %vm17398_vm13, %v15664_v50, %v12396_v33  ;;  %v7238_v37 = vsel %vm17399_vm0, %v6723_v8, %v12395_v27  ;;  %vm17409_vm13 = vmmov %vm17399_vm0 }
 0x353   : > { %v12404_v49 = vpop.permute.xlu0 %12403  ;;  %v10839_v53 = vpop.f32.mrb[48].mxu0  ;;  %v7223_v39 = vsel %vm7215_vm9, %v7206_v36, %v12421_v14  ;;  %v7222_v60 = vsel %vm7215_vm9, %v7205_v42, %v12420_v12  ;;  %vm17410_vm0 = vmmov %vm17405_vm8 }
 0x354   : > { %v12406_v20 = vunpack.i.h.bf16 %v12404_v49  ;;  %v12405_v16 = vunpack.i.l.bf16 %v12404_v49  ;;  %v4315_v28 = vadd.f32 %v15741_v3, %v10839_v53  ;;  %v4306_v45 = vpop.f32.mrb[49].mxu0  ;;  %v15872_v57 = vld [vmem:[#allocation3 + $0xe2] sm:$0xff]  ;;  %v7289_v17 = vpack.c.bf16 %v7223_v39, %v7222_v60 }
 0x355   : > { %v4307_v9 = vadd.f32 %v15741_v3, %v4306_v45  ;;  %v10840_v18 = vpop.f32.mrb[50].mxu0  ;;  %v15874_v50 = vld [vmem:[#allocation3 + $0xe0] sm:$0xff]  ;;  %v12452_v38 = vpack.i.bf16 %v15872_v57, %v15832_v46 }
 0x356   : > { %v7254_v59 = vsel %vm7198_vm15, %v7238_v37, %v12405_v16  ;;  %v7255_v26 = vsel %vm7198_vm15, %v7239_v44, %v12406_v20  ;;  %v4419_v32 = vmax.f32 %v4315_v28, 0.0  ;;  %v4318_v7 = vadd.f32 %v15741_v3, %v10840_v18  ;;  %v4309_v6 = vpop.f32.mrb[51].mxu0 }
 0x357   : > { %v12414_v62 = vpop.permute.xlu0 %12413  ;;  %v12477_v22 = vpack.i.bf16 %v15874_v50, %v15820_v61  ;;  %v4417_v2 = vmax.f32 %v4307_v9, 0.0  ;;  %v4310_v56 = vadd.f32 %v15741_v3, %v4309_v6  ;;  %12453 = vrot.lane.b32.xlu0 %v12452_v38, %s12906_s20 }
 0x358   : > { %v12416_v5 = vunpack.i.h.bf16 %v12414_v62  ;;  %v12415_v13 = vunpack.i.l.bf16 %v12414_v62  ;;  %v4420_v11 = vmax.f32 %v4318_v7, 0.0 }
 0x359   : > { %12478 = vrot.lane.b32.xlu1 %v12477_v22, %s12908_s26  ;;  %v4457_v47 = vadd.f32 %v4419_v32, %v4417_v2  ;;  %v4418_v30 = vmax.f32 %v4310_v56, 0.0 }
 0x35a   : > { %v7270_v1 = vsel %vm7215_vm9, %v7254_v59, %v12415_v13  ;;  %v7271_v10 = vsel %vm7215_vm9, %v7255_v26, %v12416_v5 }
 0x35b   : > { %v7290_v51 = vpack.c.bf16 %v7271_v10, %v7270_v1  ;;  %v4905_v40 = vcombine.high %v4457_v47, %v4457_v47  ;;  %v4912_v46 = vrot.slane %v4457_v47, %v14423_v48  ;;  %v4458_v52 = vadd.f32 %v4420_v11, %v4418_v30  ;;  %v15908_v30 = vld [vmem:[#allocation3 + $0xe1] sm:$0xff] }
 0x35d   : > { %7535 = vmatprep.mubr.bf16.mxu1 %v7290_v51  ;;  %v4919_v24 = vrot.slane %v4905_v40, %v14423_v48  ;;  %v4920_v58 = vcombine.high %v4912_v46, %v4912_v46  ;;  %v10219_v25 = vrot.slane %v4912_v46, 9  ;;  %v4922_v4 = vcombine.high %v4458_v52, %v4458_v52 }
 0x35e   : > { %7536 = vmatmul.mubr.bf16.gmra.mrb[12].mxu1 %v7289_v17  ;;  %v4929_v54 = vrot.slane %v4458_v52, %v14423_v48 }
 0x35f   : > { %v4921_v0 = vcombine.high %v4919_v24, %v4919_v24  ;;  %v10220_v29 = vrot.slane %v4920_v58, 9  ;;  %v10221_v63 = vrot.slane %v4919_v24, 9  ;;  %v5649_v41 = vadd.f32 %v10219_v25, %v4912_v46 }
 0x360   : > { %v4936_v49 = vrot.slane %v4922_v4, %v14423_v48  ;;  %v4937_v33 = vcombine.high %v4929_v54, %v4929_v54  ;;  %v10223_v27 = vrot.slane %v4929_v54, 9 }
 0x361   : > { %v10222_v34 = vrot.slane %v4921_v0, 9  ;;  %v5650_v14 = vadd.f32 %v10220_v29, %v4920_v58  ;;  %v5651_v20 = vadd.f32 %v10221_v63, %v4919_v24  ;;  %v5777_v16 = vmul.f32 0.25, %v5649_v41 }
 0x362   : > { %v4938_v23 = vcombine.high %v4936_v49, %v4936_v49  ;;  %v10224_v31 = vrot.slane %v4937_v33, 9  ;;  %v10225_v15 = vrot.slane %v4936_v49, 9  ;;  %v5653_v12 = vadd.f32 %v10223_v27, %v4929_v54 }
 0x363   : > { %v5652_v42 = vadd.f32 %v10222_v34, %v4921_v0  ;;  %v5778_v36 = vmul.f32 0.25, %v5650_v14  ;;  %v5779_v8 = vmul.f32 0.25, %v5651_v20  ;;  %v6324_v53 = vrot.slane %v5777_v16, %v14429_v21 }
 0x364   : > { %v10226_v62 = vrot.slane %v4938_v23, 9  ;;  %v5654_v44 = vadd.f32 %v10224_v31, %v4937_v33  ;;  %v5655_v37 = vadd.f32 %v10225_v15, %v4936_v49  ;;  %v5781_v5 = vmul.f32 0.25, %v5653_v12 }
 0x365   : > { %v5780_v13 = vmul.f32 0.25, %v5652_v42  ;;  %v6328_v59 = vrot.slane %v5778_v36, %v14429_v21  ;;  %v6332_v26 = vrot.slane %v5779_v8, %v14429_v21 }
 0x366   : > { %v5656_v28 = vadd.f32 %v10226_v62, %v4938_v23  ;;  %v5782_v45 = vmul.f32 0.25, %v5654_v44  ;;  %v5783_v39 = vmul.f32 0.25, %v5655_v37  ;;  %v6340_v60 = vrot.slane %v5781_v5, %v14429_v21 }
 0x367   : > { %v6336_v9 = vrot.slane %v5780_v13, %v14429_v21  ;;  %v6540_v18 = vsel %vm6449_vm1, %v6328_v59, %v6324_v53 }
 0x368   : > { %v6541_v1 = vsel %vm6451_vm2, %v6332_v26, %v6540_v18  ;;  %v5784_v10 = vmul.f32 0.25, %v5656_v28  ;;  %v6344_v32 = vrot.slane %v5782_v45, %v14429_v21  ;;  %v6348_v6 = vrot.slane %v5783_v39, %v14429_v21 }
 0x369   : > { %v6542_v7 = vsel %vm6453_vm3, %v6336_v9, %v6541_v1 }
 0x36a   : > { %v6543_v38 = vsel %vm17400_vm12, %v6340_v60, %v6542_v7  ;;  %v6352_v22 = vrot.slane %v5784_v10, %v14429_v21  ;;  %vm17411_vm12 = vmmov %vm17401_vm4 }
 0x36b   : > { %v6544_v2 = vsel %vm17401_vm4, %v6344_v32, %v6543_v38  ;;  %vm17412_vm4 = vmmov %vm17402_vm6 }
 0x36c   : > { %v6545_v56 = vsel %vm17402_vm6, %v6348_v6, %v6544_v2  ;;  %vm17413_vm6 = vmmov %vm17408_vm11 }
 0x36d   : > { %v6546_v51 = vsel %vm17403_vm14, %v6352_v22, %v6545_v56  ;;  %vm17414_vm14 = vmmov %vm17404_vm7 }
 0x36e   : > { %6598 = vst.msk [vmem:[#allocation3 + $0xf1] sm:$0xff] %vm17404_vm7, %v6546_v51 }
 0x375   : > { %v10843_v11 = vpop.f32.mrb[52].mxu0  ;;  %v15911_v52 = vld [vmem:[#allocation3 + $0xf0] sm:$0xff] }
 0x376   : > { %v4331_v17 = vadd.f32 %v15741_v3, %v10843_v11  ;;  %v4322_v47 = vpop.f32.mrb[53].mxu0  ;;  %v15913_v24 = vld [vmem:[#allocation3 + $0xf1] sm:$0xff]  ;;  %v12462_v0 = vpack.i.bf16 %v15911_v52, %v15874_v50 }
 0x377   : > { %v4323_v40 = vadd.f32 %v15741_v3, %v4322_v47  ;;  %v10844_v46 = vpop.f32.mrb[54].mxu0  ;;  %v15915_v58 = vld [vmem:[#allocation3 + $0xf2] sm:$0xff]  ;;  %v12487_v29 = vpack.i.bf16 %v15913_v24, %v15908_v30 }
 0x378   : > { %v4423_v25 = vmax.f32 %v4331_v17, 0.0  ;;  %v4334_v4 = vadd.f32 %v15741_v3, %v10844_v46  ;;  %v4325_v54 = vpop.f32.mrb[55].mxu0  ;;  %v7297_v49 = vpack.c.bf16 %v15915_v58, %v15872_v57  ;;  %12463 = vrot.lane.b32.xlu0 %v12462_v0, %s12907_s27  ;;  %v12497_v14 = vpack.i.bf16 %v15915_v58, %v15872_v57 }
 0x379   : > { %v4421_v63 = vmax.f32 %v4323_v40, 0.0  ;;  %v4326_v41 = vadd.f32 %v15741_v3, %v4325_v54  ;;  %12488 = vrot.lane.b32.xlu1 %v12487_v29, %s12906_s20  ;;  %v12909_v57 = vmov 0.0|0.0  }
 0x37a   : > { %v4424_v33 = vmax.f32 %v4334_v4, 0.0 }
 0x37b   : > { %v4459_v27 = vadd.f32 %v4423_v25, %v4421_v63  ;;  %v4422_v34 = vmax.f32 %v4326_v41, 0.0 }
 0x37c   : > { %12473 = vrot.lane.b32.xlu0 %v12487_v29, %s12908_s26 }
 0x37d   : > { %v4939_v20 = vcombine.high %v4459_v27, %v4459_v27  ;;  %v4946_v16 = vrot.slane %v4459_v27, %v14423_v48  ;;  %v4460_v23 = vadd.f32 %v4424_v33, %v4422_v34  ;;  %12498 = vrot.lane.b32.xlu1 %v12497_v14, %s12907_s27 }
 0x37f   : > { %v4953_v31 = vrot.slane %v4939_v20, %v14423_v48  ;;  %v4954_v15 = vcombine.high %v4946_v16, %v4946_v16  ;;  %v10227_v12 = vrot.slane %v4946_v16, 9  ;;  %v4956_v42 = vcombine.high %v4460_v23, %v4460_v23 }
 0x380   : > { %v4963_v36 = vrot.slane %v4460_v23, %v14423_v48 }
 0x381   : > { %v4955_v8 = vcombine.high %v4953_v31, %v4953_v31  ;;  %v10228_v62 = vrot.slane %v4954_v15, 9  ;;  %v10229_v44 = vrot.slane %v4953_v31, 9  ;;  %v5657_v37 = vadd.f32 %v10227_v12, %v4946_v16 }
 0x382   : > { %v4970_v5 = vrot.slane %v4956_v42, %v14423_v48  ;;  %v4971_v13 = vcombine.high %v4963_v36, %v4963_v36  ;;  %v10231_v53 = vrot.slane %v4963_v36, 9 }
 0x383   : > { %v10230_v59 = vrot.slane %v4955_v8, 9  ;;  %v5658_v26 = vadd.f32 %v10228_v62, %v4954_v15  ;;  %v5659_v28 = vadd.f32 %v10229_v44, %v4953_v31  ;;  %v5785_v45 = vmul.f32 0.25, %v5657_v37 }
 0x384   : > { %v4972_v39 = vcombine.high %v4970_v5, %v4970_v5  ;;  %v10232_v9 = vrot.slane %v4971_v13, 9  ;;  %v10233_v18 = vrot.slane %v4970_v5, 9  ;;  %v5661_v1 = vadd.f32 %v10231_v53, %v4963_v36 }
 0x385   : > { %v5660_v10 = vadd.f32 %v10230_v59, %v4955_v8  ;;  %v5786_v60 = vmul.f32 0.25, %v5658_v26  ;;  %v5787_v32 = vmul.f32 0.25, %v5659_v28  ;;  %v6356_v56 = vrot.slane %v5785_v45, %v14429_v21 }
 0x386   : > { %v10234_v7 = vrot.slane %v4972_v39, 9  ;;  %v5662_v6 = vadd.f32 %v10232_v9, %v4971_v13  ;;  %v5663_v38 = vadd.f32 %v10233_v18, %v4970_v5  ;;  %v5789_v22 = vmul.f32 0.25, %v5661_v1 }
 0x387   : > { %v5788_v2 = vmul.f32 0.25, %v5660_v10  ;;  %v6360_v51 = vrot.slane %v5786_v60, %v14429_v21  ;;  %v6364_v11 = vrot.slane %v5787_v32, %v14429_v21 }
 0x388   : > { %v5664_v17 = vadd.f32 %v10234_v7, %v4972_v39  ;;  %v5790_v47 = vmul.f32 0.25, %v5662_v6  ;;  %v5791_v40 = vmul.f32 0.25, %v5663_v38  ;;  %v6372_v0 = vrot.slane %v5789_v22, %v14429_v21 }
 0x389   : > { %v6368_v46 = vrot.slane %v5788_v2, %v14429_v21  ;;  %v6547_v25 = vsel %vm6449_vm1, %v6360_v51, %v6356_v56 }
 0x38a   : > { %v6548_v4 = vsel %vm6451_vm2, %v6364_v11, %v6547_v25  ;;  %v5792_v54 = vmul.f32 0.25, %v5664_v17  ;;  %v6376_v63 = vrot.slane %v5790_v47, %v14429_v21  ;;  %v6380_v34 = vrot.slane %v5791_v40, %v14429_v21 }
 0x38b   : > { %v6549_v41 = vsel %vm6453_vm3, %v6368_v46, %v6548_v4 }
 0x38c   : > { %v10847_v29 = vpop.f32.mrb[56].mxu0  ;;  %v6550_v14 = vsel %vm17405_vm8, %v6372_v0, %v6549_v41  ;;  %v6384_v16 = vrot.slane %v5792_v54, %v14429_v21  ;;  %vm17415_vm8 = vmmov %vm17404_vm7 }
 0x38d   : > { %v4347_v33 = vadd.f32 %v15741_v3, %v10847_v29  ;;  %v4338_v27 = vpop.f32.mrb[57].mxu0  ;;  %v6551_v23 = vsel %vm17406_vm5, %v6376_v63, %v6550_v14  ;;  %vm17416_vm5 = vmmov %vm17404_vm7 }
 0x38e   : > { %v4339_v20 = vadd.f32 %v15741_v3, %v4338_v27  ;;  %v10848_v31 = vpop.f32.mrb[58].mxu0  ;;  %v6552_v15 = vsel %vm17407_vm10, %v6380_v34, %v6551_v23  ;;  %v12429_v23 = vpop.permute.xlu1 %12428  ;;  %vm17417_vm10 = vmmov %vm17416_vm5 }
 0x38f   : > { %v4427_v12 = vmax.f32 %v4347_v33, 0.0  ;;  %v4341_v36 = vpop.f32.mrb[59].mxu0  ;;  %v6553_v8 = vsel %vm17408_vm11, %v6384_v16, %v6552_v15  ;;  %v4350_v62 = vadd.f32 %v15741_v3, %v10848_v31  ;;  %vm17418_vm11 = vmmov %vm17410_vm0 }
 0x390   : > { %v4425_v42 = vmax.f32 %v4339_v20, 0.0  ;;  %6599 = vst.msk [vmem:[#allocation3 + $0x101] sm:$0xff] %vm17409_vm13, %v6553_v8  ;;  %v4342_v37 = vadd.f32 %v15741_v3, %v4341_v36  ;;  %vm17421_vm13 = vmmov %vm17413_vm6 }
 0x391   : > { %v4428_v5 = vmax.f32 %v4350_v62, 0.0 }
 0x392   : > { %v4461_v44 = vadd.f32 %v4427_v12, %v4425_v42  ;;  %v4426_v59 = vmax.f32 %v4342_v37, 0.0 }
 0x394   : > { %v4973_v13 = vcombine.high %v4461_v44, %v4461_v44  ;;  %v4980_v53 = vrot.slane %v4461_v44, %v14423_v48  ;;  %v4462_v39 = vadd.f32 %v4428_v5, %v4426_v59 }
 0x396   : > { %v4987_v26 = vrot.slane %v4973_v13, %v14423_v48  ;;  %v4988_v28 = vcombine.high %v4980_v53, %v4980_v53  ;;  %v10235_v45 = vrot.slane %v4980_v53, 9  ;;  %v4990_v60 = vcombine.high %v4462_v39, %v4462_v39 }
 0x397   : > { %v4997_v32 = vrot.slane %v4462_v39, %v14423_v48  ;;  %v15958_v7 = vld [vmem:[#allocation3 + $0x102] sm:$0xff] }
 0x398   : > { %v4989_v9 = vcombine.high %v4987_v26, %v4987_v26  ;;  %v10236_v18 = vrot.slane %v4988_v28, 9  ;;  %v10237_v1 = vrot.slane %v4987_v26, 9  ;;  %v5665_v10 = vadd.f32 %v10235_v45, %v4980_v53  ;;  %v15963_v17 = vld [vmem:[#allocation3 + $0x100] sm:$0xff] }
 0x399   : > { %v5004_v2 = vrot.slane %v4990_v60, %v14423_v48  ;;  %v5005_v56 = vcombine.high %v4997_v32, %v4997_v32  ;;  %v10239_v51 = vrot.slane %v4997_v32, 9  ;;  %v12482_v11 = vpack.i.bf16 %v15958_v7, %v15915_v58 }
 0x39a   : > { %v10238_v3 = vrot.slane %v4989_v9, 9  ;;  %v5666_v6 = vadd.f32 %v10236_v18, %v4988_v28  ;;  %v5667_v38 = vadd.f32 %v10237_v1, %v4987_v26  ;;  %v5793_v22 = vmul.f32 0.25, %v5665_v10  ;;  %v12439_v28 = vpop.permute.xlu1 %12438  ;;  %v12424_v18 = vpop.permute.xlu0 %12423  ;;  %v6661_v10 = vld [vmem:[#allocation3 + $0xa0] sm:$0xff] }
 0x39b   : > { %v5006_v4 = vcombine.high %v5004_v2, %v5004_v2  ;;  %v10240_v54 = vrot.slane %v5005_v56, 9  ;;  %v10241_v0 = vrot.slane %v5004_v2, 9  ;;  %v5669_v29 = vadd.f32 %v10239_v51, %v4997_v32  ;;  %12483 = vrot.lane.b32.xlu0 %v12482_v11, %s12906_s20 }
 0x39c   : > { %v5668_v47 = vadd.f32 %v10238_v3, %v4989_v9  ;;  %v5794_v40 = vmul.f32 0.25, %v5666_v6  ;;  %v5795_v46 = vmul.f32 0.25, %v5667_v38  ;;  %v6388_v25 = vrot.slane %v5793_v22, %v14429_v21 }
 0x39d   : > { %v12507_v27 = vpack.i.bf16 %v15963_v17, %v15911_v52  ;;  %v10242_v34 = vrot.slane %v5006_v4, 9  ;;  %v5670_v14 = vadd.f32 %v10240_v54, %v5005_v56  ;;  %v5671_v20 = vadd.f32 %v10241_v0, %v5004_v2 }
 0x39e   : > { %v5796_v63 = vmul.f32 0.25, %v5668_v47  ;;  %v6392_v41 = vrot.slane %v5794_v40, %v14429_v21  ;;  %v6396_v33 = vrot.slane %v5795_v46, %v14429_v21  ;;  %v5797_v16 = vmul.f32 0.25, %v5669_v29  ;;  %v12449_v1 = vpop.permute.xlu1 %12448  ;;  %v12796_v47 = vld [vmem:[%s17220_s4] ss:$0 sm:$0xff] }
 0x39f   : > { %12508 = vrot.lane.b32.xlu1 %v12507_v27, %s12908_s26  ;;  %v5672_v42 = vadd.f32 %v10242_v34, %v5006_v4  ;;  %v5798_v36 = vmul.f32 0.25, %v5670_v14  ;;  %v5799_v8 = vmul.f32 0.25, %v5671_v20  ;;  %v12430_v9 = vunpack.i.l.bf16 %v12429_v23 }
 0x3a0   : > { %v6400_v31 = vrot.slane %v5796_v63, %v14429_v21  ;;  %v6554_v15 = vsel %vm6449_vm1, %v6392_v41, %v6388_v25  ;;  %v6404_v62 = vrot.slane %v5797_v16, %v14429_v21  ;;  %v12431_v60 = vunpack.i.h.bf16 %v12429_v23  ;;  %v15994_v63 = vld [vmem:[#allocation3 + $0x101] sm:$0xff]  ;;  %v12797_v23 = vld [vmem:[#allocation3 + $0xb1] sm:$0xff] }
 0x3a1   : > { %v6555_v12 = vsel %vm6451_vm2, %v6396_v33, %v6554_v15  ;;  %v5800_v37 = vmul.f32 0.25, %v5672_v42  ;;  %v6408_v5 = vrot.slane %v5798_v36, %v14429_v21  ;;  %v6412_v13 = vrot.slane %v5799_v8, %v14429_v21 }
 0x3a2   : > { %v6556_v44 = vsel %vm6453_vm3, %v6400_v31, %v6555_v12  ;;  %v12440_v32 = vunpack.i.l.bf16 %v12439_v28  ;;  %v12441_v3 = vunpack.i.h.bf16 %v12439_v28  ;;  %v12426_v6 = vunpack.i.h.bf16 %v12424_v18 }
 0x3a3   : > { %v6557_v53 = vsel %vm17410_vm0, %v6404_v62, %v6556_v44  ;;  %v6416_v59 = vrot.slane %v5800_v37, %v14429_v21  ;;  %v12425_v38 = vunpack.i.l.bf16 %v12424_v18  ;;  %v12450_v22 = vunpack.i.l.bf16 %v12449_v1  ;;  %vm17422_vm0 = vmmov %vm17416_vm5 }
 0x3a4   : > { %v6558_v26 = vsel %vm17411_vm12, %v6408_v5, %v6557_v53  ;;  %v7190_v56 = vsel %vm17404_vm7, %v6661_v10, %v12430_v9  ;;  %v12451_v51 = vunpack.i.h.bf16 %v12449_v1  ;;  %v7191_v46 = vsel %vm17415_vm8, %v15773_v19, %v12431_v60  ;;  %vm17428_vm7 = vmmov %vm17422_vm0 }
 0x3a5   : > { %v6559_v45 = vsel %vm17412_vm4, %v6412_v13, %v6558_v26  ;;  %v7207_v25 = vsel %vm7198_vm15, %v7190_v56, %v12440_v32  ;;  %v7208_v20 = vsel %vm7198_vm15, %v7191_v46, %v12441_v3  ;;  %v7241_v16 = vsel %vm17416_vm5, %v15822_v55, %v12426_v6  ;;  %vm17429_vm8 = vmmov %vm17422_vm0 }
 0x3a6   : > { %v6560_v39 = vsel %vm17413_vm6, %v6416_v59, %v6559_v45  ;;  %v7240_v31 = vsel %vm17417_vm10, %v12797_v23, %v12425_v38  ;;  %v7224_v12 = vsel %vm7215_vm9, %v7207_v25, %v12450_v22  ;;  %v7225_v37 = vsel %vm7215_vm9, %v7208_v20, %v12451_v51  ;;  %v12640_v59 = vld [vmem:[%s17276_s5 + $0x80] sm:$0xff]   ;;  %vm17426_vm6 = vmmov %vm17422_vm0 }
 0x3a7   : > { %6600 = vst.msk [vmem:[#allocation3 + $0x111] sm:$0xff] %vm17414_vm14, %v6560_v39  ;;  %v12434_v11 = vpop.permute.xlu0 %12433  ;;  %10853 = vmatprep.subr.bf16.mxu1 %v12640_v59  ;;  %v7292_v6 = vpack.c.bf16 %v7225_v37, %v7224_v12  ;;  %vm17427_vm14 = vmmov %vm17422_vm0 }
 0x3a8   : > { %v12436_v4 = vunpack.i.h.bf16 %v12434_v11  ;;  %v12435_v54 = vunpack.i.l.bf16 %v12434_v11  ;;  %10854 = vmatpush3.bf16.msra.mxu1 %v12640_v59  ;;  %vm17430_vm5 = vmmov %vm17422_vm0 }
 0x3a9   : > { %vm17431_vm10 = vmmov %vm17422_vm0 }
 0x3aa   : > { %v7256_v55 = vsel %vm7198_vm15, %v7240_v31, %v12435_v54  ;;  %v7257_v5 = vsel %vm7198_vm15, %v7241_v16, %v12436_v4 }
 0x3ab   : > { %v12444_v36 = vpop.permute.xlu0 %12443 }
 0x3ac   : > { %v12446_v13 = vunpack.i.h.bf16 %v12444_v36  ;;  %v12445_v53 = vunpack.i.l.bf16 %v12444_v36 }
 0x3ae   : > { %v15992_v29 = vld [vmem:[#allocation3 + $0x110] sm:$0xff]  ;;  %v7272_v9 = vsel %vm7215_vm9, %v7256_v55, %v12445_v53  ;;  %v7273_v18 = vsel %vm7215_vm9, %v7257_v5, %v12446_v13 }
 0x3af   : > { %v15996_v41 = vld [vmem:[#allocation3 + $0x111] sm:$0xff]  ;;  %v12492_v14 = vpack.i.bf16 %v15992_v29, %v15963_v17  ;;  %v7293_v3 = vpack.c.bf16 %v7273_v18, %v7272_v9 }
 0x3b0   : > { %v10851_v2 = vpop.f32.mrb[60].mxu0  ;;  %v12517_v19 = vpack.i.bf16 %v15996_v41, %v15994_v63  ;;  %v16007_v42 = vld [vmem:[#allocation3 + $0x112] sm:$0xff] }
 0x3b1   : > { %v4363_v40 = vadd.f32 %v12796_v47, %v10851_v2  ;;  %v4354_v0 = vpop.f32.mrb[61].mxu0  ;;  %12493 = vrot.lane.b32.xlu0 %v12492_v14, %s12907_s27  ;;  %v7300_v39 = vpack.c.bf16 %v16007_v42, %v15958_v7  ;;  %v12527_v1 = vpack.i.bf16 %v16007_v42, %v15958_v7  ;;  %7543 = vmatprep.mubr.bf16.mxu1 %v7293_v3 }
 0x3b2   : > { %v4355_v27 = vadd.f32 %v12796_v47, %v4354_v0  ;;  %v10852_v34 = vpop.f32.mrb[62].mxu0  ;;  %12518 = vrot.lane.b32.xlu1 %v12517_v19, %s12906_s20  ;;  %7544 = vmatmul.mubr.bf16.gmra.mrb[16].mxu1 %v7292_v6 }
 0x3b3   : > { %v4431_v33 = vmax.f32 %v4363_v40, 0.0  ;;  %v4357_v15 = vpop.f32.mrb[63].mxu0  ;;  %v4366_v62 = vadd.f32 %v12796_v47, %v10852_v34 }
 0x3b4   : > { %v4429_v8 = vmax.f32 %v4355_v27, 0.0  ;;  %v4358_v44 = vadd.f32 %v12796_v47, %v4357_v15 }
 0x3b5   : > { %v4432_v28 = vmax.f32 %v4366_v62, 0.0  ;;  %12503 = vrot.lane.b32.xlu0 %v12517_v19, %s12908_s26 }
 0x3b6   : > { %v4463_v26 = vadd.f32 %v4431_v33, %v4429_v8  ;;  %v4430_v45 = vmax.f32 %v4358_v44, 0.0  ;;  %12528 = vrot.lane.b32.xlu1 %v12527_v1, %s12907_s27 }
 0x3b8   : > { %v5007_v10 = vcombine.high %v4463_v26, %v4463_v26  ;;  %v5014_v60 = vrot.slane %v4463_v26, %v14423_v48  ;;  %v4464_v32 = vadd.f32 %v4432_v28, %v4430_v45 }
 0x3ba   : > { %v5021_v38 = vrot.slane %v5007_v10, %v14423_v48  ;;  %v5022_v22 = vcombine.high %v5014_v60, %v5014_v60  ;;  %v10243_v2 = vrot.slane %v5014_v60, 9  ;;  %v5024_v56 = vcombine.high %v4464_v32, %v4464_v32 }
 0x3bb   : > { %v5031_v51 = vrot.slane %v4464_v32, %v14423_v48 }
 0x3bc   : > { %v5023_v11 = vcombine.high %v5021_v38, %v5021_v38  ;;  %v10244_v47 = vrot.slane %v5022_v22, 9  ;;  %v10245_v40 = vrot.slane %v5021_v38, 9  ;;  %v5673_v46 = vadd.f32 %v10243_v2, %v5014_v60 }
 0x3bd   : > { %v5038_v25 = vrot.slane %v5024_v56, %v14423_v48  ;;  %v5039_v4 = vcombine.high %v5031_v51, %v5031_v51  ;;  %v10247_v54 = vrot.slane %v5031_v51, 9 }
 0x3be   : > { %v10246_v0 = vrot.slane %v5023_v11, 9  ;;  %v5674_v33 = vadd.f32 %v10244_v47, %v5022_v22  ;;  %v5675_v27 = vadd.f32 %v10245_v40, %v5021_v38  ;;  %v5801_v34 = vmul.f32 0.25, %v5673_v46 }
 0x3bf   : > { %v5040_v14 = vcombine.high %v5038_v25, %v5038_v25  ;;  %v10248_v19 = vrot.slane %v5039_v4, 9  ;;  %v10249_v20 = vrot.slane %v5038_v25, 9  ;;  %v5677_v16 = vadd.f32 %v10247_v54, %v5031_v51  ;;  %v12641_v54 = vld [vmem:[%s17276_s5 + $0x88] sm:$0xff]  }
 0x3c0   : > { %v5676_v23 = vadd.f32 %v10246_v0, %v5023_v11  ;;  %v5802_v31 = vmul.f32 0.25, %v5674_v33  ;;  %v5803_v15 = vmul.f32 0.25, %v5675_v27  ;;  %v6420_v48 = vrot.slane %v5801_v34, %v14429_v21  ;;  %10855 = vmatprep.subr.bf16.mxu1 %v12641_v54 }
 0x3c1   : > { %v10250_v12 = vrot.slane %v5040_v14, 9  ;;  %v5678_v36 = vadd.f32 %v10248_v19, %v5039_v4  ;;  %v5679_v8 = vadd.f32 %v10249_v20, %v5038_v25  ;;  %v5805_v62 = vmul.f32 0.25, %v5677_v16  ;;  %10856 = vmatpush3.bf16.msra.mxu1 %v12641_v54  ;;  %v6765_v20 = vld [vmem:[#allocation3 + $0x130] sm:$0xff] }
 0x3c2   : > { %v5804_v44 = vmul.f32 0.25, %v5676_v23  ;;  %v6424_v37 = vrot.slane %v5802_v31, %v14429_v21  ;;  %v6428_v55 = vrot.slane %v5803_v15, %v14429_v21  ;;  %v10453_v28 = vpop.f32.mrb[0].mxu1  ;;  %v6781_v31 = vld [vmem:[#allocation3 + $0x131] sm:$0xff]  ;;  %10944 = vmatprep.subr.bf16.mxu1 %v12909_v57 }
 0x3c3   : > { %v5680_v5 = vadd.f32 %v10250_v12, %v5040_v14  ;;  %v5806_v13 = vmul.f32 0.25, %v5678_v36  ;;  %v5807_v53 = vmul.f32 0.25, %v5679_v8  ;;  %v6436_v18 = vrot.slane %v5805_v62, %v14429_v21  ;;  %v10454_v1 = vpop.f32.mrb[1].mxu1  ;;  %v12459_v12 = vpop.permute.xlu1 %12458 }
 0x3c4   : > { %v6432_v59 = vrot.slane %v5804_v44, %v14429_v21  ;;  %v6561_v26 = vsel %vm6449_vm1, %v6424_v37, %v6420_v48  ;;  %v16038_v32 = vadd.f32 %v10454_v1, %v10453_v28  ;;  %v10456_v3 = vpop.f32.mrb[2].mxu1  ;;  %vm17419_vm1 = vmmov %vm17411_vm12  ;;  %v12461_v62 = vunpack.i.h.bf16 %v12459_v12 }
 0x3c5   : > { %v6562_v45 = vsel %vm6451_vm2, %v6428_v55, %v6561_v26  ;;  %v5808_v9 = vmul.f32 0.25, %v5680_v5  ;;  %v6440_v10 = vrot.slane %v5806_v13, %v14429_v21  ;;  %v6444_v6 = vrot.slane %v5807_v53, %v14429_v21  ;;  %v10457_v22 = vpop.f32.mrb[3].mxu1  ;;  %vm17420_vm2 = vmmov %vm17412_vm4 }
 0x3c6   : > { %v6563_v60 = vsel %vm6453_vm3, %v6432_v59, %v6562_v45  ;;  %v16044_v51 = vadd.f32 %v10457_v22, %v10456_v3  ;;  %v12460_v44 = vunpack.i.l.bf16 %v12459_v12  ;;  %vm17423_vm3 = vmmov %vm17422_vm0 }
 0x3c7   : > { %v6564_v38 = vsel %vm17418_vm11, %v6436_v18, %v6563_v60  ;;  %v6448_v2 = vrot.slane %v5808_v9, %v14429_v21  ;;  %v12469_v36 = vpop.permute.xlu1 %12468  ;;  %v7193_v9 = vsel %vm17423_vm3, %v15820_v61, %v12461_v62  ;;  %v12798_v18 = vld [vmem:[#allocation3 + $0xc0] sm:$0xff]  ;;  %vm17424_vm12 = vmmov %vm17422_vm0 }
 0x3c8   : > { %v6565_v56 = vsel %vm17419_vm1, %v6440_v10, %v6564_v38  ;;  %v12471_v37 = vunpack.i.h.bf16 %v12469_v36  ;;  %v12470_v55 = vunpack.i.l.bf16 %v12469_v36  ;;  %v7192_v1 = vsel %vm17424_vm12, %v12798_v18, %v12460_v44  ;;  %vm17425_vm4 = vmmov %vm17422_vm0 }
 0x3c9   : > { %v6566_v11 = vsel %vm17420_vm2, %v6444_v6, %v6565_v56  ;;  %v12454_v8 = vpop.permute.xlu0 %12453  ;;  %vm17432_vm11 = vmmov %vm17422_vm0 }
 0x3ca   : > { %v6567_v47 = vsel %vm17421_vm13, %v6448_v2, %v6566_v11  ;;  %v12456_v13 = vunpack.i.h.bf16 %v12454_v8  ;;  %v12455_v53 = vunpack.i.l.bf16 %v12454_v8  ;;  %v7209_v10 = vsel %vm7198_vm15, %v7192_v1, %v12470_v55  ;;  %vm17433_vm1 = vmmov %vm17422_vm0 }
 0x3cb   : > { %6601 = vst.msk [vmem:[#allocation3 + $0x121] sm:$0xff] %vm17422_vm0, %v6567_v47  ;;  %v10459_v40 = vpop.f32.mrb[4].mxu1  ;;  %v12479_v48 = vpop.permute.xlu1 %12478  ;;  %v7210_v60 = vsel %vm7198_vm15, %v7193_v9, %v12471_v37  ;;  %vm17434_vm2 = vmmov %vm17422_vm0 }
 0x3cc   : > { %v10460_v46 = vpop.f32.mrb[5].mxu1  ;;  %v12481_v59 = vunpack.i.h.bf16 %v12479_v48  ;;  %v12480_v26 = vunpack.i.l.bf16 %v12479_v48  ;;  %v7243_v6 = vsel %vm17425_vm4, %v15908_v30, %v12456_v13  ;;  %v7242_v38 = vsel %vm17426_vm6, %v15824_v35, %v12455_v53  ;;  %vm17435_vm13 = vmmov %vm17422_vm0 }
 0x3cd   : > { %v16049_v25 = vadd.f32 %v10460_v46, %v10459_v40  ;;  %v10462_v4 = vpop.f32.mrb[6].mxu1  ;;  %vm17436_vm3 = vmmov %vm17422_vm0 }
 0x3ce   : > { %v10463_v0 = vpop.f32.mrb[7].mxu1  ;;  %v7226_v11 = vsel %vm7215_vm9, %v7209_v10, %v12480_v26  ;;  %v7227_v47 = vsel %vm7215_vm9, %v7210_v60, %v12481_v59  ;;  %vm17438_vm12 = vmmov %vm17422_vm0 }
 0x3cf   : > { %v16054_v33 = vadd.f32 %v10463_v0, %v10462_v4  ;;  %v7295_v54 = vpack.c.bf16 %v7227_v47, %v7226_v11  ;;  %vm17439_vm4 = vmmov %vm17422_vm0 }
 0x3d0   : > { %vm17440_vm6 = vmmov %vm17422_vm0 }
 0x3d2   : > { %v16056_v27 = vld [vmem:[#allocation3 + $0x122] sm:$0xff] }
 0x3d3   : > { %v6716_v34 = vld [vmem:[#allocation3 + $0x120] sm:$0xff]  ;;  %v12512_v14 = vpack.i.bf16 %v16056_v27, %v16007_v42 }
 0x3d4   : > { %v12537_v19 = vpack.i.bf16 %v6716_v34, %v15992_v29  ;;  %v12522_v16 = vpack.i.bf16 %v6765_v20, %v6716_v34  ;;  %v16063_v23 = vld [vmem:[#allocation3 + $0x121] sm:$0xff] }
 0x3d5   : > { %12513 = vrot.lane.b32.xlu0 %v12512_v14, %s12906_s20  ;;  %v12532_v15 = vpack.i.bf16 %v6781_v31, %v16063_v23  ;;  %s16284_s20 = scalar_lea.vmem [#allocation6], %s10080_s25  ;;  %s10401_s25 = sshll.u32 %s13233_s30, 6 }
 0x3d6   : > { %12538 = vrot.lane.b32.xlu1 %v12537_v19, %s12908_s26  ;;  %s16805_s0 = scalar_lea.vmem %s17158_s14, %s10401_s25 }
 0x3d9   : > { %12523 = vrot.lane.b32.xlu0 %v12522_v16, %s12907_s27 }
 0x3dd   : > { %12533 = vrot.lane.b32.xlu0 %v12532_v15, %s12908_s26  ;;  %s17193_s26 = scalar_lea.vmem [#allocation8], %s16260_s3 }
 0x3ea   : > { %v12464_v5 = vpop.permute.xlu0 %12463 }
 0x3eb   : > { %v12466_v28 = vunpack.i.h.bf16 %v12464_v5  ;;  %v12465_v45 = vunpack.i.l.bf16 %v12464_v5  ;;  %v12489_v20 = vpop.permute.xlu1 %12488 }
 0x3ec   : > { %v12491_v15 = vunpack.i.h.bf16 %v12489_v20  ;;  %v12490_v12 = vunpack.i.l.bf16 %v12489_v20 }
 0x3ed   : > { %v7258_v56 = vsel %vm7198_vm15, %v7242_v38, %v12465_v45  ;;  %v7259_v61 = vsel %vm7198_vm15, %v7243_v6, %v12466_v28 }
 0x3ee   : > { %v12474_v3 = vpop.permute.xlu0 %12473  ;;  %v7195_v59 = vsel %vm17427_vm14, %v15911_v52, %v12491_v15  ;;  %v7194_v26 = vsel %vm17428_vm7, %v15874_v50, %v12490_v12  ;;  %vm17441_vm14 = vmmov %vm17422_vm0  ;;  %vm12910_vm7 = vmmov 0  }
 0x3ef   : > { %v12476_v22 = vunpack.i.h.bf16 %v12474_v3  ;;  %v12475_v2 = vunpack.i.l.bf16 %v12474_v3  ;;  %v12499_v16 = vpop.permute.xlu1 %12498 }
 0x3f0   : > { %v12501_v8 = vunpack.i.h.bf16 %v12499_v16  ;;  %v12500_v62 = vunpack.i.l.bf16 %v12499_v16 }
 0x3f1   : > { %v7274_v40 = vsel %vm7215_vm9, %v7258_v56, %v12475_v2  ;;  %v7275_v46 = vsel %vm7215_vm9, %v7259_v61, %v12476_v22 }
 0x3f2   : > { %v7296_v4 = vpack.c.bf16 %v7275_v46, %v7274_v40  ;;  %v7211_v28 = vsel %vm7198_vm15, %v7194_v26, %v12500_v62  ;;  %v7212_v45 = vsel %vm7198_vm15, %v7195_v59, %v12501_v8 }
 0x3f4   : > { %7551 = vmatprep.mubr.bf16.mxu1 %v7296_v4 }
 0x3f5   : > { %7552 = vmatmul.mubr.bf16.gmra.mrb[20].mxu1 %v7295_v54 }
 0x402   : > { %v10465_v30 = vpop.f32.mrb[8].mxu1 }
 0x403   : > { %v10466_v35 = vpop.f32.mrb[9].mxu1 }
 0x404   : > { %v16083_v0 = vadd.f32 %v10466_v35, %v10465_v30  ;;  %v10468_v34 = vpop.f32.mrb[10].mxu1 }
 0x405   : > { %v10469_v14 = vpop.f32.mrb[11].mxu1 }
 0x406   : > { %v16085_v19 = vadd.f32 %v10469_v14, %v10468_v34 }
 0x40d   : > { %v12484_v31 = vpop.permute.xlu0 %12483 }
 0x40e   : > { %v12486_v48 = vunpack.i.h.bf16 %v12484_v31  ;;  %v12485_v37 = vunpack.i.l.bf16 %v12484_v31 }
 0x410   : > { %v7245_v18 = vsel %vm17429_vm8, %v15994_v63, %v12486_v48  ;;  %v7244_v1 = vsel %vm17430_vm5, %v15913_v24, %v12485_v37  ;;  %vm7783_vm8 = vcmask 517120   ;;  %vm7763_vm5 = vcmask 516096  }
 0x411   : > { %v12509_v36 = vpop.permute.xlu1 %12508  ;;  %7784 = vst.msk [vmem:[#allocation4 + $0x8] sm:$0x3] %vm7783_vm8, %v17336_v43  ;;  %7787 = vst.msk [vmem:[#allocation4 + $0x98] sm:$0x3] %vm7783_vm8, %v17336_v43 }
 0x412   : > { %v12511_v55 = vunpack.i.h.bf16 %v12509_v36  ;;  %v12510_v5 = vunpack.i.l.bf16 %v12509_v36  ;;  %7789 = vst.msk [vmem:[#allocation4 + $0x10] sm:$0x1] %vm7763_vm5, %v17336_v43  ;;  %7790 = vst.msk [vmem:[#allocation4 + $0x20] sm:$0x1] %vm7763_vm5, %v17336_v43 }
 0x413   : > { %7788 = vst.msk [vmem:[#allocation4] sm:$0x1] %vm7763_vm5, %v17336_v43  ;;  %7791 = vst.msk [vmem:[#allocation4 + $0x30] sm:$0x1] %vm7763_vm5, %v17336_v43 }
 0x414   : > { %v7228_v6 = vsel %vm7215_vm9, %v7211_v28, %v12510_v5  ;;  %v7229_v50 = vsel %vm7215_vm9, %v7212_v45, %v12511_v55  ;;  %7792 = vst.msk [vmem:[#allocation4 + $0x40] sm:$0x1] %vm7763_vm5, %v17336_v43  ;;  %7793 = vst.msk [vmem:[#allocation4 + $0x50] sm:$0x1] %vm7763_vm5, %v17336_v43 }
 0x415   : > { %v7298_v56 = vpack.c.bf16 %v7229_v50, %v7228_v6  ;;  %v6784_v6 = vld [vmem:[#allocation3 + $0x42] sm:$0xff]  ;;  %7794 = vst.msk [vmem:[#allocation4 + $0x60] sm:$0x1] %vm7763_vm5, %v17336_v43  ;;  %7795 = vst.msk [vmem:[#allocation4 + $0x70] sm:$0x1] %vm7763_vm5, %v17336_v43 }
 0x416   : > { %7796 = vst.msk [vmem:[#allocation4 + $0x80] sm:$0x1] %vm7763_vm5, %v17336_v43  ;;  %7797 = vst.msk [vmem:[#allocation4 + $0x90] sm:$0x1] %vm7763_vm5, %v17336_v43 }
 0x417   : > { %7799 = vst.msk [vmem:[#allocation4 + $0x19] sm:$0x1] %vm7763_vm5, %v17336_v43  ;;  %7800 = vst.msk [vmem:[#allocation4 + $0x29] sm:$0x1] %vm7763_vm5, %v17336_v43 }
 0x418   : > { %7801 = vst.msk [vmem:[#allocation4 + $0x39] sm:$0x1] %vm7763_vm5, %v17336_v43  ;;  %7802 = vst.msk [vmem:[#allocation4 + $0x49] sm:$0x1] %vm7763_vm5, %v17336_v43 }
 0x419   : > { %7803 = vst.msk [vmem:[#allocation4 + $0x59] sm:$0x1] %vm7763_vm5, %v17336_v43  ;;  %7804 = vst.msk [vmem:[#allocation4 + $0x69] sm:$0x1] %vm7763_vm5, %v17336_v43 }
 0x41a   : > { %7805 = vst.msk [vmem:[#allocation4 + $0x79] sm:$0x1] %vm7763_vm5, %v17336_v43  ;;  %7806 = vst.msk [vmem:[#allocation4 + $0x89] sm:$0x1] %vm7763_vm5, %v17336_v43 }
 0x41b   : > { %7798 = vst.msk [vmem:[#allocation4 + $0x9] sm:$0x1] %vm7763_vm5, %v17336_v43  ;;  %7807 = vst.msk [vmem:[#allocation4 + $0x99] sm:$0x1] %vm7763_vm5, %v17336_v43 }
 0x423   : > { %v12494_v44 = vpop.permute.xlu0 %12493 }
 0x424   : > { %v12496_v13 = vunpack.i.h.bf16 %v12494_v44  ;;  %v12495_v53 = vunpack.i.l.bf16 %v12494_v44  ;;  %v12519_v46 = vpop.permute.xlu1 %12518 }
 0x425   : > { %v12521_v30 = vunpack.i.h.bf16 %v12519_v46  ;;  %v12520_v35 = vunpack.i.l.bf16 %v12519_v46  ;;  %v6797_v46 = vld [vmem:[#allocation3 + $0x132] sm:$0xff] }
 0x426   : > { %v7260_v3 = vsel %vm7198_vm15, %v7244_v1, %v12495_v53  ;;  %v7261_v52 = vsel %vm7198_vm15, %v7245_v18, %v12496_v13  ;;  %v6783_v1 = vld [vmem:[#allocation3 + $0x32] sm:$0xff] }
 0x427   : > { %v12504_v9 = vpop.permute.xlu0 %12503  ;;  %v7197_v44 = vsel %vm17431_vm10, %v15992_v29, %v12521_v30  ;;  %v7196_v48 = vsel %vm17432_vm11, %v15963_v17, %v12520_v35 }
 0x428   : > { %v12506_v10 = vunpack.i.h.bf16 %v12504_v9  ;;  %v12505_v60 = vunpack.i.l.bf16 %v12504_v9  ;;  %v12529_v4 = vpop.permute.xlu1 %12528 }
 0x429   : > { %v12531_v14 = vunpack.i.h.bf16 %v12529_v4  ;;  %v12530_v20 = vunpack.i.l.bf16 %v12529_v4  ;;  %v7303_v4 = vpack.c.bf16 %v6797_v46, %v16056_v27 }
 0x42a   : > { %v7276_v38 = vsel %vm7215_vm9, %v7260_v3, %v12505_v60  ;;  %v7277_v22 = vsel %vm7215_vm9, %v7261_v52, %v12506_v10  ;;  %v6782_v60 = vld [vmem:[#allocation3 + $0x22] sm:$0xff]  ;;  %v6785_v3 = vld [vmem:[#allocation3 + $0x52] sm:$0xff] }
 0x42b   : > { %v7299_v2 = vpack.c.bf16 %v7277_v22, %v7276_v38  ;;  %v7213_v37 = vsel %vm7198_vm15, %v7196_v48, %v12530_v20  ;;  %v7214_v55 = vsel %vm7198_vm15, %v7197_v44, %v12531_v14  ;;  %v6787_v52 = vld [vmem:[#allocation3 + $0x72] sm:$0xff]  ;;  %v7285_v50 = vpack.c.bf16 %v6785_v3, %v6784_v6  ;;  %v6786_v38 = vld [vmem:[#allocation3 + $0x62] sm:$0xff] }
 0x42c   : > { %v7288_v22 = vpack.c.bf16 %v6787_v52, %v6786_v38  ;;  %v12643_v44 = vld [vmem:[%s17151_s7] sm:$0xff]   ;;  %v12644_v48 = vld [vmem:[%s17151_s7 + $0x48] sm:$0xff]  }
 0x42d   : > { %7559 = vmatprep.mubr.bf16.mxu1 %v7299_v2  ;;  %v6788_v2 = vld [vmem:[#allocation3 + $0x82] sm:$0xff] }
 0x42e   : > { %7560 = vmatmul.mubr.bf16.gmra.mrb[24].mxu1 %v7298_v56  ;;  %v6789_v56 = vld [vmem:[#allocation3 + $0x92] sm:$0xff] }
 0x431   : > { %v10471_v63 = vpop.f32.mrb[12].mxu1 }
 0x432   : > { %v10472_v24 = vpop.f32.mrb[13].mxu1 }
 0x433   : > { %v16103_v61 = vadd.f32 %v10472_v24, %v10471_v63  ;;  %v10474_v11 = vpop.f32.mrb[14].mxu1  ;;  %v6791_v63 = vld [vmem:[#allocation3 + $0xd2] sm:$0xff]  ;;  %v7291_v24 = vpack.c.bf16 %v6789_v56, %v6788_v2 }
 0x434   : > { %v10475_v47 = vpop.f32.mrb[15].mxu1 }
 0x435   : > { %v16105_v40 = vadd.f32 %v10475_v47, %v10474_v11  ;;  %v6790_v11 = vld [vmem:[#allocation3 + $0xc2] sm:$0xff] }
 0x436   : > { %v7294_v47 = vpack.c.bf16 %v6791_v63, %v6790_v11 }
 0x447   : > { %v12514_v54 = vpop.permute.xlu0 %12513 }
 0x448   : > { %v12539_v34 = vpop.permute.xlu1 %12538  ;;  %v12516_v31 = vunpack.i.h.bf16 %v12514_v54  ;;  %v12515_v15 = vunpack.i.l.bf16 %v12514_v54 }
 0x449   : > { %v12541_v12 = vunpack.i.h.bf16 %v12539_v34  ;;  %v12540_v36 = vunpack.i.l.bf16 %v12539_v34 }
 0x44a   : > { %v7247_v13 = vsel %vm17433_vm1, %v16063_v23, %v12516_v31  ;;  %v7246_v53 = vsel %vm17434_vm2, %v15996_v41, %v12515_v15  ;;  %v7282_v41 = vpack.c.bf16 %v6783_v1, %v6782_v60  ;;  %v12656_v1 = vld [vmem:[%s17151_s7 + $0x28] sm:$0xff]  }
 0x44b   : > { %v12524_v16 = vpop.permute.xlu0 %12523  ;;  %v7230_v45 = vsel %vm7215_vm9, %v7213_v37, %v12540_v36  ;;  %v7231_v17 = vsel %vm7215_vm9, %v7214_v55, %v12541_v12  ;;  %v12645_v37 = vld [vmem:[%s17151_s7 + $0x8] sm:$0xff]   ;;  %v12646_v55 = vld [vmem:[%s17151_s7 + $0x50] sm:$0xff]  }
 0x44c   : > { %v12526_v8 = vunpack.i.h.bf16 %v12524_v16  ;;  %v12525_v62 = vunpack.i.l.bf16 %v12524_v16  ;;  %v7301_v23 = vpack.c.bf16 %v7231_v17, %v7230_v45 }
 0x44e   : > { %v7262_v28 = vsel %vm7198_vm15, %v7246_v53, %v12525_v62  ;;  %v7263_v29 = vsel %vm7198_vm15, %v7247_v13, %v12526_v8  ;;  %v12642_v62 = vld [vmem:[%s17151_s7 + $0x40] sm:$0xff]   ;;  %v12648_v13 = vld [vmem:[%s17151_s7 + $0x58] sm:$0xff]  }
 0x44f   : > { %v12534_v5 = vpop.permute.xlu0 %12533  ;;  %10520 = vmatprep.subr.bf16.mxu0 %v12642_v62  ;;  %v12649_v53 = vld [vmem:[%s17151_s7 + $0x18] sm:$0xff]  }
 0x450   : > { %v12536_v59 = vunpack.i.h.bf16 %v12534_v5  ;;  %v12535_v26 = vunpack.i.l.bf16 %v12534_v5  ;;  %10521 = vmatpush3.bf16.msra.mxu0 %v12643_v44  ;;  %v12647_v5 = vld [vmem:[%s17151_s7 + $0x10] sm:$0xff]  }
 0x451   : > { %10522 = vmatprep.subr.bf16.mxu0 %v12644_v48 }
 0x452   : > { %v7278_v9 = vsel %vm7215_vm9, %v7262_v28, %v12535_v26  ;;  %v7279_v18 = vsel %vm7215_vm9, %v7263_v29, %v12536_v59  ;;  %vm17437_vm9 = vmmov %vm17422_vm0  ;;  %v12650_v59 = vld [vmem:[%s17151_s7 + $0x60] sm:$0xff]   ;;  %v12654_v29 = vld [vmem:[%s17151_s7 + $0x68] sm:$0xff]  }
 0x453   : > { %v7302_v10 = vpack.c.bf16 %v7279_v18, %v7278_v9  ;;  %v12652_v26 = vld [vmem:[%s17151_s7 + $0x20] sm:$0xff]  }
 0x454   : > { %10523 = vmatpush3.bf16.msra.mxu0 %v12645_v37 }
 0x455   : > { %7567 = vmatprep.mubr.bf16.mxu1 %v7302_v10  ;;  %10524 = vmatprep.subr.bf16.mxu0 %v12646_v55 }
 0x456   : > { %7568 = vmatmul.mubr.bf16.gmra.mrb[28].mxu1 %v7301_v23  ;;  %v16240_v23 = vld [vmem:[%s17442_s6] ss:$0 sm:$0xff] }
 0x457   : > { %10857 = vmatprep.mubr.msk.bf16.mxu1 %vm17435_vm13, %v7282_v41  ;;  %v7522_v60 = vadd.f32 %v16049_v25, %v16240_v23  ;;  %v7514_v3 = vadd.f32 %v16038_v32, %v16240_v23  ;;  %v7517_v2 = vadd.f32 %v16044_v51, %v16240_v23  ;;  %v7538_v32 = vadd.f32 %v16103_v61, %v16240_v23 }
 0x458   : > { %10525 = vmatpush3.bf16.msra.mxu0 %v12647_v5  ;;  %v7541_v51 = vadd.f32 %v16105_v40, %v16240_v23 }
 0x459   : > { %10526 = vmatprep.subr.bf16.mxu0 %v12648_v13 }
 0x45c   : > { %10527 = vmatpush3.bf16.msra.mxu0 %v12649_v53 }
 0x45d   : > { %10528 = vmatprep.subr.bf16.mxu0 %v12650_v59 }
 0x45e   : > { %10858 = vmatmul.mubr.msk.bf16.vlgmr.msra.gmra.mrb[32].mxu1 %vm17422_vm0, %v7285_v50  ;;  %v7525_v50 = vadd.f32 %v16054_v33, %v16240_v23  ;;  %v7530_v33 = vadd.f32 %v16083_v0, %v16240_v23 }
 0x45f   : > { %10861 = vmatprep.mubr.msk.bf16.mxu1 %vm17436_vm3, %v7288_v22 }
 0x460   : > { %10529 = vmatpush3.bf16.msra.mxu0 %v12652_v26 }
 0x461   : > { %10530 = vmatprep.subr.bf16.mxu0 %v12654_v29 }
 0x464   : > { %10531 = vmatpush3.bf16.msra.mxu0 %v12656_v1  ;;  %v12660_v1 = vld [vmem:[%s17151_s7 + $0x30] sm:$0xff]  }
 0x466   : > { %10862 = vmatmul.mubr.msk.bf16.gmra.mrb[36].mxu1 %vm17437_vm9, %v7291_v24 }
 0x467   : > { %10865 = vmatprep.mubr.msk.bf16.mxu1 %vm17438_vm12, %v7294_v47 }
 0x46e   : > { %10866 = vmatmul.mubr.msk.bf16.gmra.mrb[40].mxu1 %vm17439_vm4, %v7297_v49 }
 0x46f   : > { %10869 = vmatprep.mubr.msk.bf16.mxu1 %vm17440_vm6, %v7300_v39 }
 0x476   : > { %10870 = vmatmul.mubr.msk.bf16.gmra.mrb[44].mxu1 %vm17441_vm14, %v7303_v4 }
 0x477   : > { %10889 = vmatprep.mubr.msk.f32.mxu1 %vm12910_vm7, %v17336_v43 }
 0x485   : > { %v10477_v54 = vpop.f32.mrb[16].mxu1 }
 0x486   : > { %v10478_v30 = vpop.f32.mrb[17].mxu1 }
 0x487   : > { %v16138_v35 = vadd.f32 %v10478_v30, %v10477_v54  ;;  %v10480_v34 = vpop.f32.mrb[18].mxu1 }
 0x488   : > { %v10481_v14 = vpop.f32.mrb[19].mxu1 }
 0x489   : > { %v16140_v20 = vadd.f32 %v10481_v14, %v10480_v34  ;;  %v7546_v48 = vadd.f32 %v16138_v35, %v16240_v23  ;;  %v12651_v35 = vld [vmem:[%s17151_s7 + $0xc0] sm:$0xff]  }
 0x48b   : > { %v7549_v59 = vadd.f32 %v16140_v20, %v16240_v23 }
 0x4c8   : > { %v10483_v58 = vpop.f32.mrb[20].mxu1 }
 0x4c9   : > { %v10484_v49 = vpop.f32.mrb[21].mxu1 }
 0x4ca   : > { %v16145_v7 = vadd.f32 %v10484_v49, %v10483_v58  ;;  %v10486_v42 = vpop.f32.mrb[22].mxu1 }
 0x4cb   : > { %v10487_v39 = vpop.f32.mrb[23].mxu1 }
 0x4cc   : > { %v16147_v27 = vadd.f32 %v10487_v39, %v10486_v42  ;;  %v7533_v42 = vadd.f32 %v16085_v19, %v16240_v23  ;;  %v7554_v62 = vadd.f32 %v16145_v7, %v16240_v23 }
 0x4ce   : > { %v7557_v5 = vadd.f32 %v16147_v27, %v16240_v23 }
 0x501   : > { %v10489_v16 = vpop.f32.mrb[24].mxu1 }
 0x502   : > { %v10490_v31 = vpop.f32.mrb[25].mxu1 }
 0x503   : > { %v16193_v15 = vadd.f32 %v10490_v31, %v10489_v16  ;;  %v10492_v12 = vpop.f32.mrb[26].mxu1 }
 0x504   : > { %v10493_v36 = vpop.f32.mrb[27].mxu1 }
 0x505   : > { %v16195_v8 = vadd.f32 %v10493_v36, %v10492_v12 }
 0x529   : > { %v10495_v28 = vpop.f32.mrb[28].mxu1 }
 0x52a   : > { %v10496_v45 = vpop.f32.mrb[29].mxu1 }
 0x52b   : > { %v16230_v17 = vadd.f32 %v10496_v45, %v10495_v28  ;;  %v10498_v9 = vpop.f32.mrb[30].mxu1 }
 0x52c   : > { %v10499_v18 = vpop.f32.mrb[31].mxu1 }
 0x52d   : > { %v16235_v10 = vadd.f32 %v10499_v18, %v10498_v9  ;;  %v12653_v9 = vld [vmem:[%s17151_s7 + $0x80] sm:$0xff]   ;;  %v12658_v18 = vld [vmem:[%s17151_s7 + $0x70] sm:$0xff]  }
 0x52e   : > { %10532 = vmatprep.subr.bf16.mxu0 %v12658_v18 }
 0x52f   : > { %10533 = vmatpush3.bf16.msra.mxu0 %v12660_v1  ;;  %v12671_v1 = vld [vmem:[%s17151_s7 + $0xb0] sm:$0xff]  }
 0x531   : > { %v10859_v41 = vpop.f32.mrb[32].mxu1 }
 0x532   : > { %v7619_v52 = vadd.f32 %v10859_v41, %v7522_v60  ;;  %v7610_v6 = vpop.f32.mrb[33].mxu1  ;;  %v7570_v60 = vadd.f32 %v16230_v17, %v16240_v23  ;;  %v12655_v41 = vld [vmem:[%s17151_s7 + $0xc8] sm:$0xff]  }
 0x533   : > { %v7611_v38 = vadd.f32 %v7610_v6, %v7514_v3  ;;  %v10860_v22 = vpop.f32.mrb[34].mxu1  ;;  %v12662_v3 = vld [vmem:[%s17151_s7 + $0x78] sm:$0xff]   ;;  %v7562_v6 = vadd.f32 %v16193_v15, %v16240_v23  ;;  %v12657_v15 = vld [vmem:[%s17151_s7 + $0x88] sm:$0xff]  }
 0x534   : > { %v7622_v56 = vadd.f32 %v10860_v22, %v7525_v50  ;;  %v7613_v63 = vpop.f32.mrb[35].mxu1  ;;  %v7675_v11 = vmax.f32 %v7619_v52, 0.0  ;;  %v12664_v22 = vld [vmem:[%s17151_s7 + $0x38] sm:$0xff]   ;;  %10534 = vmatprep.subr.bf16.mxu0 %v12662_v3 }
 0x535   : > { %v7614_v24 = vadd.f32 %v7613_v63, %v7517_v2  ;;  %v7673_v47 = vmax.f32 %v7611_v38, 0.0  ;;  %v7573_v38 = vadd.f32 %v16235_v10, %v16240_v23  ;;  %v7565_v63 = vadd.f32 %v16195_v8, %v16240_v23  ;;  %10535 = vmatpush3.bf16.msra.mxu0 %v12664_v22 }
 0x536   : > { %v7676_v25 = vmax.f32 %v7622_v56, 0.0 }
 0x537   : > { %v7674_v46 = vmax.f32 %v7614_v24, 0.0 }
 0x538   : > { %v10948_v4 = vpack.c.bf16 %v7676_v25, %v7675_v11  ;;  %v7816_v25 = vld [vmem:[#allocation4 + $0x1] sm:$0xff] }
 0x539   : > { %v10945_v54 = vpack.c.bf16 %v7674_v46, %v7673_v47  ;;  %v10863_v30 = vpop.f32.mrb[36].mxu1  ;;  %v12659_v47 = vld [vmem:[%s17151_s7 + $0xd0] sm:$0xff]  }
 0x53a   : > { %v7635_v34 = vadd.f32 %v10863_v30, %v7538_v32  ;;  %v7626_v14 = vpop.f32.mrb[37].mxu1  ;;  %v12661_v30 = vld [vmem:[%s17151_s7 + $0x90] sm:$0xff]  }
 0x53b   : > { %v7627_v58 = vadd.f32 %v7626_v14, %v7530_v33  ;;  %v10864_v49 = vpop.f32.mrb[38].mxu1  ;;  %10946 = vmatpush3.bf16.msra.mxu1 %v10945_v54  ;;  %v12663_v33 = vld [vmem:[%s17151_s7 + $0xd8] sm:$0xff]  }
 0x53c   : > { %v7638_v39 = vadd.f32 %v10864_v49, %v7541_v51  ;;  %v7629_v16 = vpop.f32.mrb[39].mxu1  ;;  %10947 = vmatprep.subr.bf16.mxu1 %v12909_v57  ;;  %v7679_v0 = vmax.f32 %v7635_v34, 0.0 }
 0x53d   : > { %v7630_v61 = vadd.f32 %v7629_v16, %v7533_v42  ;;  %v7677_v12 = vmax.f32 %v7627_v58, 0.0  ;;  %v12665_v16 = vld [vmem:[%s17151_s7 + $0x98] sm:$0xff]  }
 0x53e   : > { %v7680_v31 = vmax.f32 %v7638_v39, 0.0 }
 0x53f   : > { %v7678_v36 = vmax.f32 %v7630_v61, 0.0  ;;  %10949 = vmatpush3.bf16.msra.mxu1 %v10948_v4 }
 0x540   : > { %v10954_v40 = vpack.c.bf16 %v7680_v31, %v7679_v0  ;;  %10950 = vmatprep.subr.bf16.mxu1 %v12909_v57  ;;  %v12666_v0 = vld [vmem:[%s17151_s7 + $0xe0] sm:$0xff]  }
 0x541   : > { %v10951_v19 = vpack.c.bf16 %v7678_v36, %v7677_v12  ;;  %v10867_v44 = vpop.f32.mrb[40].mxu1 }
 0x542   : > { %v7651_v37 = vadd.f32 %v10867_v44, %v7554_v62  ;;  %v7642_v55 = vpop.f32.mrb[41].mxu1  ;;  %v12667_v62 = vld [vmem:[%s17151_s7 + $0xa0] sm:$0xff]  }
 0x543   : > { %v7643_v13 = vadd.f32 %v7642_v55, %v7546_v48  ;;  %v10868_v53 = vpop.f32.mrb[42].mxu1  ;;  %10952 = vmatpush3.bf16.msra.mxu1 %v10951_v19  ;;  %v12668_v19 = vld [vmem:[%s17151_s7 + $0xe8] sm:$0xff]  }
 0x544   : > { %v16276_v7 = vmax.f32 %v7651_v37, 0.0  ;;  %v7654_v26 = vadd.f32 %v10868_v53, %v7557_v5  ;;  %v7645_v28 = vpop.f32.mrb[43].mxu1  ;;  %10953 = vmatprep.subr.bf16.mxu1 %v12909_v57  ;;  %v7689_v57 = vld [vmem:[%s549_s17] sm:$0x1]  ;;  %s9897_s17 = sshll.u32 %s16284_s20, 4  ;;  %s17070_s17 = int_to_ptr.vmem [resolvable:$true] %s9897_s17 }
 0x545   : > { %v16282_v27 = vmax.f32 %v7643_v13, 0.0  ;;  %v7646_v29 = vadd.f32 %v7645_v28, %v7549_v59  ;;  %s12799_s25 = scalar_lea.vmem %s17070_s17, 1024 }
 0x546   : > { %7767 = vst.msk [vmem:[%s16284_s20 + $0x10] sm:$0xff] %vm7198_vm15, %v16276_v7  ;;  %7776 = vst.msk [vmem:[#allocation4 + $0x31] sm:$0xff] %vm7198_vm15, %v16276_v7  ;;  %v16291_v20 = vmax.f32 %v7654_v26, 0.0  ;;  %v12669_v26 = vld [vmem:[%s17151_s7 + $0xa8] sm:$0xff]   ;;  %p12800_p11 = scmp.ne.s32.totalorder %s17070_s17, %s12799_s25 }
 0x547   : > { %7765 = vst.msk [vmem:[%s16284_s20] sm:$0xff] %vm7198_vm15, %v16282_v27  ;;  %7774 = vst.msk [vmem:[#allocation4 + $0x11] sm:$0xff] %vm7198_vm15, %v16282_v27  ;;  %v16298_v45 = vmax.f32 %v7646_v29, 0.0  ;;  %10955 = vmatpush3.bf16.msra.mxu1 %v10954_v40  ;;  %v16449_v29 = vld [vmem:[%s17151_s7 + $0x100] sm:$0xff]  }
 0x548   : > { %7768 = vst.msk [vmem:[%s16284_s20 + $0x18] sm:$0xff] %vm7198_vm15, %v16291_v20  ;;  %7777 = vst.msk [vmem:[#allocation4 + $0x41] sm:$0xff] %vm7198_vm15, %v16291_v20  ;;  %10560 = vmatprep.subr.bf16.mxu1 %v12651_v35  ;;  %v12670_v35 = vld [vmem:[%s17151_s7 + $0xf0] sm:$0xff]   ;;  %10892 = vmatprep.subr.bf16.mxu0 %v16449_v29  ;;  %p12801_p12 = pnand %p12800_p11, %p13033_p5 }
 0x549   : > { %7766 = vst.msk [vmem:[%s16284_s20 + $0x8] sm:$0xff] %vm7198_vm15, %v16298_v45  ;;  %7775 = vst.msk [vmem:[#allocation4 + $0x21] sm:$0xff] %vm7198_vm15, %v16298_v45  ;;  %v10871_v52 = vpop.f32.mrb[44].mxu1 }
 0x54a   : > { %v7667_v17 = vadd.f32 %v10871_v52, %v7570_v60  ;;  %v7658_v50 = vpop.f32.mrb[45].mxu1  ;;  %10890 = vmatmul.mubr.msk.f32.vlgmr.msra.gmra.mrb[48].mxu1 %vm7198_vm15, %v7689_v57  ;;  %p12802_p13 = pneg %p12801_p12 }
 0x54b   : > { %v7659_v2 = vadd.f32 %v7658_v50, %v7562_v6  ;;  %v10872_v56 = vpop.f32.mrb[46].mxu1  ;;  %10561 = vmatpush3.bf16.msra.mxu1 %v12653_v9  ;;  %v12673_v6 = vld [vmem:[%s17151_s7 + $0xb8] sm:$0xff]  }
 0x54c   : > { %v16340_v24 = vmax.f32 %v7667_v17, 0.0  ;;  %v7670_v10 = vadd.f32 %v10872_v56, %v7573_v38  ;;  %v7661_v11 = vpop.f32.mrb[47].mxu1  ;;  %10562 = vmatprep.subr.bf16.mxu1 %v12655_v41  ;;  %v12672_v41 = vld [vmem:[%s17151_s7 + $0xf8] sm:$0xff]  }
 0x54d   : > { %v16345_v46 = vmax.f32 %v7659_v2, 0.0  ;;  %v7662_v8 = vadd.f32 %v7661_v11, %v7565_v63  ;;  %v16389_v49 = vld [vmem:[#allocation4 + $0x31] sm:$0xff]  ;;  %v8607_v11 = vmul.f32 %v16282_v27, %v16282_v27 }
 0x54e   : > { %7771 = vst.msk [vmem:[%s16284_s20 + $0x30] sm:$0xff] %vm7198_vm15, %v16340_v24  ;;  %7780 = vst.msk [vmem:[#allocation4 + $0x71] sm:$0xff] %vm7198_vm15, %v16340_v24  ;;  %v16352_v23 = vmax.f32 %v7670_v10, 0.0  ;;  %v16354_v4 = vld [vmem:[#allocation4 + $0x11] sm:$0xff] }
 0x54f   : > { %7769 = vst.msk [vmem:[%s16284_s20 + $0x20] sm:$0xff] %vm7198_vm15, %v16345_v46  ;;  %7778 = vst.msk [vmem:[#allocation4 + $0x51] sm:$0xff] %vm7198_vm15, %v16345_v46  ;;  %v16361_v32 = vmax.f32 %v7662_v8, 0.0  ;;  %v12547_v54 = vpack.i.bf16 %v16354_v4, %v7816_v25  ;;  %10563 = vmatpush3.bf16.msra.mxu1 %v12657_v15  ;;  %v16375_v34 = vld [vmem:[#allocation4 + $0x10] sm:$0xff]  ;;  %v16391_v42 = vld [vmem:[#allocation4 + $0x40] sm:$0xff]  ;;  %v8615_v25 = vsel %vm7198_vm15, %v8607_v11, 0.0 }
 0x550   : > { %7772 = vst.msk [vmem:[%s16284_s20 + $0x38] sm:$0xff] %vm7198_vm15, %v16352_v23  ;;  %7781 = vst.msk [vmem:[#allocation4 + $0x81] sm:$0xff] %vm7198_vm15, %v16352_v23  ;;  %v16377_v14 = vld [vmem:[#allocation4 + $0x20] sm:$0xff]  ;;  %10564 = vmatprep.subr.bf16.mxu1 %v12659_v47  ;;  %v16399_v61 = vld [vmem:[#allocation4 + $0x30] sm:$0xff]  ;;  %v8610_v47 = vmul.f32 %v16291_v20, %v16291_v20 }
 0x551   : > { %v16379_v51 = vld [vmem:[#allocation4 + $0x21] sm:$0xff]  ;;  %7770 = vst.msk [vmem:[%s16284_s20 + $0x28] sm:$0xff] %vm7198_vm15, %v16361_v32  ;;  %7779 = vst.msk [vmem:[#allocation4 + $0x61] sm:$0xff] %vm7198_vm15, %v16361_v32  ;;  %12548 = vrot.lane.b32.xlu1 %v12547_v54, %s12907_s27  ;;  %v12542_v58 = vpack.i.bf16 %v16377_v14, %v16375_v34  ;;  %v12552_v31 = vpack.i.bf16 %v16391_v42, %v16399_v61  ;;  %v7848_v9 = vld [vmem:[#allocation4 + $0x12] sm:$0xff]  ;;  %v8612_v54 = vmul.f32 %v16361_v32, %v16361_v32 }
 0x552   : > { %v12557_v39 = vpack.i.bf16 %v16389_v49, %v16379_v51  ;;  %v16407_v12 = vld [vmem:[#allocation4 + $0x41] sm:$0xff]  ;;  %v16466_v3 = vld [vmem:[#allocation4 + $0x32] sm:$0xff]  ;;  %v8624_v8 = vsel %vm7198_vm15, %v8610_v47, 0.0 }
 0x553   : > { %12543 = vrot.lane.b32.xlu0 %v12542_v58, %s12907_s27  ;;  %10565 = vmatpush3.bf16.msra.mxu1 %v12661_v30  ;;  %v16436_v59 = vld [vmem:[#allocation4 + $0x22] sm:$0xff]  ;;  %v7872_v63 = vld [vmem:[#allocation4 + $0x91] sm:$0xff]  ;;  %v8630_v30 = vsel %vm7198_vm15, %v8612_v54, 0.0 }
 0x554   : > { %10566 = vmatprep.subr.bf16.mxu1 %v12663_v33  ;;  %v12587_v18 = vpack.i.bf16 %v16436_v59, %v7848_v9  ;;  %v16460_v60 = vld [vmem:[#allocation4 + $0x42] sm:$0xff] }
 0x555   : > { %12558 = vrot.lane.b32.xlu1 %v12557_v39, %s12907_s27  ;;  %v16429_v5 = vld [vmem:[#allocation4 + $0x71] sm:$0xff]  ;;  %v12597_v52 = vpack.i.bf16 %v16460_v60, %v16466_v3  ;;  %v7808_v58 = vld [vmem:[#allocation4] sm:$0xff] }
 0x556   : > { %v16409_v36 = vld [vmem:[#allocation4 + $0x51] sm:$0xff] }
 0x557   : > { %12553 = vrot.lane.b32.xlu0 %v12552_v31, %s12907_s27  ;;  %v12567_v40 = vpack.i.bf16 %v16409_v36, %v16407_v12  ;;  %10567 = vmatpush3.bf16.msra.mxu1 %v12665_v16  ;;  %v16420_v44 = vld [vmem:[#allocation4 + $0x50] sm:$0xff]  ;;  %v16431_v13 = vld [vmem:[#allocation4 + $0x80] sm:$0xff] }
 0x558   : > { %v16422_v48 = vld [vmem:[#allocation4 + $0x60] sm:$0xff]  ;;  %10568 = vmatprep.subr.bf16.mxu1 %v12666_v0  ;;  %v16441_v28 = vld [vmem:[#allocation4 + $0x70] sm:$0xff] }
 0x559   : > { %v16424_v37 = vld [vmem:[#allocation4 + $0x61] sm:$0xff]  ;;  %12568 = vrot.lane.b32.xlu1 %v12567_v40, %s12907_s27  ;;  %v12562_v55 = vpack.i.bf16 %v16422_v48, %v16420_v44  ;;  %v12572_v57 = vpack.i.bf16 %v16431_v13, %v16441_v28  ;;  %v16477_v50 = vld [vmem:[#allocation4 + $0x52] sm:$0xff] }
 0x55a   : > { %v12582_v53 = vpack.i.bf16 %v16429_v5, %v16424_v37  ;;  %v16474_v17 = vld [vmem:[#allocation4 + $0x62] sm:$0xff]  ;;  %v16485_v2 = vld [vmem:[#allocation4 + $0x72] sm:$0xff] }
 0x55b   : > { %12563 = vrot.lane.b32.xlu0 %v12562_v55, %s12907_s27  ;;  %10569 = vmatpush3.bf16.msra.mxu1 %v12667_v62  ;;  %v12607_v38 = vpack.i.bf16 %v16474_v17, %v16477_v50  ;;  %v16482_v22 = vld [vmem:[#allocation4 + $0x82] sm:$0xff] }
 0x55c   : > { %10570 = vmatprep.subr.bf16.mxu1 %v12668_v19  ;;  %v16487_v56 = vld [vmem:[#allocation4 + $0x81] sm:$0xff]  ;;  %v12617_v15 = vpack.i.bf16 %v16482_v22, %v16485_v2 }
 0x55d   : > { %12583 = vrot.lane.b32.xlu1 %v12582_v53, %s12907_s27  ;;  %v12612_v10 = vpack.i.bf16 %v7872_v63, %v16487_v56  ;;  %v7824_v31 = vld [vmem:[#allocation4 + $0x2] sm:$0xff] }
 0x55f   : > { %12573 = vrot.lane.b32.xlu0 %v12572_v57, %s12907_s27  ;;  %10571 = vmatpush3.bf16.msra.mxu1 %v12669_v26 }
 0x560   : > { %10572 = vmatprep.subr.bf16.mxu1 %v12670_v35 }
 0x561   : > { %12588 = vrot.lane.b32.xlu1 %v12587_v18, %s12907_s27 }
 0x563   : > { %12578 = vrot.lane.b32.xlu0 %v12557_v39, %s12907_s27  ;;  %10573 = vmatpush3.bf16.msra.mxu1 %v12671_v1 }
 0x564   : > { %10574 = vmatprep.subr.bf16.mxu1 %v12672_v41 }
 0x565   : > { %12598 = vrot.lane.b32.xlu1 %v12597_v52, %s12907_s27 }
 0x567   : > { %12593 = vrot.lane.b32.xlu0 %v12567_v40, %s12907_s27  ;;  %10575 = vmatpush3.bf16.msra.mxu1 %v12673_v6  ;;  %v12675_v6 = vld [vmem:[%s17151_s7 + $0x108] sm:$0xff]  }
 0x569   : > { %12608 = vrot.lane.b32.xlu1 %v12607_v38, %s12907_s27 }
 0x56b   : > { %12603 = vrot.lane.b32.xlu0 %v12582_v53, %s12907_s27 }
 0x56d   : > { %12618 = vrot.lane.b32.xlu1 %v12617_v15, %s12907_s27 }
 0x56f   : > { %12613 = vrot.lane.b32.xlu0 %v12612_v10, %s12907_s27  ;;  %s12911_s27 = smov [#allocation6]  }
 0x570   : > { %s12803_s16 = sshll.u32 %s12911_s27, 4  ;;  %s12804_s16 = int_to_ptr.vmem [resolvable:$false] %s12803_s16 }
 0x571   : > { %s12805_s20 = scalar_lea.vmem %s12804_s16, 2048  ;;  %p12806_p0 = scmp.lt.s32.totalorder %s17070_s17, %s12804_s16 }
 0x572   : > { %p12807_p1 = scmp.lt.s32.totalorder %s12805_s20, %s12799_s25 }
 0x574   : > { %p12808_p2 = por %p12807_p1, %p12806_p0 }
 0x576   : > { %p12809_p3 = pnand %p12808_p2, %p12802_p13 }
 0x591   : > { %8616 = vadd.xlane.f32.xlu1 %v8615_v25 }
 0x595   : > { %8625 = vadd.xlane.f32.xlu1 %v8624_v8  ;;  %v12676_v8 = vld [vmem:[%s17151_s7 + $0x110] sm:$0xff]  }
 0x599   : > { %8631 = vadd.xlane.f32.xlu1 %v8630_v30 }
 0x5c3   : > { %v12549_v33 = vpop.permute.xlu1 %12548 }
 0x5c4   : > { %v12551_v39 = vunpack.i.h.bf16 %v12549_v33  ;;  %v12550_v16 = vunpack.i.l.bf16 %v12549_v33 }
 0x5c5   : > { %v12544_v0 = vpop.permute.xlu0 %12543 }
 0x5c6   : > { %v12546_v40 = vunpack.i.h.bf16 %v12544_v0  ;;  %v12545_v62 = vunpack.i.l.bf16 %v12544_v0  ;;  %v8009_v19 = vsel %vm7198_vm15, %v7808_v58, %v12550_v16  ;;  %v8010_v55 = vsel %vm7198_vm15, %v16375_v34, %v12551_v39 }
 0x5c7   : > { %v12559_v53 = vpop.permute.xlu1 %12558  ;;  %v8041_v1 = vpack.c.bf16 %v8010_v55, %v8009_v19 }
 0x5c8   : > { %v8017_v26 = vsel %vm7198_vm15, %v7824_v31, %v12545_v62  ;;  %v8018_v35 = vsel %vm7198_vm15, %v7848_v9, %v12546_v40  ;;  %v12561_v38 = vunpack.i.h.bf16 %v12559_v53  ;;  %v12560_v63 = vunpack.i.l.bf16 %v12559_v53  ;;  %v12677_v40 = vld [vmem:[%s17151_s7 + $0x118] sm:$0xff]  }
 0x5c9   : > { %v12554_v57 = vpop.permute.xlu0 %12553  ;;  %v8042_v18 = vpack.c.bf16 %v8018_v35, %v8017_v26 }
 0x5ca   : > { %v12556_v41 = vunpack.i.h.bf16 %v12554_v57  ;;  %v12555_v52 = vunpack.i.l.bf16 %v12554_v57  ;;  %v8011_v30 = vsel %vm7198_vm15, %v16377_v14, %v12560_v63  ;;  %v8012_v33 = vsel %vm7198_vm15, %v16399_v61, %v12561_v38 }
 0x5cb   : > { %8400 = vmatprep.mubr.bf16.mxu0 %v8042_v18  ;;  %v12569_v15 = vpop.permute.xlu1 %12568  ;;  %v8046_v31 = vpack.c.bf16 %v8012_v33, %v8011_v30 }
 0x5cc   : > { %8401 = vmatmul.mubr.bf16.vlgmr.msra.gmra.mrb[64].mxu0 %v8041_v1  ;;  %v8019_v34 = vsel %vm7198_vm15, %v16436_v59, %v12555_v52  ;;  %v8020_v9 = vsel %vm7198_vm15, %v16466_v3, %v12556_v41  ;;  %v12571_v16 = vunpack.i.h.bf16 %v12569_v15  ;;  %v12570_v0 = vunpack.i.l.bf16 %v12569_v15 }
 0x5cd   : > { %v12564_v10 = vpop.permute.xlu0 %12563  ;;  %v8047_v11 = vpack.c.bf16 %v8020_v9, %v8019_v34  ;;  %10893 = vmatpush3.bf16.msra.mxu0 %v16449_v29 }
 0x5ce   : > { %v12566_v25 = vunpack.i.h.bf16 %v12564_v10  ;;  %v12565_v47 = vunpack.i.l.bf16 %v12564_v10  ;;  %10894 = vmatprep.subr.bf16.mxu0 %v12675_v6  ;;  %v8013_v41 = vsel %vm7198_vm15, %v16391_v42, %v12570_v0  ;;  %v8014_v52 = vsel %vm7198_vm15, %v16420_v44, %v12571_v16 }
 0x5cf   : > { %v12584_v54 = vpop.permute.xlu1 %12583  ;;  %8408 = vmatprep.mubr.bf16.mxu0 %v8047_v11 }
 0x5d0   : > { %v8021_v58 = vsel %vm7198_vm15, %v16460_v60, %v12565_v47  ;;  %v8022_v29 = vsel %vm7198_vm15, %v16477_v50, %v12566_v25  ;;  %v8051_v47 = vpack.c.bf16 %v8014_v52, %v8013_v41  ;;  %v12585_v33 = vunpack.i.l.bf16 %v12584_v54 }
 0x5d1   : > { %v12574_v39 = vpop.permute.xlu0 %12573  ;;  %10895 = vmatpush3.bf16.msra.mxu0 %v12675_v6  ;;  %v8052_v19 = vpack.c.bf16 %v8022_v29, %v8021_v58  ;;  %v8045_v52 = vpack.c.bf16 %v16466_v3, %v16436_v59 }
 0x5d2   : > { %10896 = vmatprep.subr.bf16.mxu0 %v12676_v8  ;;  %v12576_v55 = vunpack.i.h.bf16 %v12574_v39  ;;  %v12575_v53 = vunpack.i.l.bf16 %v12574_v39 }
 0x5d3   : > { %v12589_v62 = vpop.permute.xlu1 %12588 }
 0x5d4   : > { %v12591_v26 = vunpack.i.h.bf16 %v12589_v62  ;;  %v12590_v35 = vunpack.i.l.bf16 %v12589_v62  ;;  %8409 = vmatmul.mubr.bf16.gmra.mrb[68].mxu0 %v8046_v31  ;;  %v8023_v9 = vsel %vm7198_vm15, %v16474_v17, %v12575_v53  ;;  %v8024_v10 = vsel %vm7198_vm15, %v16485_v2, %v12576_v55 }
 0x5d5   : > { %v12579_v57 = vpop.permute.xlu0 %12578  ;;  %8416 = vmatprep.mubr.bf16.mxu0 %v8052_v19  ;;  %10897 = vmatpush3.bf16.msra.mxu0 %v12676_v8  ;;  %v8057_v29 = vpack.c.bf16 %v8024_v10, %v8023_v9 }
 0x5d6   : > { %v12581_v18 = vunpack.i.h.bf16 %v12579_v57  ;;  %v12580_v1 = vunpack.i.l.bf16 %v12579_v57  ;;  %10898 = vmatprep.subr.bf16.mxu0 %v12677_v40  ;;  %v8026_v6 = vsel %vm7198_vm15, %v16379_v51, %v12591_v26  ;;  %v8025_v38 = vsel %vm7198_vm15, %v16354_v4, %v12590_v35 }
 0x5d7   : > { %v12599_v63 = vpop.permute.xlu1 %12598  ;;  %v12586_v51 = vunpack.i.h.bf16 %v12584_v54  ;;  %v8043_v8 = vpack.c.bf16 %v8026_v6, %v8025_v38  ;;  %v8015_v54 = vsel %vm7198_vm15, %v16422_v48, %v12585_v33 }
 0x5d8   : > { %v8033_v15 = vsel %vm7198_vm15, %v16377_v14, %v12580_v1  ;;  %v8034_v34 = vsel %vm7198_vm15, %v16399_v61, %v12581_v18  ;;  %v12601_v58 = vunpack.i.h.bf16 %v12599_v63  ;;  %v12600_v14 = vunpack.i.l.bf16 %v12599_v63 }
 0x5d9   : > { %v12594_v11 = vpop.permute.xlu0 %12593  ;;  %v8044_v25 = vpack.c.bf16 %v8034_v34, %v8033_v15  ;;  %10899 = vmatpush3.bf16.msra.mxu0 %v12677_v40  ;;  %v8016_v62 = vsel %vm7198_vm15, %v16441_v28, %v12586_v51  ;;  %v8050_v15 = vpack.c.bf16 %v16477_v50, %v16460_v60  ;;  %v8608_v51 = vmul.f32 %v16298_v45, %v16298_v45 }
 0x5da   : > { %v12596_v4 = vunpack.i.h.bf16 %v12594_v11  ;;  %v12595_v30 = vunpack.i.l.bf16 %v12594_v11  ;;  %v8027_v19 = vsel %vm7198_vm15, %v16389_v49, %v12600_v14  ;;  %v8056_v35 = vpack.c.bf16 %v8016_v62, %v8015_v54 }
 0x5db   : > { %8465 = vmatprep.mubr.bf16.mxu1 %v8044_v25  ;;  %v12609_v55 = vpop.permute.xlu1 %12608  ;;  %v8055_v11 = vpack.c.bf16 %v16485_v2, %v16474_v17  ;;  %v8614_v62 = vmul.f32 %v16352_v23, %v16352_v23 }
 0x5dc   : > { %8417 = vmatmul.mubr.bf16.gmra.mrb[72].mxu0 %v8051_v47  ;;  %8466 = vmatmul.mubr.bf16.vlgmr.msra.gmra.mrb[52].mxu1 %v8043_v8  ;;  %v8035_v61 = vsel %vm7198_vm15, %v16391_v42, %v12595_v30  ;;  %v8036_v39 = vsel %vm7198_vm15, %v16420_v44, %v12596_v4  ;;  %v8028_v42 = vsel %vm7198_vm15, %v16407_v12, %v12601_v58  ;;  %v12611_v18 = vunpack.i.h.bf16 %v12609_v55  ;;  %v7864_v12 = vld [vmem:[#allocation4 + $0x90] sm:$0xff] }
 0x5dd   : > { %v12604_v16 = vpop.permute.xlu0 %12603  ;;  %8424 = vmatprep.mubr.bf16.mxu0 %v8057_v29  ;;  %v8049_v0 = vpack.c.bf16 %v8036_v39, %v8035_v61  ;;  %v8048_v57 = vpack.c.bf16 %v8028_v42, %v8027_v19  ;;  %v12610_v1 = vunpack.i.l.bf16 %v12609_v55  ;;  %v8609_v4 = vmul.f32 %v16276_v7, %v16276_v7 }
 0x5de   : > { %v12606_v31 = vunpack.i.h.bf16 %v12604_v16  ;;  %v12605_v40 = vunpack.i.l.bf16 %v12604_v16  ;;  %v8611_v58 = vmul.f32 %v16345_v46, %v16345_v46  ;;  %v8636_v19 = vsel %vm7198_vm15, %v8614_v62, 0.0 }
 0x5df   : > { %8473 = vmatprep.mubr.bf16.mxu1 %v8049_v0  ;;  %v12619_v38 = vpop.permute.xlu1 %12618 }
 0x5e0   : > { %v8037_v44 = vsel %vm7198_vm15, %v16422_v48, %v12605_v40  ;;  %v8038_v53 = vsel %vm7198_vm15, %v16441_v28, %v12606_v31  ;;  %v8029_v48 = vsel %vm7198_vm15, %v16409_v36, %v12610_v1  ;;  %v8030_v28 = vsel %vm7198_vm15, %v16424_v37, %v12611_v18 }
 0x5e1   : > { %v12614_v26 = vpop.permute.xlu0 %12613  ;;  %v8054_v41 = vpack.c.bf16 %v8038_v53, %v8037_v44  ;;  %v8053_v3 = vpack.c.bf16 %v8030_v28, %v8029_v48  ;;  %v12621_v34 = vunpack.i.h.bf16 %v12619_v38  ;;  %v12620_v9 = vunpack.i.l.bf16 %v12619_v38  ;;  %v16625_v48 = vld [vmem:[%s17152_s8] ss:$0 sm:$0xff] }
 0x5e2   : > { %v12616_v49 = vunpack.i.h.bf16 %v12614_v26  ;;  %v12615_v6 = vunpack.i.l.bf16 %v12614_v26  ;;  %v8627_v61 = vsel %vm7198_vm15, %v8611_v58, 0.0 }
 0x5e3   : > { %v8031_v36 = vsel %vm7198_vm15, %v16429_v5, %v12620_v9  ;;  %v8032_v37 = vsel %vm7198_vm15, %v16487_v56, %v12621_v34 }
 0x5e4   : > { %8425 = vmatmul.mubr.bf16.gmra.mrb[76].mxu0 %v8056_v35  ;;  %8474 = vmatmul.mubr.bf16.gmra.mrb[56].mxu1 %v8048_v57  ;;  %v8039_v63 = vsel %vm7198_vm15, %v16431_v13, %v12615_v6  ;;  %v8040_v59 = vsel %vm7198_vm15, %v7864_v12, %v12616_v49  ;;  %v7880_v13 = vld [vmem:[#allocation4 + $0x92] sm:$0xff]  ;;  %v8058_v60 = vpack.c.bf16 %v8032_v37, %v8031_v36 }
 0x5e5   : > { %8481 = vmatprep.mubr.bf16.mxu1 %v8054_v41  ;;  %10900 = vmatprep.mubr.msk.bf16.mxu0 %vm7198_vm15, %v8045_v52  ;;  %v8059_v10 = vpack.c.bf16 %v8040_v59, %v8039_v63  ;;  %v8060_v50 = vpack.c.bf16 %v7880_v13, %v16482_v22 }
 0x5ec   : > { %8482 = vmatmul.mubr.bf16.gmra.mrb[60].mxu1 %v8053_v3  ;;  %10901 = vmatmul.mubr.msk.bf16.vlgmr.msra.gmra.mrb[80].mxu0 %vm7198_vm15, %v8050_v15 }
 0x5ed   : > { %8489 = vmatprep.mubr.bf16.mxu1 %v8059_v10  ;;  %10904 = vmatprep.mubr.msk.bf16.mxu0 %vm7198_vm15, %v8055_v11 }
 0x5f4   : > { %8490 = vmatmul.mubr.bf16.gmra.mrb[64].mxu1 %v8058_v60  ;;  %10905 = vmatmul.mubr.msk.bf16.gmra.mrb[84].mxu0 %vm7198_vm15, %v8060_v50 }
 0x61d   : > { %v7759_v17 = vpop.f32.mrb[48].mxu1 }
 0x61e   : > { %v8574_v2 = vrot.slane %v7759_v17, %v14429_v21  ;;  %v8639_v25 = vmul.f32 %v7759_v17, %v7759_v17  ;;  %v10891_v47 = vpop.f32.mrb[49].mxu1  ;;  %7764 = vst.msk [vmem:[%s17193_s26] sm:$0x1] %vm7763_vm5, %v7759_v17  ;;  %v8618_v21 = vsel %vm7198_vm15, %v8608_v51, 0.0  ;;  %s10402_s26 = sshll.u32 %s13016_s22, 10 }
 0x620   : > { %v8640_v5 = vsel %vm7763_vm5, %v8639_v25, 0.0  ;;  %v8575_v56 = vmul.f32 %v8574_v2, %v16282_v27  ;;  %v8577_v8 = vmul.f32 %v8574_v2, %v16276_v7  ;;  %v8579_v33 = vmul.f32 %v8574_v2, %v16345_v46 }
 0x621   : > { %8641 = vadd.xlane.f32.xlu0 %v8640_v5  ;;  %v8621_v27 = vsel %vm7198_vm15, %v8609_v4, 0.0  ;;  %v8580_v29 = vmul.f32 %v8574_v2, %v16361_v32  ;;  %v8613_v7 = vmul.f32 %v16340_v24, %v16340_v24  ;;  %v8582_v16 = vmul.f32 %v8574_v2, %v16352_v23 }
 0x622   : > { %v8583_v22 = vsel %vm7198_vm15, %v8575_v56, 0.0  ;;  %v8589_v30 = vsel %vm7198_vm15, %v8577_v8, 0.0  ;;  %v8595_v14 = vsel %vm7198_vm15, %v8579_v33, 0.0  ;;  %v8576_v46 = vmul.f32 %v8574_v2, %v16298_v45 }
 0x623   : > { %8584 = vadd.xlane.f32.xlu1 %v8583_v22  ;;  %v8598_v39 = vsel %vm7198_vm15, %v8580_v29, 0.0  ;;  %v8633_v0 = vsel %vm7198_vm15, %v8613_v7, 0.0  ;;  %v8604_v31 = vsel %vm7198_vm15, %v8582_v16, 0.0  ;;  %v8578_v40 = vmul.f32 %v8574_v2, %v16291_v20 }
 0x624   : > { %v8586_v32 = vsel %vm7198_vm15, %v8576_v46, 0.0  ;;  %v8581_v42 = vmul.f32 %v8574_v2, %v16340_v24 }
 0x625   : > { %8619 = vadd.xlane.f32.xlu0 %v8618_v21  ;;  %v8592_v54 = vsel %vm7198_vm15, %v8578_v40, 0.0 }
 0x626   : > { %v8601_v45 = vsel %vm7198_vm15, %v8581_v42, 0.0 }
 0x627   : > { %8590 = vadd.xlane.f32.xlu1 %v8589_v30 }
 0x629   : > { %8622 = vadd.xlane.f32.xlu0 %v8621_v27 }
 0x62b   : > { %8596 = vadd.xlane.f32.xlu1 %v8595_v14 }
 0x62d   : > { %8628 = vadd.xlane.f32.xlu0 %v8627_v61 }
 0x62f   : > { %8599 = vadd.xlane.f32.xlu1 %v8598_v39 }
 0x631   : > { %8634 = vadd.xlane.f32.xlu0 %v8633_v0 }
 0x633   : > { %8605 = vadd.xlane.f32.xlu1 %v8604_v31 }
 0x635   : > { %8587 = vadd.xlane.f32.xlu0 %v8586_v32 }
 0x639   : > { %8593 = vadd.xlane.f32.xlu0 %v8592_v54 }
 0x63d   : > { %8637 = vadd.xlane.f32.xlu0 %v8636_v19 }
 0x641   : > { %8602 = vadd.xlane.f32.xlu0 %v8601_v45 }
 0x69f   : > { %v10536_v55 = vpop.f32.mrb[64].mxu0 }
 0x6a0   : > { %v10537_v44 = vpop.f32.mrb[65].mxu0 }
 0x6a1   : > { %v10538_v53 = vadd.f32 %v10537_v44, %v10536_v55  ;;  %v10539_v26 = vpop.f32.mrb[66].mxu0 }
 0x6a2   : > { %v10540_v20 = vpop.f32.mrb[67].mxu0 }
 0x6a3   : > { %v10541_v35 = vadd.f32 %v10540_v20, %v10539_v26  ;;  %v8403_v10 = vadd.f32 %v10538_v53, %v16625_v48 }
 0x6a5   : > { %v8406_v13 = vadd.f32 %v10541_v35, %v16625_v48 }
 0x6a7   : > { %v10542_v57 = vpop.f32.mrb[68].mxu0 }
 0x6a8   : > { %v10543_v18 = vpop.f32.mrb[69].mxu0 }
 0x6a9   : > { %v10544_v1 = vadd.f32 %v10543_v18, %v10542_v57  ;;  %v10545_v41 = vpop.f32.mrb[70].mxu0 }
 0x6aa   : > { %v10546_v23 = vpop.f32.mrb[71].mxu0 }
 0x6ab   : > { %v10547_v52 = vadd.f32 %v10546_v23, %v10545_v41  ;;  %v8411_v33 = vadd.f32 %v10544_v1, %v16625_v48 }
 0x6ad   : > { %v8414_v29 = vadd.f32 %v10547_v52, %v16625_v48 }
 0x6ae   : > { %v8642_v49 = vpop.xlane.xlu0 %8641 }
 0x6af   : > { %v8643_v6 = vrot.slane %v8642_v49, 4  ;;  %v10548_v12 = vpop.f32.mrb[72].mxu0  ;;  %v10576_v24 = vpop.f32.mrb[52].mxu1 }
 0x6b0   : > { %v10549_v28 = vpop.f32.mrb[73].mxu0  ;;  %v10577_v59 = vpop.f32.mrb[53].mxu1 }
 0x6b1   : > { %v8644_v38 = vadd.f32 %v8643_v6, %v8642_v49  ;;  %v10550_v63 = vadd.f32 %v10549_v28, %v10548_v12  ;;  %v10551_v3 = vpop.f32.mrb[74].mxu0  ;;  %v10578_v15 = vadd.f32 %v10577_v59, %v10576_v24  ;;  %v10579_v34 = vpop.f32.mrb[54].mxu1  ;;  %v12680_v59 = vld [vmem:[%s17153_s9] sm:$0xff]  }
 0x6b2   : > { %v10552_v9 = vpop.f32.mrb[75].mxu0  ;;  %v10580_v37 = vpop.f32.mrb[55].mxu1 }
 0x6b3   : > { %v8645_v11 = vrot.slane %v8644_v38, 2  ;;  %v10553_v36 = vadd.f32 %v10552_v9, %v10551_v3  ;;  %v10581_v60 = vadd.f32 %v10580_v37, %v10579_v34  ;;  %v8468_v17 = vadd.f32 %v10578_v15, %v8403_v10  ;;  %v12681_v9 = vld [vmem:[%s17153_s9 + $0x80] sm:$0xff]   ;;  %v12682_v10 = vld [vmem:[%s17153_s9 + $0x48] sm:$0xff]  }
 0x6b4   : > { %v8419_v31 = vadd.f32 %v10550_v63, %v16625_v48  ;;  %v12679_v63 = vld [vmem:[%s17153_s9 + $0xc0] sm:$0xff]  }
 0x6b5   : > { %v8646_v50 = vadd.f32 %v8645_v11, %v8644_v38  ;;  %v8471_v47 = vadd.f32 %v10581_v60, %v8406_v13  ;;  %v8422_v20 = vadd.f32 %v10553_v36, %v16625_v48  ;;  %v12678_v38 = vld [vmem:[%s17153_s9 + $0x40] sm:$0xff]   ;;  %v12683_v11 = vld [vmem:[%s17153_s9 + $0xc8] sm:$0xff]   ;;  %10648 = vmatprep.subr.bf16.mxu0 %v12679_v63 }
 0x6b6   : > { %10608 = vmatprep.subr.bf16.mxu1 %v12678_v38  ;;  %10649 = vmatpush3.bf16.msra.mxu0 %v12681_v9  ;;  %v12684_v60 = vld [vmem:[%s17153_s9 + $0x8] sm:$0xff]  }
 0x6b7   : > { %v10554_v2 = vpop.f32.mrb[76].mxu0  ;;  %v8647_v25 = vrot.slane %v8646_v50, 1  ;;  %v10582_v5 = vpop.f32.mrb[56].mxu1  ;;  %10609 = vmatpush3.bf16.msra.mxu1 %v12680_v59  ;;  %10650 = vmatprep.subr.bf16.mxu0 %v12683_v11 }
 0x6b8   : > { %v10555_v56 = vpop.f32.mrb[77].mxu0  ;;  %v10583_v22 = vpop.f32.mrb[57].mxu1  ;;  %10610 = vmatprep.subr.bf16.mxu1 %v12682_v10 }
 0x6b9   : > { %v10556_v51 = vadd.f32 %v10555_v56, %v10554_v2  ;;  %v8648_v8 = vadd.f32 %v8647_v25, %v8646_v50  ;;  %v10584_v21 = vadd.f32 %v10583_v22, %v10582_v5  ;;  %v10557_v4 = vpop.f32.mrb[78].mxu0  ;;  %v10585_v30 = vpop.f32.mrb[58].mxu1  ;;  %v12685_v50 = vld [vmem:[%s17153_s9 + $0x88] sm:$0xff]   ;;  %v12687_v2 = vld [vmem:[%s17153_s9 + $0xd0] sm:$0xff]   ;;  %v12690_v56 = vld [vmem:[%s17153_s9 + $0x58] sm:$0xff]  }
 0x6ba   : > { %v10558_v27 = vpop.f32.mrb[79].mxu0  ;;  %v10586_v14 = vpop.f32.mrb[59].mxu1  ;;  %10651 = vmatpush3.bf16.msra.mxu0 %v12685_v50  ;;  %v12689_v5 = vld [vmem:[%s17153_s9 + $0x90] sm:$0xff]   ;;  %v12692_v22 = vld [vmem:[%s17153_s9 + $0x18] sm:$0xff]  }
 0x6bb   : > { %10956 = vpush %v8648_v8  ;;  %v10559_v58 = vadd.f32 %v10558_v27, %v10557_v4  ;;  %v10587_v61 = vadd.f32 %v10586_v14, %v10585_v30  ;;  %v8476_v7 = vadd.f32 %v10584_v21, %v8411_v33  ;;  %v8427_v23 = vadd.f32 %v10556_v51, %v16625_v48  ;;  %v12691_v51 = vld [vmem:[%s17153_s9 + $0xd8] sm:$0xff]   ;;  %v12694_v21 = vld [vmem:[%s17153_s9 + $0x60] sm:$0xff]   ;;  %v12698_v27 = vld [vmem:[%s17153_s9 + $0x68] sm:$0xff]  }
 0x6bc   : > { %10611 = vmatpush3.bf16.msra.mxu1 %v12684_v60  ;;  %10652 = vmatprep.subr.bf16.mxu0 %v12687_v2  ;;  %v12693_v8 = vld [vmem:[%s17153_s9 + $0x98] sm:$0xff]   ;;  %v12695_v4 = vld [vmem:[%s17153_s9 + $0xe0] sm:$0xff]   ;;  %v12700_v14 = vld [vmem:[%s17153_s9 + $0x28] sm:$0xff]  }
 0x6bd   : > { %v8479_v16 = vadd.f32 %v10587_v61, %v8414_v29  ;;  %v8430_v36 = vadd.f32 %v10559_v58, %v16625_v48  ;;  %v12686_v48 = vld [vmem:[%s17153_s9 + $0x50] sm:$0xff]   ;;  %v12696_v30 = vld [vmem:[%s17153_s9 + $0x20] sm:$0xff]   ;;  %v12699_v58 = vld [vmem:[%s17153_s9 + $0xe8] sm:$0xff]  }
 0x6be   : > { %10612 = vmatprep.subr.bf16.mxu1 %v12686_v48  ;;  %10653 = vmatpush3.bf16.msra.mxu0 %v12689_v5  ;;  %v12697_v33 = vld [vmem:[%s17153_s9 + $0xa0] sm:$0xff]   ;;  %v12701_v29 = vld [vmem:[%s17153_s9 + $0xa8] sm:$0xff]   ;;  %v12702_v61 = vld [vmem:[%s17153_s9 + $0x70] sm:$0xff]  }
 0x6bf   : > { %v10588_v39 = vpop.f32.mrb[60].mxu1  ;;  %v10902_v0 = vpop.f32.mrb[80].mxu0  ;;  %10654 = vmatprep.subr.bf16.mxu0 %v12691_v51 }
 0x6c0   : > { %v10589_v46 = vpop.f32.mrb[61].mxu1  ;;  %v16632_v32 = vadd.f32 %v10902_v0, %v8476_v7  ;;  %v8532_v40 = vpop.f32.mrb[81].mxu0  ;;  %v12703_v7 = vld [vmem:[%s17153_s9 + $0xf0] sm:$0xff]   ;;  %v12706_v0 = vld [vmem:[%s17153_s9 + $0x78] sm:$0xff]  }
 0x6c1   : > { %v10590_v54 = vadd.f32 %v10589_v46, %v10588_v39  ;;  %v16634_v62 = vadd.f32 %v8532_v40, %v8468_v17  ;;  %v10591_v19 = vpop.f32.mrb[62].mxu1  ;;  %v10903_v42 = vpop.f32.mrb[82].mxu0  ;;  %v12704_v39 = vld [vmem:[%s17153_s9 + $0x30] sm:$0xff]   ;;  %v12707_v46 = vld [vmem:[%s17153_s9 + $0xf8] sm:$0xff]  }
 0x6c2   : > { %v16636_v45 = vadd.f32 %v10903_v42, %v8479_v16  ;;  %v8535_v55 = vpop.f32.mrb[83].mxu0  ;;  %v10592_v26 = vpop.f32.mrb[63].mxu1  ;;  %10655 = vmatpush3.bf16.msra.mxu0 %v12693_v8  ;;  %v12705_v16 = vld [vmem:[%s17153_s9 + $0xb0] sm:$0xff]   ;;  %v12709_v40 = vld [vmem:[%s17153_s9 + $0xb8] sm:$0xff]  }
 0x6c3   : > { %v8484_v44 = vadd.f32 %v10590_v54, %v8419_v31  ;;  %v16638_v53 = vadd.f32 %v8535_v55, %v8471_v47  ;;  %v10593_v35 = vadd.f32 %v10592_v26, %v10591_v19  ;;  %v12688_v47 = vld [vmem:[%s17153_s9 + $0x10] sm:$0xff]   ;;  %10656 = vmatprep.subr.bf16.mxu0 %v12695_v4  ;;  %v12708_v31 = vld [vmem:[%s17153_s9 + $0x38] sm:$0xff]   ;;  %v12710_v54 = vld [vmem:[%s17153_s9 + $0x140] sm:$0xff]   ;;  %v16753_v55 = vpop.xlane.xlu0 %8619 }
 0x6c4   : > { %10613 = vmatpush3.bf16.msra.mxu1 %v12688_v47  ;;  %v12711_v19 = vld [vmem:[%s17153_s9 + $0x1c0] sm:$0xff]   ;;  %vm8668_vm9 = vcmp.eq.f32.partialorder %v16753_v55, inf  ;;  %vm8670_vm12 = vcmp.eq.f32.partialorder %v16753_v55, 0.0 }
 0x6c5   : > { %v8487_v18 = vadd.f32 %v10593_v35, %v8422_v20  ;;  %10614 = vmatprep.subr.bf16.mxu1 %v12690_v56 }
 0x6c6   : > { %10657 = vmatpush3.bf16.msra.mxu0 %v12697_v33 }
 0x6c7   : > { %v10594_v57 = vpop.f32.mrb[64].mxu1  ;;  %v10906_v1 = vpop.f32.mrb[84].mxu0  ;;  %10658 = vmatprep.subr.bf16.mxu0 %v12699_v58 }
 0x6c8   : > { %v10595_v41 = vpop.f32.mrb[65].mxu1  ;;  %v8548_v49 = vpop.f32.mrb[85].mxu0  ;;  %10615 = vmatpush3.bf16.msra.mxu1 %v12692_v22 }
 0x6c9   : > { %v10596_v52 = vadd.f32 %v10595_v41, %v10594_v57  ;;  %v10597_v6 = vpop.f32.mrb[66].mxu1  ;;  %v16642_v12 = vadd.f32 %v8548_v49, %v8484_v44  ;;  %v10907_v24 = vpop.f32.mrb[86].mxu0  ;;  %10616 = vmatprep.subr.bf16.mxu1 %v12694_v21 }
 0x6ca   : > { %v10598_v28 = vpop.f32.mrb[67].mxu1  ;;  %v8551_v15 = vpop.f32.mrb[87].mxu0  ;;  %10659 = vmatpush3.bf16.msra.mxu0 %v12701_v29 }
 0x6cb   : > { %v8492_v3 = vadd.f32 %v10596_v52, %v8427_v23  ;;  %v10599_v34 = vadd.f32 %v10598_v28, %v10597_v6  ;;  %v16663_v37 = vadd.f32 %v8551_v15, %v8487_v18  ;;  %10660 = vmatprep.subr.bf16.mxu0 %v12703_v7  ;;  %v16755_v57 = vpop.xlane.xlu0 %8622  ;;  %v8617_v41 = vpop.xlane.xlu1 %8616 }
 0x6cc   : > { %10617 = vmatpush3.bf16.msra.mxu1 %v12696_v30  ;;  %vm8661_vm11 = vcmp.eq.f32.partialorder %v8617_v41, inf  ;;  %vm8663_vm13 = vcmp.eq.f32.partialorder %v8617_v41, 0.0  ;;  %v8664_v50 = vand.u32 2147483648, %v8617_v41  ;;  %v8671_v30 = vand.u32 2147483648, %v16753_v55 }
 0x6cd   : > { %v16665_v13 = vadd.f32 %v10906_v1, %v8492_v3  ;;  %v8495_v17 = vadd.f32 %v10599_v34, %v8430_v36  ;;  %10618 = vmatprep.subr.bf16.mxu1 %v12698_v27  ;;  %vm8675_vm4 = vcmp.eq.f32.partialorder %v16755_v57, inf  ;;  %vm8677_vm6 = vcmp.eq.f32.partialorder %v16755_v57, 0.0 }
 0x6ce   : > { %10661 = vmatpush3.bf16.msra.mxu0 %v12705_v16  ;;  %v8678_v29 = vand.u32 2147483648, %v16755_v57 }
 0x6cf   : > { %v16679_v25 = vadd.f32 %v10907_v24, %v8495_v17  ;;  %10662 = vmatprep.subr.bf16.mxu0 %v12707_v46  ;;  %v16757_v1 = vpop.xlane.xlu0 %8628  ;;  %v8626_v52 = vpop.xlane.xlu1 %8625 }
 0x6d0   : > { %10619 = vmatpush3.bf16.msra.mxu1 %v12700_v14  ;;  %vm8682_vm1 = vcmp.eq.f32.partialorder %v8626_v52, inf  ;;  %v8685_v47 = vand.u32 2147483648, %v8626_v52  ;;  %vm8684_vm0 = vcmp.eq.f32.partialorder %v8626_v52, 0.0  ;;  %vm8689_vm14 = vcmp.eq.f32.partialorder %v16757_v1, inf }
 0x6d1   : > { %10620 = vmatprep.subr.bf16.mxu1 %v12702_v61  ;;  %vm8691_vm5 = vcmp.eq.f32.partialorder %v16757_v1, 0.0  ;;  %v8692_v7 = vand.u32 2147483648, %v16757_v1 }
 0x6d2   : > { %10663 = vmatpush3.bf16.msra.mxu0 %v12709_v40 }
 0x6d3   : > { %10728 = vmatprep.subr.bf16.mxu0 %v12711_v19  ;;  %v16759_v23 = vpop.xlane.xlu0 %8634  ;;  %v8632_v6 = vpop.xlane.xlu1 %8631 }
 0x6d4   : > { %10621 = vmatpush3.bf16.msra.mxu1 %v12704_v39  ;;  %vm8696_vm2 = vcmp.eq.f32.partialorder %v8632_v6, inf  ;;  %v8699_v5 = vand.u32 2147483648, %v8632_v6  ;;  %vm8698_vm3 = vcmp.eq.f32.partialorder %v8632_v6, 0.0  ;;  %v8706_v16 = vand.u32 2147483648, %v16759_v23 }
 0x6d5   : > { %10622 = vmatprep.subr.bf16.mxu1 %v12706_v0 }
 0x6d7   : > { %v16761_v49 = vpop.xlane.xlu0 %8587  ;;  %v8585_v39 = vpop.xlane.xlu1 %8584 }
 0x6d8   : > { %10623 = vmatpush3.bf16.msra.mxu1 %v12708_v31 }
 0x6d9   : > { %10688 = vmatprep.subr.bf16.mxu1 %v12710_v54 }
 0x6db   : > { %v16763_v24 = vpop.xlane.xlu0 %8593 }
 0x6df   : > { %v16767_v28 = vpop.xlane.xlu0 %8637 }
 0x6e0   : > { %v8713_v19 = vand.u32 2147483648, %v16767_v28 }
 0x6ec   : > { %s10957_s29 = spop %10956 }
 0x6ed   : > { %v8650_v42 = vstv %s10957_s29  ;;  %s17068_s29 = scalar_lea.hbm %s17156_s12, %s10402_s26 }
 0x6ee   : > { %12750 = vrsqrt.f32 %v8650_v42  ;;  %vm8653_vm15 = vcmp.eq.f32.partialorder %v8650_v42, inf  ;;  %v8656_v20 = vand.u32 2147483648, %v8650_v42  ;;  %vm8655_vm10 = vcmp.eq.f32.partialorder %v8650_v42, 0.0 }
 0x6ef   : > { %12752 = vrsqrt.f32 %v8617_v41 }
 0x6f0   : > { %12754 = vrsqrt.f32 %v8626_v52 }
 0x6f1   : > { %12756 = vrsqrt.f32 %v8632_v6 }
 0x6f2   : > { %12758 = vrsqrt.f32 %v16753_v55 }
 0x6f3   : > { %12760 = vrsqrt.f32 %v16755_v57 }
 0x6f4   : > { %12762 = vrsqrt.f32 %v16757_v1 }
 0x6f5   : > { %12764 = vrsqrt.f32 %v16759_v23 }
 0x6f6   : > { %12766 = vrsqrt.f32 %v16767_v28 }
 0x6f8   : > { %v12751_v44 = vpop.eup %12750 }
 0x6f9   : > { %v8652_v26 = vmul.f32 %v12751_v44, %v8650_v42  ;;  %v12753_v38 = vpop.eup %12752 }
 0x6fa   : > { %v12755_v63 = vpop.eup %12754  ;;  %v8660_v3 = vmul.f32 %v12753_v38, %v8617_v41 }
 0x6fb   : > { %v8654_v35 = vsel %vm8653_vm15, %v8650_v42, %v8652_v26  ;;  %v12757_v59 = vpop.eup %12756  ;;  %v8681_v15 = vmul.f32 %v12755_v63, %v8626_v52  ;;  %vm8703_vm15 = vcmp.eq.f32.partialorder %v16759_v23, inf  ;;  %v8591_v63 = vpop.xlane.xlu1 %8590 }
 0x6fc   : > { %v8657_v18 = vsel %vm8655_vm10, %v8656_v20, %v8654_v35  ;;  %v8695_v34 = vmul.f32 %v12757_v59, %v8632_v6  ;;  %v12759_v9 = vpop.eup %12758  ;;  %v8662_v36 = vsel %vm8661_vm11, %v8617_v41, %v8660_v3  ;;  %vm8705_vm10 = vcmp.eq.f32.partialorder %v16759_v23, 0.0 }
 0x6fd   : > { %10958 = vpush %v8657_v18  ;;  %v12761_v10 = vpop.eup %12760  ;;  %v8683_v17 = vsel %vm8682_vm1, %v8626_v52, %v8681_v15  ;;  %v8667_v56 = vmul.f32 %v12759_v9, %v16753_v55  ;;  %v8665_v22 = vsel %vm8663_vm13, %v8664_v50, %v8662_v36  ;;  %vm8710_vm11 = vcmp.eq.f32.partialorder %v16767_v28, inf }
 0x6fe   : > { %v12763_v11 = vpop.eup %12762  ;;  %v8697_v48 = vsel %vm8696_vm2, %v8632_v6, %v8695_v34  ;;  %v8674_v51 = vmul.f32 %v12761_v10, %v16755_v57  ;;  %v8686_v21 = vsel %vm8684_vm0, %v8685_v47, %v8683_v17  ;;  %vm8712_vm1 = vcmp.eq.f32.partialorder %v16767_v28, 0.0  ;;  %v8807_v47 = vld [vmem:[#allocation5 + $0x1] sm:$0xff] }
 0x6ff   : > { %v12765_v60 = vpop.eup %12764  ;;  %v8688_v8 = vmul.f32 %v12763_v11, %v16757_v1  ;;  %v8700_v4 = vsel %vm8698_vm3, %v8699_v5, %v8697_v48  ;;  %v8669_v58 = vsel %vm8668_vm9, %v16753_v55, %v8667_v56  ;;  %vm8748_vm2 = vcmask 7168  }
 0x700   : > { %v12767_v2 = vpop.eup %12766  ;;  %v8702_v33 = vmul.f32 %v12765_v60, %v16759_v23  ;;  %v8676_v14 = vsel %vm8675_vm4, %v16755_v57, %v8674_v51  ;;  %v8672_v0 = vsel %vm8670_vm12, %v8671_v30, %v8669_v58  ;;  %v8563_v60 = vmax.f32 %v16634_v62, 0.0 }
 0x701   : > { %v8709_v27 = vmul.f32 %v12767_v2, %v16767_v28  ;;  %v8690_v61 = vsel %vm8689_vm14, %v16757_v1, %v8688_v8  ;;  %v8679_v46 = vsel %vm8677_vm6, %v8678_v29, %v8676_v14  ;;  %v8564_v48 = vmax.f32 %v16638_v53, 0.0 }
 0x702   : > { %v8704_v31 = vsel %vm8703_vm15, %v16759_v23, %v8702_v33  ;;  %v8693_v54 = vsel %vm8691_vm5, %v8692_v7, %v8690_v61  ;;  %v8597_v23 = vpop.xlane.xlu1 %8596  ;;  %v8565_v56 = vmax.f32 %v16632_v32, 0.0  ;;  %v8566_v62 = vmax.f32 %v16636_v45, 0.0 }
 0x703   : > { %v8711_v40 = vsel %vm8710_vm11, %v16767_v28, %v8709_v27  ;;  %v8707_v55 = vsel %vm8705_vm10, %v8706_v16, %v8704_v31  ;;  %v8603_v27 = vpop.xlane.xlu0 %8602  ;;  %v8569_v7 = vmax.f32 %v16665_v13, 0.0 }
 0x704   : > { %v8714_v57 = vsel %vm8712_vm1, %v8713_v19, %v8711_v40  ;;  %v8799_v19 = vld [vmem:[#allocation5] sm:$0xff] }
 0x706   : > { %v8600_v36 = vpop.xlane.xlu1 %8599 }
 0x70a   : > { %v8606_v61 = vpop.xlane.xlu1 %8605 }
 0x72e   : > { %s10959_s18 = spop %10958 }
 0x72f   : > { %v8715_v42 = vstv %s10959_s18  ;;  %s9871_s18 = scalar_lea.sflag [#allocation7], %s16260_s3 }
 0x730   : > { %v8716_v44 = vmul.f32 %v8715_v42, %v8665_v22  ;;  %v8717_v26 = vmul.f32 %v8715_v42, %v8672_v0  ;;  %v8718_v20 = vmul.f32 %v8715_v42, %v8679_v46  ;;  %v8719_v35 = vmul.f32 %v8715_v42, %v8686_v21 }
 0x731   : > { %v8720_v18 = vmul.f32 %v8715_v42, %v8693_v54  ;;  %v8721_v1 = vmul.f32 %v8715_v42, %v8700_v4  ;;  %v8722_v41 = vmul.f32 %v8715_v42, %v8707_v55  ;;  %v8723_v59 = vmul.f32 %v8715_v42, %v8714_v57  ;;  %v8815_v42 = vld [vmem:[#allocation5 + $0x2] sm:$0xff] }
 0x732   : > { %v8724_v52 = vmax.f32 %v8716_v44, 1e-08  ;;  %v8725_v6 = vmax.f32 %v8717_v26, 1e-08  ;;  %v8726_v38 = vmax.f32 %v8718_v20, 1e-08 }
 0x733   : > { %v8727_v3 = vmax.f32 %v8719_v35, 1e-08  ;;  %v8728_v28 = vmax.f32 %v8720_v18, 1e-08  ;;  %v8729_v15 = vmax.f32 %v8721_v1, 1e-08 }
 0x734   : > { %12768 = vrcp.f32 %v8724_v52  ;;  %v8730_v34 = vmax.f32 %v8722_v41, 1e-08  ;;  %v8731_v9 = vmax.f32 %v8723_v59, 1e-08  ;;  %v8567_v4 = vmax.f32 %v16642_v12, 0.0  ;;  %v12712_v41 = vld [vmem:[%s17153_s9 + $0x100] sm:$0xff]  }
 0x735   : > { %12770 = vrcp.f32 %v8725_v6  ;;  %v8570_v0 = vmax.f32 %v16679_v25, 0.0  ;;  %v12714_v59 = vld [vmem:[%s17153_s9 + $0x148] sm:$0xff]  }
 0x736   : > { %12772 = vrcp.f32 %v8726_v38  ;;  %v12713_v38 = vld [vmem:[%s17153_s9 + $0x180] sm:$0xff]  }
 0x737   : > { %12774 = vrcp.f32 %v8727_v3  ;;  %v12715_v3 = vld [vmem:[%s17153_s9 + $0x1c8] sm:$0xff]  }
 0x738   : > { %12776 = vrcp.f32 %v8728_v28 }
 0x739   : > { %12778 = vrcp.f32 %v8729_v15  ;;  %v12716_v15 = vld [vmem:[%s17153_s9 + $0x108] sm:$0xff]  }
 0x73a   : > { %12780 = vrcp.f32 %v8730_v34  ;;  %v12717_v34 = vld [vmem:[%s17153_s9 + $0x188] sm:$0xff]  }
 0x73b   : > { %12782 = vrcp.f32 %v8731_v9  ;;  %v12718_v9 = vld [vmem:[%s17153_s9 + $0x150] sm:$0xff]  }
 0x73e   : > { %v12769_v10 = vpop.eup %12768 }
 0x73f   : > { %v12771_v11 = vpop.eup %12770  ;;  %v8733_v50 = vmul.f32 %v12769_v10, %v8585_v39 }
 0x740   : > { %v12773_v17 = vpop.eup %12772  ;;  %v8735_v2 = vmul.f32 %v12771_v11, %v16761_v49 }
 0x741   : > { %v12775_v5 = vpop.eup %12774  ;;  %v8737_v51 = vmul.f32 %v12773_v17, %v8591_v63  ;;  %8749 = vst.msk [vmem:[%s16805_s0] sm:$0xff] %vm8748_vm2, %v8733_v50  ;;  %v16813_v22 = vmul.f32 %v8733_v50, %v8563_v60  ;;  %v12720_v17 = vld [vmem:[%s17153_s9 + $0x110] sm:$0xff]  }
 0x742   : > { %v12777_v8 = vpop.eup %12776  ;;  %v8739_v21 = vmul.f32 %v12775_v5, %v16763_v24  ;;  %8750 = vst.msk [vmem:[%s16805_s0 + $0x8] sm:$0xff] %vm8748_vm2, %v8735_v2  ;;  %v16819_v53 = vmul.f32 %v8735_v2, %v8564_v48  ;;  %v8568_v24 = vmax.f32 %v16663_v37, 0.0  ;;  %v12721_v48 = vld [vmem:[%s17153_s9 + $0x190] sm:$0xff]   ;;  %v12723_v5 = vld [vmem:[%s17153_s9 + $0x1d8] sm:$0xff]  }
 0x743   : > { %v12779_v49 = vpop.eup %12778  ;;  %v8741_v30 = vmul.f32 %v12777_v8, %v8597_v23  ;;  %8751 = vst.msk [vmem:[%s16805_s0 + $0x10] sm:$0xff] %vm8748_vm2, %v8737_v51  ;;  %v16824_v32 = vmul.f32 %v8737_v51, %v8565_v56  ;;  %8766 = vst [vmem:[#allocation5 + $0x11] sm:$0xff] %v16813_v22  ;;  %v8873_v33 = vpack.c.bf16 %v16813_v22, %v8807_v47  ;;  %v12719_v23 = vld [vmem:[%s17153_s9 + $0x1d0] sm:$0xff]   ;;  %v12722_v47 = vld [vmem:[%s17153_s9 + $0x158] sm:$0xff]  }
 0x744   : > { %v12781_v45 = vpop.eup %12780  ;;  %v8743_v58 = vmul.f32 %v12779_v49, %v8600_v36  ;;  %8752 = vst.msk [vmem:[%s16805_s0 + $0x18] sm:$0xff] %vm8748_vm2, %v8739_v21  ;;  %v16831_v14 = vmul.f32 %v8739_v21, %v8566_v62  ;;  %8767 = vst [vmem:[#allocation5 + $0x21] sm:$0xff] %v16819_v53  ;;  %v8876_v12 = vpack.c.bf16 %v16819_v53, %v16813_v22  ;;  %v12724_v51 = vld [vmem:[%s17153_s9 + $0x118] sm:$0xff]   ;;  %v12726_v62 = vld [vmem:[%s17153_s9 + $0x160] sm:$0xff]  }
 0x745   : > { %v12783_v29 = vpop.eup %12782  ;;  %v8745_v39 = vmul.f32 %v12781_v45, %v8603_v27  ;;  %8753 = vst.msk [vmem:[%s16805_s0 + $0x20] sm:$0xff] %vm8748_vm2, %v8741_v30  ;;  %v16839_v37 = vmul.f32 %v8741_v30, %v8567_v4  ;;  %8768 = vst [vmem:[#allocation5 + $0x31] sm:$0xff] %v16824_v32  ;;  %9523 = vmatprep.mubr.bf16.mxu1 %v8873_v33  ;;  %v16844_v16 = vpack.c.bf16 %v16824_v32, %v16819_v53  ;;  %v12725_v8 = vld [vmem:[%s17153_s9 + $0x198] sm:$0xff]   ;;  %v12727_v21 = vld [vmem:[%s17153_s9 + $0x1e0] sm:$0xff]  }
 0x746   : > { %v8747_v46 = vmul.f32 %v12783_v29, %v8606_v61  ;;  %8754 = vst.msk [vmem:[%s16805_s0 + $0x28] sm:$0xff] %vm8748_vm2, %v8743_v58  ;;  %v16849_v31 = vmul.f32 %v8743_v58, %v8568_v24  ;;  %8769 = vst [vmem:[#allocation5 + $0x41] sm:$0xff] %v16831_v14  ;;  %v8885_v13 = vpack.c.bf16 %v16831_v14, %v16824_v32  ;;  %v12728_v24 = vld [vmem:[%s17153_s9 + $0x120] sm:$0xff]   ;;  %v12730_v29 = vld [vmem:[%s17153_s9 + $0x168] sm:$0xff]  }
 0x747   : > { %8755 = vst.msk [vmem:[%s16805_s0 + $0x30] sm:$0xff] %vm8748_vm2, %v8745_v39  ;;  %v16856_v40 = vmul.f32 %v8745_v39, %v8569_v7  ;;  %8770 = vst [vmem:[#allocation5 + $0x51] sm:$0xff] %v16839_v37  ;;  %v16861_v54 = vpack.c.bf16 %v16839_v37, %v16831_v14  ;;  %v12729_v27 = vld [vmem:[%s17153_s9 + $0x1a0] sm:$0xff]   ;;  %v12731_v61 = vld [vmem:[%s17153_s9 + $0x1e8] sm:$0xff]  }
 0x748   : > { %8756 = vst.msk [vmem:[%s16805_s0 + $0x38] sm:$0xff] %vm8748_vm2, %v8747_v46  ;;  %v16865_v25 = vmul.f32 %v8747_v46, %v8570_v0  ;;  %8771 = vst [vmem:[#allocation5 + $0x61] sm:$0xff] %v16849_v31  ;;  %v8894_v44 = vpack.c.bf16 %v16849_v31, %v16839_v37  ;;  %v12732_v39 = vld [vmem:[%s17153_s9 + $0x128] sm:$0xff]   ;;  %v12734_v46 = vld [vmem:[%s17153_s9 + $0x170] sm:$0xff]  }
 0x749   : > { %8772 = vst [vmem:[#allocation5 + $0x71] sm:$0xff] %v16856_v40  ;;  %v16873_v26 = vpack.c.bf16 %v16856_v40, %v16849_v31  ;;  %v12733_v0 = vld [vmem:[%s17153_s9 + $0x1a8] sm:$0xff]   ;;  %v12745_v22 = vld [vmem:[%s17153_s9 + $0x218] sm:$0xff]   ;;  %v12746_v53 = vld [vmem:[%s17153_s9 + $0x220] sm:$0xff]  }
 0x74a   : > { %8773 = vst [vmem:[#allocation5 + $0x81] sm:$0xff] %v16865_v25  ;;  %v8823_v20 = vld [vmem:[#allocation5 + $0x10] sm:$0xff]  ;;  %v8903_v55 = vpack.c.bf16 %v16865_v25, %v16856_v40  ;;  %v12747_v32 = vld [vmem:[%s17153_s9 + $0x228] sm:$0xff]   ;;  %v12749_v37 = vld [vmem:[%s17153_s9 + $0x238] sm:$0xff]  }
 0x74b   : > { %v16876_v35 = vld [vmem:[#allocation5 + $0x12] sm:$0xff]  ;;  %v8824_v57 = vld [vmem:[#allocation5 + $0x20] sm:$0xff]  ;;  %v8872_v18 = vpack.c.bf16 %v8823_v20, %v8799_v19 }
 0x74c   : > { %v8874_v1 = vpack.c.bf16 %v16876_v35, %v8815_v42  ;;  %v8875_v52 = vpack.c.bf16 %v8824_v57, %v8823_v20  ;;  %v8825_v6 = vld [vmem:[#allocation5 + $0x30] sm:$0xff]  ;;  %v16906_v10 = vld [vmem:[#allocation5 + $0x22] sm:$0xff]  ;;  %v10320_v40 = vld [vmem:[%s17154_s10] ss:$0 sm:$0xff] }
 0x74d   : > { %9524 = vmatmul.mubr.bf16.vlgmr.msra.gmra.mrb[68].mxu1 %v8872_v18  ;;  %v8826_v63 = vld [vmem:[#allocation5 + $0x40] sm:$0xff]  ;;  %v16908_v11 = vld [vmem:[#allocation5 + $0x32] sm:$0xff]  ;;  %v16910_v36 = vpack.c.bf16 %v8825_v6, %v8824_v57 }
 0x74e   : > { %9588 = vmatprep.mubr.bf16.mxu0 %v8875_v52  ;;  %9531 = vmatprep.mubr.bf16.mxu1 %v16844_v16  ;;  %v8884_v28 = vpack.c.bf16 %v8826_v63, %v8825_v6  ;;  %v8827_v60 = vld [vmem:[#allocation5 + $0x50] sm:$0xff]  ;;  %v16921_v2 = vpack.c.bf16 %v16908_v11, %v16906_v10  ;;  %v8819_v49 = vld [vmem:[#allocation5 + $0x42] sm:$0xff]  ;;  %v12738_v6 = vld [vmem:[%s17153_s9 + $0x178] sm:$0xff]  }
 0x74f   : > { %9589 = vmatmul.mubr.bf16.vlgmr.msra.gmra.mrb[88].mxu0 %v8874_v1  ;;  %10689 = vmatpush3.bf16.msra.mxu1 %v12712_v41  ;;  %v8828_v50 = vld [vmem:[#allocation5 + $0x60] sm:$0xff]  ;;  %v16943_v4 = vld [vmem:[#allocation5 + $0x52] sm:$0xff]  ;;  %v16945_v30 = vpack.c.bf16 %v8827_v60, %v8826_v63  ;;  %v8877_v1 = vpack.c.bf16 %v16906_v10, %v16876_v35 }
 0x750   : > { %9596 = vmatprep.mubr.bf16.mxu0 %v8884_v28  ;;  %10729 = vmatpush3.bf16.msra.mxu0 %v12713_v38  ;;  %v8893_v56 = vpack.c.bf16 %v8828_v50, %v8827_v60  ;;  %v8829_v33 = vld [vmem:[#allocation5 + $0x70] sm:$0xff]  ;;  %v16957_v58 = vpack.c.bf16 %v16943_v4, %v8819_v49  ;;  %v8821_v42 = vld [vmem:[#allocation5 + $0x62] sm:$0xff]  ;;  %v12739_v38 = vld [vmem:[%s17153_s9 + $0x1f8] sm:$0xff]  }
 0x751   : > { %10690 = vmatprep.subr.bf16.mxu1 %v12714_v59  ;;  %10730 = vmatprep.subr.bf16.mxu0 %v12715_v3  ;;  %v16947_v45 = vld [vmem:[#allocation5 + $0x80] sm:$0xff]  ;;  %v12735_v19 = vld [vmem:[%s17153_s9 + $0x1f0] sm:$0xff]   ;;  %v8899_v57 = vpack.c.bf16 %v8829_v33, %v8828_v50  ;;  %v12740_v35 = vld [vmem:[%s17153_s9 + $0x138] sm:$0xff]   ;;  %v8886_v3 = vpack.c.bf16 %v8819_v49, %v16908_v11 }
 0x752   : > { %v8902_v7 = vpack.c.bf16 %v16947_v45, %v8829_v33  ;;  %v8822_v20 = vld [vmem:[#allocation5 + $0x72] sm:$0xff]  ;;  %v12742_v59 = vld [vmem:[%s17153_s9 + $0x200] sm:$0xff]   ;;  %v12743_v28 = vld [vmem:[%s17153_s9 + $0x208] sm:$0xff]  }
 0x753   : > { %10691 = vmatpush3.bf16.msra.mxu1 %v12716_v15  ;;  %v12736_v18 = vld [vmem:[%s17153_s9 + $0x130] sm:$0xff]   ;;  %v16988_v52 = vpack.c.bf16 %v8822_v20, %v8821_v42  ;;  %v12741_v63 = vld [vmem:[%s17153_s9 + $0x1b8] sm:$0xff]   ;;  %v8895_v15 = vpack.c.bf16 %v8821_v42, %v16943_v4 }
 0x754   : > { %10731 = vmatpush3.bf16.msra.mxu0 %v12717_v34  ;;  %10692 = vmatprep.subr.bf16.mxu1 %v12718_v9  ;;  %v12737_v41 = vld [vmem:[%s17153_s9 + $0x1b0] sm:$0xff]  }
 0x755   : > { %9532 = vmatmul.mubr.bf16.gmra.mrb[72].mxu1 %v16910_v36  ;;  %10732 = vmatprep.subr.bf16.mxu0 %v12719_v23  ;;  %v8871_v31 = vld [vmem:[#allocation5 + $0x92] sm:$0xff] }
 0x756   : > { %9539 = vmatprep.mubr.bf16.mxu1 %v16861_v54 }
 0x757   : > { %9597 = vmatmul.mubr.bf16.gmra.mrb[92].mxu0 %v16921_v2  ;;  %10693 = vmatpush3.bf16.msra.mxu1 %v12720_v17 }
 0x758   : > { %9604 = vmatprep.mubr.bf16.mxu0 %v8893_v56  ;;  %10733 = vmatpush3.bf16.msra.mxu0 %v12721_v48 }
 0x759   : > { %10694 = vmatprep.subr.bf16.mxu1 %v12722_v47  ;;  %10734 = vmatprep.subr.bf16.mxu0 %v12723_v5 }
 0x75b   : > { %10695 = vmatpush3.bf16.msra.mxu1 %v12724_v51 }
 0x75c   : > { %10735 = vmatpush3.bf16.msra.mxu0 %v12725_v8  ;;  %10696 = vmatprep.subr.bf16.mxu1 %v12726_v62 }
 0x75d   : > { %9540 = vmatmul.mubr.bf16.gmra.mrb[76].mxu1 %v16945_v30  ;;  %10736 = vmatprep.subr.bf16.mxu0 %v12727_v21 }
 0x75e   : > { %9547 = vmatprep.mubr.bf16.mxu1 %v16873_v26 }
 0x75f   : > { %9605 = vmatmul.mubr.bf16.gmra.mrb[96].mxu0 %v16957_v58  ;;  %10697 = vmatpush3.bf16.msra.mxu1 %v12728_v24 }
 0x760   : > { %9612 = vmatprep.mubr.bf16.mxu0 %v8902_v7  ;;  %10737 = vmatpush3.bf16.msra.mxu0 %v12729_v27 }
 0x761   : > { %10698 = vmatprep.subr.bf16.mxu1 %v12730_v29  ;;  %10738 = vmatprep.subr.bf16.mxu0 %v12731_v61 }
 0x763   : > { %10699 = vmatpush3.bf16.msra.mxu1 %v12732_v39 }
 0x764   : > { %10739 = vmatpush3.bf16.msra.mxu0 %v12733_v0  ;;  %10700 = vmatprep.subr.bf16.mxu1 %v12734_v46 }
 0x765   : > { %9548 = vmatmul.mubr.bf16.gmra.mrb[80].mxu1 %v8899_v57  ;;  %10740 = vmatprep.subr.bf16.mxu0 %v12735_v19 }
 0x766   : > { %9653 = vmatprep.mubr.bf16.mxu1 %v8877_v1 }
 0x767   : > { %9613 = vmatmul.mubr.bf16.gmra.mrb[100].mxu0 %v16988_v52  ;;  %10701 = vmatpush3.bf16.msra.mxu1 %v12736_v18 }
 0x768   : > { %10741 = vmatpush3.bf16.msra.mxu0 %v12737_v41  ;;  %9718 = vmatprep.mubr.bf16.mxu0 %v16844_v16  ;;  %v12744_v16 = vld [vmem:[%s17153_s9 + $0x210] sm:$0xff]  }
 0x769   : > { %10702 = vmatprep.subr.bf16.mxu1 %v12738_v6  ;;  %10742 = vmatprep.subr.bf16.mxu0 %v12739_v38 }
 0x76b   : > { %10703 = vmatpush3.bf16.msra.mxu1 %v12740_v35 }
 0x76c   : > { %10743 = vmatpush3.bf16.msra.mxu0 %v12741_v63  ;;  %10908 = vmatprep.subr.bf16.mxu1 %v12742_v59 }
 0x76d   : > { %10932 = vmatprep.subr.bf16.mxu0 %v17336_v43 }
 0x76e   : > { %9654 = vmatmul.mubr.bf16.vlgmr.msra.gmra.mrb[84].mxu1 %v8876_v12  ;;  %v8846_v12 = vld [vmem:[#allocation5 + $0x82] sm:$0xff] }
 0x76f   : > { %9719 = vmatmul.mubr.bf16.vlgmr.msra.gmra.mrb[104].mxu0 %v16910_v36  ;;  %9661 = vmatprep.mubr.bf16.mxu1 %v8886_v3  ;;  %v8904_v34 = vpack.c.bf16 %v8846_v12, %v8822_v20 }
 0x770   : > { %9726 = vmatprep.mubr.bf16.mxu0 %v16861_v54  ;;  %10909 = vmatpush3.bf16.msra.mxu1 %v12742_v59  ;;  %v8863_v54 = vld [vmem:[#allocation5 + $0x91] sm:$0xff] }
 0x771   : > { %10910 = vmatprep.subr.bf16.mxu1 %v12743_v28  ;;  %v8906_v14 = vpack.c.bf16 %v8863_v54, %v16865_v25 }
 0x774   : > { %10911 = vmatpush3.bf16.msra.mxu1 %v12743_v28 }
 0x775   : > { %10912 = vmatprep.subr.bf16.mxu1 %v12744_v16 }
 0x776   : > { %9662 = vmatmul.mubr.bf16.gmra.mrb[88].mxu1 %v8885_v13  ;;  %v12748_v13 = vld [vmem:[%s17153_s9 + $0x230] sm:$0xff]  }
 0x777   : > { %9727 = vmatmul.mubr.bf16.gmra.mrb[108].mxu0 %v16945_v30  ;;  %9669 = vmatprep.mubr.bf16.mxu1 %v8895_v15 }
 0x778   : > { %9734 = vmatprep.mubr.bf16.mxu0 %v16873_v26  ;;  %10913 = vmatpush3.bf16.msra.mxu1 %v12744_v16  ;;  %v8855_v26 = vld [vmem:[#allocation5 + $0x90] sm:$0xff] }
 0x779   : > { %10914 = vmatprep.subr.bf16.mxu1 %v12745_v22  ;;  %v8905_v9 = vpack.c.bf16 %v8855_v26, %v16947_v45 }
 0x77c   : > { %10915 = vmatpush3.bf16.msra.mxu1 %v12745_v22 }
 0x77d   : > { %10916 = vmatprep.subr.bf16.mxu1 %v12746_v53 }
 0x77e   : > { %9670 = vmatmul.mubr.bf16.gmra.mrb[92].mxu1 %v8894_v44  ;;  %v8907_v44 = vpack.c.bf16 %v8871_v31, %v8846_v12 }
 0x77f   : > { %9735 = vmatmul.mubr.bf16.gmra.mrb[112].mxu0 %v8899_v57  ;;  %9677 = vmatprep.mubr.bf16.mxu1 %v8904_v34 }
 0x780   : > { %9742 = vmatprep.mubr.bf16.mxu0 %v8906_v14  ;;  %10917 = vmatpush3.bf16.msra.mxu1 %v12746_v53 }
 0x781   : > { %10918 = vmatprep.subr.bf16.mxu1 %v12747_v32 }
 0x784   : > { %10919 = vmatpush3.bf16.msra.mxu1 %v12747_v32 }
 0x785   : > { %10920 = vmatprep.subr.bf16.mxu1 %v12748_v13 }
 0x786   : > { %9678 = vmatmul.mubr.bf16.gmra.mrb[96].mxu1 %v8903_v55 }
 0x787   : > { %9743 = vmatmul.mubr.bf16.gmra.mrb[116].mxu0 %v8905_v9  ;;  %10924 = vmatprep.mubr.bf16.mxu1 %v16921_v2 }
 0x788   : > { %10921 = vmatpush3.bf16.msra.mxu1 %v12748_v13  ;;  %10940 = vmatprep.mubr.msk.bf16.mxu0 %vm12910_vm7, %v17336_v43 }
 0x789   : > { %10922 = vmatprep.subr.bf16.mxu1 %v12749_v37 }
 0x78c   : > { %10923 = vmatpush3.bf16.msra.mxu1 %v12749_v37 }
 0x78f   : > { %10925 = vmatmul.mubr.bf16.vlgmr.msra.gmra.mrb[100].mxu1 %v16957_v58 }
 0x790   : > { %10928 = vmatprep.mubr.bf16.mxu1 %v16988_v52 }
 0x797   : > { %10929 = vmatmul.mubr.bf16.gmra.mrb[104].mxu1 %v8907_v44 }
 0x820   : > { %v10624_v23 = vpop.f32.mrb[68].mxu1 }
 0x821   : > { %v10625_v25 = vpop.f32.mrb[69].mxu1 }
 0x822   : > { %v10664_v55 = vpop.f32.mrb[88].mxu0  ;;  %v10626_v10 = vadd.f32 %v10625_v25, %v10624_v23  ;;  %v10627_v11 = vpop.f32.mrb[70].mxu1 }
 0x823   : > { %v10665_v36 = vpop.f32.mrb[89].mxu0  ;;  %v10628_v60 = vpop.f32.mrb[71].mxu1 }
 0x824   : > { %v9526_v50 = vadd.f32 %v10626_v10, %v10320_v40  ;;  %v10666_v17 = vadd.f32 %v10665_v36, %v10664_v55  ;;  %v10667_v48 = vpop.f32.mrb[90].mxu0  ;;  %v10629_v2 = vadd.f32 %v10628_v60, %v10627_v11 }
 0x825   : > { %v10668_v47 = vpop.f32.mrb[91].mxu0 }
 0x826   : > { %v9591_v5 = vadd.f32 %v10666_v17, %v9526_v50  ;;  %v9529_v56 = vadd.f32 %v10629_v2, %v10320_v40  ;;  %v10669_v51 = vadd.f32 %v10668_v47, %v10667_v48 }
 0x828   : > { %v9594_v8 = vadd.f32 %v10669_v51, %v9529_v56  ;;  %v10630_v62 = vpop.f32.mrb[72].mxu1 }
 0x829   : > { %v10631_v21 = vpop.f32.mrb[73].mxu1 }
 0x82a   : > { %v10670_v49 = vpop.f32.mrb[92].mxu0  ;;  %v10632_v4 = vadd.f32 %v10631_v21, %v10630_v62  ;;  %v10633_v30 = vpop.f32.mrb[74].mxu1 }
 0x82b   : > { %v10671_v33 = vpop.f32.mrb[93].mxu0  ;;  %v10634_v45 = vpop.f32.mrb[75].mxu1 }
 0x82c   : > { %v9534_v24 = vadd.f32 %v10632_v4, %v10320_v40  ;;  %v10672_v27 = vadd.f32 %v10671_v33, %v10670_v49  ;;  %v10673_v58 = vpop.f32.mrb[94].mxu0  ;;  %v10635_v29 = vadd.f32 %v10634_v45, %v10633_v30 }
 0x82d   : > { %v10674_v61 = vpop.f32.mrb[95].mxu0 }
 0x82e   : > { %v9599_v7 = vadd.f32 %v10672_v27, %v9534_v24  ;;  %v9537_v39 = vadd.f32 %v10635_v29, %v10320_v40  ;;  %v10675_v0 = vadd.f32 %v10674_v61, %v10673_v58 }
 0x830   : > { %v9602_v46 = vadd.f32 %v10675_v0, %v9537_v39  ;;  %v10636_v19 = vpop.f32.mrb[76].mxu1 }
 0x831   : > { %v10637_v42 = vpop.f32.mrb[77].mxu1 }
 0x832   : > { %v10676_v20 = vpop.f32.mrb[96].mxu0  ;;  %v10638_v57 = vadd.f32 %v10637_v42, %v10636_v19  ;;  %v10639_v18 = vpop.f32.mrb[78].mxu1 }
 0x833   : > { %v10677_v1 = vpop.f32.mrb[97].mxu0  ;;  %v10640_v41 = vpop.f32.mrb[79].mxu1 }
 0x834   : > { %v9542_v52 = vadd.f32 %v10638_v57, %v10320_v40  ;;  %v10678_v6 = vadd.f32 %v10677_v1, %v10676_v20  ;;  %v10679_v38 = vpop.f32.mrb[98].mxu0  ;;  %v10641_v35 = vadd.f32 %v10640_v41, %v10639_v18 }
 0x835   : > { %v10680_v63 = vpop.f32.mrb[99].mxu0 }
 0x836   : > { %v9607_v59 = vadd.f32 %v10678_v6, %v9542_v52  ;;  %v9545_v3 = vadd.f32 %v10641_v35, %v10320_v40  ;;  %v10681_v28 = vadd.f32 %v10680_v63, %v10679_v38 }
 0x838   : > { %v9610_v16 = vadd.f32 %v10681_v28, %v9545_v3  ;;  %v10642_v15 = vpop.f32.mrb[80].mxu1 }
 0x839   : > { %v10643_v22 = vpop.f32.mrb[81].mxu1 }
 0x83a   : > { %v10682_v53 = vpop.f32.mrb[100].mxu0  ;;  %v10644_v12 = vadd.f32 %v10643_v22, %v10642_v15  ;;  %v10645_v54 = vpop.f32.mrb[82].mxu1 }
 0x83b   : > { %v10683_v34 = vpop.f32.mrb[101].mxu0  ;;  %v10646_v32 = vpop.f32.mrb[83].mxu1 }
 0x83c   : > { %v9550_v14 = vadd.f32 %v10644_v12, %v10320_v40  ;;  %v10684_v13 = vadd.f32 %v10683_v34, %v10682_v53  ;;  %v10685_v26 = vpop.f32.mrb[102].mxu0  ;;  %v10647_v9 = vadd.f32 %v10646_v32, %v10645_v54 }
 0x83d   : > { %v10686_v37 = vpop.f32.mrb[103].mxu0 }
 0x83e   : > { %v9615_v31 = vadd.f32 %v10684_v13, %v9550_v14  ;;  %v9553_v44 = vadd.f32 %v10647_v9, %v10320_v40  ;;  %v10687_v23 = vadd.f32 %v10686_v37, %v10685_v26 }
 0x840   : > { %v9618_v25 = vadd.f32 %v10687_v23, %v9553_v44 }
 0x841   : > { %v10704_v55 = vpop.f32.mrb[84].mxu1 }
 0x842   : > { %v10744_v10 = vpop.f32.mrb[104].mxu0  ;;  %v10705_v11 = vpop.f32.mrb[85].mxu1 }
 0x843   : > { %v10706_v36 = vadd.f32 %v10705_v11, %v10704_v55  ;;  %v10745_v60 = vpop.f32.mrb[105].mxu0  ;;  %v10707_v50 = vpop.f32.mrb[86].mxu1 }
 0x844   : > { %v10746_v17 = vadd.f32 %v10745_v60, %v10744_v10  ;;  %v10747_v48 = vpop.f32.mrb[106].mxu0  ;;  %v10708_v2 = vpop.f32.mrb[87].mxu1 }
 0x845   : > { %v9656_v47 = vadd.f32 %v10706_v36, %v9591_v5  ;;  %v10709_v56 = vadd.f32 %v10708_v2, %v10707_v50  ;;  %v10748_v51 = vpop.f32.mrb[107].mxu0 }
 0x846   : > { %v10749_v62 = vadd.f32 %v10748_v51, %v10747_v48 }
 0x847   : > { %v9659_v21 = vadd.f32 %v10709_v56, %v9594_v8  ;;  %v9721_v49 = vadd.f32 %v10746_v17, %v9656_v47 }
 0x849   : > { %v10710_v4 = vpop.f32.mrb[88].mxu1  ;;  %v9724_v30 = vadd.f32 %v10749_v62, %v9659_v21 }
 0x84a   : > { %v10750_v40 = vpop.f32.mrb[108].mxu0  ;;  %v10711_v33 = vpop.f32.mrb[89].mxu1 }
 0x84b   : > { %v10712_v45 = vadd.f32 %v10711_v33, %v10710_v4  ;;  %v10751_v24 = vpop.f32.mrb[109].mxu0  ;;  %v10713_v27 = vpop.f32.mrb[90].mxu1 }
 0x84c   : > { %v10752_v58 = vadd.f32 %v10751_v24, %v10750_v40  ;;  %v10753_v29 = vpop.f32.mrb[110].mxu0  ;;  %v10714_v61 = vpop.f32.mrb[91].mxu1 }
 0x84d   : > { %v9664_v39 = vadd.f32 %v10712_v45, %v9599_v7  ;;  %v10715_v0 = vadd.f32 %v10714_v61, %v10713_v27  ;;  %v10754_v19 = vpop.f32.mrb[111].mxu0 }
 0x84e   : > { %v10755_v42 = vadd.f32 %v10754_v19, %v10753_v29 }
 0x84f   : > { %v9667_v5 = vadd.f32 %v10715_v0, %v9602_v46  ;;  %v9729_v20 = vadd.f32 %v10752_v58, %v9664_v39 }
 0x851   : > { %v10716_v57 = vpop.f32.mrb[92].mxu1  ;;  %v9732_v18 = vadd.f32 %v10755_v42, %v9667_v5  ;;  %v9824_v5 = vld [vmem:[%s17155_s11] sm:$0x1] }
 0x852   : > { %v10756_v8 = vpop.f32.mrb[112].mxu0  ;;  %v10717_v1 = vpop.f32.mrb[93].mxu1 }
 0x853   : > { %v10718_v41 = vadd.f32 %v10717_v1, %v10716_v57  ;;  %v10757_v52 = vpop.f32.mrb[113].mxu0  ;;  %v10719_v6 = vpop.f32.mrb[94].mxu1 }
 0x854   : > { %v10758_v38 = vadd.f32 %v10757_v52, %v10756_v8  ;;  %v10759_v35 = vpop.f32.mrb[114].mxu0  ;;  %v10720_v63 = vpop.f32.mrb[95].mxu1 }
 0x855   : > { %v9672_v3 = vadd.f32 %v10718_v41, %v9607_v59  ;;  %v10721_v28 = vadd.f32 %v10720_v63, %v10719_v6  ;;  %v10760_v15 = vpop.f32.mrb[115].mxu0 }
 0x856   : > { %v10761_v22 = vadd.f32 %v10760_v15, %v10759_v35 }
 0x857   : > { %v9675_v7 = vadd.f32 %v10721_v28, %v9610_v16  ;;  %v9737_v53 = vadd.f32 %v10758_v38, %v9672_v3 }
 0x859   : > { %v10722_v12 = vpop.f32.mrb[96].mxu1  ;;  %v9740_v54 = vadd.f32 %v10761_v22, %v9675_v7 }
 0x85a   : > { %v10762_v46 = vpop.f32.mrb[116].mxu0  ;;  %v10723_v34 = vpop.f32.mrb[97].mxu1 }
 0x85b   : > { %v10724_v32 = vadd.f32 %v10723_v34, %v10722_v12  ;;  %v10763_v14 = vpop.f32.mrb[117].mxu0  ;;  %v10725_v13 = vpop.f32.mrb[98].mxu1 }
 0x85c   : > { %v10764_v26 = vadd.f32 %v10763_v14, %v10762_v46  ;;  %v10765_v9 = vpop.f32.mrb[118].mxu0  ;;  %v10726_v37 = vpop.f32.mrb[99].mxu1 }
 0x85d   : > { %v9680_v44 = vadd.f32 %v10724_v32, %v9615_v31  ;;  %v10727_v23 = vadd.f32 %v10726_v37, %v10725_v13  ;;  %v10766_v55 = vpop.f32.mrb[119].mxu0 }
 0x85e   : > { %v10767_v10 = vadd.f32 %v10766_v55, %v10765_v9 }
 0x85f   : > { %v9683_v59 = vadd.f32 %v10727_v23, %v9618_v25  ;;  %v9745_v11 = vadd.f32 %v10764_v26, %v9680_v44 }
 0x861   : > { %v9748_v36 = vadd.f32 %v10767_v10, %v9683_v59 }
 0x862   : > { %v10926_v60 = vpop.f32.mrb[100].mxu1 }
 0x863   : > { %v9794_v16 = vadd.f32 %v10926_v60, %v9729_v20  ;;  %v9785_v50 = vpop.f32.mrb[101].mxu1 }
 0x864   : > { %v9786_v17 = vadd.f32 %v9785_v50, %v9721_v49  ;;  %v10927_v48 = vpop.f32.mrb[102].mxu1 }
 0x865   : > { %v9797_v2 = vadd.f32 %v10927_v48, %v9732_v18  ;;  %v9788_v47 = vpop.f32.mrb[103].mxu1  ;;  %v9818_v51 = vmax.f32 %v9794_v16, 0.0 }
 0x866   : > { %v9789_v56 = vadd.f32 %v9788_v47, %v9724_v30  ;;  %v9816_v21 = vmax.f32 %v9786_v17, 0.0 }
 0x867   : > { %v9819_v62 = vmax.f32 %v9797_v2, 0.0 }
 0x868   : > { %v9817_v4 = vmax.f32 %v9789_v56, 0.0 }
 0x869   : > { %v9826_v40 = vpack.c.bf16 %v9819_v62, %v9818_v51 }
 0x86a   : > { %v9825_v31 = vpack.c.bf16 %v9817_v4, %v9816_v21  ;;  %v10930_v33 = vpop.f32.mrb[104].mxu1 }
 0x86b   : > { %v9810_v45 = vadd.f32 %v10930_v33, %v9745_v11  ;;  %v9801_v24 = vpop.f32.mrb[105].mxu1 }
 0x86c   : > { %v9802_v25 = vadd.f32 %v9801_v24, %v9737_v53  ;;  %v10931_v27 = vpop.f32.mrb[106].mxu1  ;;  %10933 = vmatpush3.bf16.xpose.msra.mxu0 %v9825_v31 }
 0x86d   : > { %v9813_v58 = vadd.f32 %v10931_v27, %v9748_v36  ;;  %v9804_v29 = vpop.f32.mrb[107].mxu1  ;;  %10934 = vmatprep.subr.bf16.mxu0 %v17336_v43  ;;  %v9822_v30 = vmax.f32 %v9810_v45, 0.0 }
 0x86e   : > { %v9805_v49 = vadd.f32 %v9804_v29, %v9740_v54  ;;  %v9820_v39 = vmax.f32 %v9802_v25, 0.0 }
 0x86f   : > { %v9823_v61 = vmax.f32 %v9813_v58, 0.0 }
 0x870   : > { %v9821_v0 = vmax.f32 %v9805_v49, 0.0 }
 0x871   : > { %v9828_v19 = vpack.c.bf16 %v9823_v61, %v9822_v30 }
 0x872   : > { %v9827_v42 = vpack.c.bf16 %v9821_v0, %v9820_v39 }
 0x874   : > { %10935 = vmatpush3.bf16.xpose.msra.mxu0 %v9826_v40 }
 0x875   : > { %10936 = vmatprep.subr.bf16.mxu0 %v17336_v43 }
 0x87c   : > { %10937 = vmatpush3.bf16.xpose.msra.mxu0 %v9827_v42 }
 0x87d   : > { %10938 = vmatprep.subr.bf16.mxu0 %v17336_v43 }
 0x884   : > { %10939 = vmatpush3.bf16.xpose.msra.mxu0 %v9828_v19 }
 0x88b   : > { %10941 = vmatmul.mubr.bf16.vlgmr.msra.gmra.mrb[120].mxu0 %v9824_v5 }
 0x88c   : > { %12812 = shalt.err (!%p12809_p3)
}
 0x88d   : > { %s12813_s0 = scalar_lea.hbm %s17068_s29, 1024  ;;  %s12817_s24 = scalar_lea.hbm %s17156_s12, 2048 }
 0x88e   : > { %p12814_p4 = scmp.ne.s32.totalorder %s17068_s29, %s12813_s0  ;;  %p12818_p9 = scmp.lt.u32.totalorder %s17068_s29, %s17156_s12 }
 0x88f   : > { %p12819_p10 = scmp.lt.u32.totalorder %s12817_s24, %s12813_s0  ;;  %p12821_p12 = scmp.lt.u32.totalorder %s12813_s0, %s17068_s29 }
 0x890   : > { %p12815_p7 = pnand %p12814_p4, %p13033_p5 }
 0x891   : > { %p12820_p11 = por %p12819_p10, %p12818_p9 }
 0x892   : > { %p12816_p8 = pneg %p12815_p7 }
 0x893   : > { %p12822_p13 = por %p12821_p12, %p12820_p11 }
 0x895   : > { %p12823_p0 = pnand %p12822_p13, %p12816_p8 }
 0x897   : > { %12826 = shalt.err (!%p12823_p0)
}
 0x898   : > { %s12912_s25 = smov 128   ;;  %s12913_s20 = smov 8  }
 0x899   : > { %10960 = dma.vmem_to_hbm [thread:$0]  (%p13033_p5), %s17070_s17, 1024, %s17068_s29, %s9871_s18, %s12912_s25, %s12912_s25, %s12913_s20  }
 0x89a   : > { %s10396_s26 = sshll.u32 %s13016_s22, 4  ;;  %s17444_s27 = scalar_lea.vmem [#allocation8], %s16260_s3 }
 0x89b   : > { %s17100_s0 = scalar_lea.hbm %s17157_s13, %s10396_s26  ;;  %s9913_s16 = sshll.u32 %s17444_s27, 4  ;;  %s9914_s16 = int_to_ptr.vmem [resolvable:$true] %s9913_s16 }
 0x89c   : > { %s9876_s1 = scalar_lea.sflag [#allocation9], %s16260_s3  ;;  %s12827_s2 = scalar_lea.vmem %s9914_s16, 16 }
 0x89d   : > { %p12828_p1 = scmp.ne.s32.totalorder %s9914_s16, %s12827_s2  ;;  %s12914_s4 = smov [#allocation8]  }
 0x89e   : > { %s12831_s5 = sshll.u32 %s12914_s4, 4  ;;  %s12832_s5 = int_to_ptr.vmem [resolvable:$false] %s12831_s5 }
 0x89f   : > { %p12829_p2 = pnand %p12828_p1, %p13033_p5  ;;  %s12833_s6 = scalar_lea.vmem %s12832_s5, 32 }
 0x8a0   : > { %p12834_p4 = scmp.lt.s32.totalorder %s9914_s16, %s12832_s5  ;;  %p12835_p7 = scmp.lt.s32.totalorder %s12833_s6, %s12827_s2 }
 0x8a1   : > { %p12830_p3 = pneg %p12829_p2 }
 0x8a2   : > { %p12836_p8 = por %p12835_p7, %p12834_p4 }
 0x8a4   : > { %p12837_p9 = pnand %p12836_p8, %p12830_p3 }
 0x8a6   : > { %12840 = shalt.err (!%p12837_p9)
}
 0x8a7   : > { %s12841_s22 = scalar_lea.hbm %s17100_s0, 16  ;;  %s12845_s4 = scalar_lea.hbm %s17157_s13, 32 }
 0x8a8   : > { %p12842_p10 = scmp.ne.s32.totalorder %s17100_s0, %s12841_s22  ;;  %p12846_p13 = scmp.lt.u32.totalorder %s17100_s0, %s17157_s13 }
 0x8a9   : > { %p12847_p0 = scmp.lt.u32.totalorder %s12845_s4, %s12841_s22  ;;  %p12849_p2 = scmp.lt.u32.totalorder %s12841_s22, %s17100_s0 }
 0x8aa   : > { %p12843_p11 = pnand %p12842_p10, %p13033_p5 }
 0x8ab   : > { %p12848_p1 = por %p12847_p0, %p12846_p13 }
 0x8ac   : > { %p12844_p12 = pneg %p12843_p11 }
 0x8ad   : > { %p12850_p3 = por %p12849_p2, %p12848_p1 }
 0x8af   : > { %p12851_p4 = pnand %p12850_p3, %p12844_p12 }
 0x8b1   : > { %12854 = shalt.err (!%p12851_p4)
}
 0x8b2   : > { %10961 = dma.vmem_to_hbm [thread:$0]  (%p13033_p5), %s9914_s16, 16, %s17100_s0, %s9876_s1  }
 0x8b3   : > { %s10087_s2 = sshll.u32 %s13233_s30, 1 }
 0x8b4   : > { %s558_s25 = scalar_lea.vmem %s17159_s15, %s10087_s2 }
 0x95e   : > { %v9863_v43 = vpop.f32.mrb[120].mxu0 }
 0x95f   : > { %9869 = vst.msk [vmem:[%s558_s25] sm:$0x3] %vm7783_vm8, %v9863_v43  ;;  %v10942_v20 = vpop.f32.mrb[121].mxu0 }
 0x960   : > { %v9866_v57 = vpop.f32.mrb[122].mxu0 }
 0x961   : > { %v10943_v18 = vpop.f32.mrb[123].mxu0 }
 0x962 PF: > { %s17445_s20 = sld [smem:[#allocation12_spill]]  ;;  %p10971_p7 = scmp.ge.s32.totalorder %s12893_s21, 2 }
 0x964   : > { %p10965_p8 = pnand %p10971_p7, %p13037_p6 }
 0x968   : > { %s9931_s28 = sand.u32 1, %s17445_s20  }
 0x969   : > { %s9932_s1 = scalar_lea.sflag [#allocation7], %s9931_s28 }
 0x96a   : > { %12872 = dma.done.wait (!%p10965_p8), %s9932_s1, 1024  }
 0x96b   : > { %12874 = vsyncadd (!%p10965_p8), %s9932_s1, 4294966272  ;;  %s9941_s30 = scalar_lea.sflag [#allocation9], %s9931_s28 }
 0x96c   : > { %12876 = dma.done.wait (!%p10965_p8), %s9941_s30, 16  }
 0x96d   : > { %12878 = vsyncadd (!%p10965_p8), %s9941_s30, 4294967280  ;;  %s17447_s21 = sld [smem:[#allocation14_spill]]  ;;  %s17448_s23 = sld [smem:[#allocation13_spill]] }
 0x96e   : > { %s17449_s20 = sld [smem:[#allocation15_spill]]  ;;  %s17450_s18 = smov %s12885_s19 }
 0x973   : > { %p29_p5 = scmp.ge.s32.totalorder %s17447_s21, 4   ;;  %s17451_s19 = smov %s17448_s23 }
 0x975   :  { %31 = sbr.rel (!%p29_p5) target bundleno = 13 (0xd), region = 163 }
 0x97c   :  { %9960 = vsyncpa [#allocation7], 1 }
 0x97d   :  { %9962 = vsyncpa [#allocation7 + $0x1], 1 }
 0x97e   :  { %9963 = vsyncpa [#allocation9], 1 }
 0x97f   :  { %9965 = vsyncpa [#allocation9 + $0x1], 1 }

</bundles_post_ra>
